<compile_context>
chip_gen: v5e
topology: v5e:2x2
jax: 0.10.0
libtpu: 0.0.40
codegen_flags: <defaults>
</compile_context>

<pallas_src>
import functools

import numpy as np
import jax
import jax.numpy as jnp
from jax.experimental import pallas as pl
from jax.experimental.pallas import tpu as pltpu


LANES = 128


def _round_up(n, m):
    return ((n + m - 1) // m) * m


# ----------------------------------------------------------------------------
# Layout helpers (XLA glue; cheap, one pass or metadata-only)
# ----------------------------------------------------------------------------

def to_padded_flat(x):
    """(N, C, H, W) -> (N, C, Lp) with zero 1-pixel ring and zero tail, Lp = rup((H+2)(W+2), 128)."""
    N, C, H, W = x.shape
    xp = jnp.pad(x, ((0, 0), (0, 0), (1, 1), (1, 1)))
    L = (H + 2) * (W + 2)
    Lp = _round_up(L, LANES)
    flat = xp.reshape(N, C, L)
    return jnp.pad(flat, ((0, 0), (0, 0), (0, Lp - L)))


def from_padded_flat(y, H, W):
    """(B, C, Lp) -> (B, C, H, W) valid region."""
    B, C, _ = y.shape
    L = (H + 2) * (W + 2)
    return y[:, :, :L].reshape(B, C, H + 2, W + 2)[:, :, 1:H + 1, 1:W + 1]


def _valid_mask(H, W, Lp):
    m2 = np.zeros((H + 2, W + 2), np.float32)
    m2[1:H + 1, 1:W + 1] = 1.0
    flat = np.zeros((1, Lp), np.float32)
    flat[0, :(H + 2) * (W + 2)] = m2.reshape(-1)
    return jnp.asarray(flat)


def refit(y, hw_cur, hw_tgt):
    """Match F.pad with possibly-negative padding (crop), then restore zero ring + tail."""
    N, C, _ = (int(s) for s in y.shape)
    h, w = hw_cur
    th, tw = hw_tgt
    L = (h + 2) * (w + 2)
    y4 = y[:, :, :L].reshape(N, C, h + 2, w + 2)[:, :, 1:h + 1, 1:w + 1]
    dY, dX = th - h, tw - w
    py0, py1 = dY // 2, dY - dY // 2
    px0, px1 = dX // 2, dX - dX // 2
    y4 = jax.lax.pad(y4, jnp.zeros((), y4.dtype),
                     ((0, 0, 0), (0, 0, 0), (py0, py1, 0), (px0, px1, 0)))
    y4 = jnp.pad(y4, ((0, 0), (0, 0), (1, 1), (1, 1)))
    Lt = (th + 2) * (tw + 2)
    Lpt = _round_up(Lt, LANES)
    flat = y4.reshape(N, C, Lt)
    return jnp.pad(flat, ((0, 0), (0, 0), (0, Lpt - Lt)))


# ----------------------------------------------------------------------------
# Fused multi-stage kernel:  [3x3 conv (roll-taps, one MXU matmul) + IN + PReLU] x n_stages,
# optional 1x1 head (+bias, +softplus).  Grid = (batch, weight-group).
# ----------------------------------------------------------------------------

def _fused_stages_kernel(*refs, n_x, n_stages, wp, Lp, inv_cnt,
                         has_head, head_softplus, keep_feat):
    pos = 0
    x_refs = refs[pos:pos + n_x]; pos += n_x
    st_refs = refs[pos:pos + 3 * n_stages]; pos += 3 * n_stages
    a_ref = refs[pos]; pos += 1
    wh_ref = bh_ref = None
    if has_head:
        wh_ref, bh_ref = refs[pos], refs[pos + 1]; pos += 2
    mask_ref = refs[pos]; pos += 1
    out_refs = refs[pos:]

    g_idx = pl.program_id(1)
    mask = mask_ref[...]                                   # (1, Lp) f32, 1 on valid pixels

    # Keep f32 for the rolls (32-bit XLU rotate), cast the stacked tap matrix to bf16 once.
    xs = [r[0].astype(jnp.float32) for r in x_refs]
    y = None
    for s in range(n_stages):
        w_ref, gm_ref, bt_ref = st_refs[3 * s:3 * s + 3]
        taps = []
        for kh in range(3):
            for kw in range(3):
                d = (kh - 1) * wp + (kw - 1)
                for xb in xs:                              # torch.cat channel order
                    if d == 0:
                        taps.append(xb)
                    else:
                        # result[p] = x[(p+d) mod Lp]; wraps only hit pad-ring/tail slots.
                        taps.append(pltpu.roll(xb, shift=(-d) % Lp, axis=1))
        tapmat = jnp.concatenate(taps, axis=0).astype(jnp.bfloat16)   # (9*Cin_tot, Lp)
        acc = jnp.dot(w_ref[0], tapmat,
                      preferred_element_type=jnp.float32)             # (Cout, Lp) f32

        # InstanceNorm (affine), masked centered two-pass stats over the H*W valid pixels.
        mean = jnp.sum(acc * mask, axis=1, keepdims=True) * inv_cnt
        cen = (acc - mean) * mask
        var = jnp.sum(cen * cen, axis=1, keepdims=True) * inv_cnt
        y = (acc - mean) * jax.lax.rsqrt(var + 1e-5)
        y = y * gm_ref[0] + bt_ref[0]
        alpha = a_ref[g_idx, s]                                       # PReLU scalar (SMEM)
        y = jnp.where(y >= 0.0, y, alpha * y)
        y = y * mask                                                  # restore zero ring/tail
        xs = [y]

    oi = 0
    if keep_feat:
        out_refs[oi][0] = y.astype(out_refs[oi].dtype)
        oi += 1
    if has_head:
        h = jnp.dot(wh_ref[0], y.astype(jnp.bfloat16),
                    preferred_element_type=jnp.float32) + bh_ref[0]
        if head_softplus:  # torch.nn.Softplus (beta=1, threshold=20)
            h = jnp.where(h > 20.0, h, jnp.log1p(jnp.exp(jnp.minimum(h, 20.0))))
        out_refs[oi][0] = h.astype(out_refs[oi].dtype)


def fused_conv_block(xs, stages, hw, *, head=None, head_softplus=False,
                     keep_feat=True, feat_dtype=jnp.bfloat16):
    """xs: list of (N, Cin_k, Lp) activations (channel-concatenated in-kernel, torch.cat
    order).  stages: list of conv3x3 param dicts (w (G,Cout,9*Cin), g, b, a).  head:
    optional 1x1 conv dict (w (G,Ch,Cin_h), b).  Grid = (N, G)."""
    H, W = hw
    Wp = W + 2
    L = (H + 2) * Wp
    Lp = _round_up(L, LANES)
    N = int(xs[0].shape[0])
    G = int(stages[0]["w"].shape[0])
    n_stages = len(stages)
    c_last = int(stages[-1]["w"].shape[1])
    assert sum(int(x.shape[1]) for x in xs) * 9 == int(stages[0]["w"].shape[2])

    in_specs, args = [], []
    for x in xs:
        cin_k = int(x.shape[1])
        in_specs.append(pl.BlockSpec((1, cin_k, Lp), lambda n, g: (n, 0, 0)))
        args.append(x)
    for st in stages:
        _, cout_s, k_s = (int(v) for v in st["w"].shape)
        in_specs.append(pl.BlockSpec((1, cout_s, k_s), lambda n, g: (g, 0, 0)))
        in_specs.append(pl.BlockSpec((1, cout_s, 1), lambda n, g: (g, 0, 0)))
        in_specs.append(pl.BlockSpec((1, cout_s, 1), lambda n, g: (g, 0, 0)))
        args += [st["w"], st["g"], st["b"]]
    alpha = jnp.stack([st["a"] for st in stages], axis=1)              # (G, n_stages)
    in_specs.append(pl.BlockSpec(memory_space=pltpu.MemorySpace.SMEM))
    args.append(alpha)
    if head is not None:
        _, ch, cin_h = (int(v) for v in head["w"].shape)
        in_specs.append(pl.BlockSpec((1, ch, cin_h), lambda n, g: (g, 0, 0)))
        in_specs.append(pl.BlockSpec((1, ch, 1), lambda n, g: (g, 0, 0)))
        args += [head["w"], head["b"]]
    in_specs.append(pl.BlockSpec((1, Lp), lambda n, g: (0, 0)))
    args.append(_valid_mask(H, W, Lp))

    out_shapes, out_specs = [], []
    if keep_feat:
        out_shapes.append(jax.ShapeDtypeStruct((G * N, c_last, Lp), feat_dtype))
        out_specs.append(pl.BlockSpec((1, c_last, Lp), lambda n, g: (g * N + n, 0, 0)))
    if head is not None:
        ch = int(head["w"].shape[1])
        out_shapes.append(jax.ShapeDtypeStruct((G * N, ch, Lp), jnp.float32))
        out_specs.append(pl.BlockSpec((1, ch, Lp), lambda n, g: (g * N + n, 0, 0)))

    kernel = functools.partial(
        _fused_stages_kernel, n_x=len(xs), n_stages=n_stages, wp=Wp, Lp=Lp,
        inv_cnt=1.0 / float(H * W), has_head=head is not None,
        head_softplus=head_softplus, keep_feat=keep_feat)

    single = len(out_shapes) == 1
    return pl.pallas_call(
        kernel,
        grid=(N, G),
        out_shape=out_shapes[0] if single else tuple(out_shapes),
        in_specs=in_specs,
        out_specs=out_specs[0] if single else tuple(out_specs),
        compiler_params=pltpu.CompilerParams(
            dimension_semantics=("parallel", "arbitrary")),
    )(*args)


# ----------------------------------------------------------------------------
# Stride-2 3x3 conv + InstanceNorm + PReLU (patch-matrix input, 2 layers total)
# ----------------------------------------------------------------------------

def _patch_conv_in_prelu_kernel(p_ref, w_ref, g_ref, b_ref, a_ref, o_ref):
    pm = p_ref[0].astype(jnp.bfloat16)                                  # (Cin*9, M)
    acc = jnp.dot(w_ref[0], pm, preferred_element_type=jnp.float32)     # (Cout, M)
    mean = jnp.mean(acc, axis=1, keepdims=True)
    cen = acc - mean
    var = jnp.mean(cen * cen, axis=1, keepdims=True)
    y = cen * jax.lax.rsqrt(var + 1e-5)
    y = y * g_ref[0] + b_ref[0]
    alpha = a_ref[0]
    o_ref[0] = jnp.where(y >= 0.0, y, alpha * y).astype(o_ref.dtype)


def fused_conv3x3_s2(x, p, hw):
    """Stride-2 conv: small glue-side tap gather, fused matmul+IN+PReLU kernel,
    output re-packed into padded-flat bf16 layout."""
    N, cin, _ = (int(s) for s in x.shape)
    H, W = hw
    Hp, Wp = H + 2, W + 2
    L = Hp * Wp
    Ho = (H - 1) // 2 + 1
    Wo = (W - 1) // 2 + 1
    M = Ho * Wo
    gr, cout, k = (int(s) for s in p["w"].shape)
    assert gr == 1 and k == cin * 9

    x4 = x[:, :, :L].reshape(N, cin, Hp, Wp)
    taps = []
    for kh in range(3):
        for kw in range(3):
            taps.append(x4[:, :, kh:kh + 2 * Ho - 1:2, kw:kw + 2 * Wo - 1:2])
    pmat = jnp.stack(taps, axis=2).reshape(N, cin * 9, M)               # ci-major, k-minor

    out = pl.pallas_call(
        _patch_conv_in_prelu_kernel,
        grid=(N,),
        out_shape=jax.ShapeDtypeStruct((N, cout, M), jnp.bfloat16),
        in_specs=[pl.BlockSpec((1, cin * 9, M), lambda n: (n, 0, 0)),
                  pl.BlockSpec((1, cout, cin * 9), lambda n: (0, 0, 0)),
                  pl.BlockSpec((1, cout, 1), lambda n: (0, 0, 0)),
                  pl.BlockSpec((1, cout, 1), lambda n: (0, 0, 0)),
                  pl.BlockSpec(memory_space=pltpu.MemorySpace.SMEM)],
        out_specs=pl.BlockSpec((1, cout, M), lambda n: (n, 0, 0)),
        compiler_params=pltpu.CompilerParams(dimension_semantics=("parallel",)),
    )(pmat, p["w"], p["g"], p["b"], p["a"])

    out4 = out.reshape(N, cout, Ho, Wo)
    out_pad = jnp.pad(out4, ((0, 0), (0, 0), (1, 1), (1, 1)))
    L2 = (Ho + 2) * (Wo + 2)
    Lp2 = _round_up(L2, LANES)
    flat = out_pad.reshape(N, cout, L2)
    flat = jnp.pad(flat, ((0, 0), (0, 0), (0, Lp2 - L2)))
    return flat, (Ho, Wo)


# ----------------------------------------------------------------------------
# Bilinear 2x upsample (align_corners=True), batched per image
# ----------------------------------------------------------------------------

def _upsample2x_kernel(x_ref, ah_ref, awt_ref, o_ref):
    x = x_ref[0].astype(jnp.float32)                             # (C, Hp, Wp)
    C = x.shape[0]
    ah = jnp.broadcast_to(ah_ref[...], (C,) + ah_ref.shape)      # (C, Hop, Hp)
    awt = jnp.broadcast_to(awt_ref[...], (C,) + awt_ref.shape)   # (C, Wp, Wop)
    t = jnp.einsum('coh,chw->cow', ah, x, preferred_element_type=jnp.float32)
    o = jnp.einsum('cow,cwq->coq', t, awt, preferred_element_type=jnp.float32)
    o_ref[0] = o.astype(o_ref.dtype)


def _interp_matrix_padded(n_out, n_in):
    """(n_out+2, n_in+2) interp matrix mapping padded input grid to padded output grid;
    first/last rows are zero (fresh zero ring on the output)."""
    A = np.zeros((n_out + 2, n_in + 2), np.float32)
    for o in range(n_out):
        src = 0.0 if (n_out == 1 or n_in == 1) else o * (n_in - 1) / (n_out - 1)
        i0 = min(int(np.floor(src)), n_in - 1)
        i1 = min(i0 + 1, n_in - 1)
        w = src - i0
        A[o + 1, i0 + 1] += 1.0 - w
        A[o + 1, i1 + 1] += w
    return jnp.asarray(A)


def upsample2x(y, hw):
    nb, C, _ = (int(s) for s in y.shape)
    H, W = hw
    Hp, Wp = H + 2, W + 2
    L = Hp * Wp
    Ho, Wo = 2 * H, 2 * W
    Hop, Wop = Ho + 2, Wo + 2
    Lo = Hop * Wop
    Lpo = _round_up(Lo, LANES)
    ah = _interp_matrix_padded(Ho, H)            # (Hop, Hp)
    awt = _interp_matrix_padded(Wo, W).T         # (Wp, Wop)
    x4 = y[:, :, :L].reshape(nb, C, Hp, Wp)
    out = pl.pallas_call(
        _upsample2x_kernel,
        grid=(nb,),
        out_shape=jax.ShapeDtypeStruct((nb, C, Hop, Wop), jnp.bfloat16),
        in_specs=[pl.BlockSpec((1, C, Hp, Wp), lambda n: (n, 0, 0, 0)),
                  pl.BlockSpec((Hop, Hp), lambda n: (0, 0)),
                  pl.BlockSpec((Wp, Wop), lambda n: (0, 0))],
        out_specs=pl.BlockSpec((1, C, Hop, Wop), lambda n: (n, 0, 0, 0)),
        compiler_params=pltpu.CompilerParams(dimension_semantics=("parallel",)),
    )(x4, ah, awt)
    flat = out.reshape(nb, C, Lo)
    flat = jnp.pad(flat, ((0, 0), (0, 0), (0, Lpo - Lo)))
    return flat, (Ho, Wo)


# ----------------------------------------------------------------------------
# Parameter init (kernel-ready formats: pre-transposed, bf16, once at init)
# ----------------------------------------------------------------------------

def init_conv3x3_params(key, cin, cout, stride, groups=1):
    w = 0.1 * jax.random.normal(key, (groups, cout, cin, 3, 3), jnp.float32)
    if stride == 1:
        # (G, Cout, 9*Cin), k-major / channel-minor (matches roll-tap matrix order).
        wk = jnp.transpose(w, (0, 1, 3, 4, 2)).reshape(groups, cout, 9 * cin)
    else:
        # (G, Cout, Cin*9), channel-major / k-minor (matches glue patch-matrix order).
        wk = w.reshape(groups, cout, cin * 9)
    return dict(w=wk.astype(jnp.bfloat16),
                g=jnp.ones((groups, cout, 1), jnp.float32),
                b=jnp.zeros((groups, cout, 1), jnp.float32),
                a=jnp.full((groups,), 0.25, jnp.float32))


def init_double_conv(key, cin, cout, step, groups=1):
    k1, k2 = jax.random.split(key)
    return dict(c1=init_conv3x3_params(k1, cin, cout, step, groups),
                c2=init_conv3x3_params(k2, cout, cout, 1, groups))


def init_conv1x1_params(key, cin, cout, groups=1):
    kw, kb = jax.random.split(key)
    return dict(w=(0.1 * jax.random.normal(kw, (groups, cout, cin),
                                           jnp.float32)).astype(jnp.bfloat16),
                b=0.1 * jax.random.normal(kb, (groups, cout, 1), jnp.float32))


def init_unet_cms(key, in_ch, width, depth, class_no):
    keys = jax.random.split(key, 2 * depth + 2)
    enc, dec = [], []
    for i in range(depth):
        if i == 0:
            enc.append(init_double_conv(keys[i], in_ch, width, 1))
            dec.append(init_double_conv(keys[depth + i], width * 2, width, 1))
        elif i < depth - 1:
            enc.append(init_double_conv(keys[i], width * 2 ** (i - 1), width * 2 ** i, 2))
            dec.append(init_double_conv(keys[depth + i], width * 2 ** (i + 1),
                                        width * 2 ** (i - 1), 1))
        else:
            enc.append(init_double_conv(keys[i], width * 2 ** (i - 1),
                                        width * 2 ** (i - 1), 2))
            dec.append(init_double_conv(keys[depth + i], width * 2 ** i,
                                        width * 2 ** (i - 1), 1))
    final = init_conv1x1_params(keys[2 * depth], width, class_no)
    kh1, kh2, kh3 = jax.random.split(keys[2 * depth + 1], 3)
    # 3 confusion-matrix heads, parameters stacked along a group axis (batched via grid).
    cm_heads = dict(dc1=init_double_conv(kh1, width, width, 1, groups=3),
                    dc2=init_double_conv(kh2, width, width, 1, groups=3),
                    last=init_conv1x1_params(kh3, width, class_no ** 2, groups=3))
    return dict(encoders=enc, decoders=dec, final=final, cm_heads=cm_heads)


# ----------------------------------------------------------------------------
# Forward pass
# ----------------------------------------------------------------------------

def unet_cms_forward(params, x, depth, class_no):
    N, _, H, W = x.shape
    y = to_padded_flat(x)
    hw = (H, W)
    enc_feats = []
    for i, enc in enumerate(params["encoders"]):
        if i == 0:
            y = fused_conv_block([y], [enc["c1"], enc["c2"]], hw)
        else:
            y, hw = fused_conv3x3_s2(y, enc["c1"], hw)
            y = fused_conv_block([y], [enc["c2"]], hw)
        enc_feats.append((y, hw))

    y_seg_flat = None
    for i in range(depth):
        y, hw = upsample2x(y, hw)
        y_e, hw_e = enc_feats[-(i + 1)]
        if hw_e != hw:
            y = refit(y, hw, hw_e)
            hw = hw_e
        dec = params["decoders"][-(i + 1)]
        if i == depth - 1:
            # last decoder: fuse the final 1x1 segmentation head into the same kernel,
            # keep the feature map for the CM heads.
            y, y_seg_flat = fused_conv_block([y_e, y], [dec["c1"], dec["c2"]], hw,
                                             head=params["final"], head_softplus=False,
                                             keep_feat=True)
        else:
            # skip concat happens inside the fused kernel (two input refs)
            y = fused_conv_block([y_e, y], [dec["c1"], dec["c2"]], hw)

    # Entire CM annotator path (4 convs + 1x1 + softplus) for all 3 heads in one call.
    heads = params["cm_heads"]
    y_noisy_flat = fused_conv_block(
        [y],
        [heads["dc1"]["c1"], heads["dc1"]["c2"], heads["dc2"]["c1"], heads["dc2"]["c2"]],
        hw, head=heads["last"], head_softplus=True, keep_feat=False)     # (3N, c^2, Lp)

    y_out = from_padded_flat(y_seg_flat, H, W)                           # (N, c, H, W)
    yn = from_padded_flat(y_noisy_flat, H, W).reshape(3, N, class_no ** 2, H, W)
    return y_out, [yn[i] for i in range(3)]


# ----------------------------------------------------------------------------
# Main
# ----------------------------------------------------------------------------

if __name__ == "__main__":
    in_ch, width, depth, class_no = 3, 8, 3, 2
    key = jax.random.PRNGKey(0)
    kp, kx = jax.random.split(key)
    params = init_unet_cms(kp, in_ch, width, depth, class_no)
    x = jax.random.normal(kx, (2, in_ch, 16, 16), jnp.float32)

    fwd = jax.jit(functools.partial(unet_cms_forward, depth=depth, class_no=class_no))
    y, y_noisy = fwd(params, x)
    y = jax.block_until_ready(y)
    y_noisy = [jax.block_until_ready(t) for t in y_noisy]

    assert y.shape == (2, class_no, 16, 16), y.shape
    assert len(y_noisy) == 3
    assert all(t.shape == (2, class_no ** 2, 16, 16) for t in y_noisy)
    assert all(bool(jnp.all(t >= 0.0)) for t in y_noisy)  # softplus outputs
    assert bool(jnp.all(jnp.isfinite(y)))
    print("KERNEL_OK")
</pallas_src>

<mosaic_0001>
module attributes {stable_mosaic.version = 11 : i64} {
  func.func @_fused_stages_kernel(%arg0: i32, %arg1: i32, %arg2: memref<1x3x384xf32, #tpu.memory_space<vmem>>, %arg3: memref<1x8x27xbf16, #tpu.memory_space<vmem>>, %arg4: memref<1x8x1xf32, #tpu.memory_space<vmem>>, %arg5: memref<1x8x1xf32, #tpu.memory_space<vmem>>, %arg6: memref<1x8x72xbf16, #tpu.memory_space<vmem>>, %arg7: memref<1x8x1xf32, #tpu.memory_space<vmem>>, %arg8: memref<1x8x1xf32, #tpu.memory_space<vmem>>, %arg9: memref<1x2xf32, #tpu.memory_space<smem>>, %arg10: memref<1x384xf32, #tpu.memory_space<vmem>>, %arg11: memref<1x8x384xbf16, #tpu.memory_space<vmem>>) attributes {dimension_semantics = [#tpu.dimension_semantics<parallel>, #tpu.dimension_semantics<arbitrary>], iteration_bounds = array<i64: 2, 1>, scalar_prefetch = 0 : i64, scratch_operands = 0 : i64, tpu.core_type = #tpu.core_type<tc>, window_params = [{transform_indices = @transform_0, window_bounds = array<i64: 1, 3, 384>}, {transform_indices = @transform_1, window_bounds = array<i64: 1, 8, 27>}, {transform_indices = @transform_2, window_bounds = array<i64: 1, 8, 1>}, {transform_indices = @transform_3, window_bounds = array<i64: 1, 8, 1>}, {transform_indices = @transform_4, window_bounds = array<i64: 1, 8, 72>}, {transform_indices = @transform_5, window_bounds = array<i64: 1, 8, 1>}, {transform_indices = @transform_6, window_bounds = array<i64: 1, 8, 1>}, {transform_indices = @transform_7, window_bounds = array<i64: 1, 2>}, {pipeline_mode = #tpu.pipeline_mode<synchronous>, transform_indices = @transform_8, window_bounds = array<i64: 1, 384>}, {transform_indices = @transform_9, window_bounds = array<i64: 1, 8, 384>}]} {
    %c0 = arith.constant 0 : index
    %c0_0 = arith.constant 0 : index
    %0 = vector.load %arg10[%c0, %c0_0] : memref<1x384xf32, #tpu.memory_space<vmem>>, vector<1x384xf32>
    %c0_1 = arith.constant 0 : index
    %c0_2 = arith.constant 0 : index
    %c0_3 = arith.constant 0 : index
    %1 = vector.load %arg2[%c0_1, %c0_2, %c0_3] : memref<1x3x384xf32, #tpu.memory_space<vmem>>, vector<1x3x384xf32>
    %2 = vector.shape_cast %1 : vector<1x3x384xf32> to vector<3x384xf32>
    %c19_i32 = arith.constant 19 : i32
    %3 = tpu.dynamic_rotate %2 by %c19_i32 dim 1 : vector<3x384xf32>, i32 -> vector<3x384xf32>
    %c18_i32 = arith.constant 18 : i32
    %4 = tpu.dynamic_rotate %2 by %c18_i32 dim 1 : vector<3x384xf32>, i32 -> vector<3x384xf32>
    %c17_i32 = arith.constant 17 : i32
    %5 = tpu.dynamic_rotate %2 by %c17_i32 dim 1 : vector<3x384xf32>, i32 -> vector<3x384xf32>
    %c1_i32 = arith.constant 1 : i32
    %6 = tpu.dynamic_rotate %2 by %c1_i32 dim 1 : vector<3x384xf32>, i32 -> vector<3x384xf32>
    %c383_i32 = arith.constant 383 : i32
    %7 = tpu.dynamic_rotate %2 by %c383_i32 dim 1 : vector<3x384xf32>, i32 -> vector<3x384xf32>
    %c367_i32 = arith.constant 367 : i32
    %8 = tpu.dynamic_rotate %2 by %c367_i32 dim 1 : vector<3x384xf32>, i32 -> vector<3x384xf32>
    %c366_i32 = arith.constant 366 : i32
    %9 = tpu.dynamic_rotate %2 by %c366_i32 dim 1 : vector<3x384xf32>, i32 -> vector<3x384xf32>
    %c365_i32 = arith.constant 365 : i32
    %10 = tpu.dynamic_rotate %2 by %c365_i32 dim 1 : vector<3x384xf32>, i32 -> vector<3x384xf32>
    %11 = tpu.concatenate %3, %4, %5, %6, %2, %7, %8, %9, %10 in 0 : vector<3x384xf32>, vector<3x384xf32>, vector<3x384xf32>, vector<3x384xf32>, vector<3x384xf32>, vector<3x384xf32>, vector<3x384xf32>, vector<3x384xf32>, vector<3x384xf32> -> vector<27x384xf32>
    %12 = arith.truncf %11 : vector<27x384xf32> to vector<27x384xbf16>
    %c0_4 = arith.constant 0 : index
    %c0_5 = arith.constant 0 : index
    %c0_6 = arith.constant 0 : index
    %13 = vector.load %arg3[%c0_4, %c0_5, %c0_6] : memref<1x8x27xbf16, #tpu.memory_space<vmem>>, vector<1x8x27xbf16>
    %14 = vector.shape_cast %13 : vector<1x8x27xbf16> to vector<8x27xbf16>
    %cst = arith.constant dense<0.000000e+00> : vector<8x384xf32>
    %15 = tpu.matmul %14, %12, %cst {dimension_numbers = #tpu.dot_dimension_numbers<[1], [0], [0], [1], [0, 0, 1, 1], [], []>} : vector<8x27xbf16>, vector<27x384xbf16>, vector<8x384xf32> -> vector<8x384xf32>
    %16 = vector.broadcast %0 : vector<1x384xf32> to vector<8x384xf32>
    %17 = arith.mulf %15, %16 : vector<8x384xf32>
    %cst_7 = arith.constant dense<0.000000e+00> : vector<8xf32>
    %18 = vector.multi_reduction <add>, %17, %cst_7 [1] : vector<8x384xf32> to vector<8xf32>
    %19 = vector.shape_cast %18 : vector<8xf32> to vector<8x1xf32>
    %cst_8 = arith.constant 3.906250e-03 : f32
    %20 = vector.broadcast %cst_8 : f32 to vector<8x1xf32>
    %21 = arith.mulf %19, %20 : vector<8x1xf32>
    %22 = vector.broadcast %21 : vector<8x1xf32> to vector<8x384xf32>
    %23 = arith.subf %15, %22 : vector<8x384xf32>
    %24 = vector.broadcast %0 : vector<1x384xf32> to vector<8x384xf32>
    %25 = arith.mulf %23, %24 : vector<8x384xf32>
    %26 = arith.mulf %25, %25 : vector<8x384xf32>
    %cst_9 = arith.constant dense<0.000000e+00> : vector<8xf32>
    %27 = vector.multi_reduction <add>, %26, %cst_9 [1] : vector<8x384xf32> to vector<8xf32>
    %28 = vector.shape_cast %27 : vector<8xf32> to vector<8x1xf32>
    %cst_10 = arith.constant 3.906250e-03 : f32
    %29 = vector.broadcast %cst_10 : f32 to vector<8x1xf32>
    %30 = arith.mulf %28, %29 : vector<8x1xf32>
    %31 = vector.broadcast %21 : vector<8x1xf32> to vector<8x384xf32>
    %32 = arith.subf %15, %31 : vector<8x384xf32>
    %cst_11 = arith.constant 9.99999974E-6 : f32
    %33 = vector.broadcast %cst_11 : f32 to vector<8x1xf32>
    %34 = arith.addf %30, %33 : vector<8x1xf32>
    %35 = math.rsqrt %34 : vector<8x1xf32>
    %36 = vector.broadcast %35 : vector<8x1xf32> to vector<8x384xf32>
    %37 = arith.mulf %32, %36 : vector<8x384xf32>
    %c0_12 = arith.constant 0 : index
    %c0_13 = arith.constant 0 : index
    %c0_14 = arith.constant 0 : index
    %38 = vector.load %arg4[%c0_12, %c0_13, %c0_14] : memref<1x8x1xf32, #tpu.memory_space<vmem>>, vector<1x8x1xf32>
    %39 = vector.shape_cast %38 : vector<1x8x1xf32> to vector<8x1xf32>
    %40 = vector.broadcast %39 : vector<8x1xf32> to vector<8x384xf32>
    %41 = arith.mulf %37, %40 : vector<8x384xf32>
    %c0_15 = arith.constant 0 : index
    %c0_16 = arith.constant 0 : index
    %c0_17 = arith.constant 0 : index
    %42 = vector.load %arg5[%c0_15, %c0_16, %c0_17] : memref<1x8x1xf32, #tpu.memory_space<vmem>>, vector<1x8x1xf32>
    %43 = vector.shape_cast %42 : vector<1x8x1xf32> to vector<8x1xf32>
    %44 = vector.broadcast %43 : vector<8x1xf32> to vector<8x384xf32>
    %45 = arith.addf %41, %44 : vector<8x384xf32>
    %46 = arith.index_cast %arg1 : i32 to index
    %c0_18 = arith.constant 0 : index
    %47 = memref.load %arg9[%46, %c0_18] : memref<1x2xf32, #tpu.memory_space<smem>>
    %cst_19 = arith.constant 0.000000e+00 : f32
    %48 = vector.broadcast %cst_19 : f32 to vector<8x384xf32>
    %49 = arith.cmpf oge, %45, %48 : vector<8x384xf32>
    %50 = vector.broadcast %47 : f32 to vector<8x384xf32>
    %51 = arith.mulf %50, %45 : vector<8x384xf32>
    %52 = arith.select %49, %45, %51 : vector<8x384xi1>, vector<8x384xf32>
    %53 = vector.broadcast %0 : vector<1x384xf32> to vector<8x384xf32>
    %54 = arith.mulf %52, %53 : vector<8x384xf32>
    %c19_i32_20 = arith.constant 19 : i32
    %55 = tpu.dynamic_rotate %54 by %c19_i32_20 dim 1 : vector<8x384xf32>, i32 -> vector<8x384xf32>
    %c18_i32_21 = arith.constant 18 : i32
    %56 = tpu.dynamic_rotate %54 by %c18_i32_21 dim 1 : vector<8x384xf32>, i32 -> vector<8x384xf32>
    %c17_i32_22 = arith.constant 17 : i32
    %57 = tpu.dynamic_rotate %54 by %c17_i32_22 dim 1 : vector<8x384xf32>, i32 -> vector<8x384xf32>
    %c1_i32_23 = arith.constant 1 : i32
    %58 = tpu.dynamic_rotate %54 by %c1_i32_23 dim 1 : vector<8x384xf32>, i32 -> vector<8x384xf32>
    %c383_i32_24 = arith.constant 383 : i32
    %59 = tpu.dynamic_rotate %54 by %c383_i32_24 dim 1 : vector<8x384xf32>, i32 -> vector<8x384xf32>
    %c367_i32_25 = arith.constant 367 : i32
    %60 = tpu.dynamic_rotate %54 by %c367_i32_25 dim 1 : vector<8x384xf32>, i32 -> vector<8x384xf32>
    %c366_i32_26 = arith.constant 366 : i32
    %61 = tpu.dynamic_rotate %54 by %c366_i32_26 dim 1 : vector<8x384xf32>, i32 -> vector<8x384xf32>
    %c365_i32_27 = arith.constant 365 : i32
    %62 = tpu.dynamic_rotate %54 by %c365_i32_27 dim 1 : vector<8x384xf32>, i32 -> vector<8x384xf32>
    %63 = tpu.concatenate %55, %56, %57, %58, %54, %59, %60, %61, %62 in 0 : vector<8x384xf32>, vector<8x384xf32>, vector<8x384xf32>, vector<8x384xf32>, vector<8x384xf32>, vector<8x384xf32>, vector<8x384xf32>, vector<8x384xf32>, vector<8x384xf32> -> vector<72x384xf32>
    %64 = arith.truncf %63 : vector<72x384xf32> to vector<72x384xbf16>
    %c0_28 = arith.constant 0 : index
    %c0_29 = arith.constant 0 : index
    %c0_30 = arith.constant 0 : index
    %65 = vector.load %arg6[%c0_28, %c0_29, %c0_30] : memref<1x8x72xbf16, #tpu.memory_space<vmem>>, vector<1x8x72xbf16>
    %66 = vector.shape_cast %65 : vector<1x8x72xbf16> to vector<8x72xbf16>
    %cst_31 = arith.constant dense<0.000000e+00> : vector<8x384xf32>
    %67 = tpu.matmul %66, %64, %cst_31 {dimension_numbers = #tpu.dot_dimension_numbers<[1], [0], [0], [1], [0, 0, 1, 1], [], []>} : vector<8x72xbf16>, vector<72x384xbf16>, vector<8x384xf32> -> vector<8x384xf32>
    %68 = vector.broadcast %0 : vector<1x384xf32> to vector<8x384xf32>
    %69 = arith.mulf %67, %68 : vector<8x384xf32>
    %cst_32 = arith.constant dense<0.000000e+00> : vector<8xf32>
    %70 = vector.multi_reduction <add>, %69, %cst_32 [1] : vector<8x384xf32> to vector<8xf32>
    %71 = vector.shape_cast %70 : vector<8xf32> to vector<8x1xf32>
    %cst_33 = arith.constant 3.906250e-03 : f32
    %72 = vector.broadcast %cst_33 : f32 to vector<8x1xf32>
    %73 = arith.mulf %71, %72 : vector<8x1xf32>
    %74 = vector.broadcast %73 : vector<8x1xf32> to vector<8x384xf32>
    %75 = arith.subf %67, %74 : vector<8x384xf32>
    %76 = vector.broadcast %0 : vector<1x384xf32> to vector<8x384xf32>
    %77 = arith.mulf %75, %76 : vector<8x384xf32>
    %78 = arith.mulf %77, %77 : vector<8x384xf32>
    %cst_34 = arith.constant dense<0.000000e+00> : vector<8xf32>
    %79 = vector.multi_reduction <add>, %78, %cst_34 [1] : vector<8x384xf32> to vector<8xf32>
    %80 = vector.shape_cast %79 : vector<8xf32> to vector<8x1xf32>
    %cst_35 = arith.constant 3.906250e-03 : f32
    %81 = vector.broadcast %cst_35 : f32 to vector<8x1xf32>
    %82 = arith.mulf %80, %81 : vector<8x1xf32>
    %83 = vector.broadcast %73 : vector<8x1xf32> to vector<8x384xf32>
    %84 = arith.subf %67, %83 : vector<8x384xf32>
    %cst_36 = arith.constant 9.99999974E-6 : f32
    %85 = vector.broadcast %cst_36 : f32 to vector<8x1xf32>
    %86 = arith.addf %82, %85 : vector<8x1xf32>
    %87 = math.rsqrt %86 : vector<8x1xf32>
    %88 = vector.broadcast %87 : vector<8x1xf32> to vector<8x384xf32>
    %89 = arith.mulf %84, %88 : vector<8x384xf32>
    %c0_37 = arith.constant 0 : index
    %c0_38 = arith.constant 0 : index
    %c0_39 = arith.constant 0 : index
    %90 = vector.load %arg7[%c0_37, %c0_38, %c0_39] : memref<1x8x1xf32, #tpu.memory_space<vmem>>, vector<1x8x1xf32>
    %91 = vector.shape_cast %90 : vector<1x8x1xf32> to vector<8x1xf32>
    %92 = vector.broadcast %91 : vector<8x1xf32> to vector<8x384xf32>
    %93 = arith.mulf %89, %92 : vector<8x384xf32>
    %c0_40 = arith.constant 0 : index
    %c0_41 = arith.constant 0 : index
    %c0_42 = arith.constant 0 : index
    %94 = vector.load %arg8[%c0_40, %c0_41, %c0_42] : memref<1x8x1xf32, #tpu.memory_space<vmem>>, vector<1x8x1xf32>
    %95 = vector.shape_cast %94 : vector<1x8x1xf32> to vector<8x1xf32>
    %96 = vector.broadcast %95 : vector<8x1xf32> to vector<8x384xf32>
    %97 = arith.addf %93, %96 : vector<8x384xf32>
    %98 = arith.index_cast %arg1 : i32 to index
    %c1 = arith.constant 1 : index
    %99 = memref.load %arg9[%98, %c1] : memref<1x2xf32, #tpu.memory_space<smem>>
    %cst_43 = arith.constant 0.000000e+00 : f32
    %100 = vector.broadcast %cst_43 : f32 to vector<8x384xf32>
    %101 = arith.cmpf oge, %97, %100 : vector<8x384xf32>
    %102 = vector.broadcast %99 : f32 to vector<8x384xf32>
    %103 = arith.mulf %102, %97 : vector<8x384xf32>
    %104 = arith.select %101, %97, %103 : vector<8x384xi1>, vector<8x384xf32>
    %105 = vector.broadcast %0 : vector<1x384xf32> to vector<8x384xf32>
    %106 = arith.mulf %104, %105 : vector<8x384xf32>
    %107 = arith.truncf %106 : vector<8x384xf32> to vector<8x384xbf16>
    %c0_44 = arith.constant 0 : index
    %c0_45 = arith.constant 0 : index
    %c0_46 = arith.constant 0 : index
    %108 = vector.load %arg11[%c0_44, %c0_45, %c0_46] : memref<1x8x384xbf16, #tpu.memory_space<vmem>>, vector<1x8x384xbf16>
    %109 = vector.shape_cast %108 : vector<1x8x384xbf16> to vector<8x384xbf16>
    %110 = vector.shape_cast %107 : vector<8x384xbf16> to vector<1x8x384xbf16>
    tpu.vector_store %arg11[%c0_44, %c0_45, %c0_46], %110 {strides = array<i32>} : memref<1x8x384xbf16, #tpu.memory_space<vmem>>, vector<1x8x384xbf16>,
    return
  }
  func.func @transform_0(%arg0: i32, %arg1: i32) -> (i32, i32, i32) {
    %c0_i32 = arith.constant 0 : i32
    %c0_i32_0 = arith.constant 0 : i32
    %c0_i32_1 = arith.constant 0 : i32
    return %arg0, %c0_i32, %c0_i32_0 : i32, i32, i32
  }
  func.func @transform_1(%arg0: i32, %arg1: i32) -> (i32, i32, i32) {
    %c0_i32 = arith.constant 0 : i32
    %c0_i32_0 = arith.constant 0 : i32
    %c0_i32_1 = arith.constant 0 : i32
    return %arg1, %c0_i32, %c0_i32_0 : i32, i32, i32
  }
  func.func @transform_2(%arg0: i32, %arg1: i32) -> (i32, i32, i32) {
    %c0_i32 = arith.constant 0 : i32
    %c0_i32_0 = arith.constant 0 : i32
    %c0_i32_1 = arith.constant 0 : i32
    return %arg1, %c0_i32, %c0_i32_0 : i32, i32, i32
  }
  func.func @transform_3(%arg0: i32, %arg1: i32) -> (i32, i32, i32) {
    %c0_i32 = arith.constant 0 : i32
    %c0_i32_0 = arith.constant 0 : i32
    %c0_i32_1 = arith.constant 0 : i32
    return %arg1, %c0_i32, %c0_i32_0 : i32, i32, i32
  }
  func.func @transform_4(%arg0: i32, %arg1: i32) -> (i32, i32, i32) {
    %c0_i32 = arith.constant 0 : i32
    %c0_i32_0 = arith.constant 0 : i32
    %c0_i32_1 = arith.constant 0 : i32
    return %arg1, %c0_i32, %c0_i32_0 : i32, i32, i32
  }
  func.func @transform_5(%arg0: i32, %arg1: i32) -> (i32, i32, i32) {
    %c0_i32 = arith.constant 0 : i32
    %c0_i32_0 = arith.constant 0 : i32
    %c0_i32_1 = arith.constant 0 : i32
    return %arg1, %c0_i32, %c0_i32_0 : i32, i32, i32
  }
  func.func @transform_6(%arg0: i32, %arg1: i32) -> (i32, i32, i32) {
    %c0_i32 = arith.constant 0 : i32
    %c0_i32_0 = arith.constant 0 : i32
    %c0_i32_1 = arith.constant 0 : i32
    return %arg1, %c0_i32, %c0_i32_0 : i32, i32, i32
  }
  func.func @transform_7(%arg0: i32, %arg1: i32) -> (i32, i32) {
    %c0_i32 = arith.constant 0 : i32
    %c0_i32_0 = arith.constant 0 : i32
    %c0_i32_1 = arith.constant 0 : i32
    return %c0_i32, %c0_i32_0 : i32, i32
  }
  func.func @transform_8(%arg0: i32, %arg1: i32) -> (i32, i32) {
    %c0_i32 = arith.constant 0 : i32
    %c0_i32_0 = arith.constant 0 : i32
    %c0_i32_1 = arith.constant 0 : i32
    return %c0_i32, %c0_i32_0 : i32, i32
  }
  func.func @transform_9(%arg0: i32, %arg1: i32) -> (i32, i32, i32) {
    %c2_i32 = arith.constant 2 : i32
    %0 = arith.muli %arg1, %c2_i32 : i32
    %1 = arith.addi %0, %arg0 : i32
    %c0_i32 = arith.constant 0 : i32
    %c0_i32_0 = arith.constant 0 : i32
    %c0_i32_1 = arith.constant 0 : i32
    return %1, %c0_i32, %c0_i32_0 : i32, i32, i32
  }
}

module attributes {stable_mosaic.version = 11 : i64} {
  func.func @_patch_conv_in_prelu_kernel(%arg0: i32, %arg1: memref<1x72x64xbf16, #tpu.memory_space<vmem>>, %arg2: memref<1x16x72xbf16, #tpu.memory_space<vmem>>, %arg3: memref<1x16x1xf32, #tpu.memory_space<vmem>>, %arg4: memref<1x16x1xf32, #tpu.memory_space<vmem>>, %arg5: memref<1xf32, #tpu.memory_space<smem>>, %arg6: memref<1x16x64xbf16, #tpu.memory_space<vmem>>) attributes {dimension_semantics = [#tpu.dimension_semantics<parallel>], iteration_bounds = array<i64: 2>, scalar_prefetch = 0 : i64, scratch_operands = 0 : i64, tpu.core_type = #tpu.core_type<tc>, window_params = [{transform_indices = @transform_0, window_bounds = array<i64: 1, 72, 64>}, {pipeline_mode = #tpu.pipeline_mode<synchronous>, transform_indices = @transform_1, window_bounds = array<i64: 1, 16, 72>}, {pipeline_mode = #tpu.pipeline_mode<synchronous>, transform_indices = @transform_2, window_bounds = array<i64: 1, 16, 1>}, {pipeline_mode = #tpu.pipeline_mode<synchronous>, transform_indices = @transform_3, window_bounds = array<i64: 1, 16, 1>}, {transform_indices = @transform_4, window_bounds = array<i64: 1>}, {transform_indices = @transform_5, window_bounds = array<i64: 1, 16, 64>}]} {
    %c0 = arith.constant 0 : index
    %c0_0 = arith.constant 0 : index
    %c0_1 = arith.constant 0 : index
    %0 = vector.load %arg1[%c0, %c0_0, %c0_1] : memref<1x72x64xbf16, #tpu.memory_space<vmem>>, vector<1x72x64xbf16>
    %1 = vector.shape_cast %0 : vector<1x72x64xbf16> to vector<72x64xbf16>
    %c0_2 = arith.constant 0 : index
    %c0_3 = arith.constant 0 : index
    %c0_4 = arith.constant 0 : index
    %2 = vector.load %arg2[%c0_2, %c0_3, %c0_4] : memref<1x16x72xbf16, #tpu.memory_space<vmem>>, vector<1x16x72xbf16>
    %3 = vector.shape_cast %2 : vector<1x16x72xbf16> to vector<16x72xbf16>
    %cst = arith.constant dense<0.000000e+00> : vector<16x64xf32>
    %4 = tpu.matmul %3, %1, %cst {dimension_numbers = #tpu.dot_dimension_numbers<[1], [0], [0], [1], [0, 0, 1, 1], [], []>} : vector<16x72xbf16>, vector<72x64xbf16>, vector<16x64xf32> -> vector<16x64xf32>
    %cst_5 = arith.constant dense<0.000000e+00> : vector<16xf32>
    %5 = vector.multi_reduction <add>, %4, %cst_5 [1] : vector<16x64xf32> to vector<16xf32>
    %6 = vector.shape_cast %5 : vector<16xf32> to vector<16x1xf32>
    %cst_6 = arith.constant 6.400000e+01 : f32
    %7 = vector.broadcast %cst_6 : f32 to vector<16x1xf32>
    %8 = arith.divf %6, %7 : vector<16x1xf32>
    %9 = vector.broadcast %8 : vector<16x1xf32> to vector<16x64xf32>
    %10 = arith.subf %4, %9 : vector<16x64xf32>
    %11 = arith.mulf %10, %10 : vector<16x64xf32>
    %cst_7 = arith.constant dense<0.000000e+00> : vector<16xf32>
    %12 = vector.multi_reduction <add>, %11, %cst_7 [1] : vector<16x64xf32> to vector<16xf32>
    %13 = vector.shape_cast %12 : vector<16xf32> to vector<16x1xf32>
    %cst_8 = arith.constant 6.400000e+01 : f32
    %14 = vector.broadcast %cst_8 : f32 to vector<16x1xf32>
    %15 = arith.divf %13, %14 : vector<16x1xf32>
    %cst_9 = arith.constant 9.99999974E-6 : f32
    %16 = vector.broadcast %cst_9 : f32 to vector<16x1xf32>
    %17 = arith.addf %15, %16 : vector<16x1xf32>
    %18 = math.rsqrt %17 : vector<16x1xf32>
    %19 = vector.broadcast %18 : vector<16x1xf32> to vector<16x64xf32>
    %20 = arith.mulf %10, %19 : vector<16x64xf32>
    %c0_10 = arith.constant 0 : index
    %c0_11 = arith.constant 0 : index
    %c0_12 = arith.constant 0 : index
    %21 = vector.load %arg3[%c0_10, %c0_11, %c0_12] : memref<1x16x1xf32, #tpu.memory_space<vmem>>, vector<1x16x1xf32>
    %22 = vector.shape_cast %21 : vector<1x16x1xf32> to vector<16x1xf32>
    %23 = vector.broadcast %22 : vector<16x1xf32> to vector<16x64xf32>
    %24 = arith.mulf %20, %23 : vector<16x64xf32>
    %c0_13 = arith.constant 0 : index
    %c0_14 = arith.constant 0 : index
    %c0_15 = arith.constant 0 : index
    %25 = vector.load %arg4[%c0_13, %c0_14, %c0_15] : memref<1x16x1xf32, #tpu.memory_space<vmem>>, vector<1x16x1xf32>
    %26 = vector.shape_cast %25 : vector<1x16x1xf32> to vector<16x1xf32>
    %27 = vector.broadcast %26 : vector<16x1xf32> to vector<16x64xf32>
    %28 = arith.addf %24, %27 : vector<16x64xf32>
    %c0_16 = arith.constant 0 : index
    %29 = memref.load %arg5[%c0_16] : memref<1xf32, #tpu.memory_space<smem>>
    %cst_17 = arith.constant 0.000000e+00 : f32
    %30 = vector.broadcast %cst_17 : f32 to vector<16x64xf32>
    %31 = arith.cmpf oge, %28, %30 : vector<16x64xf32>
    %32 = vector.broadcast %29 : f32 to vector<16x64xf32>
    %33 = arith.mulf %32, %28 : vector<16x64xf32>
    %34 = arith.select %31, %28, %33 : vector<16x64xi1>, vector<16x64xf32>
    %35 = arith.truncf %34 : vector<16x64xf32> to vector<16x64xbf16>
    %c0_18 = arith.constant 0 : index
    %c0_19 = arith.constant 0 : index
    %c0_20 = arith.constant 0 : index
    %36 = vector.load %arg6[%c0_18, %c0_19, %c0_20] : memref<1x16x64xbf16, #tpu.memory_space<vmem>>, vector<1x16x64xbf16>
    %37 = vector.shape_cast %36 : vector<1x16x64xbf16> to vector<16x64xbf16>
    %38 = vector.shape_cast %35 : vector<16x64xbf16> to vector<1x16x64xbf16>
    tpu.vector_store %arg6[%c0_18, %c0_19, %c0_20], %38 {strides = array<i32>} : memref<1x16x64xbf16, #tpu.memory_space<vmem>>, vector<1x16x64xbf16>,
    return
  }
  func.func @transform_0(%arg0: i32) -> (i32, i32, i32) {
    %c0_i32 = arith.constant 0 : i32
    %c0_i32_0 = arith.constant 0 : i32
    %c0_i32_1 = arith.constant 0 : i32
    return %arg0, %c0_i32, %c0_i32_0 : i32, i32, i32
  }
  func.func @transform_1(%arg0: i32) -> (i32, i32, i32) {
    %c0_i32 = arith.constant 0 : i32
    %c0_i32_0 = arith.constant 0 : i32
    %c0_i32_1 = arith.constant 0 : i32
    %c0_i32_2 = arith.constant 0 : i32
    return %c0_i32, %c0_i32_0, %c0_i32_1 : i32, i32, i32
  }
  func.func @transform_2(%arg0: i32) -> (i32, i32, i32) {
    %c0_i32 = arith.constant 0 : i32
    %c0_i32_0 = arith.constant 0 : i32
    %c0_i32_1 = arith.constant 0 : i32
    %c0_i32_2 = arith.constant 0 : i32
    return %c0_i32, %c0_i32_0, %c0_i32_1 : i32, i32, i32
  }
  func.func @transform_3(%arg0: i32) -> (i32, i32, i32) {
    %c0_i32 = arith.constant 0 : i32
    %c0_i32_0 = arith.constant 0 : i32
    %c0_i32_1 = arith.constant 0 : i32
    %c0_i32_2 = arith.constant 0 : i32
    return %c0_i32, %c0_i32_0, %c0_i32_1 : i32, i32, i32
  }
  func.func @transform_4(%arg0: i32) -> i32 {
    %c0_i32 = arith.constant 0 : i32
    %c0_i32_0 = arith.constant 0 : i32
    return %c0_i32 : i32
  }
  func.func @transform_5(%arg0: i32) -> (i32, i32, i32) {
    %c0_i32 = arith.constant 0 : i32
    %c0_i32_0 = arith.constant 0 : i32
    %c0_i32_1 = arith.constant 0 : i32
    return %arg0, %c0_i32, %c0_i32_0 : i32, i32, i32
  }
}

module attributes {stable_mosaic.version = 11 : i64} {
  func.func @_fused_stages_kernel(%arg0: i32, %arg1: i32, %arg2: memref<1x16x128xbf16, #tpu.memory_space<vmem>>, %arg3: memref<1x16x144xbf16, #tpu.memory_space<vmem>>, %arg4: memref<1x16x1xf32, #tpu.memory_space<vmem>>, %arg5: memref<1x16x1xf32, #tpu.memory_space<vmem>>, %arg6: memref<1x1xf32, #tpu.memory_space<smem>>, %arg7: memref<1x128xf32, #tpu.memory_space<vmem>>, %arg8: memref<1x16x128xbf16, #tpu.memory_space<vmem>>) attributes {dimension_semantics = [#tpu.dimension_semantics<parallel>, #tpu.dimension_semantics<arbitrary>], iteration_bounds = array<i64: 2, 1>, scalar_prefetch = 0 : i64, scratch_operands = 0 : i64, tpu.core_type = #tpu.core_type<tc>, window_params = [{transform_indices = @transform_0, window_bounds = array<i64: 1, 16, 128>}, {transform_indices = @transform_1, window_bounds = array<i64: 1, 16, 144>}, {transform_indices = @transform_2, window_bounds = array<i64: 1, 16, 1>}, {transform_indices = @transform_3, window_bounds = array<i64: 1, 16, 1>}, {transform_indices = @transform_4, window_bounds = array<i64: 1, 1>}, {pipeline_mode = #tpu.pipeline_mode<synchronous>, transform_indices = @transform_5, window_bounds = array<i64: 1, 128>}, {transform_indices = @transform_6, window_bounds = array<i64: 1, 16, 128>}]} {
    %c0 = arith.constant 0 : index
    %c0_0 = arith.constant 0 : index
    %0 = vector.load %arg7[%c0, %c0_0] : memref<1x128xf32, #tpu.memory_space<vmem>>, vector<1x128xf32>
    %c0_1 = arith.constant 0 : index
    %c0_2 = arith.constant 0 : index
    %c0_3 = arith.constant 0 : index
    %1 = vector.load %arg2[%c0_1, %c0_2, %c0_3] : memref<1x16x128xbf16, #tpu.memory_space<vmem>>, vector<1x16x128xbf16>
    %2 = vector.shape_cast %1 : vector<1x16x128xbf16> to vector<16x128xbf16>
    %3 = arith.extf %2 : vector<16x128xbf16> to vector<16x128xf32>
    %c11_i32 = arith.constant 11 : i32
    %4 = tpu.dynamic_rotate %3 by %c11_i32 dim 1 : vector<16x128xf32>, i32 -> vector<16x128xf32>
    %c10_i32 = arith.constant 10 : i32
    %5 = tpu.dynamic_rotate %3 by %c10_i32 dim 1 : vector<16x128xf32>, i32 -> vector<16x128xf32>
    %c9_i32 = arith.constant 9 : i32
    %6 = tpu.dynamic_rotate %3 by %c9_i32 dim 1 : vector<16x128xf32>, i32 -> vector<16x128xf32>
    %c1_i32 = arith.constant 1 : i32
    %7 = tpu.dynamic_rotate %3 by %c1_i32 dim 1 : vector<16x128xf32>, i32 -> vector<16x128xf32>
    %c127_i32 = arith.constant 127 : i32
    %8 = tpu.dynamic_rotate %3 by %c127_i32 dim 1 : vector<16x128xf32>, i32 -> vector<16x128xf32>
    %c119_i32 = arith.constant 119 : i32
    %9 = tpu.dynamic_rotate %3 by %c119_i32 dim 1 : vector<16x128xf32>, i32 -> vector<16x128xf32>
    %c118_i32 = arith.constant 118 : i32
    %10 = tpu.dynamic_rotate %3 by %c118_i32 dim 1 : vector<16x128xf32>, i32 -> vector<16x128xf32>
    %c117_i32 = arith.constant 117 : i32
    %11 = tpu.dynamic_rotate %3 by %c117_i32 dim 1 : vector<16x128xf32>, i32 -> vector<16x128xf32>
    %12 = tpu.concatenate %4, %5, %6, %7, %3, %8, %9, %10, %11 in 0 : vector<16x128xf32>, vector<16x128xf32>, vector<16x128xf32>, vector<16x128xf32>, vector<16x128xf32>, vector<16x128xf32>, vector<16x128xf32>, vector<16x128xf32>, vector<16x128xf32> -> vector<144x128xf32>
    %13 = arith.truncf %12 : vector<144x128xf32> to vector<144x128xbf16>
    %c0_4 = arith.constant 0 : index
    %c0_5 = arith.constant 0 : index
    %c0_6 = arith.constant 0 : index
    %14 = vector.load %arg3[%c0_4, %c0_5, %c0_6] : memref<1x16x144xbf16, #tpu.memory_space<vmem>>, vector<1x16x144xbf16>
    %15 = vector.shape_cast %14 : vector<1x16x144xbf16> to vector<16x144xbf16>
    %cst = arith.constant dense<0.000000e+00> : vector<16x128xf32>
    %16 = tpu.matmul %15, %13, %cst {dimension_numbers = #tpu.dot_dimension_numbers<[1], [0], [0], [1], [0, 0, 1, 1], [], []>} : vector<16x144xbf16>, vector<144x128xbf16>, vector<16x128xf32> -> vector<16x128xf32>
    %17 = vector.broadcast %0 : vector<1x128xf32> to vector<16x128xf32>
    %18 = arith.mulf %16, %17 : vector<16x128xf32>
    %cst_7 = arith.constant dense<0.000000e+00> : vector<16xf32>
    %19 = vector.multi_reduction <add>, %18, %cst_7 [1] : vector<16x128xf32> to vector<16xf32>
    %20 = vector.shape_cast %19 : vector<16xf32> to vector<16x1xf32>
    %cst_8 = arith.constant 1.562500e-02 : f32
    %21 = vector.broadcast %cst_8 : f32 to vector<16x1xf32>
    %22 = arith.mulf %20, %21 : vector<16x1xf32>
    %23 = vector.broadcast %22 : vector<16x1xf32> to vector<16x128xf32>
    %24 = arith.subf %16, %23 : vector<16x128xf32>
    %25 = vector.broadcast %0 : vector<1x128xf32> to vector<16x128xf32>
    %26 = arith.mulf %24, %25 : vector<16x128xf32>
    %27 = arith.mulf %26, %26 : vector<16x128xf32>
    %cst_9 = arith.constant dense<0.000000e+00> : vector<16xf32>
    %28 = vector.multi_reduction <add>, %27, %cst_9 [1] : vector<16x128xf32> to vector<16xf32>
    %29 = vector.shape_cast %28 : vector<16xf32> to vector<16x1xf32>
    %cst_10 = arith.constant 1.562500e-02 : f32
    %30 = vector.broadcast %cst_10 : f32 to vector<16x1xf32>
    %31 = arith.mulf %29, %30 : vector<16x1xf32>
    %32 = vector.broadcast %22 : vector<16x1xf32> to vector<16x128xf32>
    %33 = arith.subf %16, %32 : vector<16x128xf32>
    %cst_11 = arith.constant 9.99999974E-6 : f32
    %34 = vector.broadcast %cst_11 : f32 to vector<16x1xf32>
    %35 = arith.addf %31, %34 : vector<16x1xf32>
    %36 = math.rsqrt %35 : vector<16x1xf32>
    %37 = vector.broadcast %36 : vector<16x1xf32> to vector<16x128xf32>
    %38 = arith.mulf %33, %37 : vector<16x128xf32>
    %c0_12 = arith.constant 0 : index
    %c0_13 = arith.constant 0 : index
    %c0_14 = arith.constant 0 : index
    %39 = vector.load %arg4[%c0_12, %c0_13, %c0_14] : memref<1x16x1xf32, #tpu.memory_space<vmem>>, vector<1x16x1xf32>
    %40 = vector.shape_cast %39 : vector<1x16x1xf32> to vector<16x1xf32>
    %41 = vector.broadcast %40 : vector<16x1xf32> to vector<16x128xf32>
    %42 = arith.mulf %38, %41 : vector<16x128xf32>
    %c0_15 = arith.constant 0 : index
    %c0_16 = arith.constant 0 : index
    %c0_17 = arith.constant 0 : index
    %43 = vector.load %arg5[%c0_15, %c0_16, %c0_17] : memref<1x16x1xf32, #tpu.memory_space<vmem>>, vector<1x16x1xf32>
    %44 = vector.shape_cast %43 : vector<1x16x1xf32> to vector<16x1xf32>
    %45 = vector.broadcast %44 : vector<16x1xf32> to vector<16x128xf32>
    %46 = arith.addf %42, %45 : vector<16x128xf32>
    %47 = arith.index_cast %arg1 : i32 to index
    %c0_18 = arith.constant 0 : index
    %48 = memref.load %arg6[%47, %c0_18] : memref<1x1xf32, #tpu.memory_space<smem>>
    %cst_19 = arith.constant 0.000000e+00 : f32
    %49 = vector.broadcast %cst_19 : f32 to vector<16x128xf32>
    %50 = arith.cmpf oge, %46, %49 : vector<16x128xf32>
    %51 = vector.broadcast %48 : f32 to vector<16x128xf32>
    %52 = arith.mulf %51, %46 : vector<16x128xf32>
    %53 = arith.select %50, %46, %52 : vector<16x128xi1>, vector<16x128xf32>
    %54 = vector.broadcast %0 : vector<1x128xf32> to vector<16x128xf32>
    %55 = arith.mulf %53, %54 : vector<16x128xf32>
    %56 = arith.truncf %55 : vector<16x128xf32> to vector<16x128xbf16>
    %c0_20 = arith.constant 0 : index
    %c0_21 = arith.constant 0 : index
    %c0_22 = arith.constant 0 : index
    %57 = vector.load %arg8[%c0_20, %c0_21, %c0_22] : memref<1x16x128xbf16, #tpu.memory_space<vmem>>, vector<1x16x128xbf16>
    %58 = vector.shape_cast %57 : vector<1x16x128xbf16> to vector<16x128xbf16>
    %59 = vector.shape_cast %56 : vector<16x128xbf16> to vector<1x16x128xbf16>
    tpu.vector_store %arg8[%c0_20, %c0_21, %c0_22], %59 {strides = array<i32>} : memref<1x16x128xbf16, #tpu.memory_space<vmem>>, vector<1x16x128xbf16>,
    return
  }
  func.func @transform_0(%arg0: i32, %arg1: i32) -> (i32, i32, i32) {
    %c0_i32 = arith.constant 0 : i32
    %c0_i32_0 = arith.constant 0 : i32
    %c0_i32_1 = arith.constant 0 : i32
    return %arg0, %c0_i32, %c0_i32_0 : i32, i32, i32
  }
  func.func @transform_1(%arg0: i32, %arg1: i32) -> (i32, i32, i32) {
    %c0_i32 = arith.constant 0 : i32
    %c0_i32_0 = arith.constant 0 : i32
    %c0_i32_1 = arith.constant 0 : i32
    return %arg1, %c0_i32, %c0_i32_0 : i32, i32, i32
  }
  func.func @transform_2(%arg0: i32, %arg1: i32) -> (i32, i32, i32) {
    %c0_i32 = arith.constant 0 : i32
    %c0_i32_0 = arith.constant 0 : i32
    %c0_i32_1 = arith.constant 0 : i32
    return %arg1, %c0_i32, %c0_i32_0 : i32, i32, i32
  }
  func.func @transform_3(%arg0: i32, %arg1: i32) -> (i32, i32, i32) {
    %c0_i32 = arith.constant 0 : i32
    %c0_i32_0 = arith.constant 0 : i32
    %c0_i32_1 = arith.constant 0 : i32
    return %arg1, %c0_i32, %c0_i32_0 : i32, i32, i32
  }
  func.func @transform_4(%arg0: i32, %arg1: i32) -> (i32, i32) {
    %c0_i32 = arith.constant 0 : i32
    %c0_i32_0 = arith.constant 0 : i32
    %c0_i32_1 = arith.constant 0 : i32
    return %c0_i32, %c0_i32_0 : i32, i32
  }
  func.func @transform_5(%arg0: i32, %arg1: i32) -> (i32, i32) {
    %c0_i32 = arith.constant 0 : i32
    %c0_i32_0 = arith.constant 0 : i32
    %c0_i32_1 = arith.constant 0 : i32
    return %c0_i32, %c0_i32_0 : i32, i32
  }
  func.func @transform_6(%arg0: i32, %arg1: i32) -> (i32, i32, i32) {
    %c2_i32 = arith.constant 2 : i32
    %0 = arith.muli %arg1, %c2_i32 : i32
    %1 = arith.addi %0, %arg0 : i32
    %c0_i32 = arith.constant 0 : i32
    %c0_i32_0 = arith.constant 0 : i32
    %c0_i32_1 = arith.constant 0 : i32
    return %1, %c0_i32, %c0_i32_0 : i32, i32, i32
  }
}

module attributes {stable_mosaic.version = 11 : i64} {
  func.func @_patch_conv_in_prelu_kernel(%arg0: i32, %arg1: memref<1x144x16xbf16, #tpu.memory_space<vmem>>, %arg2: memref<1x16x144xbf16, #tpu.memory_space<vmem>>, %arg3: memref<1x16x1xf32, #tpu.memory_space<vmem>>, %arg4: memref<1x16x1xf32, #tpu.memory_space<vmem>>, %arg5: memref<1xf32, #tpu.memory_space<smem>>, %arg6: memref<1x16x16xbf16, #tpu.memory_space<vmem>>) attributes {dimension_semantics = [#tpu.dimension_semantics<parallel>], iteration_bounds = array<i64: 2>, scalar_prefetch = 0 : i64, scratch_operands = 0 : i64, tpu.core_type = #tpu.core_type<tc>, window_params = [{transform_indices = @transform_0, window_bounds = array<i64: 1, 144, 16>}, {pipeline_mode = #tpu.pipeline_mode<synchronous>, transform_indices = @transform_1, window_bounds = array<i64: 1, 16, 144>}, {pipeline_mode = #tpu.pipeline_mode<synchronous>, transform_indices = @transform_2, window_bounds = array<i64: 1, 16, 1>}, {pipeline_mode = #tpu.pipeline_mode<synchronous>, transform_indices = @transform_3, window_bounds = array<i64: 1, 16, 1>}, {transform_indices = @transform_4, window_bounds = array<i64: 1>}, {transform_indices = @transform_5, window_bounds = array<i64: 1, 16, 16>}]} {
    %c0 = arith.constant 0 : index
    %c0_0 = arith.constant 0 : index
    %c0_1 = arith.constant 0 : index
    %0 = vector.load %arg1[%c0, %c0_0, %c0_1] : memref<1x144x16xbf16, #tpu.memory_space<vmem>>, vector<1x144x16xbf16>
    %1 = vector.shape_cast %0 : vector<1x144x16xbf16> to vector<144x16xbf16>
    %c0_2 = arith.constant 0 : index
    %c0_3 = arith.constant 0 : index
    %c0_4 = arith.constant 0 : index
    %2 = vector.load %arg2[%c0_2, %c0_3, %c0_4] : memref<1x16x144xbf16, #tpu.memory_space<vmem>>, vector<1x16x144xbf16>
    %3 = vector.shape_cast %2 : vector<1x16x144xbf16> to vector<16x144xbf16>
    %cst = arith.constant dense<0.000000e+00> : vector<16x16xf32>
    %4 = tpu.matmul %3, %1, %cst {dimension_numbers = #tpu.dot_dimension_numbers<[1], [0], [0], [1], [0, 0, 1, 1], [], []>} : vector<16x144xbf16>, vector<144x16xbf16>, vector<16x16xf32> -> vector<16x16xf32>
    %cst_5 = arith.constant dense<0.000000e+00> : vector<16xf32>
    %5 = vector.multi_reduction <add>, %4, %cst_5 [1] : vector<16x16xf32> to vector<16xf32>
    %6 = vector.shape_cast %5 : vector<16xf32> to vector<16x1xf32>
    %cst_6 = arith.constant 1.600000e+01 : f32
    %7 = vector.broadcast %cst_6 : f32 to vector<16x1xf32>
    %8 = arith.divf %6, %7 : vector<16x1xf32>
    %9 = vector.broadcast %8 : vector<16x1xf32> to vector<16x16xf32>
    %10 = arith.subf %4, %9 : vector<16x16xf32>
    %11 = arith.mulf %10, %10 : vector<16x16xf32>
    %cst_7 = arith.constant dense<0.000000e+00> : vector<16xf32>
    %12 = vector.multi_reduction <add>, %11, %cst_7 [1] : vector<16x16xf32> to vector<16xf32>
    %13 = vector.shape_cast %12 : vector<16xf32> to vector<16x1xf32>
    %cst_8 = arith.constant 1.600000e+01 : f32
    %14 = vector.broadcast %cst_8 : f32 to vector<16x1xf32>
    %15 = arith.divf %13, %14 : vector<16x1xf32>
    %cst_9 = arith.constant 9.99999974E-6 : f32
    %16 = vector.broadcast %cst_9 : f32 to vector<16x1xf32>
    %17 = arith.addf %15, %16 : vector<16x1xf32>
    %18 = math.rsqrt %17 : vector<16x1xf32>
    %19 = vector.broadcast %18 : vector<16x1xf32> to vector<16x16xf32>
    %20 = arith.mulf %10, %19 : vector<16x16xf32>
    %c0_10 = arith.constant 0 : index
    %c0_11 = arith.constant 0 : index
    %c0_12 = arith.constant 0 : index
    %21 = vector.load %arg3[%c0_10, %c0_11, %c0_12] : memref<1x16x1xf32, #tpu.memory_space<vmem>>, vector<1x16x1xf32>
    %22 = vector.shape_cast %21 : vector<1x16x1xf32> to vector<16x1xf32>
    %23 = vector.broadcast %22 : vector<16x1xf32> to vector<16x16xf32>
    %24 = arith.mulf %20, %23 : vector<16x16xf32>
    %c0_13 = arith.constant 0 : index
    %c0_14 = arith.constant 0 : index
    %c0_15 = arith.constant 0 : index
    %25 = vector.load %arg4[%c0_13, %c0_14, %c0_15] : memref<1x16x1xf32, #tpu.memory_space<vmem>>, vector<1x16x1xf32>
    %26 = vector.shape_cast %25 : vector<1x16x1xf32> to vector<16x1xf32>
    %27 = vector.broadcast %26 : vector<16x1xf32> to vector<16x16xf32>
    %28 = arith.addf %24, %27 : vector<16x16xf32>
    %c0_16 = arith.constant 0 : index
    %29 = memref.load %arg5[%c0_16] : memref<1xf32, #tpu.memory_space<smem>>
    %cst_17 = arith.constant 0.000000e+00 : f32
    %30 = vector.broadcast %cst_17 : f32 to vector<16x16xf32>
    %31 = arith.cmpf oge, %28, %30 : vector<16x16xf32>
    %32 = vector.broadcast %29 : f32 to vector<16x16xf32>
    %33 = arith.mulf %32, %28 : vector<16x16xf32>
    %34 = arith.select %31, %28, %33 : vector<16x16xi1>, vector<16x16xf32>
    %35 = arith.truncf %34 : vector<16x16xf32> to vector<16x16xbf16>
    %c0_18 = arith.constant 0 : index
    %c0_19 = arith.constant 0 : index
    %c0_20 = arith.constant 0 : index
    %36 = vector.load %arg6[%c0_18, %c0_19, %c0_20] : memref<1x16x16xbf16, #tpu.memory_space<vmem>>, vector<1x16x16xbf16>
    %37 = vector.shape_cast %36 : vector<1x16x16xbf16> to vector<16x16xbf16>
    %38 = vector.shape_cast %35 : vector<16x16xbf16> to vector<1x16x16xbf16>
    tpu.vector_store %arg6[%c0_18, %c0_19, %c0_20], %38 {strides = array<i32>} : memref<1x16x16xbf16, #tpu.memory_space<vmem>>, vector<1x16x16xbf16>,
    return
  }
  func.func @transform_0(%arg0: i32) -> (i32, i32, i32) {
    %c0_i32 = arith.constant 0 : i32
    %c0_i32_0 = arith.constant 0 : i32
    %c0_i32_1 = arith.constant 0 : i32
    return %arg0, %c0_i32, %c0_i32_0 : i32, i32, i32
  }
  func.func @transform_1(%arg0: i32) -> (i32, i32, i32) {
    %c0_i32 = arith.constant 0 : i32
    %c0_i32_0 = arith.constant 0 : i32
    %c0_i32_1 = arith.constant 0 : i32
    %c0_i32_2 = arith.constant 0 : i32
    return %c0_i32, %c0_i32_0, %c0_i32_1 : i32, i32, i32
  }
  func.func @transform_2(%arg0: i32) -> (i32, i32, i32) {
    %c0_i32 = arith.constant 0 : i32
    %c0_i32_0 = arith.constant 0 : i32
    %c0_i32_1 = arith.constant 0 : i32
    %c0_i32_2 = arith.constant 0 : i32
    return %c0_i32, %c0_i32_0, %c0_i32_1 : i32, i32, i32
  }
  func.func @transform_3(%arg0: i32) -> (i32, i32, i32) {
    %c0_i32 = arith.constant 0 : i32
    %c0_i32_0 = arith.constant 0 : i32
    %c0_i32_1 = arith.constant 0 : i32
    %c0_i32_2 = arith.constant 0 : i32
    return %c0_i32, %c0_i32_0, %c0_i32_1 : i32, i32, i32
  }
  func.func @transform_4(%arg0: i32) -> i32 {
    %c0_i32 = arith.constant 0 : i32
    %c0_i32_0 = arith.constant 0 : i32
    return %c0_i32 : i32
  }
  func.func @transform_5(%arg0: i32) -> (i32, i32, i32) {
    %c0_i32 = arith.constant 0 : i32
    %c0_i32_0 = arith.constant 0 : i32
    %c0_i32_1 = arith.constant 0 : i32
    return %arg0, %c0_i32, %c0_i32_0 : i32, i32, i32
  }
}

module attributes {stable_mosaic.version = 11 : i64} {
  func.func @_fused_stages_kernel(%arg0: i32, %arg1: i32, %arg2: memref<1x16x128xbf16, #tpu.memory_space<vmem>>, %arg3: memref<1x16x144xbf16, #tpu.memory_space<vmem>>, %arg4: memref<1x16x1xf32, #tpu.memory_space<vmem>>, %arg5: memref<1x16x1xf32, #tpu.memory_space<vmem>>, %arg6: memref<1x1xf32, #tpu.memory_space<smem>>, %arg7: memref<1x128xf32, #tpu.memory_space<vmem>>, %arg8: memref<1x16x128xbf16, #tpu.memory_space<vmem>>) attributes {dimension_semantics = [#tpu.dimension_semantics<parallel>, #tpu.dimension_semantics<arbitrary>], iteration_bounds = array<i64: 2, 1>, scalar_prefetch = 0 : i64, scratch_operands = 0 : i64, tpu.core_type = #tpu.core_type<tc>, window_params = [{transform_indices = @transform_0, window_bounds = array<i64: 1, 16, 128>}, {transform_indices = @transform_1, window_bounds = array<i64: 1, 16, 144>}, {transform_indices = @transform_2, window_bounds = array<i64: 1, 16, 1>}, {transform_indices = @transform_3, window_bounds = array<i64: 1, 16, 1>}, {transform_indices = @transform_4, window_bounds = array<i64: 1, 1>}, {pipeline_mode = #tpu.pipeline_mode<synchronous>, transform_indices = @transform_5, window_bounds = array<i64: 1, 128>}, {transform_indices = @transform_6, window_bounds = array<i64: 1, 16, 128>}]} {
    %c0 = arith.constant 0 : index
    %c0_0 = arith.constant 0 : index
    %0 = vector.load %arg7[%c0, %c0_0] : memref<1x128xf32, #tpu.memory_space<vmem>>, vector<1x128xf32>
    %c0_1 = arith.constant 0 : index
    %c0_2 = arith.constant 0 : index
    %c0_3 = arith.constant 0 : index
    %1 = vector.load %arg2[%c0_1, %c0_2, %c0_3] : memref<1x16x128xbf16, #tpu.memory_space<vmem>>, vector<1x16x128xbf16>
    %2 = vector.shape_cast %1 : vector<1x16x128xbf16> to vector<16x128xbf16>
    %3 = arith.extf %2 : vector<16x128xbf16> to vector<16x128xf32>
    %c7_i32 = arith.constant 7 : i32
    %4 = tpu.dynamic_rotate %3 by %c7_i32 dim 1 : vector<16x128xf32>, i32 -> vector<16x128xf32>
    %c6_i32 = arith.constant 6 : i32
    %5 = tpu.dynamic_rotate %3 by %c6_i32 dim 1 : vector<16x128xf32>, i32 -> vector<16x128xf32>
    %c5_i32 = arith.constant 5 : i32
    %6 = tpu.dynamic_rotate %3 by %c5_i32 dim 1 : vector<16x128xf32>, i32 -> vector<16x128xf32>
    %c1_i32 = arith.constant 1 : i32
    %7 = tpu.dynamic_rotate %3 by %c1_i32 dim 1 : vector<16x128xf32>, i32 -> vector<16x128xf32>
    %c127_i32 = arith.constant 127 : i32
    %8 = tpu.dynamic_rotate %3 by %c127_i32 dim 1 : vector<16x128xf32>, i32 -> vector<16x128xf32>
    %c123_i32 = arith.constant 123 : i32
    %9 = tpu.dynamic_rotate %3 by %c123_i32 dim 1 : vector<16x128xf32>, i32 -> vector<16x128xf32>
    %c122_i32 = arith.constant 122 : i32
    %10 = tpu.dynamic_rotate %3 by %c122_i32 dim 1 : vector<16x128xf32>, i32 -> vector<16x128xf32>
    %c121_i32 = arith.constant 121 : i32
    %11 = tpu.dynamic_rotate %3 by %c121_i32 dim 1 : vector<16x128xf32>, i32 -> vector<16x128xf32>
    %12 = tpu.concatenate %4, %5, %6, %7, %3, %8, %9, %10, %11 in 0 : vector<16x128xf32>, vector<16x128xf32>, vector<16x128xf32>, vector<16x128xf32>, vector<16x128xf32>, vector<16x128xf32>, vector<16x128xf32>, vector<16x128xf32>, vector<16x128xf32> -> vector<144x128xf32>
    %13 = arith.truncf %12 : vector<144x128xf32> to vector<144x128xbf16>
    %c0_4 = arith.constant 0 : index
    %c0_5 = arith.constant 0 : index
    %c0_6 = arith.constant 0 : index
    %14 = vector.load %arg3[%c0_4, %c0_5, %c0_6] : memref<1x16x144xbf16, #tpu.memory_space<vmem>>, vector<1x16x144xbf16>
    %15 = vector.shape_cast %14 : vector<1x16x144xbf16> to vector<16x144xbf16>
    %cst = arith.constant dense<0.000000e+00> : vector<16x128xf32>
    %16 = tpu.matmul %15, %13, %cst {dimension_numbers = #tpu.dot_dimension_numbers<[1], [0], [0], [1], [0, 0, 1, 1], [], []>} : vector<16x144xbf16>, vector<144x128xbf16>, vector<16x128xf32> -> vector<16x128xf32>
    %17 = vector.broadcast %0 : vector<1x128xf32> to vector<16x128xf32>
    %18 = arith.mulf %16, %17 : vector<16x128xf32>
    %cst_7 = arith.constant dense<0.000000e+00> : vector<16xf32>
    %19 = vector.multi_reduction <add>, %18, %cst_7 [1] : vector<16x128xf32> to vector<16xf32>
    %20 = vector.shape_cast %19 : vector<16xf32> to vector<16x1xf32>
    %cst_8 = arith.constant 6.250000e-02 : f32
    %21 = vector.broadcast %cst_8 : f32 to vector<16x1xf32>
    %22 = arith.mulf %20, %21 : vector<16x1xf32>
    %23 = vector.broadcast %22 : vector<16x1xf32> to vector<16x128xf32>
    %24 = arith.subf %16, %23 : vector<16x128xf32>
    %25 = vector.broadcast %0 : vector<1x128xf32> to vector<16x128xf32>
    %26 = arith.mulf %24, %25 : vector<16x128xf32>
    %27 = arith.mulf %26, %26 : vector<16x128xf32>
    %cst_9 = arith.constant dense<0.000000e+00> : vector<16xf32>
    %28 = vector.multi_reduction <add>, %27, %cst_9 [1] : vector<16x128xf32> to vector<16xf32>
    %29 = vector.shape_cast %28 : vector<16xf32> to vector<16x1xf32>
    %cst_10 = arith.constant 6.250000e-02 : f32
    %30 = vector.broadcast %cst_10 : f32 to vector<16x1xf32>
    %31 = arith.mulf %29, %30 : vector<16x1xf32>
    %32 = vector.broadcast %22 : vector<16x1xf32> to vector<16x128xf32>
    %33 = arith.subf %16, %32 : vector<16x128xf32>
    %cst_11 = arith.constant 9.99999974E-6 : f32
    %34 = vector.broadcast %cst_11 : f32 to vector<16x1xf32>
    %35 = arith.addf %31, %34 : vector<16x1xf32>
    %36 = math.rsqrt %35 : vector<16x1xf32>
    %37 = vector.broadcast %36 : vector<16x1xf32> to vector<16x128xf32>
    %38 = arith.mulf %33, %37 : vector<16x128xf32>
    %c0_12 = arith.constant 0 : index
    %c0_13 = arith.constant 0 : index
    %c0_14 = arith.constant 0 : index
    %39 = vector.load %arg4[%c0_12, %c0_13, %c0_14] : memref<1x16x1xf32, #tpu.memory_space<vmem>>, vector<1x16x1xf32>
    %40 = vector.shape_cast %39 : vector<1x16x1xf32> to vector<16x1xf32>
    %41 = vector.broadcast %40 : vector<16x1xf32> to vector<16x128xf32>
    %42 = arith.mulf %38, %41 : vector<16x128xf32>
    %c0_15 = arith.constant 0 : index
    %c0_16 = arith.constant 0 : index
    %c0_17 = arith.constant 0 : index
    %43 = vector.load %arg5[%c0_15, %c0_16, %c0_17] : memref<1x16x1xf32, #tpu.memory_space<vmem>>, vector<1x16x1xf32>
    %44 = vector.shape_cast %43 : vector<1x16x1xf32> to vector<16x1xf32>
    %45 = vector.broadcast %44 : vector<16x1xf32> to vector<16x128xf32>
    %46 = arith.addf %42, %45 : vector<16x128xf32>
    %47 = arith.index_cast %arg1 : i32 to index
    %c0_18 = arith.constant 0 : index
    %48 = memref.load %arg6[%47, %c0_18] : memref<1x1xf32, #tpu.memory_space<smem>>
    %cst_19 = arith.constant 0.000000e+00 : f32
    %49 = vector.broadcast %cst_19 : f32 to vector<16x128xf32>
    %50 = arith.cmpf oge, %46, %49 : vector<16x128xf32>
    %51 = vector.broadcast %48 : f32 to vector<16x128xf32>
    %52 = arith.mulf %51, %46 : vector<16x128xf32>
    %53 = arith.select %50, %46, %52 : vector<16x128xi1>, vector<16x128xf32>
    %54 = vector.broadcast %0 : vector<1x128xf32> to vector<16x128xf32>
    %55 = arith.mulf %53, %54 : vector<16x128xf32>
    %56 = arith.truncf %55 : vector<16x128xf32> to vector<16x128xbf16>
    %c0_20 = arith.constant 0 : index
    %c0_21 = arith.constant 0 : index
    %c0_22 = arith.constant 0 : index
    %57 = vector.load %arg8[%c0_20, %c0_21, %c0_22] : memref<1x16x128xbf16, #tpu.memory_space<vmem>>, vector<1x16x128xbf16>
    %58 = vector.shape_cast %57 : vector<1x16x128xbf16> to vector<16x128xbf16>
    %59 = vector.shape_cast %56 : vector<16x128xbf16> to vector<1x16x128xbf16>
    tpu.vector_store %arg8[%c0_20, %c0_21, %c0_22], %59 {strides = array<i32>} : memref<1x16x128xbf16, #tpu.memory_space<vmem>>, vector<1x16x128xbf16>,
    return
  }
  func.func @transform_0(%arg0: i32, %arg1: i32) -> (i32, i32, i32) {
    %c0_i32 = arith.constant 0 : i32
    %c0_i32_0 = arith.constant 0 : i32
    %c0_i32_1 = arith.constant 0 : i32
    return %arg0, %c0_i32, %c0_i32_0 : i32, i32, i32
  }
  func.func @transform_1(%arg0: i32, %arg1: i32) -> (i32, i32, i32) {
    %c0_i32 = arith.constant 0 : i32
    %c0_i32_0 = arith.constant 0 : i32
    %c0_i32_1 = arith.constant 0 : i32
    return %arg1, %c0_i32, %c0_i32_0 : i32, i32, i32
  }
  func.func @transform_2(%arg0: i32, %arg1: i32) -> (i32, i32, i32) {
    %c0_i32 = arith.constant 0 : i32
    %c0_i32_0 = arith.constant 0 : i32
    %c0_i32_1 = arith.constant 0 : i32
    return %arg1, %c0_i32, %c0_i32_0 : i32, i32, i32
  }
  func.func @transform_3(%arg0: i32, %arg1: i32) -> (i32, i32, i32) {
    %c0_i32 = arith.constant 0 : i32
    %c0_i32_0 = arith.constant 0 : i32
    %c0_i32_1 = arith.constant 0 : i32
    return %arg1, %c0_i32, %c0_i32_0 : i32, i32, i32
  }
  func.func @transform_4(%arg0: i32, %arg1: i32) -> (i32, i32) {
    %c0_i32 = arith.constant 0 : i32
    %c0_i32_0 = arith.constant 0 : i32
    %c0_i32_1 = arith.constant 0 : i32
    return %c0_i32, %c0_i32_0 : i32, i32
  }
  func.func @transform_5(%arg0: i32, %arg1: i32) -> (i32, i32) {
    %c0_i32 = arith.constant 0 : i32
    %c0_i32_0 = arith.constant 0 : i32
    %c0_i32_1 = arith.constant 0 : i32
    return %c0_i32, %c0_i32_0 : i32, i32
  }
  func.func @transform_6(%arg0: i32, %arg1: i32) -> (i32, i32, i32) {
    %c2_i32 = arith.constant 2 : i32
    %0 = arith.muli %arg1, %c2_i32 : i32
    %1 = arith.addi %0, %arg0 : i32
    %c0_i32 = arith.constant 0 : i32
    %c0_i32_0 = arith.constant 0 : i32
    %c0_i32_1 = arith.constant 0 : i32
    return %1, %c0_i32, %c0_i32_0 : i32, i32, i32
  }
}

module attributes {stable_mosaic.version = 11 : i64} {
  func.func @_upsample2x_kernel(%arg0: i32, %arg1: memref<1x16x6x6xbf16, #tpu.memory_space<vmem>>, %arg2: memref<10x6xf32, #tpu.memory_space<vmem>>, %arg3: memref<6x10xf32, #tpu.memory_space<vmem>>, %arg4: memref<1x16x10x10xbf16, #tpu.memory_space<vmem>>) attributes {dimension_semantics = [#tpu.dimension_semantics<parallel>], iteration_bounds = array<i64: 2>, scalar_prefetch = 0 : i64, scratch_operands = 0 : i64, tpu.core_type = #tpu.core_type<tc>, window_params = [{transform_indices = @transform_0, window_bounds = array<i64: 1, 16, 6, 6>}, {pipeline_mode = #tpu.pipeline_mode<synchronous>, transform_indices = @transform_1, window_bounds = array<i64: 10, 6>}, {pipeline_mode = #tpu.pipeline_mode<synchronous>, transform_indices = @transform_2, window_bounds = array<i64: 6, 10>}, {transform_indices = @transform_3, window_bounds = array<i64: 1, 16, 10, 10>}]} {
    %c0 = arith.constant 0 : index
    %c0_0 = arith.constant 0 : index
    %c0_1 = arith.constant 0 : index
    %c0_2 = arith.constant 0 : index
    %0 = vector.load %arg1[%c0, %c0_0, %c0_1, %c0_2] : memref<1x16x6x6xbf16, #tpu.memory_space<vmem>>, vector<1x16x6x6xbf16>
    %1 = vector.shape_cast %0 : vector<1x16x6x6xbf16> to vector<16x6x6xbf16>
    %2 = arith.extf %1 : vector<16x6x6xbf16> to vector<16x6x6xf32>
    %c0_3 = arith.constant 0 : index
    %c0_4 = arith.constant 0 : index
    %3 = vector.load %arg2[%c0_3, %c0_4] : memref<10x6xf32, #tpu.memory_space<vmem>>, vector<10x6xf32>
    %4 = vector.shape_cast %3 : vector<10x6xf32> to vector<1x10x6xf32>
    %5 = vector.broadcast %4 : vector<1x10x6xf32> to vector<16x10x6xf32>
    %c0_5 = arith.constant 0 : index
    %c0_6 = arith.constant 0 : index
    %6 = vector.load %arg3[%c0_5, %c0_6] : memref<6x10xf32, #tpu.memory_space<vmem>>, vector<6x10xf32>
    %7 = vector.shape_cast %6 : vector<6x10xf32> to vector<1x6x10xf32>
    %8 = vector.broadcast %7 : vector<1x6x10xf32> to vector<16x6x10xf32>
    "tpu.trace_start"() <{level = 10 : i32, message = "coh,chw->cow"}> : () -> ()
    %cst = arith.constant dense<0.000000e+00> : vector<16x10x6xf32>
    %9 = tpu.matmul %5, %2, %cst {dimension_numbers = #tpu.dot_dimension_numbers<[2], [1], [1], [2], [0, 0, 0, 1, 1, 2], [0], [0]>} : vector<16x10x6xf32>, vector<16x6x6xf32>, vector<16x10x6xf32> -> vector<16x10x6xf32>
    "tpu.trace_stop"() : () -> ()
    "tpu.trace_start"() <{level = 10 : i32, message = "cow,cwq->coq"}> : () -> ()
    %cst_7 = arith.constant dense<0.000000e+00> : vector<16x10x10xf32>
    %10 = tpu.matmul %9, %8, %cst_7 {dimension_numbers = #tpu.dot_dimension_numbers<[2], [1], [1], [2], [0, 0, 0, 1, 1, 2], [0], [0]>} : vector<16x10x6xf32>, vector<16x6x10xf32>, vector<16x10x10xf32> -> vector<16x10x10xf32>
    "tpu.trace_stop"() : () -> ()
    %11 = arith.truncf %10 : vector<16x10x10xf32> to vector<16x10x10xbf16>
    %c0_8 = arith.constant 0 : index
    %c0_9 = arith.constant 0 : index
    %c0_10 = arith.constant 0 : index
    %c0_11 = arith.constant 0 : index
    %12 = vector.load %arg4[%c0_8, %c0_9, %c0_10, %c0_11] : memref<1x16x10x10xbf16, #tpu.memory_space<vmem>>, vector<1x16x10x10xbf16>
    %13 = vector.shape_cast %12 : vector<1x16x10x10xbf16> to vector<16x10x10xbf16>
    %14 = vector.shape_cast %11 : vector<16x10x10xbf16> to vector<1x16x10x10xbf16>
    tpu.vector_store %arg4[%c0_8, %c0_9, %c0_10, %c0_11], %14 {strides = array<i32>} : memref<1x16x10x10xbf16, #tpu.memory_space<vmem>>, vector<1x16x10x10xbf16>,
    return
  }
  func.func @transform_0(%arg0: i32) -> (i32, i32, i32, i32) {
    %c0_i32 = arith.constant 0 : i32
    %c0_i32_0 = arith.constant 0 : i32
    %c0_i32_1 = arith.constant 0 : i32
    %c0_i32_2 = arith.constant 0 : i32
    return %arg0, %c0_i32, %c0_i32_0, %c0_i32_1 : i32, i32, i32, i32
  }
  func.func @transform_1(%arg0: i32) -> (i32, i32) {
    %c0_i32 = arith.constant 0 : i32
    %c0_i32_0 = arith.constant 0 : i32
    %c0_i32_1 = arith.constant 0 : i32
    return %c0_i32, %c0_i32_0 : i32, i32
  }
  func.func @transform_2(%arg0: i32) -> (i32, i32) {
    %c0_i32 = arith.constant 0 : i32
    %c0_i32_0 = arith.constant 0 : i32
    %c0_i32_1 = arith.constant 0 : i32
    return %c0_i32, %c0_i32_0 : i32, i32
  }
  func.func @transform_3(%arg0: i32) -> (i32, i32, i32, i32) {
    %c0_i32 = arith.constant 0 : i32
    %c0_i32_0 = arith.constant 0 : i32
    %c0_i32_1 = arith.constant 0 : i32
    %c0_i32_2 = arith.constant 0 : i32
    return %arg0, %c0_i32, %c0_i32_0, %c0_i32_1 : i32, i32, i32, i32
  }
}

module attributes {stable_mosaic.version = 11 : i64} {
  func.func @_fused_stages_kernel(%arg0: i32, %arg1: i32, %arg2: memref<1x16x128xbf16, #tpu.memory_space<vmem>>, %arg3: memref<1x16x128xbf16, #tpu.memory_space<vmem>>, %arg4: memref<1x16x288xbf16, #tpu.memory_space<vmem>>, %arg5: memref<1x16x1xf32, #tpu.memory_space<vmem>>, %arg6: memref<1x16x1xf32, #tpu.memory_space<vmem>>, %arg7: memref<1x16x144xbf16, #tpu.memory_space<vmem>>, %arg8: memref<1x16x1xf32, #tpu.memory_space<vmem>>, %arg9: memref<1x16x1xf32, #tpu.memory_space<vmem>>, %arg10: memref<1x2xf32, #tpu.memory_space<smem>>, %arg11: memref<1x128xf32, #tpu.memory_space<vmem>>, %arg12: memref<1x16x128xbf16, #tpu.memory_space<vmem>>) attributes {dimension_semantics = [#tpu.dimension_semantics<parallel>, #tpu.dimension_semantics<arbitrary>], iteration_bounds = array<i64: 2, 1>, scalar_prefetch = 0 : i64, scratch_operands = 0 : i64, tpu.core_type = #tpu.core_type<tc>, window_params = [{transform_indices = @transform_0, window_bounds = array<i64: 1, 16, 128>}, {transform_indices = @transform_1, window_bounds = array<i64: 1, 16, 128>}, {transform_indices = @transform_2, window_bounds = array<i64: 1, 16, 288>}, {transform_indices = @transform_3, window_bounds = array<i64: 1, 16, 1>}, {transform_indices = @transform_4, window_bounds = array<i64: 1, 16, 1>}, {transform_indices = @transform_5, window_bounds = array<i64: 1, 16, 144>}, {transform_indices = @transform_6, window_bounds = array<i64: 1, 16, 1>}, {transform_indices = @transform_7, window_bounds = array<i64: 1, 16, 1>}, {transform_indices = @transform_8, window_bounds = array<i64: 1, 2>}, {pipeline_mode = #tpu.pipeline_mode<synchronous>, transform_indices = @transform_9, window_bounds = array<i64: 1, 128>}, {transform_indices = @transform_10, window_bounds = array<i64: 1, 16, 128>}]} {
    %c0 = arith.constant 0 : index
    %c0_0 = arith.constant 0 : index
    %0 = vector.load %arg11[%c0, %c0_0] : memref<1x128xf32, #tpu.memory_space<vmem>>, vector<1x128xf32>
    %c0_1 = arith.constant 0 : index
    %c0_2 = arith.constant 0 : index
    %c0_3 = arith.constant 0 : index
    %1 = vector.load %arg2[%c0_1, %c0_2, %c0_3] : memref<1x16x128xbf16, #tpu.memory_space<vmem>>, vector<1x16x128xbf16>
    %2 = vector.shape_cast %1 : vector<1x16x128xbf16> to vector<16x128xbf16>
    %3 = arith.extf %2 : vector<16x128xbf16> to vector<16x128xf32>
    %c0_4 = arith.constant 0 : index
    %c0_5 = arith.constant 0 : index
    %c0_6 = arith.constant 0 : index
    %4 = vector.load %arg3[%c0_4, %c0_5, %c0_6] : memref<1x16x128xbf16, #tpu.memory_space<vmem>>, vector<1x16x128xbf16>
    %5 = vector.shape_cast %4 : vector<1x16x128xbf16> to vector<16x128xbf16>
    %6 = arith.extf %5 : vector<16x128xbf16> to vector<16x128xf32>
    %c7_i32 = arith.constant 7 : i32
    %7 = tpu.dynamic_rotate %3 by %c7_i32 dim 1 : vector<16x128xf32>, i32 -> vector<16x128xf32>
    %c7_i32_7 = arith.constant 7 : i32
    %8 = tpu.dynamic_rotate %6 by %c7_i32_7 dim 1 : vector<16x128xf32>, i32 -> vector<16x128xf32>
    %c6_i32 = arith.constant 6 : i32
    %9 = tpu.dynamic_rotate %3 by %c6_i32 dim 1 : vector<16x128xf32>, i32 -> vector<16x128xf32>
    %c6_i32_8 = arith.constant 6 : i32
    %10 = tpu.dynamic_rotate %6 by %c6_i32_8 dim 1 : vector<16x128xf32>, i32 -> vector<16x128xf32>
    %c5_i32 = arith.constant 5 : i32
    %11 = tpu.dynamic_rotate %3 by %c5_i32 dim 1 : vector<16x128xf32>, i32 -> vector<16x128xf32>
    %c5_i32_9 = arith.constant 5 : i32
    %12 = tpu.dynamic_rotate %6 by %c5_i32_9 dim 1 : vector<16x128xf32>, i32 -> vector<16x128xf32>
    %c1_i32 = arith.constant 1 : i32
    %13 = tpu.dynamic_rotate %3 by %c1_i32 dim 1 : vector<16x128xf32>, i32 -> vector<16x128xf32>
    %c1_i32_10 = arith.constant 1 : i32
    %14 = tpu.dynamic_rotate %6 by %c1_i32_10 dim 1 : vector<16x128xf32>, i32 -> vector<16x128xf32>
    %c127_i32 = arith.constant 127 : i32
    %15 = tpu.dynamic_rotate %3 by %c127_i32 dim 1 : vector<16x128xf32>, i32 -> vector<16x128xf32>
    %c127_i32_11 = arith.constant 127 : i32
    %16 = tpu.dynamic_rotate %6 by %c127_i32_11 dim 1 : vector<16x128xf32>, i32 -> vector<16x128xf32>
    %c123_i32 = arith.constant 123 : i32
    %17 = tpu.dynamic_rotate %3 by %c123_i32 dim 1 : vector<16x128xf32>, i32 -> vector<16x128xf32>
    %c123_i32_12 = arith.constant 123 : i32
    %18 = tpu.dynamic_rotate %6 by %c123_i32_12 dim 1 : vector<16x128xf32>, i32 -> vector<16x128xf32>
    %c122_i32 = arith.constant 122 : i32
    %19 = tpu.dynamic_rotate %3 by %c122_i32 dim 1 : vector<16x128xf32>, i32 -> vector<16x128xf32>
    %c122_i32_13 = arith.constant 122 : i32
    %20 = tpu.dynamic_rotate %6 by %c122_i32_13 dim 1 : vector<16x128xf32>, i32 -> vector<16x128xf32>
    %c121_i32 = arith.constant 121 : i32
    %21 = tpu.dynamic_rotate %3 by %c121_i32 dim 1 : vector<16x128xf32>, i32 -> vector<16x128xf32>
    %c121_i32_14 = arith.constant 121 : i32
    %22 = tpu.dynamic_rotate %6 by %c121_i32_14 dim 1 : vector<16x128xf32>, i32 -> vector<16x128xf32>
    %23 = tpu.concatenate %7, %8, %9, %10, %11, %12, %13, %14, %3, %6, %15, %16, %17, %18, %19, %20 in 0 : vector<16x128xf32>, vector<16x128xf32>, vector<16x128xf32>, vector<16x128xf32>, vector<16x128xf32>, vector<16x128xf32>, vector<16x128xf32>, vector<16x128xf32>, vector<16x128xf32>, vector<16x128xf32>, vector<16x128xf32>, vector<16x128xf32>, vector<16x128xf32>, vector<16x128xf32>, vector<16x128xf32>, vector<16x128xf32> -> vector<256x128xf32>
    %24 = tpu.concatenate %21, %22 in 0 : vector<16x128xf32>, vector<16x128xf32> -> vector<32x128xf32>
    %25 = tpu.concatenate %23, %24 in 0 : vector<256x128xf32>, vector<32x128xf32> -> vector<288x128xf32>
    %26 = arith.truncf %25 : vector<288x128xf32> to vector<288x128xbf16>
    %c0_15 = arith.constant 0 : index
    %c0_16 = arith.constant 0 : index
    %c0_17 = arith.constant 0 : index
    %27 = vector.load %arg4[%c0_15, %c0_16, %c0_17] : memref<1x16x288xbf16, #tpu.memory_space<vmem>>, vector<1x16x288xbf16>
    %28 = vector.shape_cast %27 : vector<1x16x288xbf16> to vector<16x288xbf16>
    %cst = arith.constant dense<0.000000e+00> : vector<16x128xf32>
    %29 = tpu.matmul %28, %26, %cst {dimension_numbers = #tpu.dot_dimension_numbers<[1], [0], [0], [1], [0, 0, 1, 1], [], []>} : vector<16x288xbf16>, vector<288x128xbf16>, vector<16x128xf32> -> vector<16x128xf32>
    %30 = vector.broadcast %0 : vector<1x128xf32> to vector<16x128xf32>
    %31 = arith.mulf %29, %30 : vector<16x128xf32>
    %cst_18 = arith.constant dense<0.000000e+00> : vector<16xf32>
    %32 = vector.multi_reduction <add>, %31, %cst_18 [1] : vector<16x128xf32> to vector<16xf32>
    %33 = vector.shape_cast %32 : vector<16xf32> to vector<16x1xf32>
    %cst_19 = arith.constant 6.250000e-02 : f32
    %34 = vector.broadcast %cst_19 : f32 to vector<16x1xf32>
    %35 = arith.mulf %33, %34 : vector<16x1xf32>
    %36 = vector.broadcast %35 : vector<16x1xf32> to vector<16x128xf32>
    %37 = arith.subf %29, %36 : vector<16x128xf32>
    %38 = vector.broadcast %0 : vector<1x128xf32> to vector<16x128xf32>
    %39 = arith.mulf %37, %38 : vector<16x128xf32>
    %40 = arith.mulf %39, %39 : vector<16x128xf32>
    %cst_20 = arith.constant dense<0.000000e+00> : vector<16xf32>
    %41 = vector.multi_reduction <add>, %40, %cst_20 [1] : vector<16x128xf32> to vector<16xf32>
    %42 = vector.shape_cast %41 : vector<16xf32> to vector<16x1xf32>
    %cst_21 = arith.constant 6.250000e-02 : f32
    %43 = vector.broadcast %cst_21 : f32 to vector<16x1xf32>
    %44 = arith.mulf %42, %43 : vector<16x1xf32>
    %45 = vector.broadcast %35 : vector<16x1xf32> to vector<16x128xf32>
    %46 = arith.subf %29, %45 : vector<16x128xf32>
    %cst_22 = arith.constant 9.99999974E-6 : f32
    %47 = vector.broadcast %cst_22 : f32 to vector<16x1xf32>
    %48 = arith.addf %44, %47 : vector<16x1xf32>
    %49 = math.rsqrt %48 : vector<16x1xf32>
    %50 = vector.broadcast %49 : vector<16x1xf32> to vector<16x128xf32>
    %51 = arith.mulf %46, %50 : vector<16x128xf32>
    %c0_23 = arith.constant 0 : index
    %c0_24 = arith.constant 0 : index
    %c0_25 = arith.constant 0 : index
    %52 = vector.load %arg5[%c0_23, %c0_24, %c0_25] : memref<1x16x1xf32, #tpu.memory_space<vmem>>, vector<1x16x1xf32>
    %53 = vector.shape_cast %52 : vector<1x16x1xf32> to vector<16x1xf32>
    %54 = vector.broadcast %53 : vector<16x1xf32> to vector<16x128xf32>
    %55 = arith.mulf %51, %54 : vector<16x128xf32>
    %c0_26 = arith.constant 0 : index
    %c0_27 = arith.constant 0 : index
    %c0_28 = arith.constant 0 : index
    %56 = vector.load %arg6[%c0_26, %c0_27, %c0_28] : memref<1x16x1xf32, #tpu.memory_space<vmem>>, vector<1x16x1xf32>
    %57 = vector.shape_cast %56 : vector<1x16x1xf32> to vector<16x1xf32>
    %58 = vector.broadcast %57 : vector<16x1xf32> to vector<16x128xf32>
    %59 = arith.addf %55, %58 : vector<16x128xf32>
    %60 = arith.index_cast %arg1 : i32 to index
    %c0_29 = arith.constant 0 : index
    %61 = memref.load %arg10[%60, %c0_29] : memref<1x2xf32, #tpu.memory_space<smem>>
    %cst_30 = arith.constant 0.000000e+00 : f32
    %62 = vector.broadcast %cst_30 : f32 to vector<16x128xf32>
    %63 = arith.cmpf oge, %59, %62 : vector<16x128xf32>
    %64 = vector.broadcast %61 : f32 to vector<16x128xf32>
    %65 = arith.mulf %64, %59 : vector<16x128xf32>
    %66 = arith.select %63, %59, %65 : vector<16x128xi1>, vector<16x128xf32>
    %67 = vector.broadcast %0 : vector<1x128xf32> to vector<16x128xf32>
    %68 = arith.mulf %66, %67 : vector<16x128xf32>
    %c7_i32_31 = arith.constant 7 : i32
    %69 = tpu.dynamic_rotate %68 by %c7_i32_31 dim 1 : vector<16x128xf32>, i32 -> vector<16x128xf32>
    %c6_i32_32 = arith.constant 6 : i32
    %70 = tpu.dynamic_rotate %68 by %c6_i32_32 dim 1 : vector<16x128xf32>, i32 -> vector<16x128xf32>
    %c5_i32_33 = arith.constant 5 : i32
    %71 = tpu.dynamic_rotate %68 by %c5_i32_33 dim 1 : vector<16x128xf32>, i32 -> vector<16x128xf32>
    %c1_i32_34 = arith.constant 1 : i32
    %72 = tpu.dynamic_rotate %68 by %c1_i32_34 dim 1 : vector<16x128xf32>, i32 -> vector<16x128xf32>
    %c127_i32_35 = arith.constant 127 : i32
    %73 = tpu.dynamic_rotate %68 by %c127_i32_35 dim 1 : vector<16x128xf32>, i32 -> vector<16x128xf32>
    %c123_i32_36 = arith.constant 123 : i32
    %74 = tpu.dynamic_rotate %68 by %c123_i32_36 dim 1 : vector<16x128xf32>, i32 -> vector<16x128xf32>
    %c122_i32_37 = arith.constant 122 : i32
    %75 = tpu.dynamic_rotate %68 by %c122_i32_37 dim 1 : vector<16x128xf32>, i32 -> vector<16x128xf32>
    %c121_i32_38 = arith.constant 121 : i32
    %76 = tpu.dynamic_rotate %68 by %c121_i32_38 dim 1 : vector<16x128xf32>, i32 -> vector<16x128xf32>
    %77 = tpu.concatenate %69, %70, %71, %72, %68, %73, %74, %75, %76 in 0 : vector<16x128xf32>, vector<16x128xf32>, vector<16x128xf32>, vector<16x128xf32>, vector<16x128xf32>, vector<16x128xf32>, vector<16x128xf32>, vector<16x128xf32>, vector<16x128xf32> -> vector<144x128xf32>
    %78 = arith.truncf %77 : vector<144x128xf32> to vector<144x128xbf16>
    %c0_39 = arith.constant 0 : index
    %c0_40 = arith.constant 0 : index
    %c0_41 = arith.constant 0 : index
    %79 = vector.load %arg7[%c0_39, %c0_40, %c0_41] : memref<1x16x144xbf16, #tpu.memory_space<vmem>>, vector<1x16x144xbf16>
    %80 = vector.shape_cast %79 : vector<1x16x144xbf16> to vector<16x144xbf16>
    %cst_42 = arith.constant dense<0.000000e+00> : vector<16x128xf32>
    %81 = tpu.matmul %80, %78, %cst_42 {dimension_numbers = #tpu.dot_dimension_numbers<[1], [0], [0], [1], [0, 0, 1, 1], [], []>} : vector<16x144xbf16>, vector<144x128xbf16>, vector<16x128xf32> -> vector<16x128xf32>
    %82 = vector.broadcast %0 : vector<1x128xf32> to vector<16x128xf32>
    %83 = arith.mulf %81, %82 : vector<16x128xf32>
    %cst_43 = arith.constant dense<0.000000e+00> : vector<16xf32>
    %84 = vector.multi_reduction <add>, %83, %cst_43 [1] : vector<16x128xf32> to vector<16xf32>
    %85 = vector.shape_cast %84 : vector<16xf32> to vector<16x1xf32>
    %cst_44 = arith.constant 6.250000e-02 : f32
    %86 = vector.broadcast %cst_44 : f32 to vector<16x1xf32>
    %87 = arith.mulf %85, %86 : vector<16x1xf32>
    %88 = vector.broadcast %87 : vector<16x1xf32> to vector<16x128xf32>
    %89 = arith.subf %81, %88 : vector<16x128xf32>
    %90 = vector.broadcast %0 : vector<1x128xf32> to vector<16x128xf32>
    %91 = arith.mulf %89, %90 : vector<16x128xf32>
    %92 = arith.mulf %91, %91 : vector<16x128xf32>
    %cst_45 = arith.constant dense<0.000000e+00> : vector<16xf32>
    %93 = vector.multi_reduction <add>, %92, %cst_45 [1] : vector<16x128xf32> to vector<16xf32>
    %94 = vector.shape_cast %93 : vector<16xf32> to vector<16x1xf32>
    %cst_46 = arith.constant 6.250000e-02 : f32
    %95 = vector.broadcast %cst_46 : f32 to vector<16x1xf32>
    %96 = arith.mulf %94, %95 : vector<16x1xf32>
    %97 = vector.broadcast %87 : vector<16x1xf32> to vector<16x128xf32>
    %98 = arith.subf %81, %97 : vector<16x128xf32>
    %cst_47 = arith.constant 9.99999974E-6 : f32
    %99 = vector.broadcast %cst_47 : f32 to vector<16x1xf32>
    %100 = arith.addf %96, %99 : vector<16x1xf32>
    %101 = math.rsqrt %100 : vector<16x1xf32>
    %102 = vector.broadcast %101 : vector<16x1xf32> to vector<16x128xf32>
    %103 = arith.mulf %98, %102 : vector<16x128xf32>
    %c0_48 = arith.constant 0 : index
    %c0_49 = arith.constant 0 : index
    %c0_50 = arith.constant 0 : index
    %104 = vector.load %arg8[%c0_48, %c0_49, %c0_50] : memref<1x16x1xf32, #tpu.memory_space<vmem>>, vector<1x16x1xf32>
    %105 = vector.shape_cast %104 : vector<1x16x1xf32> to vector<16x1xf32>
    %106 = vector.broadcast %105 : vector<16x1xf32> to vector<16x128xf32>
    %107 = arith.mulf %103, %106 : vector<16x128xf32>
    %c0_51 = arith.constant 0 : index
    %c0_52 = arith.constant 0 : index
    %c0_53 = arith.constant 0 : index
    %108 = vector.load %arg9[%c0_51, %c0_52, %c0_53] : memref<1x16x1xf32, #tpu.memory_space<vmem>>, vector<1x16x1xf32>
    %109 = vector.shape_cast %108 : vector<1x16x1xf32> to vector<16x1xf32>
    %110 = vector.broadcast %109 : vector<16x1xf32> to vector<16x128xf32>
    %111 = arith.addf %107, %110 : vector<16x128xf32>
    %112 = arith.index_cast %arg1 : i32 to index
    %c1 = arith.constant 1 : index
    %113 = memref.load %arg10[%112, %c1] : memref<1x2xf32, #tpu.memory_space<smem>>
    %cst_54 = arith.constant 0.000000e+00 : f32
    %114 = vector.broadcast %cst_54 : f32 to vector<16x128xf32>
    %115 = arith.cmpf oge, %111, %114 : vector<16x128xf32>
    %116 = vector.broadcast %113 : f32 to vector<16x128xf32>
    %117 = arith.mulf %116, %111 : vector<16x128xf32>
    %118 = arith.select %115, %111, %117 : vector<16x128xi1>, vector<16x128xf32>
    %119 = vector.broadcast %0 : vector<1x128xf32> to vector<16x128xf32>
    %120 = arith.mulf %118, %119 : vector<16x128xf32>
    %121 = arith.truncf %120 : vector<16x128xf32> to vector<16x128xbf16>
    %c0_55 = arith.constant 0 : index
    %c0_56 = arith.constant 0 : index
    %c0_57 = arith.constant 0 : index
    %122 = vector.load %arg12[%c0_55, %c0_56, %c0_57] : memref<1x16x128xbf16, #tpu.memory_space<vmem>>, vector<1x16x128xbf16>
    %123 = vector.shape_cast %122 : vector<1x16x128xbf16> to vector<16x128xbf16>
    %124 = vector.shape_cast %121 : vector<16x128xbf16> to vector<1x16x128xbf16>
    tpu.vector_store %arg12[%c0_55, %c0_56, %c0_57], %124 {strides = array<i32>} : memref<1x16x128xbf16, #tpu.memory_space<vmem>>, vector<1x16x128xbf16>,
    return
  }
  func.func @transform_0(%arg0: i32, %arg1: i32) -> (i32, i32, i32) {
    %c0_i32 = arith.constant 0 : i32
    %c0_i32_0 = arith.constant 0 : i32
    %c0_i32_1 = arith.constant 0 : i32
    return %arg0, %c0_i32, %c0_i32_0 : i32, i32, i32
  }
  func.func @transform_1(%arg0: i32, %arg1: i32) -> (i32, i32, i32) {
    %c0_i32 = arith.constant 0 : i32
    %c0_i32_0 = arith.constant 0 : i32
    %c0_i32_1 = arith.constant 0 : i32
    return %arg0, %c0_i32, %c0_i32_0 : i32, i32, i32
  }
  func.func @transform_2(%arg0: i32, %arg1: i32) -> (i32, i32, i32) {
    %c0_i32 = arith.constant 0 : i32
    %c0_i32_0 = arith.constant 0 : i32
    %c0_i32_1 = arith.constant 0 : i32
    return %arg1, %c0_i32, %c0_i32_0 : i32, i32, i32
  }
  func.func @transform_3(%arg0: i32, %arg1: i32) -> (i32, i32, i32) {
    %c0_i32 = arith.constant 0 : i32
    %c0_i32_0 = arith.constant 0 : i32
    %c0_i32_1 = arith.constant 0 : i32
    return %arg1, %c0_i32, %c0_i32_0 : i32, i32, i32
  }
  func.func @transform_4(%arg0: i32, %arg1: i32) -> (i32, i32, i32) {
    %c0_i32 = arith.constant 0 : i32
    %c0_i32_0 = arith.constant 0 : i32
    %c0_i32_1 = arith.constant 0 : i32
    return %arg1, %c0_i32, %c0_i32_0 : i32, i32, i32
  }
  func.func @transform_5(%arg0: i32, %arg1: i32) -> (i32, i32, i32) {
    %c0_i32 = arith.constant 0 : i32
    %c0_i32_0 = arith.constant 0 : i32
    %c0_i32_1 = arith.constant 0 : i32
    return %arg1, %c0_i32, %c0_i32_0 : i32, i32, i32
  }
  func.func @transform_6(%arg0: i32, %arg1: i32) -> (i32, i32, i32) {
    %c0_i32 = arith.constant 0 : i32
    %c0_i32_0 = arith.constant 0 : i32
    %c0_i32_1 = arith.constant 0 : i32
    return %arg1, %c0_i32, %c0_i32_0 : i32, i32, i32
  }
  func.func @transform_7(%arg0: i32, %arg1: i32) -> (i32, i32, i32) {
    %c0_i32 = arith.constant 0 : i32
    %c0_i32_0 = arith.constant 0 : i32
    %c0_i32_1 = arith.constant 0 : i32
    return %arg1, %c0_i32, %c0_i32_0 : i32, i32, i32
  }
  func.func @transform_8(%arg0: i32, %arg1: i32) -> (i32, i32) {
    %c0_i32 = arith.constant 0 : i32
    %c0_i32_0 = arith.constant 0 : i32
    %c0_i32_1 = arith.constant 0 : i32
    return %c0_i32, %c0_i32_0 : i32, i32
  }
  func.func @transform_9(%arg0: i32, %arg1: i32) -> (i32, i32) {
    %c0_i32 = arith.constant 0 : i32
    %c0_i32_0 = arith.constant 0 : i32
    %c0_i32_1 = arith.constant 0 : i32
    return %c0_i32, %c0_i32_0 : i32, i32
  }
  func.func @transform_10(%arg0: i32, %arg1: i32) -> (i32, i32, i32) {
    %c2_i32 = arith.constant 2 : i32
    %0 = arith.muli %arg1, %c2_i32 : i32
    %1 = arith.addi %0, %arg0 : i32
    %c0_i32 = arith.constant 0 : i32
    %c0_i32_0 = arith.constant 0 : i32
    %c0_i32_1 = arith.constant 0 : i32
    return %1, %c0_i32, %c0_i32_0 : i32, i32, i32
  }
}

module attributes {stable_mosaic.version = 11 : i64} {
  func.func @_fused_stages_kernel(%arg0: i32, %arg1: i32, %arg2: memref<1x16x128xbf16, #tpu.memory_space<vmem>>, %arg3: memref<1x16x128xbf16, #tpu.memory_space<vmem>>, %arg4: memref<1x8x288xbf16, #tpu.memory_space<vmem>>, %arg5: memref<1x8x1xf32, #tpu.memory_space<vmem>>, %arg6: memref<1x8x1xf32, #tpu.memory_space<vmem>>, %arg7: memref<1x8x72xbf16, #tpu.memory_space<vmem>>, %arg8: memref<1x8x1xf32, #tpu.memory_space<vmem>>, %arg9: memref<1x8x1xf32, #tpu.memory_space<vmem>>, %arg10: memref<1x2xf32, #tpu.memory_space<smem>>, %arg11: memref<1x128xf32, #tpu.memory_space<vmem>>, %arg12: memref<1x8x128xbf16, #tpu.memory_space<vmem>>) attributes {dimension_semantics = [#tpu.dimension_semantics<parallel>, #tpu.dimension_semantics<arbitrary>], iteration_bounds = array<i64: 2, 1>, scalar_prefetch = 0 : i64, scratch_operands = 0 : i64, tpu.core_type = #tpu.core_type<tc>, window_params = [{transform_indices = @transform_0, window_bounds = array<i64: 1, 16, 128>}, {transform_indices = @transform_1, window_bounds = array<i64: 1, 16, 128>}, {transform_indices = @transform_2, window_bounds = array<i64: 1, 8, 288>}, {transform_indices = @transform_3, window_bounds = array<i64: 1, 8, 1>}, {transform_indices = @transform_4, window_bounds = array<i64: 1, 8, 1>}, {transform_indices = @transform_5, window_bounds = array<i64: 1, 8, 72>}, {transform_indices = @transform_6, window_bounds = array<i64: 1, 8, 1>}, {transform_indices = @transform_7, window_bounds = array<i64: 1, 8, 1>}, {transform_indices = @transform_8, window_bounds = array<i64: 1, 2>}, {pipeline_mode = #tpu.pipeline_mode<synchronous>, transform_indices = @transform_9, window_bounds = array<i64: 1, 128>}, {transform_indices = @transform_10, window_bounds = array<i64: 1, 8, 128>}]} {
    %c0 = arith.constant 0 : index
    %c0_0 = arith.constant 0 : index
    %0 = vector.load %arg11[%c0, %c0_0] : memref<1x128xf32, #tpu.memory_space<vmem>>, vector<1x128xf32>
    %c0_1 = arith.constant 0 : index
    %c0_2 = arith.constant 0 : index
    %c0_3 = arith.constant 0 : index
    %1 = vector.load %arg2[%c0_1, %c0_2, %c0_3] : memref<1x16x128xbf16, #tpu.memory_space<vmem>>, vector<1x16x128xbf16>
    %2 = vector.shape_cast %1 : vector<1x16x128xbf16> to vector<16x128xbf16>
    %3 = arith.extf %2 : vector<16x128xbf16> to vector<16x128xf32>
    %c0_4 = arith.constant 0 : index
    %c0_5 = arith.constant 0 : index
    %c0_6 = arith.constant 0 : index
    %4 = vector.load %arg3[%c0_4, %c0_5, %c0_6] : memref<1x16x128xbf16, #tpu.memory_space<vmem>>, vector<1x16x128xbf16>
    %5 = vector.shape_cast %4 : vector<1x16x128xbf16> to vector<16x128xbf16>
    %6 = arith.extf %5 : vector<16x128xbf16> to vector<16x128xf32>
    %c11_i32 = arith.constant 11 : i32
    %7 = tpu.dynamic_rotate %3 by %c11_i32 dim 1 : vector<16x128xf32>, i32 -> vector<16x128xf32>
    %c11_i32_7 = arith.constant 11 : i32
    %8 = tpu.dynamic_rotate %6 by %c11_i32_7 dim 1 : vector<16x128xf32>, i32 -> vector<16x128xf32>
    %c10_i32 = arith.constant 10 : i32
    %9 = tpu.dynamic_rotate %3 by %c10_i32 dim 1 : vector<16x128xf32>, i32 -> vector<16x128xf32>
    %c10_i32_8 = arith.constant 10 : i32
    %10 = tpu.dynamic_rotate %6 by %c10_i32_8 dim 1 : vector<16x128xf32>, i32 -> vector<16x128xf32>
    %c9_i32 = arith.constant 9 : i32
    %11 = tpu.dynamic_rotate %3 by %c9_i32 dim 1 : vector<16x128xf32>, i32 -> vector<16x128xf32>
    %c9_i32_9 = arith.constant 9 : i32
    %12 = tpu.dynamic_rotate %6 by %c9_i32_9 dim 1 : vector<16x128xf32>, i32 -> vector<16x128xf32>
    %c1_i32 = arith.constant 1 : i32
    %13 = tpu.dynamic_rotate %3 by %c1_i32 dim 1 : vector<16x128xf32>, i32 -> vector<16x128xf32>
    %c1_i32_10 = arith.constant 1 : i32
    %14 = tpu.dynamic_rotate %6 by %c1_i32_10 dim 1 : vector<16x128xf32>, i32 -> vector<16x128xf32>
    %c127_i32 = arith.constant 127 : i32
    %15 = tpu.dynamic_rotate %3 by %c127_i32 dim 1 : vector<16x128xf32>, i32 -> vector<16x128xf32>
    %c127_i32_11 = arith.constant 127 : i32
    %16 = tpu.dynamic_rotate %6 by %c127_i32_11 dim 1 : vector<16x128xf32>, i32 -> vector<16x128xf32>
    %c119_i32 = arith.constant 119 : i32
    %17 = tpu.dynamic_rotate %3 by %c119_i32 dim 1 : vector<16x128xf32>, i32 -> vector<16x128xf32>
    %c119_i32_12 = arith.constant 119 : i32
    %18 = tpu.dynamic_rotate %6 by %c119_i32_12 dim 1 : vector<16x128xf32>, i32 -> vector<16x128xf32>
    %c118_i32 = arith.constant 118 : i32
    %19 = tpu.dynamic_rotate %3 by %c118_i32 dim 1 : vector<16x128xf32>, i32 -> vector<16x128xf32>
    %c118_i32_13 = arith.constant 118 : i32
    %20 = tpu.dynamic_rotate %6 by %c118_i32_13 dim 1 : vector<16x128xf32>, i32 -> vector<16x128xf32>
    %c117_i32 = arith.constant 117 : i32
    %21 = tpu.dynamic_rotate %3 by %c117_i32 dim 1 : vector<16x128xf32>, i32 -> vector<16x128xf32>
    %c117_i32_14 = arith.constant 117 : i32
    %22 = tpu.dynamic_rotate %6 by %c117_i32_14 dim 1 : vector<16x128xf32>, i32 -> vector<16x128xf32>
    %23 = tpu.concatenate %7, %8, %9, %10, %11, %12, %13, %14, %3, %6, %15, %16, %17, %18, %19, %20 in 0 : vector<16x128xf32>, vector<16x128xf32>, vector<16x128xf32>, vector<16x128xf32>, vector<16x128xf32>, vector<16x128xf32>, vector<16x128xf32>, vector<16x128xf32>, vector<16x128xf32>, vector<16x128xf32>, vector<16x128xf32>, vector<16x128xf32>, vector<16x128xf32>, vector<16x128xf32>, vector<16x128xf32>, vector<16x128xf32> -> vector<256x128xf32>
    %24 = tpu.concatenate %21, %22 in 0 : vector<16x128xf32>, vector<16x128xf32> -> vector<32x128xf32>
    %25 = tpu.concatenate %23, %24 in 0 : vector<256x128xf32>, vector<32x128xf32> -> vector<288x128xf32>
    %26 = arith.truncf %25 : vector<288x128xf32> to vector<288x128xbf16>
    %c0_15 = arith.constant 0 : index
    %c0_16 = arith.constant 0 : index
    %c0_17 = arith.constant 0 : index
    %27 = vector.load %arg4[%c0_15, %c0_16, %c0_17] : memref<1x8x288xbf16, #tpu.memory_space<vmem>>, vector<1x8x288xbf16>
    %28 = vector.shape_cast %27 : vector<1x8x288xbf16> to vector<8x288xbf16>
    %cst = arith.constant dense<0.000000e+00> : vector<8x128xf32>
    %29 = tpu.matmul %28, %26, %cst {dimension_numbers = #tpu.dot_dimension_numbers<[1], [0], [0], [1], [0, 0, 1, 1], [], []>} : vector<8x288xbf16>, vector<288x128xbf16>, vector<8x128xf32> -> vector<8x128xf32>
    %30 = vector.broadcast %0 : vector<1x128xf32> to vector<8x128xf32>
    %31 = arith.mulf %29, %30 : vector<8x128xf32>
    %cst_18 = arith.constant dense<0.000000e+00> : vector<8xf32>
    %32 = vector.multi_reduction <add>, %31, %cst_18 [1] : vector<8x128xf32> to vector<8xf32>
    %33 = vector.shape_cast %32 : vector<8xf32> to vector<8x1xf32>
    %cst_19 = arith.constant 1.562500e-02 : f32
    %34 = vector.broadcast %cst_19 : f32 to vector<8x1xf32>
    %35 = arith.mulf %33, %34 : vector<8x1xf32>
    %36 = vector.broadcast %35 : vector<8x1xf32> to vector<8x128xf32>
    %37 = arith.subf %29, %36 : vector<8x128xf32>
    %38 = vector.broadcast %0 : vector<1x128xf32> to vector<8x128xf32>
    %39 = arith.mulf %37, %38 : vector<8x128xf32>
    %40 = arith.mulf %39, %39 : vector<8x128xf32>
    %cst_20 = arith.constant dense<0.000000e+00> : vector<8xf32>
    %41 = vector.multi_reduction <add>, %40, %cst_20 [1] : vector<8x128xf32> to vector<8xf32>
    %42 = vector.shape_cast %41 : vector<8xf32> to vector<8x1xf32>
    %cst_21 = arith.constant 1.562500e-02 : f32
    %43 = vector.broadcast %cst_21 : f32 to vector<8x1xf32>
    %44 = arith.mulf %42, %43 : vector<8x1xf32>
    %45 = vector.broadcast %35 : vector<8x1xf32> to vector<8x128xf32>
    %46 = arith.subf %29, %45 : vector<8x128xf32>
    %cst_22 = arith.constant 9.99999974E-6 : f32
    %47 = vector.broadcast %cst_22 : f32 to vector<8x1xf32>
    %48 = arith.addf %44, %47 : vector<8x1xf32>
    %49 = math.rsqrt %48 : vector<8x1xf32>
    %50 = vector.broadcast %49 : vector<8x1xf32> to vector<8x128xf32>
    %51 = arith.mulf %46, %50 : vector<8x128xf32>
    %c0_23 = arith.constant 0 : index
    %c0_24 = arith.constant 0 : index
    %c0_25 = arith.constant 0 : index
    %52 = vector.load %arg5[%c0_23, %c0_24, %c0_25] : memref<1x8x1xf32, #tpu.memory_space<vmem>>, vector<1x8x1xf32>
    %53 = vector.shape_cast %52 : vector<1x8x1xf32> to vector<8x1xf32>
    %54 = vector.broadcast %53 : vector<8x1xf32> to vector<8x128xf32>
    %55 = arith.mulf %51, %54 : vector<8x128xf32>
    %c0_26 = arith.constant 0 : index
    %c0_27 = arith.constant 0 : index
    %c0_28 = arith.constant 0 : index
    %56 = vector.load %arg6[%c0_26, %c0_27, %c0_28] : memref<1x8x1xf32, #tpu.memory_space<vmem>>, vector<1x8x1xf32>
    %57 = vector.shape_cast %56 : vector<1x8x1xf32> to vector<8x1xf32>
    %58 = vector.broadcast %57 : vector<8x1xf32> to vector<8x128xf32>
    %59 = arith.addf %55, %58 : vector<8x128xf32>
    %60 = arith.index_cast %arg1 : i32 to index
    %c0_29 = arith.constant 0 : index
    %61 = memref.load %arg10[%60, %c0_29] : memref<1x2xf32, #tpu.memory_space<smem>>
    %cst_30 = arith.constant 0.000000e+00 : f32
    %62 = vector.broadcast %cst_30 : f32 to vector<8x128xf32>
    %63 = arith.cmpf oge, %59, %62 : vector<8x128xf32>
    %64 = vector.broadcast %61 : f32 to vector<8x128xf32>
    %65 = arith.mulf %64, %59 : vector<8x128xf32>
    %66 = arith.select %63, %59, %65 : vector<8x128xi1>, vector<8x128xf32>
    %67 = vector.broadcast %0 : vector<1x128xf32> to vector<8x128xf32>
    %68 = arith.mulf %66, %67 : vector<8x128xf32>
    %c11_i32_31 = arith.constant 11 : i32
    %69 = tpu.dynamic_rotate %68 by %c11_i32_31 dim 1 : vector<8x128xf32>, i32 -> vector<8x128xf32>
    %c10_i32_32 = arith.constant 10 : i32
    %70 = tpu.dynamic_rotate %68 by %c10_i32_32 dim 1 : vector<8x128xf32>, i32 -> vector<8x128xf32>
    %c9_i32_33 = arith.constant 9 : i32
    %71 = tpu.dynamic_rotate %68 by %c9_i32_33 dim 1 : vector<8x128xf32>, i32 -> vector<8x128xf32>
    %c1_i32_34 = arith.constant 1 : i32
    %72 = tpu.dynamic_rotate %68 by %c1_i32_34 dim 1 : vector<8x128xf32>, i32 -> vector<8x128xf32>
    %c127_i32_35 = arith.constant 127 : i32
    %73 = tpu.dynamic_rotate %68 by %c127_i32_35 dim 1 : vector<8x128xf32>, i32 -> vector<8x128xf32>
    %c119_i32_36 = arith.constant 119 : i32
    %74 = tpu.dynamic_rotate %68 by %c119_i32_36 dim 1 : vector<8x128xf32>, i32 -> vector<8x128xf32>
    %c118_i32_37 = arith.constant 118 : i32
    %75 = tpu.dynamic_rotate %68 by %c118_i32_37 dim 1 : vector<8x128xf32>, i32 -> vector<8x128xf32>
    %c117_i32_38 = arith.constant 117 : i32
    %76 = tpu.dynamic_rotate %68 by %c117_i32_38 dim 1 : vector<8x128xf32>, i32 -> vector<8x128xf32>
    %77 = tpu.concatenate %69, %70, %71, %72, %68, %73, %74, %75, %76 in 0 : vector<8x128xf32>, vector<8x128xf32>, vector<8x128xf32>, vector<8x128xf32>, vector<8x128xf32>, vector<8x128xf32>, vector<8x128xf32>, vector<8x128xf32>, vector<8x128xf32> -> vector<72x128xf32>
    %78 = arith.truncf %77 : vector<72x128xf32> to vector<72x128xbf16>
    %c0_39 = arith.constant 0 : index
    %c0_40 = arith.constant 0 : index
    %c0_41 = arith.constant 0 : index
    %79 = vector.load %arg7[%c0_39, %c0_40, %c0_41] : memref<1x8x72xbf16, #tpu.memory_space<vmem>>, vector<1x8x72xbf16>
    %80 = vector.shape_cast %79 : vector<1x8x72xbf16> to vector<8x72xbf16>
    %cst_42 = arith.constant dense<0.000000e+00> : vector<8x128xf32>
    %81 = tpu.matmul %80, %78, %cst_42 {dimension_numbers = #tpu.dot_dimension_numbers<[1], [0], [0], [1], [0, 0, 1, 1], [], []>} : vector<8x72xbf16>, vector<72x128xbf16>, vector<8x128xf32> -> vector<8x128xf32>
    %82 = vector.broadcast %0 : vector<1x128xf32> to vector<8x128xf32>
    %83 = arith.mulf %81, %82 : vector<8x128xf32>
    %cst_43 = arith.constant dense<0.000000e+00> : vector<8xf32>
    %84 = vector.multi_reduction <add>, %83, %cst_43 [1] : vector<8x128xf32> to vector<8xf32>
    %85 = vector.shape_cast %84 : vector<8xf32> to vector<8x1xf32>
    %cst_44 = arith.constant 1.562500e-02 : f32
    %86 = vector.broadcast %cst_44 : f32 to vector<8x1xf32>
    %87 = arith.mulf %85, %86 : vector<8x1xf32>
    %88 = vector.broadcast %87 : vector<8x1xf32> to vector<8x128xf32>
    %89 = arith.subf %81, %88 : vector<8x128xf32>
    %90 = vector.broadcast %0 : vector<1x128xf32> to vector<8x128xf32>
    %91 = arith.mulf %89, %90 : vector<8x128xf32>
    %92 = arith.mulf %91, %91 : vector<8x128xf32>
    %cst_45 = arith.constant dense<0.000000e+00> : vector<8xf32>
    %93 = vector.multi_reduction <add>, %92, %cst_45 [1] : vector<8x128xf32> to vector<8xf32>
    %94 = vector.shape_cast %93 : vector<8xf32> to vector<8x1xf32>
    %cst_46 = arith.constant 1.562500e-02 : f32
    %95 = vector.broadcast %cst_46 : f32 to vector<8x1xf32>
    %96 = arith.mulf %94, %95 : vector<8x1xf32>
    %97 = vector.broadcast %87 : vector<8x1xf32> to vector<8x128xf32>
    %98 = arith.subf %81, %97 : vector<8x128xf32>
    %cst_47 = arith.constant 9.99999974E-6 : f32
    %99 = vector.broadcast %cst_47 : f32 to vector<8x1xf32>
    %100 = arith.addf %96, %99 : vector<8x1xf32>
    %101 = math.rsqrt %100 : vector<8x1xf32>
    %102 = vector.broadcast %101 : vector<8x1xf32> to vector<8x128xf32>
    %103 = arith.mulf %98, %102 : vector<8x128xf32>
    %c0_48 = arith.constant 0 : index
    %c0_49 = arith.constant 0 : index
    %c0_50 = arith.constant 0 : index
    %104 = vector.load %arg8[%c0_48, %c0_49, %c0_50] : memref<1x8x1xf32, #tpu.memory_space<vmem>>, vector<1x8x1xf32>
    %105 = vector.shape_cast %104 : vector<1x8x1xf32> to vector<8x1xf32>
    %106 = vector.broadcast %105 : vector<8x1xf32> to vector<8x128xf32>
    %107 = arith.mulf %103, %106 : vector<8x128xf32>
    %c0_51 = arith.constant 0 : index
    %c0_52 = arith.constant 0 : index
    %c0_53 = arith.constant 0 : index
    %108 = vector.load %arg9[%c0_51, %c0_52, %c0_53] : memref<1x8x1xf32, #tpu.memory_space<vmem>>, vector<1x8x1xf32>
    %109 = vector.shape_cast %108 : vector<1x8x1xf32> to vector<8x1xf32>
    %110 = vector.broadcast %109 : vector<8x1xf32> to vector<8x128xf32>
    %111 = arith.addf %107, %110 : vector<8x128xf32>
    %112 = arith.index_cast %arg1 : i32 to index
    %c1 = arith.constant 1 : index
    %113 = memref.load %arg10[%112, %c1] : memref<1x2xf32, #tpu.memory_space<smem>>
    %cst_54 = arith.constant 0.000000e+00 : f32
    %114 = vector.broadcast %cst_54 : f32 to vector<8x128xf32>
    %115 = arith.cmpf oge, %111, %114 : vector<8x128xf32>
    %116 = vector.broadcast %113 : f32 to vector<8x128xf32>
    %117 = arith.mulf %116, %111 : vector<8x128xf32>
    %118 = arith.select %115, %111, %117 : vector<8x128xi1>, vector<8x128xf32>
    %119 = vector.broadcast %0 : vector<1x128xf32> to vector<8x128xf32>
    %120 = arith.mulf %118, %119 : vector<8x128xf32>
    %121 = arith.truncf %120 : vector<8x128xf32> to vector<8x128xbf16>
    %c0_55 = arith.constant 0 : index
    %c0_56 = arith.constant 0 : index
    %c0_57 = arith.constant 0 : index
    %122 = vector.load %arg12[%c0_55, %c0_56, %c0_57] : memref<1x8x128xbf16, #tpu.memory_space<vmem>>, vector<1x8x128xbf16>
    %123 = vector.shape_cast %122 : vector<1x8x128xbf16> to vector<8x128xbf16>
    %124 = vector.shape_cast %121 : vector<8x128xbf16> to vector<1x8x128xbf16>
    tpu.vector_store %arg12[%c0_55, %c0_56, %c0_57], %124 {strides = array<i32>} : memref<1x8x128xbf16, #tpu.memory_space<vmem>>, vector<1x8x128xbf16>,
    return
  }
  func.func @transform_0(%arg0: i32, %arg1: i32) -> (i32, i32, i32) {
    %c0_i32 = arith.constant 0 : i32
    %c0_i32_0 = arith.constant 0 : i32
    %c0_i32_1 = arith.constant 0 : i32
    return %arg0, %c0_i32, %c0_i32_0 : i32, i32, i32
  }
  func.func @transform_1(%arg0: i32, %arg1: i32) -> (i32, i32, i32) {
    %c0_i32 = arith.constant 0 : i32
    %c0_i32_0 = arith.constant 0 : i32
    %c0_i32_1 = arith.constant 0 : i32
    return %arg0, %c0_i32, %c0_i32_0 : i32, i32, i32
  }
  func.func @transform_2(%arg0: i32, %arg1: i32) -> (i32, i32, i32) {
    %c0_i32 = arith.constant 0 : i32
    %c0_i32_0 = arith.constant 0 : i32
    %c0_i32_1 = arith.constant 0 : i32
    return %arg1, %c0_i32, %c0_i32_0 : i32, i32, i32
  }
  func.func @transform_3(%arg0: i32, %arg1: i32) -> (i32, i32, i32) {
    %c0_i32 = arith.constant 0 : i32
    %c0_i32_0 = arith.constant 0 : i32
    %c0_i32_1 = arith.constant 0 : i32
    return %arg1, %c0_i32, %c0_i32_0 : i32, i32, i32
  }
  func.func @transform_4(%arg0: i32, %arg1: i32) -> (i32, i32, i32) {
    %c0_i32 = arith.constant 0 : i32
    %c0_i32_0 = arith.constant 0 : i32
    %c0_i32_1 = arith.constant 0 : i32
    return %arg1, %c0_i32, %c0_i32_0 : i32, i32, i32
  }
  func.func @transform_5(%arg0: i32, %arg1: i32) -> (i32, i32, i32) {
    %c0_i32 = arith.constant 0 : i32
    %c0_i32_0 = arith.constant 0 : i32
    %c0_i32_1 = arith.constant 0 : i32
    return %arg1, %c0_i32, %c0_i32_0 : i32, i32, i32
  }
  func.func @transform_6(%arg0: i32, %arg1: i32) -> (i32, i32, i32) {
    %c0_i32 = arith.constant 0 : i32
    %c0_i32_0 = arith.constant 0 : i32
    %c0_i32_1 = arith.constant 0 : i32
    return %arg1, %c0_i32, %c0_i32_0 : i32, i32, i32
  }
  func.func @transform_7(%arg0: i32, %arg1: i32) -> (i32, i32, i32) {
    %c0_i32 = arith.constant 0 : i32
    %c0_i32_0 = arith.constant 0 : i32
    %c0_i32_1 = arith.constant 0 : i32
    return %arg1, %c0_i32, %c0_i32_0 : i32, i32, i32
  }
  func.func @transform_8(%arg0: i32, %arg1: i32) -> (i32, i32) {
    %c0_i32 = arith.constant 0 : i32
    %c0_i32_0 = arith.constant 0 : i32
    %c0_i32_1 = arith.constant 0 : i32
    return %c0_i32, %c0_i32_0 : i32, i32
  }
  func.func @transform_9(%arg0: i32, %arg1: i32) -> (i32, i32) {
    %c0_i32 = arith.constant 0 : i32
    %c0_i32_0 = arith.constant 0 : i32
    %c0_i32_1 = arith.constant 0 : i32
    return %c0_i32, %c0_i32_0 : i32, i32
  }
  func.func @transform_10(%arg0: i32, %arg1: i32) -> (i32, i32, i32) {
    %c2_i32 = arith.constant 2 : i32
    %0 = arith.muli %arg1, %c2_i32 : i32
    %1 = arith.addi %0, %arg0 : i32
    %c0_i32 = arith.constant 0 : i32
    %c0_i32_0 = arith.constant 0 : i32
    %c0_i32_1 = arith.constant 0 : i32
    return %1, %c0_i32, %c0_i32_0 : i32, i32, i32
  }
}

module attributes {stable_mosaic.version = 11 : i64} {
  func.func @_upsample2x_kernel(%arg0: i32, %arg1: memref<1x8x10x10xbf16, #tpu.memory_space<vmem>>, %arg2: memref<18x10xf32, #tpu.memory_space<vmem>>, %arg3: memref<10x18xf32, #tpu.memory_space<vmem>>, %arg4: memref<1x8x18x18xbf16, #tpu.memory_space<vmem>>) attributes {dimension_semantics = [#tpu.dimension_semantics<parallel>], iteration_bounds = array<i64: 2>, scalar_prefetch = 0 : i64, scratch_operands = 0 : i64, tpu.core_type = #tpu.core_type<tc>, window_params = [{transform_indices = @transform_0, window_bounds = array<i64: 1, 8, 10, 10>}, {pipeline_mode = #tpu.pipeline_mode<synchronous>, transform_indices = @transform_1, window_bounds = array<i64: 18, 10>}, {pipeline_mode = #tpu.pipeline_mode<synchronous>, transform_indices = @transform_2, window_bounds = array<i64: 10, 18>}, {transform_indices = @transform_3, window_bounds = array<i64: 1, 8, 18, 18>}]} {
    %c0 = arith.constant 0 : index
    %c0_0 = arith.constant 0 : index
    %c0_1 = arith.constant 0 : index
    %c0_2 = arith.constant 0 : index
    %0 = vector.load %arg1[%c0, %c0_0, %c0_1, %c0_2] : memref<1x8x10x10xbf16, #tpu.memory_space<vmem>>, vector<1x8x10x10xbf16>
    %1 = vector.shape_cast %0 : vector<1x8x10x10xbf16> to vector<8x10x10xbf16>
    %2 = arith.extf %1 : vector<8x10x10xbf16> to vector<8x10x10xf32>
    %c0_3 = arith.constant 0 : index
    %c0_4 = arith.constant 0 : index
    %3 = vector.load %arg2[%c0_3, %c0_4] : memref<18x10xf32, #tpu.memory_space<vmem>>, vector<18x10xf32>
    %4 = vector.shape_cast %3 : vector<18x10xf32> to vector<1x18x10xf32>
    %5 = vector.broadcast %4 : vector<1x18x10xf32> to vector<8x18x10xf32>
    %c0_5 = arith.constant 0 : index
    %c0_6 = arith.constant 0 : index
    %6 = vector.load %arg3[%c0_5, %c0_6] : memref<10x18xf32, #tpu.memory_space<vmem>>, vector<10x18xf32>
    %7 = vector.shape_cast %6 : vector<10x18xf32> to vector<1x10x18xf32>
    %8 = vector.broadcast %7 : vector<1x10x18xf32> to vector<8x10x18xf32>
    "tpu.trace_start"() <{level = 10 : i32, message = "coh,chw->cow"}> : () -> ()
    %cst = arith.constant dense<0.000000e+00> : vector<8x18x10xf32>
    %9 = tpu.matmul %5, %2, %cst {dimension_numbers = #tpu.dot_dimension_numbers<[2], [1], [1], [2], [0, 0, 0, 1, 1, 2], [0], [0]>} : vector<8x18x10xf32>, vector<8x10x10xf32>, vector<8x18x10xf32> -> vector<8x18x10xf32>
    "tpu.trace_stop"() : () -> ()
    "tpu.trace_start"() <{level = 10 : i32, message = "cow,cwq->coq"}> : () -> ()
    %cst_7 = arith.constant dense<0.000000e+00> : vector<8x18x18xf32>
    %10 = tpu.matmul %9, %8, %cst_7 {dimension_numbers = #tpu.dot_dimension_numbers<[2], [1], [1], [2], [0, 0, 0, 1, 1, 2], [0], [0]>} : vector<8x18x10xf32>, vector<8x10x18xf32>, vector<8x18x18xf32> -> vector<8x18x18xf32>
    "tpu.trace_stop"() : () -> ()
    %11 = arith.truncf %10 : vector<8x18x18xf32> to vector<8x18x18xbf16>
    %c0_8 = arith.constant 0 : index
    %c0_9 = arith.constant 0 : index
    %c0_10 = arith.constant 0 : index
    %c0_11 = arith.constant 0 : index
    %12 = vector.load %arg4[%c0_8, %c0_9, %c0_10, %c0_11] : memref<1x8x18x18xbf16, #tpu.memory_space<vmem>>, vector<1x8x18x18xbf16>
    %13 = vector.shape_cast %12 : vector<1x8x18x18xbf16> to vector<8x18x18xbf16>
    %14 = vector.shape_cast %11 : vector<8x18x18xbf16> to vector<1x8x18x18xbf16>
    tpu.vector_store %arg4[%c0_8, %c0_9, %c0_10, %c0_11], %14 {strides = array<i32>} : memref<1x8x18x18xbf16, #tpu.memory_space<vmem>>, vector<1x8x18x18xbf16>,
    return
  }
  func.func @transform_0(%arg0: i32) -> (i32, i32, i32, i32) {
    %c0_i32 = arith.constant 0 : i32
    %c0_i32_0 = arith.constant 0 : i32
    %c0_i32_1 = arith.constant 0 : i32
    %c0_i32_2 = arith.constant 0 : i32
    return %arg0, %c0_i32, %c0_i32_0, %c0_i32_1 : i32, i32, i32, i32
  }
  func.func @transform_1(%arg0: i32) -> (i32, i32) {
    %c0_i32 = arith.constant 0 : i32
    %c0_i32_0 = arith.constant 0 : i32
    %c0_i32_1 = arith.constant 0 : i32
    return %c0_i32, %c0_i32_0 : i32, i32
  }
  func.func @transform_2(%arg0: i32) -> (i32, i32) {
    %c0_i32 = arith.constant 0 : i32
    %c0_i32_0 = arith.constant 0 : i32
    %c0_i32_1 = arith.constant 0 : i32
    return %c0_i32, %c0_i32_0 : i32, i32
  }
  func.func @transform_3(%arg0: i32) -> (i32, i32, i32, i32) {
    %c0_i32 = arith.constant 0 : i32
    %c0_i32_0 = arith.constant 0 : i32
    %c0_i32_1 = arith.constant 0 : i32
    %c0_i32_2 = arith.constant 0 : i32
    return %arg0, %c0_i32, %c0_i32_0, %c0_i32_1 : i32, i32, i32, i32
  }
}

module attributes {stable_mosaic.version = 11 : i64} {
  func.func @_fused_stages_kernel(%arg0: i32, %arg1: i32, %arg2: memref<1x8x384xbf16, #tpu.memory_space<vmem>>, %arg3: memref<1x8x384xbf16, #tpu.memory_space<vmem>>, %arg4: memref<1x8x144xbf16, #tpu.memory_space<vmem>>, %arg5: memref<1x8x1xf32, #tpu.memory_space<vmem>>, %arg6: memref<1x8x1xf32, #tpu.memory_space<vmem>>, %arg7: memref<1x8x72xbf16, #tpu.memory_space<vmem>>, %arg8: memref<1x8x1xf32, #tpu.memory_space<vmem>>, %arg9: memref<1x8x1xf32, #tpu.memory_space<vmem>>, %arg10: memref<1x2xf32, #tpu.memory_space<smem>>, %arg11: memref<1x2x8xbf16, #tpu.memory_space<vmem>>, %arg12: memref<1x2x1xf32, #tpu.memory_space<vmem>>, %arg13: memref<1x384xf32, #tpu.memory_space<vmem>>, %arg14: memref<1x8x384xbf16, #tpu.memory_space<vmem>>, %arg15: memref<1x2x384xf32, #tpu.memory_space<vmem>>) attributes {dimension_semantics = [#tpu.dimension_semantics<parallel>, #tpu.dimension_semantics<arbitrary>], iteration_bounds = array<i64: 2, 1>, scalar_prefetch = 0 : i64, scratch_operands = 0 : i64, tpu.core_type = #tpu.core_type<tc>, window_params = [{transform_indices = @transform_0, window_bounds = array<i64: 1, 8, 384>}, {transform_indices = @transform_1, window_bounds = array<i64: 1, 8, 384>}, {transform_indices = @transform_2, window_bounds = array<i64: 1, 8, 144>}, {transform_indices = @transform_3, window_bounds = array<i64: 1, 8, 1>}, {transform_indices = @transform_4, window_bounds = array<i64: 1, 8, 1>}, {transform_indices = @transform_5, window_bounds = array<i64: 1, 8, 72>}, {transform_indices = @transform_6, window_bounds = array<i64: 1, 8, 1>}, {transform_indices = @transform_7, window_bounds = array<i64: 1, 8, 1>}, {transform_indices = @transform_8, window_bounds = array<i64: 1, 2>}, {transform_indices = @transform_9, window_bounds = array<i64: 1, 2, 8>}, {transform_indices = @transform_10, window_bounds = array<i64: 1, 2, 1>}, {pipeline_mode = #tpu.pipeline_mode<synchronous>, transform_indices = @transform_11, window_bounds = array<i64: 1, 384>}, {transform_indices = @transform_12, window_bounds = array<i64: 1, 8, 384>}, {transform_indices = @transform_13, window_bounds = array<i64: 1, 2, 384>}]} {
    %c0 = arith.constant 0 : index
    %c0_0 = arith.constant 0 : index
    %0 = vector.load %arg13[%c0, %c0_0] : memref<1x384xf32, #tpu.memory_space<vmem>>, vector<1x384xf32>
    %c0_1 = arith.constant 0 : index
    %c0_2 = arith.constant 0 : index
    %c0_3 = arith.constant 0 : index
    %1 = vector.load %arg2[%c0_1, %c0_2, %c0_3] : memref<1x8x384xbf16, #tpu.memory_space<vmem>>, vector<1x8x384xbf16>
    %2 = vector.shape_cast %1 : vector<1x8x384xbf16> to vector<8x384xbf16>
    %3 = arith.extf %2 : vector<8x384xbf16> to vector<8x384xf32>
    %c0_4 = arith.constant 0 : index
    %c0_5 = arith.constant 0 : index
    %c0_6 = arith.constant 0 : index
    %4 = vector.load %arg3[%c0_4, %c0_5, %c0_6] : memref<1x8x384xbf16, #tpu.memory_space<vmem>>, vector<1x8x384xbf16>
    %5 = vector.shape_cast %4 : vector<1x8x384xbf16> to vector<8x384xbf16>
    %6 = arith.extf %5 : vector<8x384xbf16> to vector<8x384xf32>
    %c19_i32 = arith.constant 19 : i32
    %7 = tpu.dynamic_rotate %3 by %c19_i32 dim 1 : vector<8x384xf32>, i32 -> vector<8x384xf32>
    %c19_i32_7 = arith.constant 19 : i32
    %8 = tpu.dynamic_rotate %6 by %c19_i32_7 dim 1 : vector<8x384xf32>, i32 -> vector<8x384xf32>
    %c18_i32 = arith.constant 18 : i32
    %9 = tpu.dynamic_rotate %3 by %c18_i32 dim 1 : vector<8x384xf32>, i32 -> vector<8x384xf32>
    %c18_i32_8 = arith.constant 18 : i32
    %10 = tpu.dynamic_rotate %6 by %c18_i32_8 dim 1 : vector<8x384xf32>, i32 -> vector<8x384xf32>
    %c17_i32 = arith.constant 17 : i32
    %11 = tpu.dynamic_rotate %3 by %c17_i32 dim 1 : vector<8x384xf32>, i32 -> vector<8x384xf32>
    %c17_i32_9 = arith.constant 17 : i32
    %12 = tpu.dynamic_rotate %6 by %c17_i32_9 dim 1 : vector<8x384xf32>, i32 -> vector<8x384xf32>
    %c1_i32 = arith.constant 1 : i32
    %13 = tpu.dynamic_rotate %3 by %c1_i32 dim 1 : vector<8x384xf32>, i32 -> vector<8x384xf32>
    %c1_i32_10 = arith.constant 1 : i32
    %14 = tpu.dynamic_rotate %6 by %c1_i32_10 dim 1 : vector<8x384xf32>, i32 -> vector<8x384xf32>
    %c383_i32 = arith.constant 383 : i32
    %15 = tpu.dynamic_rotate %3 by %c383_i32 dim 1 : vector<8x384xf32>, i32 -> vector<8x384xf32>
    %c383_i32_11 = arith.constant 383 : i32
    %16 = tpu.dynamic_rotate %6 by %c383_i32_11 dim 1 : vector<8x384xf32>, i32 -> vector<8x384xf32>
    %c367_i32 = arith.constant 367 : i32
    %17 = tpu.dynamic_rotate %3 by %c367_i32 dim 1 : vector<8x384xf32>, i32 -> vector<8x384xf32>
    %c367_i32_12 = arith.constant 367 : i32
    %18 = tpu.dynamic_rotate %6 by %c367_i32_12 dim 1 : vector<8x384xf32>, i32 -> vector<8x384xf32>
    %c366_i32 = arith.constant 366 : i32
    %19 = tpu.dynamic_rotate %3 by %c366_i32 dim 1 : vector<8x384xf32>, i32 -> vector<8x384xf32>
    %c366_i32_13 = arith.constant 366 : i32
    %20 = tpu.dynamic_rotate %6 by %c366_i32_13 dim 1 : vector<8x384xf32>, i32 -> vector<8x384xf32>
    %c365_i32 = arith.constant 365 : i32
    %21 = tpu.dynamic_rotate %3 by %c365_i32 dim 1 : vector<8x384xf32>, i32 -> vector<8x384xf32>
    %c365_i32_14 = arith.constant 365 : i32
    %22 = tpu.dynamic_rotate %6 by %c365_i32_14 dim 1 : vector<8x384xf32>, i32 -> vector<8x384xf32>
    %23 = tpu.concatenate %7, %8, %9, %10, %11, %12, %13, %14, %3, %6, %15, %16, %17, %18, %19, %20 in 0 : vector<8x384xf32>, vector<8x384xf32>, vector<8x384xf32>, vector<8x384xf32>, vector<8x384xf32>, vector<8x384xf32>, vector<8x384xf32>, vector<8x384xf32>, vector<8x384xf32>, vector<8x384xf32>, vector<8x384xf32>, vector<8x384xf32>, vector<8x384xf32>, vector<8x384xf32>, vector<8x384xf32>, vector<8x384xf32> -> vector<128x384xf32>
    %24 = tpu.concatenate %21, %22 in 0 : vector<8x384xf32>, vector<8x384xf32> -> vector<16x384xf32>
    %25 = tpu.concatenate %23, %24 in 0 : vector<128x384xf32>, vector<16x384xf32> -> vector<144x384xf32>
    %26 = arith.truncf %25 : vector<144x384xf32> to vector<144x384xbf16>
    %c0_15 = arith.constant 0 : index
    %c0_16 = arith.constant 0 : index
    %c0_17 = arith.constant 0 : index
    %27 = vector.load %arg4[%c0_15, %c0_16, %c0_17] : memref<1x8x144xbf16, #tpu.memory_space<vmem>>, vector<1x8x144xbf16>
    %28 = vector.shape_cast %27 : vector<1x8x144xbf16> to vector<8x144xbf16>
    %cst = arith.constant dense<0.000000e+00> : vector<8x384xf32>
    %29 = tpu.matmul %28, %26, %cst {dimension_numbers = #tpu.dot_dimension_numbers<[1], [0], [0], [1], [0, 0, 1, 1], [], []>} : vector<8x144xbf16>, vector<144x384xbf16>, vector<8x384xf32> -> vector<8x384xf32>
    %30 = vector.broadcast %0 : vector<1x384xf32> to vector<8x384xf32>
    %31 = arith.mulf %29, %30 : vector<8x384xf32>
    %cst_18 = arith.constant dense<0.000000e+00> : vector<8xf32>
    %32 = vector.multi_reduction <add>, %31, %cst_18 [1] : vector<8x384xf32> to vector<8xf32>
    %33 = vector.shape_cast %32 : vector<8xf32> to vector<8x1xf32>
    %cst_19 = arith.constant 3.906250e-03 : f32
    %34 = vector.broadcast %cst_19 : f32 to vector<8x1xf32>
    %35 = arith.mulf %33, %34 : vector<8x1xf32>
    %36 = vector.broadcast %35 : vector<8x1xf32> to vector<8x384xf32>
    %37 = arith.subf %29, %36 : vector<8x384xf32>
    %38 = vector.broadcast %0 : vector<1x384xf32> to vector<8x384xf32>
    %39 = arith.mulf %37, %38 : vector<8x384xf32>
    %40 = arith.mulf %39, %39 : vector<8x384xf32>
    %cst_20 = arith.constant dense<0.000000e+00> : vector<8xf32>
    %41 = vector.multi_reduction <add>, %40, %cst_20 [1] : vector<8x384xf32> to vector<8xf32>
    %42 = vector.shape_cast %41 : vector<8xf32> to vector<8x1xf32>
    %cst_21 = arith.constant 3.906250e-03 : f32
    %43 = vector.broadcast %cst_21 : f32 to vector<8x1xf32>
    %44 = arith.mulf %42, %43 : vector<8x1xf32>
    %45 = vector.broadcast %35 : vector<8x1xf32> to vector<8x384xf32>
    %46 = arith.subf %29, %45 : vector<8x384xf32>
    %cst_22 = arith.constant 9.99999974E-6 : f32
    %47 = vector.broadcast %cst_22 : f32 to vector<8x1xf32>
    %48 = arith.addf %44, %47 : vector<8x1xf32>
    %49 = math.rsqrt %48 : vector<8x1xf32>
    %50 = vector.broadcast %49 : vector<8x1xf32> to vector<8x384xf32>
    %51 = arith.mulf %46, %50 : vector<8x384xf32>
    %c0_23 = arith.constant 0 : index
    %c0_24 = arith.constant 0 : index
    %c0_25 = arith.constant 0 : index
    %52 = vector.load %arg5[%c0_23, %c0_24, %c0_25] : memref<1x8x1xf32, #tpu.memory_space<vmem>>, vector<1x8x1xf32>
    %53 = vector.shape_cast %52 : vector<1x8x1xf32> to vector<8x1xf32>
    %54 = vector.broadcast %53 : vector<8x1xf32> to vector<8x384xf32>
    %55 = arith.mulf %51, %54 : vector<8x384xf32>
    %c0_26 = arith.constant 0 : index
    %c0_27 = arith.constant 0 : index
    %c0_28 = arith.constant 0 : index
    %56 = vector.load %arg6[%c0_26, %c0_27, %c0_28] : memref<1x8x1xf32, #tpu.memory_space<vmem>>, vector<1x8x1xf32>
    %57 = vector.shape_cast %56 : vector<1x8x1xf32> to vector<8x1xf32>
    %58 = vector.broadcast %57 : vector<8x1xf32> to vector<8x384xf32>
    %59 = arith.addf %55, %58 : vector<8x384xf32>
    %60 = arith.index_cast %arg1 : i32 to index
    %c0_29 = arith.constant 0 : index
    %61 = memref.load %arg10[%60, %c0_29] : memref<1x2xf32, #tpu.memory_space<smem>>
    %cst_30 = arith.constant 0.000000e+00 : f32
    %62 = vector.broadcast %cst_30 : f32 to vector<8x384xf32>
    %63 = arith.cmpf oge, %59, %62 : vector<8x384xf32>
    %64 = vector.broadcast %61 : f32 to vector<8x384xf32>
    %65 = arith.mulf %64, %59 : vector<8x384xf32>
    %66 = arith.select %63, %59, %65 : vector<8x384xi1>, vector<8x384xf32>
    %67 = vector.broadcast %0 : vector<1x384xf32> to vector<8x384xf32>
    %68 = arith.mulf %66, %67 : vector<8x384xf32>
    %c19_i32_31 = arith.constant 19 : i32
    %69 = tpu.dynamic_rotate %68 by %c19_i32_31 dim 1 : vector<8x384xf32>, i32 -> vector<8x384xf32>
    %c18_i32_32 = arith.constant 18 : i32
    %70 = tpu.dynamic_rotate %68 by %c18_i32_32 dim 1 : vector<8x384xf32>, i32 -> vector<8x384xf32>
    %c17_i32_33 = arith.constant 17 : i32
    %71 = tpu.dynamic_rotate %68 by %c17_i32_33 dim 1 : vector<8x384xf32>, i32 -> vector<8x384xf32>
    %c1_i32_34 = arith.constant 1 : i32
    %72 = tpu.dynamic_rotate %68 by %c1_i32_34 dim 1 : vector<8x384xf32>, i32 -> vector<8x384xf32>
    %c383_i32_35 = arith.constant 383 : i32
    %73 = tpu.dynamic_rotate %68 by %c383_i32_35 dim 1 : vector<8x384xf32>, i32 -> vector<8x384xf32>
    %c367_i32_36 = arith.constant 367 : i32
    %74 = tpu.dynamic_rotate %68 by %c367_i32_36 dim 1 : vector<8x384xf32>, i32 -> vector<8x384xf32>
    %c366_i32_37 = arith.constant 366 : i32
    %75 = tpu.dynamic_rotate %68 by %c366_i32_37 dim 1 : vector<8x384xf32>, i32 -> vector<8x384xf32>
    %c365_i32_38 = arith.constant 365 : i32
    %76 = tpu.dynamic_rotate %68 by %c365_i32_38 dim 1 : vector<8x384xf32>, i32 -> vector<8x384xf32>
    %77 = tpu.concatenate %69, %70, %71, %72, %68, %73, %74, %75, %76 in 0 : vector<8x384xf32>, vector<8x384xf32>, vector<8x384xf32>, vector<8x384xf32>, vector<8x384xf32>, vector<8x384xf32>, vector<8x384xf32>, vector<8x384xf32>, vector<8x384xf32> -> vector<72x384xf32>
    %78 = arith.truncf %77 : vector<72x384xf32> to vector<72x384xbf16>
    %c0_39 = arith.constant 0 : index
    %c0_40 = arith.constant 0 : index
    %c0_41 = arith.constant 0 : index
    %79 = vector.load %arg7[%c0_39, %c0_40, %c0_41] : memref<1x8x72xbf16, #tpu.memory_space<vmem>>, vector<1x8x72xbf16>
    %80 = vector.shape_cast %79 : vector<1x8x72xbf16> to vector<8x72xbf16>
    %cst_42 = arith.constant dense<0.000000e+00> : vector<8x384xf32>
    %81 = tpu.matmul %80, %78, %cst_42 {dimension_numbers = #tpu.dot_dimension_numbers<[1], [0], [0], [1], [0, 0, 1, 1], [], []>} : vector<8x72xbf16>, vector<72x384xbf16>, vector<8x384xf32> -> vector<8x384xf32>
    %82 = vector.broadcast %0 : vector<1x384xf32> to vector<8x384xf32>
    %83 = arith.mulf %81, %82 : vector<8x384xf32>
    %cst_43 = arith.constant dense<0.000000e+00> : vector<8xf32>
    %84 = vector.multi_reduction <add>, %83, %cst_43 [1] : vector<8x384xf32> to vector<8xf32>
    %85 = vector.shape_cast %84 : vector<8xf32> to vector<8x1xf32>
    %cst_44 = arith.constant 3.906250e-03 : f32
    %86 = vector.broadcast %cst_44 : f32 to vector<8x1xf32>
    %87 = arith.mulf %85, %86 : vector<8x1xf32>
    %88 = vector.broadcast %87 : vector<8x1xf32> to vector<8x384xf32>
    %89 = arith.subf %81, %88 : vector<8x384xf32>
    %90 = vector.broadcast %0 : vector<1x384xf32> to vector<8x384xf32>
    %91 = arith.mulf %89, %90 : vector<8x384xf32>
    %92 = arith.mulf %91, %91 : vector<8x384xf32>
    %cst_45 = arith.constant dense<0.000000e+00> : vector<8xf32>
    %93 = vector.multi_reduction <add>, %92, %cst_45 [1] : vector<8x384xf32> to vector<8xf32>
    %94 = vector.shape_cast %93 : vector<8xf32> to vector<8x1xf32>
    %cst_46 = arith.constant 3.906250e-03 : f32
    %95 = vector.broadcast %cst_46 : f32 to vector<8x1xf32>
    %96 = arith.mulf %94, %95 : vector<8x1xf32>
    %97 = vector.broadcast %87 : vector<8x1xf32> to vector<8x384xf32>
    %98 = arith.subf %81, %97 : vector<8x384xf32>
    %cst_47 = arith.constant 9.99999974E-6 : f32
    %99 = vector.broadcast %cst_47 : f32 to vector<8x1xf32>
    %100 = arith.addf %96, %99 : vector<8x1xf32>
    %101 = math.rsqrt %100 : vector<8x1xf32>
    %102 = vector.broadcast %101 : vector<8x1xf32> to vector<8x384xf32>
    %103 = arith.mulf %98, %102 : vector<8x384xf32>
    %c0_48 = arith.constant 0 : index
    %c0_49 = arith.constant 0 : index
    %c0_50 = arith.constant 0 : index
    %104 = vector.load %arg8[%c0_48, %c0_49, %c0_50] : memref<1x8x1xf32, #tpu.memory_space<vmem>>, vector<1x8x1xf32>
    %105 = vector.shape_cast %104 : vector<1x8x1xf32> to vector<8x1xf32>
    %106 = vector.broadcast %105 : vector<8x1xf32> to vector<8x384xf32>
    %107 = arith.mulf %103, %106 : vector<8x384xf32>
    %c0_51 = arith.constant 0 : index
    %c0_52 = arith.constant 0 : index
    %c0_53 = arith.constant 0 : index
    %108 = vector.load %arg9[%c0_51, %c0_52, %c0_53] : memref<1x8x1xf32, #tpu.memory_space<vmem>>, vector<1x8x1xf32>
    %109 = vector.shape_cast %108 : vector<1x8x1xf32> to vector<8x1xf32>
    %110 = vector.broadcast %109 : vector<8x1xf32> to vector<8x384xf32>
    %111 = arith.addf %107, %110 : vector<8x384xf32>
    %112 = arith.index_cast %arg1 : i32 to index
    %c1 = arith.constant 1 : index
    %113 = memref.load %arg10[%112, %c1] : memref<1x2xf32, #tpu.memory_space<smem>>
    %cst_54 = arith.constant 0.000000e+00 : f32
    %114 = vector.broadcast %cst_54 : f32 to vector<8x384xf32>
    %115 = arith.cmpf oge, %111, %114 : vector<8x384xf32>
    %116 = vector.broadcast %113 : f32 to vector<8x384xf32>
    %117 = arith.mulf %116, %111 : vector<8x384xf32>
    %118 = arith.select %115, %111, %117 : vector<8x384xi1>, vector<8x384xf32>
    %119 = vector.broadcast %0 : vector<1x384xf32> to vector<8x384xf32>
    %120 = arith.mulf %118, %119 : vector<8x384xf32>
    %121 = arith.truncf %120 : vector<8x384xf32> to vector<8x384xbf16>
    %c0_55 = arith.constant 0 : index
    %c0_56 = arith.constant 0 : index
    %c0_57 = arith.constant 0 : index
    %122 = vector.load %arg14[%c0_55, %c0_56, %c0_57] : memref<1x8x384xbf16, #tpu.memory_space<vmem>>, vector<1x8x384xbf16>
    %123 = vector.shape_cast %122 : vector<1x8x384xbf16> to vector<8x384xbf16>
    %124 = vector.shape_cast %121 : vector<8x384xbf16> to vector<1x8x384xbf16>
    tpu.vector_store %arg14[%c0_55, %c0_56, %c0_57], %124 {strides = array<i32>} : memref<1x8x384xbf16, #tpu.memory_space<vmem>>, vector<1x8x384xbf16>,
    %c0_58 = arith.constant 0 : index
    %c0_59 = arith.constant 0 : index
    %c0_60 = arith.constant 0 : index
    %125 = vector.load %arg11[%c0_58, %c0_59, %c0_60] : memref<1x2x8xbf16, #tpu.memory_space<vmem>>, vector<1x2x8xbf16>
    %126 = vector.shape_cast %125 : vector<1x2x8xbf16> to vector<2x8xbf16>
    %127 = arith.truncf %120 : vector<8x384xf32> to vector<8x384xbf16>
    %cst_61 = arith.constant dense<0.000000e+00> : vector<2x384xf32>
    %128 = tpu.matmul %126, %127, %cst_61 {dimension_numbers = #tpu.dot_dimension_numbers<[1], [0], [0], [1], [0, 0, 1, 1], [], []>} : vector<2x8xbf16>, vector<8x384xbf16>, vector<2x384xf32> -> vector<2x384xf32>
    %c0_62 = arith.constant 0 : index
    %c0_63 = arith.constant 0 : index
    %c0_64 = arith.constant 0 : index
    %129 = vector.load %arg12[%c0_62, %c0_63, %c0_64] : memref<1x2x1xf32, #tpu.memory_space<vmem>>, vector<1x2x1xf32>
    %130 = vector.shape_cast %129 : vector<1x2x1xf32> to vector<2x1xf32>
    %131 = vector.broadcast %130 : vector<2x1xf32> to vector<2x384xf32>
    %132 = arith.addf %128, %131 : vector<2x384xf32>
    %c0_65 = arith.constant 0 : index
    %c0_66 = arith.constant 0 : index
    %c0_67 = arith.constant 0 : index
    %133 = vector.load %arg15[%c0_65, %c0_66, %c0_67] : memref<1x2x384xf32, #tpu.memory_space<vmem>>, vector<1x2x384xf32>
    %134 = vector.shape_cast %133 : vector<1x2x384xf32> to vector<2x384xf32>
    %135 = vector.shape_cast %132 : vector<2x384xf32> to vector<1x2x384xf32>
    tpu.vector_store %arg15[%c0_65, %c0_66, %c0_67], %135 {strides = array<i32>} : memref<1x2x384xf32, #tpu.memory_space<vmem>>, vector<1x2x384xf32>,
    return
  }
  func.func @transform_0(%arg0: i32, %arg1: i32) -> (i32, i32, i32) {
    %c0_i32 = arith.constant 0 : i32
    %c0_i32_0 = arith.constant 0 : i32
    %c0_i32_1 = arith.constant 0 : i32
    return %arg0, %c0_i32, %c0_i32_0 : i32, i32, i32
  }
  func.func @transform_1(%arg0: i32, %arg1: i32) -> (i32, i32, i32) {
    %c0_i32 = arith.constant 0 : i32
    %c0_i32_0 = arith.constant 0 : i32
    %c0_i32_1 = arith.constant 0 : i32
    return %arg0, %c0_i32, %c0_i32_0 : i32, i32, i32
  }
  func.func @transform_2(%arg0: i32, %arg1: i32) -> (i32, i32, i32) {
    %c0_i32 = arith.constant 0 : i32
    %c0_i32_0 = arith.constant 0 : i32
    %c0_i32_1 = arith.constant 0 : i32
    return %arg1, %c0_i32, %c0_i32_0 : i32, i32, i32
  }
  func.func @transform_3(%arg0: i32, %arg1: i32) -> (i32, i32, i32) {
    %c0_i32 = arith.constant 0 : i32
    %c0_i32_0 = arith.constant 0 : i32
    %c0_i32_1 = arith.constant 0 : i32
    return %arg1, %c0_i32, %c0_i32_0 : i32, i32, i32
  }
  func.func @transform_4(%arg0: i32, %arg1: i32) -> (i32, i32, i32) {
    %c0_i32 = arith.constant 0 : i32
    %c0_i32_0 = arith.constant 0 : i32
    %c0_i32_1 = arith.constant 0 : i32
    return %arg1, %c0_i32, %c0_i32_0 : i32, i32, i32
  }
  func.func @transform_5(%arg0: i32, %arg1: i32) -> (i32, i32, i32) {
    %c0_i32 = arith.constant 0 : i32
    %c0_i32_0 = arith.constant 0 : i32
    %c0_i32_1 = arith.constant 0 : i32
    return %arg1, %c0_i32, %c0_i32_0 : i32, i32, i32
  }
  func.func @transform_6(%arg0: i32, %arg1: i32) -> (i32, i32, i32) {
    %c0_i32 = arith.constant 0 : i32
    %c0_i32_0 = arith.constant 0 : i32
    %c0_i32_1 = arith.constant 0 : i32
    return %arg1, %c0_i32, %c0_i32_0 : i32, i32, i32
  }
  func.func @transform_7(%arg0: i32, %arg1: i32) -> (i32, i32, i32) {
    %c0_i32 = arith.constant 0 : i32
    %c0_i32_0 = arith.constant 0 : i32
    %c0_i32_1 = arith.constant 0 : i32
    return %arg1, %c0_i32, %c0_i32_0 : i32, i32, i32
  }
  func.func @transform_8(%arg0: i32, %arg1: i32) -> (i32, i32) {
    %c0_i32 = arith.constant 0 : i32
    %c0_i32_0 = arith.constant 0 : i32
    %c0_i32_1 = arith.constant 0 : i32
    return %c0_i32, %c0_i32_0 : i32, i32
  }
  func.func @transform_9(%arg0: i32, %arg1: i32) -> (i32, i32, i32) {
    %c0_i32 = arith.constant 0 : i32
    %c0_i32_0 = arith.constant 0 : i32
    %c0_i32_1 = arith.constant 0 : i32
    return %arg1, %c0_i32, %c0_i32_0 : i32, i32, i32
  }
  func.func @transform_10(%arg0: i32, %arg1: i32) -> (i32, i32, i32) {
    %c0_i32 = arith.constant 0 : i32
    %c0_i32_0 = arith.constant 0 : i32
    %c0_i32_1 = arith.constant 0 : i32
    return %arg1, %c0_i32, %c0_i32_0 : i32, i32, i32
  }
  func.func @transform_11(%arg0: i32, %arg1: i32) -> (i32, i32) {
    %c0_i32 = arith.constant 0 : i32
    %c0_i32_0 = arith.constant 0 : i32
    %c0_i32_1 = arith.constant 0 : i32
    return %c0_i32, %c0_i32_0 : i32, i32
  }
  func.func @transform_12(%arg0: i32, %arg1: i32) -> (i32, i32, i32) {
    %c2_i32 = arith.constant 2 : i32
    %0 = arith.muli %arg1, %c2_i32 : i32
    %1 = arith.addi %0, %arg0 : i32
    %c0_i32 = arith.constant 0 : i32
    %c0_i32_0 = arith.constant 0 : i32
    %c0_i32_1 = arith.constant 0 : i32
    return %1, %c0_i32, %c0_i32_0 : i32, i32, i32
  }
  func.func @transform_13(%arg0: i32, %arg1: i32) -> (i32, i32, i32) {
    %c2_i32 = arith.constant 2 : i32
    %0 = arith.muli %arg1, %c2_i32 : i32
    %1 = arith.addi %0, %arg0 : i32
    %c0_i32 = arith.constant 0 : i32
    %c0_i32_0 = arith.constant 0 : i32
    %c0_i32_1 = arith.constant 0 : i32
    return %1, %c0_i32, %c0_i32_0 : i32, i32, i32
  }
}

module attributes {stable_mosaic.version = 11 : i64} {
  func.func @_fused_stages_kernel(%arg0: i32, %arg1: i32, %arg2: memref<1x8x384xbf16, #tpu.memory_space<vmem>>, %arg3: memref<1x8x72xbf16, #tpu.memory_space<vmem>>, %arg4: memref<1x8x1xf32, #tpu.memory_space<vmem>>, %arg5: memref<1x8x1xf32, #tpu.memory_space<vmem>>, %arg6: memref<1x8x72xbf16, #tpu.memory_space<vmem>>, %arg7: memref<1x8x1xf32, #tpu.memory_space<vmem>>, %arg8: memref<1x8x1xf32, #tpu.memory_space<vmem>>, %arg9: memref<1x8x72xbf16, #tpu.memory_space<vmem>>, %arg10: memref<1x8x1xf32, #tpu.memory_space<vmem>>, %arg11: memref<1x8x1xf32, #tpu.memory_space<vmem>>, %arg12: memref<1x8x72xbf16, #tpu.memory_space<vmem>>, %arg13: memref<1x8x1xf32, #tpu.memory_space<vmem>>, %arg14: memref<1x8x1xf32, #tpu.memory_space<vmem>>, %arg15: memref<3x4xf32, #tpu.memory_space<smem>>, %arg16: memref<1x4x8xbf16, #tpu.memory_space<vmem>>, %arg17: memref<1x4x1xf32, #tpu.memory_space<vmem>>, %arg18: memref<1x384xf32, #tpu.memory_space<vmem>>, %arg19: memref<1x4x384xf32, #tpu.memory_space<vmem>>) attributes {dimension_semantics = [#tpu.dimension_semantics<parallel>, #tpu.dimension_semantics<arbitrary>], iteration_bounds = array<i64: 2, 3>, scalar_prefetch = 0 : i64, scratch_operands = 0 : i64, tpu.core_type = #tpu.core_type<tc>, window_params = [{transform_indices = @transform_0, window_bounds = array<i64: 1, 8, 384>}, {transform_indices = @transform_1, window_bounds = array<i64: 1, 8, 72>}, {transform_indices = @transform_2, window_bounds = array<i64: 1, 8, 1>}, {transform_indices = @transform_3, window_bounds = array<i64: 1, 8, 1>}, {transform_indices = @transform_4, window_bounds = array<i64: 1, 8, 72>}, {transform_indices = @transform_5, window_bounds = array<i64: 1, 8, 1>}, {transform_indices = @transform_6, window_bounds = array<i64: 1, 8, 1>}, {transform_indices = @transform_7, window_bounds = array<i64: 1, 8, 72>}, {transform_indices = @transform_8, window_bounds = array<i64: 1, 8, 1>}, {transform_indices = @transform_9, window_bounds = array<i64: 1, 8, 1>}, {transform_indices = @transform_10, window_bounds = array<i64: 1, 8, 72>}, {transform_indices = @transform_11, window_bounds = array<i64: 1, 8, 1>}, {transform_indices = @transform_12, window_bounds = array<i64: 1, 8, 1>}, {transform_indices = @transform_13, window_bounds = array<i64: 3, 4>}, {transform_indices = @transform_14, window_bounds = array<i64: 1, 4, 8>}, {transform_indices = @transform_15, window_bounds = array<i64: 1, 4, 1>}, {pipeline_mode = #tpu.pipeline_mode<synchronous>, transform_indices = @transform_16, window_bounds = array<i64: 1, 384>}, {transform_indices = @transform_17, window_bounds = array<i64: 1, 4, 384>}]} {
    %c0 = arith.constant 0 : index
    %c0_0 = arith.constant 0 : index
    %0 = vector.load %arg18[%c0, %c0_0] : memref<1x384xf32, #tpu.memory_space<vmem>>, vector<1x384xf32>
    %c0_1 = arith.constant 0 : index
    %c0_2 = arith.constant 0 : index
    %c0_3 = arith.constant 0 : index
    %1 = vector.load %arg2[%c0_1, %c0_2, %c0_3] : memref<1x8x384xbf16, #tpu.memory_space<vmem>>, vector<1x8x384xbf16>
    %2 = vector.shape_cast %1 : vector<1x8x384xbf16> to vector<8x384xbf16>
    %3 = arith.extf %2 : vector<8x384xbf16> to vector<8x384xf32>
    %c19_i32 = arith.constant 19 : i32
    %4 = tpu.dynamic_rotate %3 by %c19_i32 dim 1 : vector<8x384xf32>, i32 -> vector<8x384xf32>
    %c18_i32 = arith.constant 18 : i32
    %5 = tpu.dynamic_rotate %3 by %c18_i32 dim 1 : vector<8x384xf32>, i32 -> vector<8x384xf32>
    %c17_i32 = arith.constant 17 : i32
    %6 = tpu.dynamic_rotate %3 by %c17_i32 dim 1 : vector<8x384xf32>, i32 -> vector<8x384xf32>
    %c1_i32 = arith.constant 1 : i32
    %7 = tpu.dynamic_rotate %3 by %c1_i32 dim 1 : vector<8x384xf32>, i32 -> vector<8x384xf32>
    %c383_i32 = arith.constant 383 : i32
    %8 = tpu.dynamic_rotate %3 by %c383_i32 dim 1 : vector<8x384xf32>, i32 -> vector<8x384xf32>
    %c367_i32 = arith.constant 367 : i32
    %9 = tpu.dynamic_rotate %3 by %c367_i32 dim 1 : vector<8x384xf32>, i32 -> vector<8x384xf32>
    %c366_i32 = arith.constant 366 : i32
    %10 = tpu.dynamic_rotate %3 by %c366_i32 dim 1 : vector<8x384xf32>, i32 -> vector<8x384xf32>
    %c365_i32 = arith.constant 365 : i32
    %11 = tpu.dynamic_rotate %3 by %c365_i32 dim 1 : vector<8x384xf32>, i32 -> vector<8x384xf32>
    %12 = tpu.concatenate %4, %5, %6, %7, %3, %8, %9, %10, %11 in 0 : vector<8x384xf32>, vector<8x384xf32>, vector<8x384xf32>, vector<8x384xf32>, vector<8x384xf32>, vector<8x384xf32>, vector<8x384xf32>, vector<8x384xf32>, vector<8x384xf32> -> vector<72x384xf32>
    %13 = arith.truncf %12 : vector<72x384xf32> to vector<72x384xbf16>
    %c0_4 = arith.constant 0 : index
    %c0_5 = arith.constant 0 : index
    %c0_6 = arith.constant 0 : index
    %14 = vector.load %arg3[%c0_4, %c0_5, %c0_6] : memref<1x8x72xbf16, #tpu.memory_space<vmem>>, vector<1x8x72xbf16>
    %15 = vector.shape_cast %14 : vector<1x8x72xbf16> to vector<8x72xbf16>
    %cst = arith.constant dense<0.000000e+00> : vector<8x384xf32>
    %16 = tpu.matmul %15, %13, %cst {dimension_numbers = #tpu.dot_dimension_numbers<[1], [0], [0], [1], [0, 0, 1, 1], [], []>} : vector<8x72xbf16>, vector<72x384xbf16>, vector<8x384xf32> -> vector<8x384xf32>
    %17 = vector.broadcast %0 : vector<1x384xf32> to vector<8x384xf32>
    %18 = arith.mulf %16, %17 : vector<8x384xf32>
    %cst_7 = arith.constant dense<0.000000e+00> : vector<8xf32>
    %19 = vector.multi_reduction <add>, %18, %cst_7 [1] : vector<8x384xf32> to vector<8xf32>
    %20 = vector.shape_cast %19 : vector<8xf32> to vector<8x1xf32>
    %cst_8 = arith.constant 3.906250e-03 : f32
    %21 = vector.broadcast %cst_8 : f32 to vector<8x1xf32>
    %22 = arith.mulf %20, %21 : vector<8x1xf32>
    %23 = vector.broadcast %22 : vector<8x1xf32> to vector<8x384xf32>
    %24 = arith.subf %16, %23 : vector<8x384xf32>
    %25 = vector.broadcast %0 : vector<1x384xf32> to vector<8x384xf32>
    %26 = arith.mulf %24, %25 : vector<8x384xf32>
    %27 = arith.mulf %26, %26 : vector<8x384xf32>
    %cst_9 = arith.constant dense<0.000000e+00> : vector<8xf32>
    %28 = vector.multi_reduction <add>, %27, %cst_9 [1] : vector<8x384xf32> to vector<8xf32>
    %29 = vector.shape_cast %28 : vector<8xf32> to vector<8x1xf32>
    %cst_10 = arith.constant 3.906250e-03 : f32
    %30 = vector.broadcast %cst_10 : f32 to vector<8x1xf32>
    %31 = arith.mulf %29, %30 : vector<8x1xf32>
    %32 = vector.broadcast %22 : vector<8x1xf32> to vector<8x384xf32>
    %33 = arith.subf %16, %32 : vector<8x384xf32>
    %cst_11 = arith.constant 9.99999974E-6 : f32
    %34 = vector.broadcast %cst_11 : f32 to vector<8x1xf32>
    %35 = arith.addf %31, %34 : vector<8x1xf32>
    %36 = math.rsqrt %35 : vector<8x1xf32>
    %37 = vector.broadcast %36 : vector<8x1xf32> to vector<8x384xf32>
    %38 = arith.mulf %33, %37 : vector<8x384xf32>
    %c0_12 = arith.constant 0 : index
    %c0_13 = arith.constant 0 : index
    %c0_14 = arith.constant 0 : index
    %39 = vector.load %arg4[%c0_12, %c0_13, %c0_14] : memref<1x8x1xf32, #tpu.memory_space<vmem>>, vector<1x8x1xf32>
    %40 = vector.shape_cast %39 : vector<1x8x1xf32> to vector<8x1xf32>
    %41 = vector.broadcast %40 : vector<8x1xf32> to vector<8x384xf32>
    %42 = arith.mulf %38, %41 : vector<8x384xf32>
    %c0_15 = arith.constant 0 : index
    %c0_16 = arith.constant 0 : index
    %c0_17 = arith.constant 0 : index
    %43 = vector.load %arg5[%c0_15, %c0_16, %c0_17] : memref<1x8x1xf32, #tpu.memory_space<vmem>>, vector<1x8x1xf32>
    %44 = vector.shape_cast %43 : vector<1x8x1xf32> to vector<8x1xf32>
    %45 = vector.broadcast %44 : vector<8x1xf32> to vector<8x384xf32>
    %46 = arith.addf %42, %45 : vector<8x384xf32>
    %47 = arith.index_cast %arg1 : i32 to index
    %c0_18 = arith.constant 0 : index
    %48 = memref.load %arg15[%47, %c0_18] : memref<3x4xf32, #tpu.memory_space<smem>>
    %cst_19 = arith.constant 0.000000e+00 : f32
    %49 = vector.broadcast %cst_19 : f32 to vector<8x384xf32>
    %50 = arith.cmpf oge, %46, %49 : vector<8x384xf32>
    %51 = vector.broadcast %48 : f32 to vector<8x384xf32>
    %52 = arith.mulf %51, %46 : vector<8x384xf32>
    %53 = arith.select %50, %46, %52 : vector<8x384xi1>, vector<8x384xf32>
    %54 = vector.broadcast %0 : vector<1x384xf32> to vector<8x384xf32>
    %55 = arith.mulf %53, %54 : vector<8x384xf32>
    %c19_i32_20 = arith.constant 19 : i32
    %56 = tpu.dynamic_rotate %55 by %c19_i32_20 dim 1 : vector<8x384xf32>, i32 -> vector<8x384xf32>
    %c18_i32_21 = arith.constant 18 : i32
    %57 = tpu.dynamic_rotate %55 by %c18_i32_21 dim 1 : vector<8x384xf32>, i32 -> vector<8x384xf32>
    %c17_i32_22 = arith.constant 17 : i32
    %58 = tpu.dynamic_rotate %55 by %c17_i32_22 dim 1 : vector<8x384xf32>, i32 -> vector<8x384xf32>
    %c1_i32_23 = arith.constant 1 : i32
    %59 = tpu.dynamic_rotate %55 by %c1_i32_23 dim 1 : vector<8x384xf32>, i32 -> vector<8x384xf32>
    %c383_i32_24 = arith.constant 383 : i32
    %60 = tpu.dynamic_rotate %55 by %c383_i32_24 dim 1 : vector<8x384xf32>, i32 -> vector<8x384xf32>
    %c367_i32_25 = arith.constant 367 : i32
    %61 = tpu.dynamic_rotate %55 by %c367_i32_25 dim 1 : vector<8x384xf32>, i32 -> vector<8x384xf32>
    %c366_i32_26 = arith.constant 366 : i32
    %62 = tpu.dynamic_rotate %55 by %c366_i32_26 dim 1 : vector<8x384xf32>, i32 -> vector<8x384xf32>
    %c365_i32_27 = arith.constant 365 : i32
    %63 = tpu.dynamic_rotate %55 by %c365_i32_27 dim 1 : vector<8x384xf32>, i32 -> vector<8x384xf32>
    %64 = tpu.concatenate %56, %57, %58, %59, %55, %60, %61, %62, %63 in 0 : vector<8x384xf32>, vector<8x384xf32>, vector<8x384xf32>, vector<8x384xf32>, vector<8x384xf32>, vector<8x384xf32>, vector<8x384xf32>, vector<8x384xf32>, vector<8x384xf32> -> vector<72x384xf32>
    %65 = arith.truncf %64 : vector<72x384xf32> to vector<72x384xbf16>
    %c0_28 = arith.constant 0 : index
    %c0_29 = arith.constant 0 : index
    %c0_30 = arith.constant 0 : index
    %66 = vector.load %arg6[%c0_28, %c0_29, %c0_30] : memref<1x8x72xbf16, #tpu.memory_space<vmem>>, vector<1x8x72xbf16>
    %67 = vector.shape_cast %66 : vector<1x8x72xbf16> to vector<8x72xbf16>
    %cst_31 = arith.constant dense<0.000000e+00> : vector<8x384xf32>
    %68 = tpu.matmul %67, %65, %cst_31 {dimension_numbers = #tpu.dot_dimension_numbers<[1], [0], [0], [1], [0, 0, 1, 1], [], []>} : vector<8x72xbf16>, vector<72x384xbf16>, vector<8x384xf32> -> vector<8x384xf32>
    %69 = vector.broadcast %0 : vector<1x384xf32> to vector<8x384xf32>
    %70 = arith.mulf %68, %69 : vector<8x384xf32>
    %cst_32 = arith.constant dense<0.000000e+00> : vector<8xf32>
    %71 = vector.multi_reduction <add>, %70, %cst_32 [1] : vector<8x384xf32> to vector<8xf32>
    %72 = vector.shape_cast %71 : vector<8xf32> to vector<8x1xf32>
    %cst_33 = arith.constant 3.906250e-03 : f32
    %73 = vector.broadcast %cst_33 : f32 to vector<8x1xf32>
    %74 = arith.mulf %72, %73 : vector<8x1xf32>
    %75 = vector.broadcast %74 : vector<8x1xf32> to vector<8x384xf32>
    %76 = arith.subf %68, %75 : vector<8x384xf32>
    %77 = vector.broadcast %0 : vector<1x384xf32> to vector<8x384xf32>
    %78 = arith.mulf %76, %77 : vector<8x384xf32>
    %79 = arith.mulf %78, %78 : vector<8x384xf32>
    %cst_34 = arith.constant dense<0.000000e+00> : vector<8xf32>
    %80 = vector.multi_reduction <add>, %79, %cst_34 [1] : vector<8x384xf32> to vector<8xf32>
    %81 = vector.shape_cast %80 : vector<8xf32> to vector<8x1xf32>
    %cst_35 = arith.constant 3.906250e-03 : f32
    %82 = vector.broadcast %cst_35 : f32 to vector<8x1xf32>
    %83 = arith.mulf %81, %82 : vector<8x1xf32>
    %84 = vector.broadcast %74 : vector<8x1xf32> to vector<8x384xf32>
    %85 = arith.subf %68, %84 : vector<8x384xf32>
    %cst_36 = arith.constant 9.99999974E-6 : f32
    %86 = vector.broadcast %cst_36 : f32 to vector<8x1xf32>
    %87 = arith.addf %83, %86 : vector<8x1xf32>
    %88 = math.rsqrt %87 : vector<8x1xf32>
    %89 = vector.broadcast %88 : vector<8x1xf32> to vector<8x384xf32>
    %90 = arith.mulf %85, %89 : vector<8x384xf32>
    %c0_37 = arith.constant 0 : index
    %c0_38 = arith.constant 0 : index
    %c0_39 = arith.constant 0 : index
    %91 = vector.load %arg7[%c0_37, %c0_38, %c0_39] : memref<1x8x1xf32, #tpu.memory_space<vmem>>, vector<1x8x1xf32>
    %92 = vector.shape_cast %91 : vector<1x8x1xf32> to vector<8x1xf32>
    %93 = vector.broadcast %92 : vector<8x1xf32> to vector<8x384xf32>
    %94 = arith.mulf %90, %93 : vector<8x384xf32>
    %c0_40 = arith.constant 0 : index
    %c0_41 = arith.constant 0 : index
    %c0_42 = arith.constant 0 : index
    %95 = vector.load %arg8[%c0_40, %c0_41, %c0_42] : memref<1x8x1xf32, #tpu.memory_space<vmem>>, vector<1x8x1xf32>
    %96 = vector.shape_cast %95 : vector<1x8x1xf32> to vector<8x1xf32>
    %97 = vector.broadcast %96 : vector<8x1xf32> to vector<8x384xf32>
    %98 = arith.addf %94, %97 : vector<8x384xf32>
    %99 = arith.index_cast %arg1 : i32 to index
    %c1 = arith.constant 1 : index
    %100 = memref.load %arg15[%99, %c1] : memref<3x4xf32, #tpu.memory_space<smem>>
    %cst_43 = arith.constant 0.000000e+00 : f32
    %101 = vector.broadcast %cst_43 : f32 to vector<8x384xf32>
    %102 = arith.cmpf oge, %98, %101 : vector<8x384xf32>
    %103 = vector.broadcast %100 : f32 to vector<8x384xf32>
    %104 = arith.mulf %103, %98 : vector<8x384xf32>
    %105 = arith.select %102, %98, %104 : vector<8x384xi1>, vector<8x384xf32>
    %106 = vector.broadcast %0 : vector<1x384xf32> to vector<8x384xf32>
    %107 = arith.mulf %105, %106 : vector<8x384xf32>
    %c19_i32_44 = arith.constant 19 : i32
    %108 = tpu.dynamic_rotate %107 by %c19_i32_44 dim 1 : vector<8x384xf32>, i32 -> vector<8x384xf32>
    %c18_i32_45 = arith.constant 18 : i32
    %109 = tpu.dynamic_rotate %107 by %c18_i32_45 dim 1 : vector<8x384xf32>, i32 -> vector<8x384xf32>
    %c17_i32_46 = arith.constant 17 : i32
    %110 = tpu.dynamic_rotate %107 by %c17_i32_46 dim 1 : vector<8x384xf32>, i32 -> vector<8x384xf32>
    %c1_i32_47 = arith.constant 1 : i32
    %111 = tpu.dynamic_rotate %107 by %c1_i32_47 dim 1 : vector<8x384xf32>, i32 -> vector<8x384xf32>
    %c383_i32_48 = arith.constant 383 : i32
    %112 = tpu.dynamic_rotate %107 by %c383_i32_48 dim 1 : vector<8x384xf32>, i32 -> vector<8x384xf32>
    %c367_i32_49 = arith.constant 367 : i32
    %113 = tpu.dynamic_rotate %107 by %c367_i32_49 dim 1 : vector<8x384xf32>, i32 -> vector<8x384xf32>
    %c366_i32_50 = arith.constant 366 : i32
    %114 = tpu.dynamic_rotate %107 by %c366_i32_50 dim 1 : vector<8x384xf32>, i32 -> vector<8x384xf32>
    %c365_i32_51 = arith.constant 365 : i32
    %115 = tpu.dynamic_rotate %107 by %c365_i32_51 dim 1 : vector<8x384xf32>, i32 -> vector<8x384xf32>
    %116 = tpu.concatenate %108, %109, %110, %111, %107, %112, %113, %114, %115 in 0 : vector<8x384xf32>, vector<8x384xf32>, vector<8x384xf32>, vector<8x384xf32>, vector<8x384xf32>, vector<8x384xf32>, vector<8x384xf32>, vector<8x384xf32>, vector<8x384xf32> -> vector<72x384xf32>
    %117 = arith.truncf %116 : vector<72x384xf32> to vector<72x384xbf16>
    %c0_52 = arith.constant 0 : index
    %c0_53 = arith.constant 0 : index
    %c0_54 = arith.constant 0 : index
    %118 = vector.load %arg9[%c0_52, %c0_53, %c0_54] : memref<1x8x72xbf16, #tpu.memory_space<vmem>>, vector<1x8x72xbf16>
    %119 = vector.shape_cast %118 : vector<1x8x72xbf16> to vector<8x72xbf16>
    %cst_55 = arith.constant dense<0.000000e+00> : vector<8x384xf32>
    %120 = tpu.matmul %119, %117, %cst_55 {dimension_numbers = #tpu.dot_dimension_numbers<[1], [0], [0], [1], [0, 0, 1, 1], [], []>} : vector<8x72xbf16>, vector<72x384xbf16>, vector<8x384xf32> -> vector<8x384xf32>
    %121 = vector.broadcast %0 : vector<1x384xf32> to vector<8x384xf32>
    %122 = arith.mulf %120, %121 : vector<8x384xf32>
    %cst_56 = arith.constant dense<0.000000e+00> : vector<8xf32>
    %123 = vector.multi_reduction <add>, %122, %cst_56 [1] : vector<8x384xf32> to vector<8xf32>
    %124 = vector.shape_cast %123 : vector<8xf32> to vector<8x1xf32>
    %cst_57 = arith.constant 3.906250e-03 : f32
    %125 = vector.broadcast %cst_57 : f32 to vector<8x1xf32>
    %126 = arith.mulf %124, %125 : vector<8x1xf32>
    %127 = vector.broadcast %126 : vector<8x1xf32> to vector<8x384xf32>
    %128 = arith.subf %120, %127 : vector<8x384xf32>
    %129 = vector.broadcast %0 : vector<1x384xf32> to vector<8x384xf32>
    %130 = arith.mulf %128, %129 : vector<8x384xf32>
    %131 = arith.mulf %130, %130 : vector<8x384xf32>
    %cst_58 = arith.constant dense<0.000000e+00> : vector<8xf32>
    %132 = vector.multi_reduction <add>, %131, %cst_58 [1] : vector<8x384xf32> to vector<8xf32>
    %133 = vector.shape_cast %132 : vector<8xf32> to vector<8x1xf32>
    %cst_59 = arith.constant 3.906250e-03 : f32
    %134 = vector.broadcast %cst_59 : f32 to vector<8x1xf32>
    %135 = arith.mulf %133, %134 : vector<8x1xf32>
    %136 = vector.broadcast %126 : vector<8x1xf32> to vector<8x384xf32>
    %137 = arith.subf %120, %136 : vector<8x384xf32>
    %cst_60 = arith.constant 9.99999974E-6 : f32
    %138 = vector.broadcast %cst_60 : f32 to vector<8x1xf32>
    %139 = arith.addf %135, %138 : vector<8x1xf32>
    %140 = math.rsqrt %139 : vector<8x1xf32>
    %141 = vector.broadcast %140 : vector<8x1xf32> to vector<8x384xf32>
    %142 = arith.mulf %137, %141 : vector<8x384xf32>
    %c0_61 = arith.constant 0 : index
    %c0_62 = arith.constant 0 : index
    %c0_63 = arith.constant 0 : index
    %143 = vector.load %arg10[%c0_61, %c0_62, %c0_63] : memref<1x8x1xf32, #tpu.memory_space<vmem>>, vector<1x8x1xf32>
    %144 = vector.shape_cast %143 : vector<1x8x1xf32> to vector<8x1xf32>
    %145 = vector.broadcast %144 : vector<8x1xf32> to vector<8x384xf32>
    %146 = arith.mulf %142, %145 : vector<8x384xf32>
    %c0_64 = arith.constant 0 : index
    %c0_65 = arith.constant 0 : index
    %c0_66 = arith.constant 0 : index
    %147 = vector.load %arg11[%c0_64, %c0_65, %c0_66] : memref<1x8x1xf32, #tpu.memory_space<vmem>>, vector<1x8x1xf32>
    %148 = vector.shape_cast %147 : vector<1x8x1xf32> to vector<8x1xf32>
    %149 = vector.broadcast %148 : vector<8x1xf32> to vector<8x384xf32>
    %150 = arith.addf %146, %149 : vector<8x384xf32>
    %151 = arith.index_cast %arg1 : i32 to index
    %c2 = arith.constant 2 : index
    %152 = memref.load %arg15[%151, %c2] : memref<3x4xf32, #tpu.memory_space<smem>>
    %cst_67 = arith.constant 0.000000e+00 : f32
    %153 = vector.broadcast %cst_67 : f32 to vector<8x384xf32>
    %154 = arith.cmpf oge, %150, %153 : vector<8x384xf32>
    %155 = vector.broadcast %152 : f32 to vector<8x384xf32>
    %156 = arith.mulf %155, %150 : vector<8x384xf32>
    %157 = arith.select %154, %150, %156 : vector<8x384xi1>, vector<8x384xf32>
    %158 = vector.broadcast %0 : vector<1x384xf32> to vector<8x384xf32>
    %159 = arith.mulf %157, %158 : vector<8x384xf32>
    %c19_i32_68 = arith.constant 19 : i32
    %160 = tpu.dynamic_rotate %159 by %c19_i32_68 dim 1 : vector<8x384xf32>, i32 -> vector<8x384xf32>
    %c18_i32_69 = arith.constant 18 : i32
    %161 = tpu.dynamic_rotate %159 by %c18_i32_69 dim 1 : vector<8x384xf32>, i32 -> vector<8x384xf32>
    %c17_i32_70 = arith.constant 17 : i32
    %162 = tpu.dynamic_rotate %159 by %c17_i32_70 dim 1 : vector<8x384xf32>, i32 -> vector<8x384xf32>
    %c1_i32_71 = arith.constant 1 : i32
    %163 = tpu.dynamic_rotate %159 by %c1_i32_71 dim 1 : vector<8x384xf32>, i32 -> vector<8x384xf32>
    %c383_i32_72 = arith.constant 383 : i32
    %164 = tpu.dynamic_rotate %159 by %c383_i32_72 dim 1 : vector<8x384xf32>, i32 -> vector<8x384xf32>
    %c367_i32_73 = arith.constant 367 : i32
    %165 = tpu.dynamic_rotate %159 by %c367_i32_73 dim 1 : vector<8x384xf32>, i32 -> vector<8x384xf32>
    %c366_i32_74 = arith.constant 366 : i32
    %166 = tpu.dynamic_rotate %159 by %c366_i32_74 dim 1 : vector<8x384xf32>, i32 -> vector<8x384xf32>
    %c365_i32_75 = arith.constant 365 : i32
    %167 = tpu.dynamic_rotate %159 by %c365_i32_75 dim 1 : vector<8x384xf32>, i32 -> vector<8x384xf32>
    %168 = tpu.concatenate %160, %161, %162, %163, %159, %164, %165, %166, %167 in 0 : vector<8x384xf32>, vector<8x384xf32>, vector<8x384xf32>, vector<8x384xf32>, vector<8x384xf32>, vector<8x384xf32>, vector<8x384xf32>, vector<8x384xf32>, vector<8x384xf32> -> vector<72x384xf32>
    %169 = arith.truncf %168 : vector<72x384xf32> to vector<72x384xbf16>
    %c0_76 = arith.constant 0 : index
    %c0_77 = arith.constant 0 : index
    %c0_78 = arith.constant 0 : index
    %170 = vector.load %arg12[%c0_76, %c0_77, %c0_78] : memref<1x8x72xbf16, #tpu.memory_space<vmem>>, vector<1x8x72xbf16>
    %171 = vector.shape_cast %170 : vector<1x8x72xbf16> to vector<8x72xbf16>
    %cst_79 = arith.constant dense<0.000000e+00> : vector<8x384xf32>
    %172 = tpu.matmul %171, %169, %cst_79 {dimension_numbers = #tpu.dot_dimension_numbers<[1], [0], [0], [1], [0, 0, 1, 1], [], []>} : vector<8x72xbf16>, vector<72x384xbf16>, vector<8x384xf32> -> vector<8x384xf32>
    %173 = vector.broadcast %0 : vector<1x384xf32> to vector<8x384xf32>
    %174 = arith.mulf %172, %173 : vector<8x384xf32>
    %cst_80 = arith.constant dense<0.000000e+00> : vector<8xf32>
    %175 = vector.multi_reduction <add>, %174, %cst_80 [1] : vector<8x384xf32> to vector<8xf32>
    %176 = vector.shape_cast %175 : vector<8xf32> to vector<8x1xf32>
    %cst_81 = arith.constant 3.906250e-03 : f32
    %177 = vector.broadcast %cst_81 : f32 to vector<8x1xf32>
    %178 = arith.mulf %176, %177 : vector<8x1xf32>
    %179 = vector.broadcast %178 : vector<8x1xf32> to vector<8x384xf32>
    %180 = arith.subf %172, %179 : vector<8x384xf32>
    %181 = vector.broadcast %0 : vector<1x384xf32> to vector<8x384xf32>
    %182 = arith.mulf %180, %181 : vector<8x384xf32>
    %183 = arith.mulf %182, %182 : vector<8x384xf32>
    %cst_82 = arith.constant dense<0.000000e+00> : vector<8xf32>
    %184 = vector.multi_reduction <add>, %183, %cst_82 [1] : vector<8x384xf32> to vector<8xf32>
    %185 = vector.shape_cast %184 : vector<8xf32> to vector<8x1xf32>
    %cst_83 = arith.constant 3.906250e-03 : f32
    %186 = vector.broadcast %cst_83 : f32 to vector<8x1xf32>
    %187 = arith.mulf %185, %186 : vector<8x1xf32>
    %188 = vector.broadcast %178 : vector<8x1xf32> to vector<8x384xf32>
    %189 = arith.subf %172, %188 : vector<8x384xf32>
    %cst_84 = arith.constant 9.99999974E-6 : f32
    %190 = vector.broadcast %cst_84 : f32 to vector<8x1xf32>
    %191 = arith.addf %187, %190 : vector<8x1xf32>
    %192 = math.rsqrt %191 : vector<8x1xf32>
    %193 = vector.broadcast %192 : vector<8x1xf32> to vector<8x384xf32>
    %194 = arith.mulf %189, %193 : vector<8x384xf32>
    %c0_85 = arith.constant 0 : index
    %c0_86 = arith.constant 0 : index
    %c0_87 = arith.constant 0 : index
    %195 = vector.load %arg13[%c0_85, %c0_86, %c0_87] : memref<1x8x1xf32, #tpu.memory_space<vmem>>, vector<1x8x1xf32>
    %196 = vector.shape_cast %195 : vector<1x8x1xf32> to vector<8x1xf32>
    %197 = vector.broadcast %196 : vector<8x1xf32> to vector<8x384xf32>
    %198 = arith.mulf %194, %197 : vector<8x384xf32>
    %c0_88 = arith.constant 0 : index
    %c0_89 = arith.constant 0 : index
    %c0_90 = arith.constant 0 : index
    %199 = vector.load %arg14[%c0_88, %c0_89, %c0_90] : memref<1x8x1xf32, #tpu.memory_space<vmem>>, vector<1x8x1xf32>
    %200 = vector.shape_cast %199 : vector<1x8x1xf32> to vector<8x1xf32>
    %201 = vector.broadcast %200 : vector<8x1xf32> to vector<8x384xf32>
    %202 = arith.addf %198, %201 : vector<8x384xf32>
    %203 = arith.index_cast %arg1 : i32 to index
    %c3 = arith.constant 3 : index
    %204 = memref.load %arg15[%203, %c3] : memref<3x4xf32, #tpu.memory_space<smem>>
    %cst_91 = arith.constant 0.000000e+00 : f32
    %205 = vector.broadcast %cst_91 : f32 to vector<8x384xf32>
    %206 = arith.cmpf oge, %202, %205 : vector<8x384xf32>
    %207 = vector.broadcast %204 : f32 to vector<8x384xf32>
    %208 = arith.mulf %207, %202 : vector<8x384xf32>
    %209 = arith.select %206, %202, %208 : vector<8x384xi1>, vector<8x384xf32>
    %210 = vector.broadcast %0 : vector<1x384xf32> to vector<8x384xf32>
    %211 = arith.mulf %209, %210 : vector<8x384xf32>
    %c0_92 = arith.constant 0 : index
    %c0_93 = arith.constant 0 : index
    %c0_94 = arith.constant 0 : index
    %212 = vector.load %arg16[%c0_92, %c0_93, %c0_94] : memref<1x4x8xbf16, #tpu.memory_space<vmem>>, vector<1x4x8xbf16>
    %213 = vector.shape_cast %212 : vector<1x4x8xbf16> to vector<4x8xbf16>
    %214 = arith.truncf %211 : vector<8x384xf32> to vector<8x384xbf16>
    %cst_95 = arith.constant dense<0.000000e+00> : vector<4x384xf32>
    %215 = tpu.matmul %213, %214, %cst_95 {dimension_numbers = #tpu.dot_dimension_numbers<[1], [0], [0], [1], [0, 0, 1, 1], [], []>} : vector<4x8xbf16>, vector<8x384xbf16>, vector<4x384xf32> -> vector<4x384xf32>
    %c0_96 = arith.constant 0 : index
    %c0_97 = arith.constant 0 : index
    %c0_98 = arith.constant 0 : index
    %216 = vector.load %arg17[%c0_96, %c0_97, %c0_98] : memref<1x4x1xf32, #tpu.memory_space<vmem>>, vector<1x4x1xf32>
    %217 = vector.shape_cast %216 : vector<1x4x1xf32> to vector<4x1xf32>
    %218 = vector.broadcast %217 : vector<4x1xf32> to vector<4x384xf32>
    %219 = arith.addf %215, %218 : vector<4x384xf32>
    %cst_99 = arith.constant 2.000000e+01 : f32
    %220 = vector.broadcast %cst_99 : f32 to vector<4x384xf32>
    %221 = arith.cmpf ogt, %219, %220 : vector<4x384xf32>
    %cst_100 = arith.constant 2.000000e+01 : f32
    %222 = vector.broadcast %cst_100 : f32 to vector<4x384xf32>
    %223 = arith.minimumf %219, %222 : vector<4x384xf32>
    %224 = math.exp %223 : vector<4x384xf32>
    %225 = math.log1p %224 : vector<4x384xf32>
    %226 = arith.select %221, %219, %225 : vector<4x384xi1>, vector<4x384xf32>
    %c0_101 = arith.constant 0 : index
    %c0_102 = arith.constant 0 : index
    %c0_103 = arith.constant 0 : index
    %227 = vector.load %arg19[%c0_101, %c0_102, %c0_103] : memref<1x4x384xf32, #tpu.memory_space<vmem>>, vector<1x4x384xf32>
    %228 = vector.shape_cast %227 : vector<1x4x384xf32> to vector<4x384xf32>
    %229 = vector.shape_cast %226 : vector<4x384xf32> to vector<1x4x384xf32>
    tpu.vector_store %arg19[%c0_101, %c0_102, %c0_103], %229 {strides = array<i32>} : memref<1x4x384xf32, #tpu.memory_space<vmem>>, vector<1x4x384xf32>,
    return
  }
  func.func @transform_0(%arg0: i32, %arg1: i32) -> (i32, i32, i32) {
    %c0_i32 = arith.constant 0 : i32
    %c0_i32_0 = arith.constant 0 : i32
    %c0_i32_1 = arith.constant 0 : i32
    return %arg0, %c0_i32, %c0_i32_0 : i32, i32, i32
  }
  func.func @transform_1(%arg0: i32, %arg1: i32) -> (i32, i32, i32) {
    %c0_i32 = arith.constant 0 : i32
    %c0_i32_0 = arith.constant 0 : i32
    %c0_i32_1 = arith.constant 0 : i32
    return %arg1, %c0_i32, %c0_i32_0 : i32, i32, i32
  }
  func.func @transform_2(%arg0: i32, %arg1: i32) -> (i32, i32, i32) {
    %c0_i32 = arith.constant 0 : i32
    %c0_i32_0 = arith.constant 0 : i32
    %c0_i32_1 = arith.constant 0 : i32
    return %arg1, %c0_i32, %c0_i32_0 : i32, i32, i32
  }
  func.func @transform_3(%arg0: i32, %arg1: i32) -> (i32, i32, i32) {
    %c0_i32 = arith.constant 0 : i32
    %c0_i32_0 = arith.constant 0 : i32
    %c0_i32_1 = arith.constant 0 : i32
    return %arg1, %c0_i32, %c0_i32_0 : i32, i32, i32
  }
  func.func @transform_4(%arg0: i32, %arg1: i32) -> (i32, i32, i32) {
    %c0_i32 = arith.constant 0 : i32
    %c0_i32_0 = arith.constant 0 : i32
    %c0_i32_1 = arith.constant 0 : i32
    return %arg1, %c0_i32, %c0_i32_0 : i32, i32, i32
  }
  func.func @transform_5(%arg0: i32, %arg1: i32) -> (i32, i32, i32) {
    %c0_i32 = arith.constant 0 : i32
    %c0_i32_0 = arith.constant 0 : i32
    %c0_i32_1 = arith.constant 0 : i32
    return %arg1, %c0_i32, %c0_i32_0 : i32, i32, i32
  }
  func.func @transform_6(%arg0: i32, %arg1: i32) -> (i32, i32, i32) {
    %c0_i32 = arith.constant 0 : i32
    %c0_i32_0 = arith.constant 0 : i32
    %c0_i32_1 = arith.constant 0 : i32
    return %arg1, %c0_i32, %c0_i32_0 : i32, i32, i32
  }
  func.func @transform_7(%arg0: i32, %arg1: i32) -> (i32, i32, i32) {
    %c0_i32 = arith.constant 0 : i32
    %c0_i32_0 = arith.constant 0 : i32
    %c0_i32_1 = arith.constant 0 : i32
    return %arg1, %c0_i32, %c0_i32_0 : i32, i32, i32
  }
  func.func @transform_8(%arg0: i32, %arg1: i32) -> (i32, i32, i32) {
    %c0_i32 = arith.constant 0 : i32
    %c0_i32_0 = arith.constant 0 : i32
    %c0_i32_1 = arith.constant 0 : i32
    return %arg1, %c0_i32, %c0_i32_0 : i32, i32, i32
  }
  func.func @transform_9(%arg0: i32, %arg1: i32) -> (i32, i32, i32) {
    %c0_i32 = arith.constant 0 : i32
    %c0_i32_0 = arith.constant 0 : i32
    %c0_i32_1 = arith.constant 0 : i32
    return %arg1, %c0_i32, %c0_i32_0 : i32, i32, i32
  }
  func.func @transform_10(%arg0: i32, %arg1: i32) -> (i32, i32, i32) {
    %c0_i32 = arith.constant 0 : i32
    %c0_i32_0 = arith.constant 0 : i32
    %c0_i32_1 = arith.constant 0 : i32
    return %arg1, %c0_i32, %c0_i32_0 : i32, i32, i32
  }
  func.func @transform_11(%arg0: i32, %arg1: i32) -> (i32, i32, i32) {
    %c0_i32 = arith.constant 0 : i32
    %c0_i32_0 = arith.constant 0 : i32
    %c0_i32_1 = arith.constant 0 : i32
    return %arg1, %c0_i32, %c0_i32_0 : i32, i32, i32
  }
  func.func @transform_12(%arg0: i32, %arg1: i32) -> (i32, i32, i32) {
    %c0_i32 = arith.constant 0 : i32
    %c0_i32_0 = arith.constant 0 : i32
    %c0_i32_1 = arith.constant 0 : i32
    return %arg1, %c0_i32, %c0_i32_0 : i32, i32, i32
  }
  func.func @transform_13(%arg0: i32, %arg1: i32) -> (i32, i32) {
    %c0_i32 = arith.constant 0 : i32
    %c0_i32_0 = arith.constant 0 : i32
    %c0_i32_1 = arith.constant 0 : i32
    return %c0_i32, %c0_i32_0 : i32, i32
  }
  func.func @transform_14(%arg0: i32, %arg1: i32) -> (i32, i32, i32) {
    %c0_i32 = arith.constant 0 : i32
    %c0_i32_0 = arith.constant 0 : i32
    %c0_i32_1 = arith.constant 0 : i32
    return %arg1, %c0_i32, %c0_i32_0 : i32, i32, i32
  }
  func.func @transform_15(%arg0: i32, %arg1: i32) -> (i32, i32, i32) {
    %c0_i32 = arith.constant 0 : i32
    %c0_i32_0 = arith.constant 0 : i32
    %c0_i32_1 = arith.constant 0 : i32
    return %arg1, %c0_i32, %c0_i32_0 : i32, i32, i32
  }
  func.func @transform_16(%arg0: i32, %arg1: i32) -> (i32, i32) {
    %c0_i32 = arith.constant 0 : i32
    %c0_i32_0 = arith.constant 0 : i32
    %c0_i32_1 = arith.constant 0 : i32
    return %c0_i32, %c0_i32_0 : i32, i32
  }
  func.func @transform_17(%arg0: i32, %arg1: i32) -> (i32, i32, i32) {
    %c2_i32 = arith.constant 2 : i32
    %0 = arith.muli %arg1, %c2_i32 : i32
    %1 = arith.addi %0, %arg0 : i32
    %c0_i32 = arith.constant 0 : i32
    %c0_i32_0 = arith.constant 0 : i32
    %c0_i32_1 = arith.constant 0 : i32
    return %1, %c0_i32, %c0_i32_0 : i32, i32, i32
  }
}

</mosaic_0001>

<bundles_post_ra>
// kernel: unet_cms_forward.12
= control target key start
LH: loop header
LB: loop body
LE: loop exit
PB: predicated region body
PF: predicated region fallthrough
CT: control target
= control target key end

     0   :  { %14 = vsyncpa [#allocation3], 0  ;;  %s1504_s30 = smov 0   ;;  %s1506_s10 = smov 0   ;;  %s1866_s0 = inlined_call_operand.vmem [shape: f32[2,3,384], index: 0, kind: input, shape index: {}]   ;;  %s1867_s1 = inlined_call_operand.vmem [shape: bf16[1,8,27], index: 1, kind: input, shape index: {}]   ;;  %s1868_s2 = inlined_call_operand.vmem [shape: f32[1,8,1], index: 2, kind: input, shape index: {}]   ;;  %s1869_s3 = inlined_call_operand.vmem [shape: f32[1,8,1], index: 3, kind: input, shape index: {}]   ;;  %s1870_s4 = inlined_call_operand.vmem [shape: bf16[1,8,72], index: 4, kind: input, shape index: {}]   ;;  %s1871_s5 = inlined_call_operand.vmem [shape: f32[1,8,1], index: 5, kind: input, shape index: {}]   ;;  %s1872_s6 = inlined_call_operand.vmem [shape: f32[1,8,1], index: 6, kind: input, shape index: {}]   ;;  %s1873_s7 = inlined_call_operand.vmem [shape: f32[1,2], index: 7, kind: input, shape index: {}]   ;;  %s1874_s8 = inlined_call_operand.vmem [shape: f32[1,384], index: 8, kind: input, shape index: {}]   ;;  %s1875_s9 = inlined_call_operand.vmem [shape: bf16[2,8,384], index: 9, kind: output, shape index: {}]  }
   0x1   :  { %s1508_s11 = smov 0  }
   0x2 LB: > { %s1245_s12 = sadd.s32 4294967295, %s1441_s11   ;;  %s32_s13 = sadd.s32 1, %s1437_s10  ;;  %s1441_s11 = sphi %s1508_s11, %s20_s11   ;;  %s1437_s10 = sphi %s1506_s10, %s1877_s10   ;;  %s1433_s30 = sphi %s1504_s30, %s1876_s30  }
   0x3   : > { %p34_p0 = scmp.ge.s32.totalorder %s32_s13, 2  ;;  %p1247_p1 = scmp.ge.s32.totalorder %s1441_s11, 1 }
   0x4   : > { %p291_p2 = scmp.lt.s32.totalorder %s1441_s11, 3  ;;  %p1278_p4 = scmp.eq.s32.totalorder %s1245_s12, 0 }
   0x5   : > { %s1879_s13 = smov (%p34_p0, %s32_s13), 0  ;;  %s345_s16 = sshll.u32 %s1873_s7, 4  ;;  %s346_s16 = int_to_ptr.vmem [resolvable:$true] %s345_s16 }
   0x6   : > { %p292_p3 = pnand %p1247_p1, %p291_p2  ;;  %s1443_s17 = smov [#allocation2]  }
   0x8   : > { %p1274_p5 = pneg %p292_p3  ;;  %369 = sbr.rel (%p292_p3) target bundleno = 1246 (0x4de), region = 56 }
   0xa   : > { %p1275_p6 = pnand %p1278_p4, %p1274_p5 }
   0xc   : > { %1277 = dma.vmem_to_smem (!%p1275_p6), %s346_s16, 16, %s1443_s17, [#allocation3]  }
   0xd   : > { %1428 = dma.done.wait (%p1278_p4), [#allocation3], 16  }
   0xe   : > { %1430 = vsyncadd (%p1278_p4), [#allocation3], 4294967280 }
   0xf   : > { %376 = sfence }
  0x10   : > { %p433_p7 = scmp.lt.s32.totalorder %s1433_s30, 1  ;;  %s1444_s22 = smov 18   ;;  %v492_v37 = vlaneseq  ;;  %vm715_vm5 = vcmask 1041408   ;;  %vm719_vm6 = vcmask 1044480   ;;  %vm699_vm8 = vcmask 1045504  }
  0x11   : > { %s1445_s23 = smov 17   ;;  %s1446_s24 = smov 1   ;;  %v1452_v63 = vmov 65535   ;;  %vm703_vm10 = vcmask 1040384   ;;  %vm707_vm11 = vcmask 1043456   ;;  %vm695_vm13 = vcmask 1042432  }
  0x12   : > { %s1881_s30 = smov (!%p433_p7, %s1433_s30), 1  ;;  %s1447_s25 = smov 127   ;;  %v1565_v38 = vand.u32 127, %v492_v37  ;;  %vm711_vm14 = vcmask 1046528   ;;  %vm730_vm15 = vcmask 220160  }
  0x13   : > { %s1269_s18 = smul.u32 12, %s1881_s30  ;;  %s1448_s26 = smov 111  }
  0x14   : > { %s1449_s27 = smov 110   ;;  %s1450_s28 = smov 109   ;;  %vm570_vm0 = vcmp.lt.s32.totalorder %v1565_v38, 127  ;;  %vm589_vm1 = vcmp.lt.s32.totalorder %v1565_v38, 111  ;;  %vm608_vm2 = vcmp.lt.s32.totalorder %v1565_v38, 110  ;;  %vm532_vm3 = vcmp.lt.s32.totalorder %v1565_v38, 17 }
  0x15   : > { %s437_s21 = scalar_lea.vmem %s1866_s0, %s1269_s18  ;;  %s1451_s29 = smov 19   ;;  %vm551_vm4 = vcmp.lt.s32.totalorder %v1565_v38, 1  ;;  %vm627_vm7 = vcmp.lt.s32.totalorder %v1565_v38, 109  ;;  %vm513_vm9 = vcmp.lt.s32.totalorder %v1565_v38, 18  ;;  %vm494_vm12 = vcmp.lt.s32.totalorder %v1565_v38, 19 }
  0x16   : > { %v473_v0 = vld [vmem:[%s437_s21] sm:$0x77]  ;;  %v474_v1 = vld [vmem:[%s437_s21 + $0x8] sm:$0x7]  ;;  %s846_s12 = sld [smem:[#allocation2]]  ;;  %s468_s15 = scalar_lea.vmem %s1875_s9, %s1269_s18 }
  0x17   : > { %477 = vst [vmem:[#allocation1] ss:$2 sm:$0xff] %v473_v0 }
  0x18   : > { %479 = vst [vmem:[#allocation1 + $0x10] ss:$2 sm:$0xff] %v474_v1 }
  0x1e   : > { %v1534_v2 = vld.sshfl [vmem:[#allocation1] sm:$0xff pattern:$0x75316420]  ;;  %v1536_v3 = vld.sshfl [vmem:[#allocation1 + $0x8] sm:$0xff pattern:$0x75316420] }
  0x1f   : > { %v1538_v4 = vld.sshfl [vmem:[#allocation1 + $0x10] sm:$0xff pattern:$0x75316420]  ;;  %498 = vst [vmem:[#allocation1] ss:$2 sm:$0xff] %v473_v0 }
  0x20   : > { %500 = vst [vmem:[#allocation1 + $0x10] ss:$2 sm:$0xff] %v474_v1  ;;  %v1350_v33 = vpack.i.bf16 %v1538_v4, %v1534_v2 }
  0x26   : > { %v501_v5 = vld.sshfl [vmem:[#allocation1] sm:$0xff pattern:$0x75316420]  ;;  %v502_v6 = vld.sshfl [vmem:[#allocation1 + $0x8] sm:$0xff pattern:$0x75316420] }
  0x27   : > { %v503_v7 = vld.sshfl [vmem:[#allocation1 + $0x10] sm:$0xff pattern:$0x75316420]  ;;  %517 = vst [vmem:[#allocation1] ss:$2 sm:$0xff] %v473_v0 }
  0x28   : > { %v1315_v8 = vpack.i.bf16 %v503_v7, %v501_v5  ;;  %519 = vst [vmem:[#allocation1 + $0x10] ss:$2 sm:$0xff] %v474_v1 }
  0x2a   : > { %1316 = vrot.lane.b32.xlu0 %v1315_v8, %s1444_s22 }
  0x2e   : > { %v520_v9 = vld.sshfl [vmem:[#allocation1] sm:$0xff pattern:$0x75316420]  ;;  %v521_v10 = vld.sshfl [vmem:[#allocation1 + $0x8] sm:$0xff pattern:$0x75316420] }
  0x2f   : > { %536 = vst [vmem:[#allocation1] ss:$2 sm:$0xff] %v473_v0  ;;  %v522_v11 = vld.sshfl [vmem:[#allocation1 + $0x10] sm:$0xff pattern:$0x75316420] }
  0x30   : > { %538 = vst [vmem:[#allocation1 + $0x10] ss:$2 sm:$0xff] %v474_v1  ;;  %v1320_v12 = vpack.i.bf16 %v522_v11, %v520_v9 }
  0x32   : > { %1321 = vrot.lane.b32.xlu2 %v1320_v12, %s1445_s23 }
  0x36   : > { %v539_v13 = vld.sshfl [vmem:[#allocation1] sm:$0xff pattern:$0x75316420]  ;;  %v540_v14 = vld.sshfl [vmem:[#allocation1 + $0x8] sm:$0xff pattern:$0x75316420] }
  0x37   : > { %555 = vst [vmem:[#allocation1] ss:$2 sm:$0xff] %v473_v0  ;;  %v541_v15 = vld.sshfl [vmem:[#allocation1 + $0x10] sm:$0xff pattern:$0x75316420] }
  0x38   : > { %557 = vst [vmem:[#allocation1 + $0x10] ss:$2 sm:$0xff] %v474_v1  ;;  %v1325_v16 = vpack.i.bf16 %v541_v15, %v539_v13 }
  0x3a   : > { %1326 = vrot.lane.b32.xlu2 %v1325_v16, %s1446_s24 }
  0x3e   : > { %v558_v17 = vld.sshfl [vmem:[#allocation1] sm:$0xff pattern:$0x75316420]  ;;  %v559_v18 = vld.sshfl [vmem:[#allocation1 + $0x8] sm:$0xff pattern:$0x75316420] }
  0x3f   : > { %v1330_v19 = vpack.i.bf16 %v559_v18, %v558_v17  ;;  %574 = vst [vmem:[#allocation1] ss:$2 sm:$0xff] %v473_v0  ;;  %v560_v20 = vld.sshfl [vmem:[#allocation1 + $0x10] sm:$0xff pattern:$0x75316420] }
  0x40   : > { %576 = vst [vmem:[#allocation1 + $0x10] ss:$2 sm:$0xff] %v474_v1 }
  0x41   : > { %1331 = vrot.lane.b32.xlu0 %v1330_v19, %s1447_s25 }
  0x42   : > { %568 = vrot.lane.b32.xlu2 %v560_v20, %s1447_s25 }
  0x46   : > { %v577_v21 = vld.sshfl [vmem:[#allocation1] sm:$0xff pattern:$0x75316420]  ;;  %v578_v22 = vld.sshfl [vmem:[#allocation1 + $0x8] sm:$0xff pattern:$0x75316420] }
  0x47   : > { %v1335_v23 = vpack.i.bf16 %v578_v22, %v577_v21  ;;  %593 = vst [vmem:[#allocation1] ss:$2 sm:$0xff] %v473_v0  ;;  %v579_v24 = vld.sshfl [vmem:[#allocation1 + $0x10] sm:$0xff pattern:$0x75316420] }
  0x48   : > { %595 = vst [vmem:[#allocation1 + $0x10] ss:$2 sm:$0xff] %v474_v1 }
  0x49   : > { %1336 = vrot.lane.b32.xlu0 %v1335_v23, %s1448_s26 }
  0x4e   : > { %v596_v25 = vld.sshfl [vmem:[#allocation1] sm:$0xff pattern:$0x75316420]  ;;  %v597_v26 = vld.sshfl [vmem:[#allocation1 + $0x8] sm:$0xff pattern:$0x75316420] }
  0x4f   : > { %v598_v27 = vld.sshfl [vmem:[#allocation1 + $0x10] sm:$0xff pattern:$0x75316420]  ;;  %v1340_v28 = vpack.i.bf16 %v597_v26, %v596_v25  ;;  %612 = vst [vmem:[#allocation1] ss:$2 sm:$0xff] %v473_v0 }
  0x50   : > { %614 = vst [vmem:[#allocation1 + $0x10] ss:$2 sm:$0xff] %v474_v1 }
  0x51   : > { %587 = vrot.lane.b32.xlu0 %v579_v24, %s1448_s26  ;;  %1341 = vrot.lane.b32.xlu1 %v1340_v28, %s1449_s27 }
  0x56   : > { %v615_v29 = vld.sshfl [vmem:[#allocation1] sm:$0xff pattern:$0x75316420]  ;;  %v616_v30 = vld.sshfl [vmem:[#allocation1 + $0x8] sm:$0xff pattern:$0x75316420] }
  0x57   : > { %v1345_v31 = vpack.i.bf16 %v616_v30, %v615_v29  ;;  %659 = vst [vmem:[#allocation1 + $0x1] ss:$2 sm:$0xff] %v473_v0  ;;  %v617_v32 = vld.sshfl [vmem:[#allocation1 + $0x10] sm:$0xff pattern:$0x75316420]  ;;  %v734_v0 = vsel %vm719_vm6, 4294967295, %v1452_v63 }
  0x58   : > { %661 = vst [vmem:[#allocation1 + $0x11] ss:$2 sm:$0xff] %v474_v1  ;;  %625 = vrot.lane.b32.xlu2 %v617_v32, %s1450_s28 }
  0x59   : > { %528 = vrot.lane.b32.xlu0 %v521_v10, %s1445_s23  ;;  %1346 = vrot.lane.b32.xlu1 %v1345_v31, %s1450_s28  ;;  %v735_v10 = vsel %vm699_vm8, %v734_v0, 0 }
  0x60   : > { %509 = vrot.lane.b32.xlu2 %v502_v6, %s1444_s22 }
  0x61   : > { %1351 = vrot.lane.b32.xlu1 %v1350_v33, %s1451_s29  ;;  %488 = vrot.lane.b32.xlu0 %v1536_v3, %s1451_s29 }
  0x69   : > { %606 = vrot.lane.b32.xlu1 %v598_v27, %s1449_s27 }
  0x71   : > { %547 = vrot.lane.b32.xlu1 %v540_v14, %s1446_s24  ;;  %v662_v14 = vld.sshfl [vmem:[#allocation1] sm:$0xff pattern:$0x75316420] }
  0x8c   : > { %v1561_v35 = vpop.permute.xlu2 %1321 }
  0x8d   : > { %v1324_v50 = vunpack.i.h.bf16 %v1561_v35  ;;  %v1323_v51 = vunpack.i.l.bf16 %v1561_v35 }
  0x8f   : > { %v535_v58 = vsel %vm532_vm3, %v1324_v50, %v1323_v51 }
  0x90   : > { %v643_v3 = vrot.slane %v535_v58, 2 }
  0x94   : > { %v1567_v39 = vpop.permute.xlu2 %1326 }
  0x95   : > { %v1329_v52 = vunpack.i.h.bf16 %v1567_v39  ;;  %v1328_v53 = vunpack.i.l.bf16 %v1567_v39 }
  0x97   : > { %v554_v59 = vsel %vm551_vm4, %v1329_v52, %v1328_v53 }
  0x98   : > { %v652_v4 = vrot.slane %v554_v59, 7 }
  0x9a   : > { %v704_v15 = vsel %vm703_vm10, %v643_v3, %v652_v4 }
  0x9b   : > { %v708_v21 = vsel %vm707_vm11, %v704_v15, %v662_v14 }
  0x9c   : > { %v1559_v34 = vpop.permute.xlu0 %1316  ;;  %v569_v57 = vpop.permute.xlu2 %568 }
  0x9d   : > { %v1319_v5 = vunpack.i.h.bf16 %v1559_v34  ;;  %v1318_v6 = vunpack.i.l.bf16 %v1559_v34 }
  0x9f   : > { %v516_v13 = vsel %vm513_vm9, %v1319_v5, %v1318_v6 }
  0xa0   : > { %v634_v20 = vrot.slane %v516_v13, 5 }
  0xb2   : > { %v626_v16 = vpop.permute.xlu2 %625 }
  0xb3   : > { %v1563_v36 = vpop.permute.xlu0 %1331 }
  0xb4   : > { %v1334_v41 = vunpack.i.h.bf16 %v1563_v36  ;;  %v1333_v42 = vunpack.i.l.bf16 %v1563_v36 }
  0xb6   : > { %v1584_v46 = vsel %vm570_vm0, %v1333_v42, %v1334_v41  ;;  %v1640_v22 = vsel %vm570_vm0, %v1334_v41, %v569_v57  ;;  %v1648_v24 = vsel %vm570_vm0, %v569_v57, %v1333_v42 }
  0xb7   : > { %v671_v54 = vrot.slane %v1584_v46, 1  ;;  %v672_v32 = vrot.slane %v1640_v22, 1  ;;  %v673_v33 = vrot.slane %v1648_v24, 1  ;;  %v472_v22 = vld [vmem:[%s1874_s8] sm:$0x7] }
  0xb9   : > { %v712_v30 = vsel %vm711_vm14, %v708_v21, %v671_v54 }
  0xbb   : > { %v1569_v40 = vpop.permute.xlu0 %1336 }
  0xbc   : > { %v1339_v43 = vunpack.i.h.bf16 %v1569_v40  ;;  %v1338_v44 = vunpack.i.l.bf16 %v1569_v40  ;;  %v729_v40 = vld [vmem:[%s1867_s1] sm:$0xf] }
  0xbe   : > { %v591_v47 = vsel %vm589_vm1, %v1338_v44, %v1339_v43 }
  0xbf   : > { %v680_v55 = vrot.slane %v591_v47, 6 }
  0xc1   : > { %v716_v62 = vsel %vm715_vm5, %v671_v54, %v680_v55 }
  0xc3   : > { %v1578_v45 = vpop.permute.xlu1 %1341  ;;  %v588_v7 = vpop.permute.xlu0 %587 }
  0xc4   : > { %v1344_v48 = vunpack.i.h.bf16 %v1578_v45  ;;  %v1343_v49 = vunpack.i.l.bf16 %v1578_v45  ;;  %v590_v25 = vsel %vm589_vm1, %v1339_v43, %v588_v7  ;;  %v592_v26 = vsel %vm589_vm1, %v588_v7, %v1338_v44  ;;  %v510_v43 = vpop.permute.xlu2 %509 }
  0xc5   : > { %v681_v34 = vrot.slane %v590_v25, 6  ;;  %v682_v36 = vrot.slane %v592_v26, 6  ;;  %v515_v57 = vsel %vm513_vm9, %v1318_v6, %v510_v43  ;;  %v664_v6 = vld.sshfl [vmem:[#allocation1 + $0x10] sm:$0xff pattern:$0x75316420]  ;;  %v1724_v25 = vperm.slane %v472_v22, 0 }
  0xc6   : > { %v610_v56 = vsel %vm608_vm2, %v1343_v49, %v1344_v48 }
  0xc7   : > { %v689_v60 = vrot.slane %v610_v56, 3  ;;  %v718_v47 = vsel %vm715_vm5, %v673_v33, %v682_v36  ;;  %v717_v54 = vsel %vm715_vm5, %v672_v32, %v681_v34  ;;  %v827_v36 = vld [vmem:[%s1868_s2] sm:$0xff] }
  0xc9   : > { %v720_v9 = vsel %vm719_vm6, %v716_v62, %v689_v60 }
  0xcb   : > { %v1619_v61 = vpop.permute.xlu1 %1346  ;;  %v529_v28 = vpop.permute.xlu0 %528 }
  0xcc   : > { %v1349_v1 = vunpack.i.h.bf16 %v1619_v61  ;;  %v1348_v2 = vunpack.i.l.bf16 %v1619_v61  ;;  %v533_v61 = vsel %vm532_vm3, %v529_v28, %v1324_v50  ;;  %v534_v62 = vsel %vm532_vm3, %v1323_v51, %v529_v28  ;;  %v663_v51 = vld.sshfl [vmem:[#allocation1 + $0x8] sm:$0xff pattern:$0x75316420] }
  0xcd   : > { %v644_v7 = vrot.slane %v534_v62, 2 }
  0xce   : > { %v629_v8 = vsel %vm627_vm7, %v1348_v2, %v1349_v1  ;;  %v628_v55 = vsel %vm627_vm7, %v1349_v1, %v626_v16  ;;  %v630_v45 = vsel %vm627_vm7, %v626_v16, %v1348_v2  ;;  %v635_v1 = vrot.slane %v515_v57, 5 }
  0xcf   : > { %v726_v11 = vpack.c.bf16 %v629_v8, %v720_v9  ;;  %v645_v8 = vrot.slane %v533_v61, 2 }
  0xd1   : > { %v737_v12 = vand.u32 %v735_v10, %v726_v11 }
  0xd3   : > { %v1352_v17 = vpop.permute.xlu1 %1351  ;;  %751 = vmatpush.bf16.msra.mxu2 %v737_v12  ;;  %v489_v58 = vpop.permute.xlu0 %488 }
  0xd4   : > { %v1354_v18 = vunpack.i.h.bf16 %v1352_v17  ;;  %v1353_v19 = vunpack.i.l.bf16 %v1352_v17 }
  0xd6   : > { %v497_v23 = vsel %vm494_vm12, %v1354_v18, %v1353_v19  ;;  %v496_v4 = vsel %vm494_vm12, %v1353_v19, %v489_v58 }
  0xd7   : > { %v696_v27 = vsel %vm695_vm13, %v497_v23, %v634_v20  ;;  %v697_v11 = vsel %vm695_vm13, %v496_v4, %v635_v1  ;;  %v1722_v23 = vperm.slane %v472_v22, 1 }
  0xd8   : > { %v700_v29 = vsel %vm699_vm8, %v696_v27, %v643_v3  ;;  %v495_v3 = vsel %vm494_vm12, %v489_v58, %v1354_v18  ;;  %v701_v14 = vsel %vm699_vm8, %v697_v11, %v644_v7  ;;  %v1727_v27 = vperm.slane %v472_v22, 2  ;;  %v1045_v22 = vld [vmem:[%s1872_s6] sm:$0xff] }
  0xd9   : > { %v723_v31 = vpack.c.bf16 %v712_v30, %v700_v29 }
  0xdb   : > { %v607_v37 = vpop.permute.xlu1 %606  ;;  %752 = vmatpush.bf16.msra.mxu2 %v723_v31 }
  0xdc   : > { %v609_v41 = vsel %vm608_vm2, %v1344_v48, %v607_v37  ;;  %v611_v42 = vsel %vm608_vm2, %v607_v37, %v1343_v49  ;;  %v514_v49 = vsel %vm513_vm9, %v510_v43, %v1319_v5  ;;  %v1453_v37 = vmov 0  }
  0xdd   : > { %v690_v44 = vrot.slane %v609_v41, 3  ;;  %v691_v46 = vrot.slane %v611_v42, 3  ;;  %v636_v2 = vrot.slane %v514_v49, 5  ;;  %1355 = vset.pattern.permute.xlu0 %v1453_v37 }
  0xde   : > { %1260 = vmatmul.msk.bf16.vlgmr.msra.gmra.mxu2 %vm730_vm15, %v729_v40  ;;  %830 = vperm.xlu0 %1355, %v827_v36  }
  0xdf   : > { %v721_v56 = vsel %vm719_vm6, %v717_v54, %v690_v44  ;;  %v722_v48 = vsel %vm719_vm6, %v718_v47, %v691_v46  ;;  %v698_v12 = vsel %vm695_vm13, %v495_v3, %v636_v2 }
  0xe0   : > { %v727_v59 = vpack.c.bf16 %v628_v55, %v721_v56  ;;  %v728_v60 = vpack.c.bf16 %v630_v45, %v722_v48  ;;  %v702_v16 = vsel %vm699_vm8, %v698_v12, %v645_v8 }
  0xe2   : > { %v740_v63 = vand.u32 %v735_v10, %v727_v59  ;;  %v743_v0 = vand.u32 %v735_v10, %v728_v60 }
  0xe3   : > { %v548_v5 = vpop.permute.xlu1 %547 }
  0xe4   : > { %v552_v50 = vsel %vm551_vm4, %v548_v5, %v1329_v52  ;;  %v553_v35 = vsel %vm551_vm4, %v1328_v53, %v548_v5  ;;  %764 = vmatpush.bf16.msra.mxu1 %v740_v63  ;;  %777 = vmatpush.bf16.msrb.mxu2 %v743_v0 }
  0xe5   : > { %v653_v9 = vrot.slane %v553_v35, 7  ;;  %v654_v10 = vrot.slane %v552_v50, 7 }
  0xe7   : > { %v705_v13 = vsel %vm703_vm10, %v644_v7, %v653_v9  ;;  %v706_v52 = vsel %vm703_vm10, %v645_v8, %v654_v10  ;;  %v850_v8 = vstv %s846_s12 }
  0xe8   : > { %v709_v39 = vsel %vm707_vm11, %v705_v13, %v663_v51  ;;  %v710_v53 = vsel %vm707_vm11, %v706_v52, %v664_v6 }
  0xe9   : > { %v713_v15 = vsel %vm711_vm14, %v709_v39, %v672_v32  ;;  %v714_v17 = vsel %vm711_vm14, %v710_v53, %v673_v33 }
  0xea   : > { %v724_v18 = vpack.c.bf16 %v713_v15, %v701_v14  ;;  %v725_v19 = vpack.c.bf16 %v714_v17, %v702_v16 }
  0xec   : > { %765 = vmatpush.bf16.msra.mxu1 %v724_v18  ;;  %778 = vmatpush.bf16.msrb.mxu2 %v725_v19 }
  0xef   : > { %1261 = vmatmul.msk.bf16.vlgmr.msra.gmra.mxu1 %vm730_vm15, %v729_v40  ;;  %1262 = vmatmul.msk.bf16.vlgmr.msrb.gmra.mxu2 %vm730_vm15, %v729_v40  ;;  %v836_v40 = vld [vmem:[%s1869_s3] sm:$0xff] }
  0xf0   : > { %839 = vperm.xlu0 %1355, %v836_v40  }
 0x150   : > { %v831_v1 = vpop.permute.xlu0 %830 }
 0x161   : > { %v754_v20 = vpop.f32.mrf.mxu2 }
 0x162   : > { %v791_v28 = vmul.f32 %v1724_v25, %v754_v20  ;;  %v840_v9 = vpop.permute.xlu0 %839 }
 0x169   : > { %v756_v21 = vpop.f32.mrf.mxu2 }
 0x16a   : > { %v1036_v21 = vld [vmem:[%s1871_s5] sm:$0xff] }
 0x16c   : > { %v767_v24 = vpop.f32.mrf.mxu1 }
 0x16d   : > { %v792_v26 = vmul.f32 %v1722_v23, %v767_v24 }
 0x16f   : > { %v794_v31 = vadd.f32 %v792_v26, %v791_v28 }
 0x172   : > { %v780_v29 = vpop.f32.mrf.mxu2 }
 0x173   : > { %v793_v30 = vmul.f32 %v1727_v27, %v780_v29 }
 0x174   : > { %v769_v32 = vpop.f32.mrf.mxu1 }
 0x175   : > { %v795_v33 = vadd.f32 %v794_v31, %v793_v30 }
 0x177   : > { %796 = vadd.xlane.f32.xlu1 %v795_v33 }
 0x17a   : > { %v782_v34 = vpop.f32.mrf.mxu2 }
 0x1ea   : > { %v797_v41 = vpop.xlane.xlu1 %796 }
 0x1eb   : > { %v798_v42 = vmul.f32 0.00390625, %v797_v41 }
 0x1ed   : > { %v799_v43 = vsub.f32 %v754_v20, %v798_v42  ;;  %v800_v44 = vsub.f32 %v767_v24, %v798_v42  ;;  %v801_v46 = vsub.f32 %v780_v29, %v798_v42 }
 0x1ef   : > { %v802_v47 = vmul.f32 %v799_v43, %v1724_v25  ;;  %v803_v54 = vmul.f32 %v800_v44, %v1722_v23  ;;  %v804_v55 = vmul.f32 %v801_v46, %v1727_v27 }
 0x1f1   : > { %v805_v56 = vmul.f32 %v802_v47, %v802_v47  ;;  %v806_v45 = vmul.f32 %v803_v54, %v803_v54  ;;  %v807_v48 = vmul.f32 %v804_v55, %v804_v55 }
 0x1f3   : > { %v808_v49 = vadd.f32 %v806_v45, %v805_v56 }
 0x1f5   : > { %v809_v57 = vadd.f32 %v808_v49, %v807_v48 }
 0x1f7   : > { %810 = vadd.xlane.f32.xlu2 %v809_v57 }
 0x26a   : > { %v811_v58 = vpop.xlane.xlu2 %810 }
 0x26b   : > { %v812_v59 = vmul.f32 0.00390625, %v811_v58 }
 0x26d   : > { %v813_v60 = vadd.f32 1e-05, %v812_v59 }
 0x26f   : > { %1396 = vrsqrt.f32 %v813_v60  ;;  %vm820_vm6 = vweird.f32 %v813_v60 }
 0x275   : > { %v1397_v61 = vpop.eup %1396 }
 0x276   : > { %v815_v62 = vmul.f32 %v1397_v61, %v813_v60  ;;  %vm821_vm5 = vweird.f32 %v1397_v61 }
 0x277   : > { %vm822_vm8 = vmor %vm820_vm6, %vm821_vm5 }
 0x278   : > { %v816_v63 = vmul.f32 %v1397_v61, %v815_v62 }
 0x27a   : > { %v817_v0 = vmul.f32 0.5, %v816_v63 }
 0x27c   : > { %v818_v2 = vsub.f32 1.5, %v817_v0 }
 0x27e   : > { %v819_v3 = vmul.f32 %v1397_v61, %v818_v2 }
 0x280   : > { %v823_v4 = vsel %vm822_vm8, %v1397_v61, %v819_v3 }
 0x281   : > { %v824_v5 = vmul.f32 %v823_v4, %v799_v43  ;;  %v825_v50 = vmul.f32 %v823_v4, %v800_v44  ;;  %v826_v35 = vmul.f32 %v823_v4, %v801_v46 }
 0x283   : > { %v833_v51 = vmul.f32 %v831_v1, %v824_v5  ;;  %v834_v6 = vmul.f32 %v831_v1, %v825_v50  ;;  %v835_v7 = vmul.f32 %v831_v1, %v826_v35 }
 0x285   : > { %v842_v10 = vadd.f32 %v840_v9, %v833_v51  ;;  %v843_v11 = vadd.f32 %v840_v9, %v834_v6  ;;  %v844_v12 = vadd.f32 %v840_v9, %v835_v7 }
 0x287   : > { %vm847_vm10 = vcmp.ge.f32.partialorder %v842_v10, 0.0  ;;  %vm848_vm13 = vcmp.ge.f32.partialorder %v843_v11, 0.0  ;;  %vm849_vm14 = vcmp.ge.f32.partialorder %v844_v12, 0.0  ;;  %v851_v13 = vmul.f32 %v850_v8, %v842_v10 }
 0x288   : > { %v852_v52 = vmul.f32 %v850_v8, %v843_v11  ;;  %v853_v39 = vmul.f32 %v850_v8, %v844_v12 }
 0x289   : > { %v854_v53 = vsel %vm847_vm10, %v842_v10, %v851_v13 }
 0x28a   : > { %v855_v14 = vsel %vm848_vm13, %v843_v11, %v852_v52  ;;  %v856_v15 = vsel %vm849_vm14, %v844_v12, %v853_v39  ;;  %v1741_v16 = vmul.f32 %v854_v53, %v1724_v25  ;;  %v947_v12 = vld [vmem:[%s1870_s4] sm:$0xf] }
 0x28b   : > { %v1744_v17 = vmul.f32 %v855_v14, %v1722_v23  ;;  %v1747_v18 = vmul.f32 %v856_v15, %v1727_v27 }
 0x28d   : > { %927 = vrot.lane.b32.xlu1 %v1747_v18, %s1450_s28  ;;  %v1366_v19 = vpack.i.bf16 %v1744_v17, %v1741_v16  ;;  %v1381_v20 = vpack.i.bf16 %v1747_v18, %v1741_v16 }
 0x28f   : > { %1367 = vrot.lane.b32.xlu2 %v1366_v19, %s1449_s27  ;;  %1357 = vrot.lane.b32.xlu0 %v1366_v19, %s1450_s28 }
 0x295   : > { %1382 = vrot.lane.b32.xlu1 %v1381_v20, %s1446_s24 }
 0x297   : > { %1377 = vrot.lane.b32.xlu2 %v1381_v20, %s1445_s23  ;;  %1362 = vrot.lane.b32.xlu0 %v1366_v19, %s1448_s26 }
 0x29d   : > { %1392 = vrot.lane.b32.xlu1 %v1381_v20, %s1444_s22 }
 0x29f   : > { %1387 = vrot.lane.b32.xlu2 %v1381_v20, %s1451_s29  ;;  %1372 = vrot.lane.b32.xlu0 %v1366_v19, %s1447_s25 }
 0x2a5   : > { %862 = vrot.lane.b32.xlu1 %v1744_v17, %s1451_s29 }
 0x2a7   : > { %889 = vrot.lane.b32.xlu2 %v1744_v17, %s1446_s24  ;;  %909 = vrot.lane.b32.xlu0 %v1747_v18, %s1448_s26 }
 0x2af   : > { %918 = vrot.lane.b32.xlu0 %v1747_v18, %s1449_s27 }
 0x2b7   : > { %900 = vrot.lane.b32.xlu0 %v1747_v18, %s1447_s25  ;;  %s1266_s25 = sld [smem:[#allocation2 + $0x1]] }
 0x2bf   : > { %880 = vrot.lane.b32.xlu0 %v1744_v17, %s1445_s23 }
 0x2c7   : > { %871 = vrot.lane.b32.xlu0 %v1744_v17, %s1444_s22 }
 0x2cf   : > { %1039 = vperm.xlu0 %1355, %v1036_v21  }
 0x2d7   : > { %1048 = vperm.xlu0 %1355, %v1045_v22  }
 0x2e9   : > { %v1368_v26 = vpop.permute.xlu2 %1367 }
 0x2ea   : > { %v1370_v43 = vunpack.i.h.bf16 %v1368_v26  ;;  %v1369_v44 = vunpack.i.l.bf16 %v1368_v26 }
 0x2ec   : > { %v921_v48 = vsel %vm608_vm2, %v1369_v44, %v1370_v43 }
 0x2f1   : > { %v1378_v56 = vpop.permute.xlu2 %1377 }
 0x2f2   : > { %v1380_v63 = vunpack.i.h.bf16 %v1378_v56  ;;  %v1379_v0 = vunpack.i.l.bf16 %v1378_v56 }
 0x2f4   : > { %v886_v6 = vsel %vm532_vm3, %v1380_v63, %v1379_v0 }
 0x2f9   : > { %v1388_v2 = vpop.permute.xlu2 %1387 }
 0x2fa   : > { %v1390_v35 = vunpack.i.h.bf16 %v1388_v2  ;;  %v1389_v51 = vunpack.i.l.bf16 %v1388_v2 }
 0x2fc   : > { %v868_v10 = vsel %vm494_vm12, %v1390_v35, %v1389_v51 }
 0x2ff   : > { %v928_v24 = vpop.permute.xlu1 %927 }
 0x301   : > { %v1358_v28 = vpop.permute.xlu0 %1357  ;;  %v890_v26 = vpop.permute.xlu2 %889 }
 0x302   : > { %v1360_v29 = vunpack.i.h.bf16 %v1358_v28  ;;  %v1359_v30 = vunpack.i.l.bf16 %v1358_v28 }
 0x304   : > { %v930_v31 = vsel %vm627_vm7, %v1359_v30, %v1360_v29  ;;  %v929_v32 = vsel %vm627_vm7, %v1360_v29, %v928_v24  ;;  %v931_v33 = vsel %vm627_vm7, %v928_v24, %v1359_v30  ;;  %vm948_vm7 = vcmask 588800  }
 0x305   : > { %v944_v34 = vpack.c.bf16 %v930_v31, %v930_v31  ;;  %v945_v36 = vpack.c.bf16 %v929_v32, %v929_v32  ;;  %v946_v37 = vpack.c.bf16 %v931_v33, %v931_v33 }
 0x307   : > { %v953_v40 = vsel %vm707_vm11, %v944_v34, 0  ;;  %v956_v41 = vsel %vm707_vm11, %v945_v36, 0  ;;  %v959_v42 = vsel %vm707_vm11, %v946_v37, 0  ;;  %v1383_v46 = vpop.permute.xlu1 %1382 }
 0x308   : > { %964 = vmatpush.bf16.msra.mxu3 %v953_v40  ;;  %977 = vmatpush.bf16.msra.mxu0 %v956_v41  ;;  %v1385_v58 = vunpack.i.h.bf16 %v1383_v46  ;;  %v1384_v59 = vunpack.i.l.bf16 %v1383_v46 }
 0x309   : > { %990 = vmatpush.bf16.msrb.mxu1 %v959_v42  ;;  %v1363_v47 = vpop.permute.xlu0 %1362 }
 0x30a   : > { %v1365_v54 = vunpack.i.h.bf16 %v1363_v47  ;;  %v1364_v55 = vunpack.i.l.bf16 %v1363_v47  ;;  %v895_v50 = vsel %vm551_vm4, %v1385_v58, %v1384_v59  ;;  %v894_v31 = vsel %vm551_vm4, %v1384_v59, %v890_v26 }
 0x30b   : > { %v935_v8 = vpack.c.bf16 %v895_v50, %v886_v6  ;;  %v893_v32 = vsel %vm551_vm4, %v890_v26, %v1385_v58 }
 0x30c   : > { %v912_v45 = vsel %vm589_vm1, %v1364_v55, %v1365_v54 }
 0x30d   : > { %v941_v49 = vpack.c.bf16 %v921_v48, %v912_v45 }
 0x30f   : > { %965 = vmatpush.bf16.msra.mxu3 %v941_v49  ;;  %v1393_v62 = vpop.permute.xlu1 %1392 }
 0x310   : > { %v1395_v4 = vunpack.i.h.bf16 %v1393_v62  ;;  %v1394_v5 = vunpack.i.l.bf16 %v1393_v62 }
 0x311   : > { %v1373_v57 = vpop.permute.xlu0 %1372 }
 0x312   : > { %v1375_v60 = vunpack.i.h.bf16 %v1373_v57  ;;  %v1374_v61 = vunpack.i.l.bf16 %v1373_v57  ;;  %v877_v9 = vsel %vm513_vm9, %v1395_v4, %v1394_v5 }
 0x313   : > { %v932_v11 = vpack.c.bf16 %v877_v9, %v868_v10 }
 0x314   : > { %v903_v1 = vsel %vm570_vm0, %v1374_v61, %v1375_v60 }
 0x315   : > { %v938_v3 = vpack.c.bf16 %v903_v1, %v1741_v16 }
 0x317   : > { %966 = vmatpush.bf16.msra.mxu3 %v938_v3 }
 0x319   : > { %v910_v7 = vpop.permute.xlu0 %909 }
 0x31a   : > { %v911_v52 = vsel %vm589_vm1, %v1365_v54, %v910_v7  ;;  %v913_v39 = vsel %vm589_vm1, %v910_v7, %v1364_v55 }
 0x31b   : > { %967 = vmatpush.bf16.msra.mxu3 %v935_v8 }
 0x31f   : > { %968 = vmatpush.bf16.msra.mxu3 %v932_v11 }
 0x321   : > { %v919_v13 = vpop.permute.xlu0 %918 }
 0x322   : > { %v920_v53 = vsel %vm608_vm2, %v1370_v43, %v919_v13  ;;  %v922_v14 = vsel %vm608_vm2, %v919_v13, %v1369_v44  ;;  %1263 = vmatmul.msk.bf16.vlgmr.msra.gmra.mxu3 %vm948_vm7, %v947_v12 }
 0x323   : > { %v942_v15 = vpack.c.bf16 %v920_v53, %v911_v52  ;;  %v943_v16 = vpack.c.bf16 %v922_v14, %v913_v39 }
 0x325   : > { %978 = vmatpush.bf16.msra.mxu0 %v942_v15  ;;  %991 = vmatpush.bf16.msrb.mxu1 %v943_v16 }
 0x329   : > { %v901_v19 = vpop.permute.xlu0 %900 }
 0x32a   : > { %v902_v20 = vsel %vm570_vm0, %v1375_v60, %v901_v19  ;;  %v904_v21 = vsel %vm570_vm0, %v901_v19, %v1374_v61 }
 0x32b   : > { %v939_v22 = vpack.c.bf16 %v902_v20, %v1744_v17  ;;  %v940_v24 = vpack.c.bf16 %v904_v21, %v1747_v18  ;;  %v863_v18 = vpop.permute.xlu1 %862  ;;  %v1059_v21 = vstv %s1266_s25 }
 0x32c   : > { %v866_v36 = vsel %vm494_vm12, %v863_v18, %v1390_v35  ;;  %v867_v37 = vsel %vm494_vm12, %v1389_v51, %v863_v18 }
 0x32d   : > { %979 = vmatpush.bf16.msra.mxu0 %v939_v22  ;;  %992 = vmatpush.bf16.msrb.mxu1 %v940_v24 }
 0x331   : > { %v881_v28 = vpop.permute.xlu0 %880 }
 0x332   : > { %v884_v29 = vsel %vm532_vm3, %v881_v28, %v1380_v63  ;;  %v885_v30 = vsel %vm532_vm3, %v1379_v0, %v881_v28 }
 0x333   : > { %v936_v33 = vpack.c.bf16 %v894_v31, %v885_v30  ;;  %v937_v17 = vpack.c.bf16 %v893_v32, %v884_v29 }
 0x335   : > { %980 = vmatpush.bf16.msra.mxu0 %v936_v33  ;;  %993 = vmatpush.bf16.msrb.mxu1 %v937_v17 }
 0x339   : > { %v872_v34 = vpop.permute.xlu0 %871 }
 0x33a   : > { %v875_v40 = vsel %vm513_vm9, %v872_v34, %v1395_v4  ;;  %v876_v41 = vsel %vm513_vm9, %v1394_v5, %v872_v34 }
 0x33b   : > { %v933_v42 = vpack.c.bf16 %v876_v41, %v867_v37  ;;  %v934_v43 = vpack.c.bf16 %v875_v40, %v866_v36 }
 0x33d   : > { %981 = vmatpush.bf16.msra.mxu0 %v933_v42  ;;  %994 = vmatpush.bf16.msrb.mxu1 %v934_v43 }
 0x340   : > { %1264 = vmatmul.msk.bf16.vlgmr.msra.gmra.mxu0 %vm948_vm7, %v947_v12  ;;  %1265 = vmatmul.msk.bf16.vlgmr.msrb.gmra.mxu1 %vm948_vm7, %v947_v12 }
 0x341   : > { %v1040_v10 = vpop.permute.xlu0 %1039 }
 0x349   : > { %v1049_v20 = vpop.permute.xlu0 %1048 }
 0x3a5   : > { %v970_v44 = vpop.f32.mrf.mxu3 }
 0x3a6   : > { %v1000_v47 = vmul.f32 %v970_v44, %v1724_v25 }
 0x3ad   : > { %v972_v46 = vpop.f32.mrf.mxu3 }
 0x3bd   : > { %v983_v54 = vpop.f32.mrf.mxu0  ;;  %v996_v55 = vpop.f32.mrf.mxu1 }
 0x3be   : > { %v1001_v56 = vmul.f32 %v983_v54, %v1722_v23  ;;  %v1002_v45 = vmul.f32 %v996_v55, %v1727_v27 }
 0x3c0   : > { %v1003_v38 = vadd.f32 %v1001_v56, %v1000_v47 }
 0x3c2   : > { %v1004_v48 = vadd.f32 %v1003_v38, %v1002_v45 }
 0x3c4   : > { %1005 = vadd.xlane.f32.xlu2 %v1004_v48 }
 0x3c5   : > { %v985_v49 = vpop.f32.mrf.mxu0  ;;  %v998_v57 = vpop.f32.mrf.mxu1 }
 0x437   : > { %v1006_v58 = vpop.xlane.xlu2 %1005 }
 0x438   : > { %v1007_v59 = vmul.f32 0.00390625, %v1006_v58 }
 0x43a   : > { %v1008_v60 = vsub.f32 %v970_v44, %v1007_v59  ;;  %v1009_v61 = vsub.f32 %v983_v54, %v1007_v59  ;;  %v1010_v62 = vsub.f32 %v996_v55, %v1007_v59 }
 0x43c   : > { %v1011_v63 = vmul.f32 %v1008_v60, %v1724_v25  ;;  %v1012_v0 = vmul.f32 %v1009_v61, %v1722_v23  ;;  %v1013_v1 = vmul.f32 %v1010_v62, %v1727_v27 }
 0x43e   : > { %v1014_v2 = vmul.f32 %v1011_v63, %v1011_v63  ;;  %v1015_v3 = vmul.f32 %v1012_v0, %v1012_v0  ;;  %v1016_v4 = vmul.f32 %v1013_v1, %v1013_v1 }
 0x440   : > { %v1017_v5 = vadd.f32 %v1015_v3, %v1014_v2 }
 0x442   : > { %v1018_v50 = vadd.f32 %v1017_v5, %v1016_v4 }
 0x444   : > { %1019 = vadd.xlane.f32.xlu1 %v1018_v50 }
 0x4b7   : > { %v1020_v35 = vpop.xlane.xlu1 %1019 }
 0x4b8   : > { %v1021_v51 = vmul.f32 0.00390625, %v1020_v35 }
 0x4ba   : > { %v1022_v6 = vadd.f32 1e-05, %v1021_v51 }
 0x4bc   : > { %1398 = vrsqrt.f32 %v1022_v6  ;;  %vm1029_vm1 = vweird.f32 %v1022_v6 }
 0x4c2   : > { %v1399_v7 = vpop.eup %1398 }
 0x4c3   : > { %v1024_v8 = vmul.f32 %v1399_v7, %v1022_v6  ;;  %vm1030_vm0 = vweird.f32 %v1399_v7 }
 0x4c4   : > { %vm1031_vm2 = vmor %vm1029_vm1, %vm1030_vm0 }
 0x4c5   : > { %v1025_v9 = vmul.f32 %v1399_v7, %v1024_v8 }
 0x4c7   : > { %v1026_v11 = vmul.f32 0.5, %v1025_v9 }
 0x4c9   : > { %v1027_v12 = vsub.f32 1.5, %v1026_v11 }
 0x4cb   : > { %v1028_v13 = vmul.f32 %v1399_v7, %v1027_v12 }
 0x4cd   : > { %v1032_v52 = vsel %vm1031_vm2, %v1399_v7, %v1028_v13 }
 0x4ce   : > { %v1033_v39 = vmul.f32 %v1032_v52, %v1008_v60  ;;  %v1034_v53 = vmul.f32 %v1032_v52, %v1009_v61  ;;  %v1035_v14 = vmul.f32 %v1032_v52, %v1010_v62 }
 0x4d0   : > { %v1042_v15 = vmul.f32 %v1040_v10, %v1033_v39  ;;  %v1043_v16 = vmul.f32 %v1040_v10, %v1034_v53  ;;  %v1044_v19 = vmul.f32 %v1040_v10, %v1035_v14 }
 0x4d2   : > { %v1051_v22 = vadd.f32 %v1049_v20, %v1042_v15  ;;  %v1052_v24 = vadd.f32 %v1049_v20, %v1043_v16  ;;  %v1053_v26 = vadd.f32 %v1049_v20, %v1044_v19 }
 0x4d4   : > { %vm1056_vm3 = vcmp.ge.f32.partialorder %v1051_v22, 0.0  ;;  %vm1057_vm4 = vcmp.ge.f32.partialorder %v1052_v24, 0.0  ;;  %vm1058_vm9 = vcmp.ge.f32.partialorder %v1053_v26, 0.0  ;;  %v1060_v28 = vmul.f32 %v1059_v21, %v1051_v22 }
 0x4d5   : > { %v1061_v29 = vmul.f32 %v1059_v21, %v1052_v24  ;;  %v1062_v30 = vmul.f32 %v1059_v21, %v1053_v26 }
 0x4d6   : > { %v1063_v31 = vsel %vm1056_vm3, %v1051_v22, %v1060_v28 }
 0x4d7   : > { %v1064_v32 = vsel %vm1057_vm4, %v1052_v24, %v1061_v29  ;;  %v1065_v33 = vsel %vm1058_vm9, %v1053_v26, %v1062_v30  ;;  %v1066_v17 = vmul.f32 %v1063_v31, %v1724_v25 }
 0x4d8   : > { %v1067_v18 = vmul.f32 %v1064_v32, %v1722_v23  ;;  %v1068_v34 = vmul.f32 %v1065_v33, %v1727_v27 }
 0x4da   : > { %v1069_v36 = vpack.c.bf16 %v1067_v18, %v1066_v17  ;;  %v1070_v37 = vpack.c.bf16 %v1068_v34, %v1068_v34 }
 0x4dc   : > { %1071 = vst [vmem:[%s468_s15] sm:$0xff] %v1069_v36 }
 0x4dd   : > { %1072 = vst [vmem:[%s468_s15 + $0x8] sm:$0xf] %v1070_v37 }
 0x4de PF: > { %s20_s11 = sadd.s32 1, %s1441_s11   ;;  %s1876_s30 = smov %s1437_s10 }
 0x4df   : > { %p17_p8 = scmp.ge.s32.totalorder %s20_s11, 4   ;;  %s1877_s10 = smov %s1879_s13 }
 0x4e1   :  { %19 = sbr.rel (!%p17_p8) target bundleno = 2 (0x2), region = 119 }
 0x4e6   :  { %1100 = vsyncpa [#allocation3], 1 }
 0x4e7   :  { %1102 = vsyncpa [#allocation3 + $0x1], 1 }

// kernel: unet_cms_forward.13
= control target key start
LH: loop header
LB: loop body
LE: loop exit
PB: predicated region body
PF: predicated region fallthrough
CT: control target
= control target key end

     0   :  { %s540_s20 = smov 0   ;;  %s583_s0 = inlined_call_operand.vmem [shape: bf16[2,72,64], index: 0, kind: input, shape index: {}]   ;;  %s584_s1 = inlined_call_operand.vmem [shape: bf16[1,16,72], index: 1, kind: input, shape index: {}]   ;;  %s585_s2 = inlined_call_operand.vmem [shape: f32[1,16,1], index: 2, kind: input, shape index: {}]   ;;  %s586_s3 = inlined_call_operand.vmem [shape: f32[1,16,1], index: 3, kind: input, shape index: {}]   ;;  %s587_s4 = inlined_call_operand.<no memory space> [shape: f32[1], index: 4, kind: input, shape index: {}]   ;;  %s588_s5 = inlined_call_operand.vmem [shape: bf16[2,16,64], index: 5, kind: output, shape index: {}]  }
   0x1   :  { %10 = sst [smem:[#allocation2]] %s587_s4 }
   0x2 LB: > { %s440_s21 = sadd.s32 4294967295, %s503_s20   ;;  %p444_p0 = scmp.ge.s32.totalorder %s503_s20, 1  ;;  %s503_s20 = sphi %s540_s20, %s16_s20  }
   0x3   : > { %p188_p1 = scmp.lt.s32.totalorder %s503_s20, 3 }
   0x5   : > { %p189_p2 = pnand %p444_p0, %p188_p1 }
   0x6   : > { %p216_p3 = scmp.lt.s32.totalorder (!%p189_p2), %s440_s21, 1  ;;  %s573_s10 = sld [smem:[#allocation2]] (!%p189_p2) }
   0x7   : > { %192 = sbr.rel (%p189_p2) target bundleno = 449 (0x1c1), region = 40 }
   0xc   : > { %s590_s21 = smov (!%p216_p3, %s440_s21), 1  ;;  %vm274_vm0 = vcmask 1043456   ;;  %v476_v8 = vld [vmem:[%s584_s1] sm:$0xff]  ;;  %vm270_vm1 = vcmask 588800   ;;  %vm292_vm2 = vcmask 523264   ;;  %v505_v13 = vmov 64.0  }
   0xd   : > { %s477_s4 = smul.u32 36, %s590_s21  ;;  %491 = vrcp.f32 %v505_v13  ;;  %v358_v16 = vld [vmem:[%s586_s3] sm:$0xff]  ;;  %v506_v17 = vmov 0   ;;  %v345_v33 = vld [vmem:[%s585_s2 + $0x8] sm:$0xff]  ;;  %v375_v57 = vstv %s573_s10  ;;  %s471_s11 = sshll.u32 %s590_s21, 3  ;;  %vm382_vm11 = vcmask 519168  }
   0xe   : > { %489 = vset.pattern.permute.xlu0 %v506_v17  ;;  %490 = vset.pattern.permute.xlu1 %v506_v17  ;;  %v344_v29 = vld [vmem:[%s585_s2] sm:$0xff]  ;;  %v359_v34 = vld [vmem:[%s586_s3 + $0x8] sm:$0xff]  ;;  %s225_s14 = scalar_lea.vmem %s588_s5, %s471_s11 }
   0xf   : > { %s220_s24 = scalar_lea.vmem %s583_s0, %s477_s4  ;;  %488 = vset.pattern.permute.xlu2 %v506_v17 }
  0x10   : > { %v235_v0 = vld [vmem:[%s220_s24 + $0x20] sm:$0xf]  ;;  %v475_v4 = vld [vmem:[%s220_s24 + $0x18] sm:$0xff]  ;;  %v474_v5 = vld [vmem:[%s220_s24 + $0x10] sm:$0xff]  ;;  %348 = vperm.xlu2 %488, %v344_v29  }
  0x11   : > { %v260_v1 = vunpack.c.l.b16 %v235_v0  ;;  %v473_v6 = vld [vmem:[%s220_s24 + $0x8] sm:$0xff]  ;;  %v472_v7 = vld [vmem:[%s220_s24] sm:$0xff] }
  0x13   : > { %v265_v2 = vpack.c.b16 %v260_v1, %v260_v1  ;;  %v492_v14 = vpop.eup %491 }
  0x14   : > { %v300_v15 = vmul.f32 64.0, %v492_v14  ;;  %vm304_vm3 = vweird.f32 %v492_v14 }
  0x15   : > { %v276_v3 = vsel %vm274_vm0, %v265_v2, 0 }
  0x16   : > { %281 = vmatpush.bf16.msra.mxu0 %v276_v3  ;;  %v301_v18 = vsub.f32 1.0, %v300_v15 }
  0x18   : > { %v302_v19 = vmul.f32 %v492_v14, %v301_v18  ;;  %353 = vperm.xlu2 %488, %v345_v33  }
  0x1a   : > { %282 = vmatpush.bf16.msra.mxu0 %v475_v4  ;;  %v303_v20 = vadd.f32 %v492_v14, %v302_v19 }
  0x1c   : > { %v305_v21 = vsel %vm304_vm3, %v492_v14, %v303_v20 }
  0x1e   : > { %283 = vmatpush.bf16.msra.mxu0 %v474_v5 }
  0x22   : > { %284 = vmatpush.bf16.msra.mxu0 %v473_v6 }
  0x26   : > { %285 = vmatpush.bf16.msra.mxu0 %v472_v7 }
  0x29   : > { %468 = vmatmul.msk.bf16.vlgmr.msra.gmra.mxu0 %vm270_vm1, %v476_v8 }
  0x6a   : > { %v349_v50 = vpop.permute.xlu2 %348 }
  0x72   : > { %v354_v0 = vpop.permute.xlu2 %353 }
  0xa6   : > { %v287_v9 = vpop.f32.mrf.mxu0 }
  0xa7   : > { %v293_v10 = vsel %vm292_vm2, %v287_v9, 0.0 }
  0xa8   : > { %294 = vadd.xlane.f32.xlu0 %v293_v10 }
  0xae   : > { %v289_v11 = vpop.f32.mrf.mxu0 }
  0xaf   : > { %v296_v12 = vsel %vm292_vm2, %v289_v11, 0.0 }
  0xb0   : > { %297 = vadd.xlane.f32.xlu0 %v296_v12 }
  0xc4   : > { %362 = vperm.xlu0 %489, %v358_v16  }
 0x11b   : > { %v295_v22 = vpop.xlane.xlu0 %294 }
 0x11c   : > { %v306_v23 = vmul.f32 %v305_v21, %v295_v22 }
 0x11e   : > { %v308_v24 = vsub.f32 %v287_v9, %v306_v23 }
 0x120   : > { %v310_v25 = vmul.f32 %v308_v24, %v308_v24 }
 0x122   : > { %v312_v26 = vsel %vm292_vm2, %v310_v25, 0.0 }
 0x123   : > { %313 = vadd.xlane.f32.xlu1 %v312_v26  ;;  %v298_v27 = vpop.xlane.xlu0 %297 }
 0x124   : > { %v307_v28 = vmul.f32 %v305_v21, %v298_v27 }
 0x126   : > { %v309_v30 = vsub.f32 %v289_v11, %v307_v28 }
 0x128   : > { %v311_v31 = vmul.f32 %v309_v30, %v309_v30 }
 0x12a   : > { %v315_v32 = vsel %vm292_vm2, %v311_v31, 0.0 }
 0x12b   : > { %316 = vadd.xlane.f32.xlu1 %v315_v32 }
 0x136   : > { %v363_v54 = vpop.permute.xlu0 %362 }
 0x144   : > { %367 = vperm.xlu1 %490, %v359_v34  }
 0x196   : > { %v314_v35 = vpop.xlane.xlu1 %313 }
 0x197   : > { %v318_v36 = vmul.f32 %v314_v35, %v305_v21 }
 0x199   : > { %v320_v37 = vadd.f32 1e-05, %v318_v36 }
 0x19b   : > { %493 = vrsqrt.f32 %v320_v37  ;;  %vm328_vm5 = vweird.f32 %v320_v37 }
 0x19e   : > { %v317_v38 = vpop.xlane.xlu1 %316 }
 0x19f   : > { %v319_v39 = vmul.f32 %v317_v38, %v305_v21 }
 0x1a1   : > { %v494_v40 = vpop.eup %493  ;;  %v321_v41 = vadd.f32 1e-05, %v319_v39 }
 0x1a2   : > { %v323_v42 = vmul.f32 %v494_v40, %v320_v37  ;;  %vm329_vm4 = vweird.f32 %v494_v40 }
 0x1a3   : > { %495 = vrsqrt.f32 %v321_v41  ;;  %vm330_vm6 = vmor %vm328_vm5, %vm329_vm4  ;;  %vm338_vm8 = vweird.f32 %v321_v41 }
 0x1a4   : > { %v324_v43 = vmul.f32 %v494_v40, %v323_v42 }
 0x1a6   : > { %v325_v44 = vmul.f32 0.5, %v324_v43 }
 0x1a8   : > { %v326_v45 = vsub.f32 1.5, %v325_v44 }
 0x1a9   : > { %v496_v46 = vpop.eup %495 }
 0x1aa   : > { %v333_v47 = vmul.f32 %v496_v46, %v321_v41  ;;  %v327_v48 = vmul.f32 %v494_v40, %v326_v45  ;;  %vm339_vm7 = vweird.f32 %v496_v46 }
 0x1ab   : > { %vm340_vm9 = vmor %vm338_vm8, %vm339_vm7 }
 0x1ac   : > { %v334_v49 = vmul.f32 %v496_v46, %v333_v47  ;;  %v331_v51 = vsel %vm330_vm6, %v494_v40, %v327_v48 }
 0x1ad   : > { %v342_v52 = vmul.f32 %v331_v51, %v308_v24 }
 0x1ae   : > { %v335_v53 = vmul.f32 0.5, %v334_v49 }
 0x1af   : > { %v356_v55 = vmul.f32 %v349_v50, %v342_v52 }
 0x1b0   : > { %v336_v56 = vsub.f32 1.5, %v335_v53 }
 0x1b1   : > { %v370_v58 = vadd.f32 %v363_v54, %v356_v55 }
 0x1b2   : > { %v337_v59 = vmul.f32 %v496_v46, %v336_v56 }
 0x1b3   : > { %vm373_vm10 = vcmp.ge.f32.partialorder %v370_v58, 0.0  ;;  %v376_v60 = vmul.f32 %v375_v57, %v370_v58 }
 0x1b4   : > { %v341_v61 = vsel %vm340_vm9, %v496_v46, %v337_v59 }
 0x1b5   : > { %v343_v62 = vmul.f32 %v341_v61, %v309_v30  ;;  %v378_v63 = vsel %vm373_vm10, %v370_v58, %v376_v60 }
 0x1b6   : > { %v380_v1 = vpack.c.bf16 %v378_v63, %v378_v63  ;;  %v368_v2 = vpop.permute.xlu1 %367 }
 0x1b7   : > { %v357_v3 = vmul.f32 %v354_v0, %v343_v62 }
 0x1b8   : > { %383 = vst.msk [vmem:[%s225_s14] sm:$0xf] %vm382_vm11, %v380_v1 }
 0x1b9   : > { %v371_v4 = vadd.f32 %v368_v2, %v357_v3 }
 0x1bb   : > { %vm374_vm12 = vcmp.ge.f32.partialorder %v371_v4, 0.0  ;;  %v377_v5 = vmul.f32 %v375_v57, %v371_v4 }
 0x1bd   : > { %v379_v6 = vsel %vm374_vm12, %v371_v4, %v377_v5 }
 0x1be   : > { %v381_v7 = vpack.c.bf16 %v379_v6, %v379_v6 }
 0x1c0   : > { %384 = vst.msk [vmem:[%s225_s14 + $0x4] sm:$0xf] %vm382_vm11, %v381_v7 }
 0x1c1 PF: > { %s16_s20 = sadd.s32 1, %s503_s20  }
 0x1c2   : > { %p13_p4 = scmp.ge.s32.totalorder %s16_s20, 4  }
 0x1c4   :  { %15 = sbr.rel (!%p13_p4) target bundleno = 2 (0x2), region = 70 }

// kernel: unet_cms_forward.14
= control target key start
LH: loop header
LB: loop body
LE: loop exit
PB: predicated region body
PF: predicated region fallthrough
CT: control target
= control target key end

     0   :  { %s818_s23 = smov 0   ;;  %s820_s24 = smov 0   ;;  %s893_s0 = inlined_call_operand.vmem [shape: bf16[2,16,128], index: 0, kind: input, shape index: {}]   ;;  %s894_s1 = inlined_call_operand.vmem [shape: bf16[1,16,144], index: 1, kind: input, shape index: {}]   ;;  %s895_s2 = inlined_call_operand.vmem [shape: f32[1,16,1], index: 2, kind: input, shape index: {}]   ;;  %s896_s3 = inlined_call_operand.vmem [shape: f32[1,16,1], index: 3, kind: input, shape index: {}]   ;;  %s897_s4 = inlined_call_operand.<no memory space> [shape: f32[1,1], index: 4, kind: input, shape index: {}]   ;;  %s898_s5 = inlined_call_operand.vmem [shape: f32[1,128], index: 5, kind: input, shape index: {}]   ;;  %s899_s6 = inlined_call_operand.vmem [shape: bf16[2,16,128], index: 6, kind: output, shape index: {}]  }
   0x1   :  { %11 = sst [smem:[#allocation2]] %s897_s4  ;;  %s822_s25 = smov 0  }
   0x2 LB: > { %s29_s4 = sadd.s32 1, %s765_s24  ;;  %p637_p0 = scmp.ge.s32.totalorder %s769_s25, 1  ;;  %s769_s25 = sphi %s822_s25, %s17_s25   ;;  %s765_s24 = sphi %s820_s24, %s901_s24   ;;  %s761_s23 = sphi %s818_s23, %s900_s23  }
   0x3   : > { %p31_p1 = scmp.ge.s32.totalorder %s29_s4, 2  ;;  %p259_p2 = scmp.lt.s32.totalorder %s769_s25, 3 }
   0x5   : > { %s903_s4 = smov (%p31_p1, %s29_s4), 0  ;;  %p260_p3 = pnand %p637_p0, %p259_p2 }
   0x6   : > { %p306_p4 = scmp.lt.s32.totalorder (!%p260_p3), %s761_s23, 1  ;;  %s771_s30 = smov (!%p260_p3), 118  }
   0x7   : > { %263 = sbr.rel (%p260_p3) target bundleno = 588 (0x24c), region = 44  ;;  %s772_s7 = smov (!%p260_p3), 127  }
   0x8   : > { %s773_s8 = smov (!%p260_p3), 9   ;;  %s774_s9 = smov (!%p260_p3), 119  }
   0x9   : > { %s775_s10 = smov (!%p260_p3), 1   ;;  %s776_s11 = smov (!%p260_p3), 10  }
   0xa   : > { %s777_s12 = smov (!%p260_p3), 117   ;;  %s778_s13 = smov (!%p260_p3), 11  }
   0xc   : > { %s905_s23 = smov (!%p306_p4, %s761_s23), 1  ;;  %v655_v23 = vld [vmem:[%s894_s1 + $0x4] sm:$0xf]  ;;  %v646_v24 = vld [vmem:[%s894_s1 + $0x8] sm:$0xf0]  ;;  %vm393_vm0 = vcmask 130048  }
   0xd   : > { %s653_s26 = sshll.u32 %s905_s23, 3  ;;  %v649_v26 = vor.u32 %v655_v23, %v646_v24  ;;  %v644_v39 = vld [vmem:[%s894_s1] sm:$0xf]  ;;  %v656_v40 = vld [vmem:[%s894_s1 + $0x4] sm:$0xf0]  ;;  %v779_v42 = vmov 0  }
   0xe   : > { %s310_s29 = scalar_lea.vmem %s893_s0, %s653_s26  ;;  %v645_v41 = vor.u32 %v656_v40, %v644_v39  ;;  %739 = vset.pattern.permute.xlu2 %v779_v42  ;;  %741 = vset.pattern.permute.xlu1 %v779_v42  ;;  %v859_v44 = vld [vmem:[%s898_s5] ss:$0 sm:$0xff]  ;;  %v473_v60 = vld [vmem:[%s895_s2 + $0x8] sm:$0xff]  ;;  %s332_s15 = scalar_lea.vmem %s899_s6, %s653_s26 }
   0xf   : > { %v658_v0 = vld [vmem:[%s310_s29] sm:$0xff]   ;;  %740 = vset.pattern.permute.xlu0 %v779_v42 }
  0x10   : > { %v659_v1 = vunpack.c.l.bf16 %v658_v0  ;;  %v660_v2 = vunpack.c.h.bf16 %v658_v0  ;;  %v472_v52 = vld [vmem:[%s895_s2] sm:$0xff] }
  0x12   : > { %v699_v3 = vpack.i.bf16 %v660_v2, %v659_v1  ;;  %v487_v1 = vld [vmem:[%s896_s3 + $0x8] sm:$0xff] }
  0x14   : > { %700 = vrot.lane.b32.xlu0 %v699_v3, %s771_s30  ;;  %710 = vrot.lane.b32.xlu1 %v699_v3, %s772_s7 }
  0x15   : > { %720 = vrot.lane.b32.xlu2 %v699_v3, %s773_s8 }
  0x1c   : > { %705 = vrot.lane.b32.xlu0 %v699_v3, %s774_s9  ;;  %715 = vrot.lane.b32.xlu1 %v699_v3, %s775_s10 }
  0x1d   : > { %725 = vrot.lane.b32.xlu2 %v699_v3, %s776_s11 }
  0x24   : > { %735 = vrot.lane.b32.xlu1 %v699_v3, %s777_s12  ;;  %730 = vrot.lane.b32.xlu0 %v699_v3, %s778_s13  ;;  %s501_s12 = sld [smem:[#allocation2]] }
  0x6f   : > { %v721_v16 = vpop.permute.xlu2 %720 }
  0x70   : > { %v723_v29 = vunpack.i.h.bf16 %v721_v16  ;;  %v722_v30 = vunpack.i.l.bf16 %v721_v16 }
  0x72   : > { %v375_v34 = vpack.c.bf16 %v723_v29, %v722_v30 }
  0x77   : > { %v726_v28 = vpop.permute.xlu2 %725 }
  0x78   : > { %v728_v31 = vunpack.i.h.bf16 %v726_v28  ;;  %v727_v32 = vunpack.i.l.bf16 %v726_v28 }
  0x7a   : > { %v374_v37 = vpack.c.bf16 %v728_v31, %v727_v32 }
  0x86   : > { %v701_v4 = vpop.permute.xlu0 %700  ;;  %v711_v5 = vpop.permute.xlu1 %710 }
  0x87   : > { %v703_v6 = vunpack.i.h.bf16 %v701_v4  ;;  %v702_v7 = vunpack.i.l.bf16 %v701_v4  ;;  %v713_v11 = vunpack.i.h.bf16 %v711_v5  ;;  %v712_v12 = vunpack.i.l.bf16 %v711_v5 }
  0x89   : > { %v380_v8 = vpack.c.bf16 %v703_v6, %v702_v7  ;;  %v378_v17 = vpack.c.bf16 %v713_v11, %v712_v12 }
  0x8b   : > { %397 = vmatpush.bf16.msra.mxu0 %v380_v8 }
  0x8e   : > { %v706_v9 = vpop.permute.xlu0 %705  ;;  %v716_v10 = vpop.permute.xlu1 %715 }
  0x8f   : > { %v708_v13 = vunpack.i.h.bf16 %v706_v9  ;;  %v707_v14 = vunpack.i.l.bf16 %v706_v9  ;;  %v718_v19 = vunpack.i.h.bf16 %v716_v10  ;;  %v717_v20 = vunpack.i.l.bf16 %v716_v10 }
  0x91   : > { %v379_v15 = vpack.c.bf16 %v708_v13, %v707_v14  ;;  %v376_v27 = vpack.c.bf16 %v718_v19, %v717_v20 }
  0x93   : > { %398 = vmatpush.bf16.msra.mxu0 %v379_v15 }
  0x96   : > { %v736_v18 = vpop.permute.xlu1 %735  ;;  %v731_v33 = vpop.permute.xlu0 %730 }
  0x97   : > { %399 = vmatpush.bf16.msra.mxu0 %v378_v17  ;;  %v738_v21 = vunpack.i.h.bf16 %v736_v18  ;;  %v737_v22 = vunpack.i.l.bf16 %v736_v18  ;;  %v733_v35 = vunpack.i.h.bf16 %v731_v33  ;;  %v732_v36 = vunpack.i.l.bf16 %v731_v33 }
  0x99   : > { %v381_v25 = vpack.c.bf16 %v738_v21, %v737_v22  ;;  %v373_v38 = vpack.c.bf16 %v733_v35, %v732_v36 }
  0x9b   : > { %400 = vmatpush.bf16.msra.mxu0 %v658_v0  ;;  %418 = vmatpush.bf16.msra.mxu1 %v381_v25  ;;  %v486_v0 = vld [vmem:[%s896_s3] sm:$0xff] }
  0x9e   : > { %650 = vmatmul.msk.bf16.vlgmr.msra.gmra.mxu1 %vm393_vm0, %v649_v26  ;;  %v504_v26 = vstv %s501_s12 }
  0x9f   : > { %401 = vmatpush.bf16.msra.mxu0 %v376_v27 }
  0xa3   : > { %402 = vmatpush.bf16.msra.mxu0 %v375_v34 }
  0xa7   : > { %403 = vmatpush.bf16.msra.mxu0 %v374_v37 }
  0xab   : > { %404 = vmatpush.bf16.msra.mxu0 %v373_v38 }
  0xae   : > { %405 = vmatmul.bf16.vlgmr.msra.gmra.mxu0 %v645_v41 }
 0x11b   : > { %v420_v43 = vpop.f32.mrf.mxu1 }
 0x123   : > { %v422_v48 = vpop.f32.mrf.mxu1 }
 0x12b   : > { %v406_v45 = vpop.f32.mrf.mxu0 }
 0x12c   : > { %v421_v46 = vadd.f32 %v420_v43, %v406_v45 }
 0x12e   : > { %v428_v47 = vmul.f32 %v859_v44, %v421_v46 }
 0x130   : > { %430 = vadd.xlane.f32.xlu2 %v428_v47 }
 0x133   : > { %v408_v49 = vpop.f32.mrf.mxu0 }
 0x134   : > { %v423_v50 = vadd.f32 %v422_v48, %v408_v49 }
 0x136   : > { %v429_v51 = vmul.f32 %v859_v44, %v423_v50 }
 0x138   : > { %432 = vadd.xlane.f32.xlu0 %v429_v51 }
 0x148   : > { %476 = vperm.xlu2 %739, %v472_v52  }
 0x14c   : > { %481 = vperm.xlu0 %740, %v473_v60  }
 0x1a3   : > { %v431_v53 = vpop.xlane.xlu2 %430 }
 0x1a4   : > { %v434_v54 = vmul.f32 0.015625, %v431_v53 }
 0x1a6   : > { %v436_v55 = vsub.f32 %v421_v46, %v434_v54 }
 0x1a8   : > { %v438_v56 = vmul.f32 %v859_v44, %v436_v55 }
 0x1aa   : > { %v440_v57 = vmul.f32 %v438_v56, %v438_v56 }
 0x1ab   : > { %v433_v58 = vpop.xlane.xlu0 %432  ;;  %v477_v2 = vpop.permute.xlu2 %476 }
 0x1ac   : > { %v435_v59 = vmul.f32 0.015625, %v433_v58  ;;  %442 = vadd.xlane.f32.xlu1 %v440_v57 }
 0x1ae   : > { %v437_v61 = vsub.f32 %v423_v50, %v435_v59 }
 0x1b0   : > { %v439_v62 = vmul.f32 %v859_v44, %v437_v61 }
 0x1b2   : > { %v441_v63 = vmul.f32 %v439_v62, %v439_v62 }
 0x1b4   : > { %444 = vadd.xlane.f32.xlu2 %v441_v63 }
 0x1be   : > { %v482_v28 = vpop.permute.xlu0 %481 }
 0x1c5   : > { %490 = vperm.xlu1 %741, %v486_v0  }
 0x1cc   : > { %495 = vperm.xlu2 %739, %v487_v1  }
 0x21f   : > { %v443_v3 = vpop.xlane.xlu1 %442 }
 0x220   : > { %v446_v4 = vmul.f32 0.015625, %v443_v3 }
 0x222   : > { %v448_v5 = vadd.f32 1e-05, %v446_v4 }
 0x224   : > { %743 = vrsqrt.f32 %v448_v5  ;;  %vm456_vm2 = vweird.f32 %v448_v5 }
 0x227   : > { %v445_v6 = vpop.xlane.xlu2 %444 }
 0x228   : > { %v447_v7 = vmul.f32 0.015625, %v445_v6 }
 0x22a   : > { %v744_v8 = vpop.eup %743  ;;  %v449_v9 = vadd.f32 1e-05, %v447_v7 }
 0x22b   : > { %v451_v10 = vmul.f32 %v744_v8, %v448_v5  ;;  %vm457_vm1 = vweird.f32 %v744_v8 }
 0x22c   : > { %745 = vrsqrt.f32 %v449_v9  ;;  %vm458_vm3 = vmor %vm456_vm2, %vm457_vm1  ;;  %vm466_vm5 = vweird.f32 %v449_v9 }
 0x22d   : > { %v452_v11 = vmul.f32 %v744_v8, %v451_v10 }
 0x22f   : > { %v453_v12 = vmul.f32 0.5, %v452_v11  ;;  %v496_v32 = vpop.permute.xlu2 %495 }
 0x231   : > { %v454_v13 = vsub.f32 1.5, %v453_v12 }
 0x232   : > { %v746_v14 = vpop.eup %745 }
 0x233   : > { %v461_v15 = vmul.f32 %v746_v14, %v449_v9  ;;  %v455_v16 = vmul.f32 %v744_v8, %v454_v13  ;;  %vm467_vm4 = vweird.f32 %v746_v14 }
 0x234   : > { %vm468_vm6 = vmor %vm466_vm5, %vm467_vm4 }
 0x235   : > { %v462_v17 = vmul.f32 %v746_v14, %v461_v15  ;;  %v459_v18 = vsel %vm458_vm3, %v744_v8, %v455_v16 }
 0x236   : > { %v470_v19 = vmul.f32 %v459_v18, %v436_v55 }
 0x237   : > { %v463_v20 = vmul.f32 0.5, %v462_v17  ;;  %v491_v23 = vpop.permute.xlu1 %490 }
 0x238   : > { %v484_v21 = vmul.f32 %v477_v2, %v470_v19 }
 0x239   : > { %v464_v22 = vsub.f32 1.5, %v463_v20 }
 0x23a   : > { %v498_v25 = vadd.f32 %v491_v23, %v484_v21 }
 0x23b   : > { %v465_v24 = vmul.f32 %v746_v14, %v464_v22 }
 0x23c   : > { %v505_v30 = vmul.f32 %v504_v26, %v498_v25  ;;  %vm502_vm7 = vcmp.ge.f32.partialorder %v498_v25, 0.0 }
 0x23d   : > { %v469_v27 = vsel %vm468_vm6, %v746_v14, %v465_v24 }
 0x23e   : > { %v471_v29 = vmul.f32 %v469_v27, %v437_v61  ;;  %v507_v34 = vsel %vm502_vm7, %v498_v25, %v505_v30 }
 0x23f   : > { %v509_v37 = vmul.f32 %v859_v44, %v507_v34 }
 0x240   : > { %v485_v31 = vmul.f32 %v482_v28, %v471_v29 }
 0x242   : > { %v499_v33 = vadd.f32 %v496_v32, %v485_v31 }
 0x244   : > { %vm503_vm8 = vcmp.ge.f32.partialorder %v499_v33, 0.0  ;;  %v506_v35 = vmul.f32 %v504_v26, %v499_v33 }
 0x246   : > { %v508_v36 = vsel %vm503_vm8, %v499_v33, %v506_v35 }
 0x247   : > { %v510_v38 = vmul.f32 %v859_v44, %v508_v36 }
 0x249   : > { %v664_v39 = vpack.c.bf16 %v510_v38, %v509_v37 }
 0x24b   : > { %665 = vst [vmem:[%s332_s15] sm:$0xff] %v664_v39  }
 0x24c PF: > { %s17_s25 = sadd.s32 1, %s769_s25   ;;  %s900_s23 = smov %s765_s24 }
 0x24d   : > { %p14_p5 = scmp.ge.s32.totalorder %s17_s25, 4   ;;  %s901_s24 = smov %s903_s4 }
 0x24f   :  { %16 = sbr.rel (!%p14_p5) target bundleno = 2 (0x2), region = 83 }

// kernel: unet_cms_forward.15
= control target key start
LH: loop header
LB: loop body
LE: loop exit
PB: predicated region body
PF: predicated region fallthrough
CT: control target
= control target key end

     0   :  { %s619_s20 = smov 0   ;;  %s672_s0 = inlined_call_operand.vmem [shape: bf16[2,144,16], index: 0, kind: input, shape index: {}]   ;;  %s673_s1 = inlined_call_operand.vmem [shape: bf16[1,16,144], index: 1, kind: input, shape index: {}]   ;;  %s674_s2 = inlined_call_operand.vmem [shape: f32[1,16,1], index: 2, kind: input, shape index: {}]   ;;  %s675_s3 = inlined_call_operand.vmem [shape: f32[1,16,1], index: 3, kind: input, shape index: {}]   ;;  %s676_s4 = inlined_call_operand.<no memory space> [shape: f32[1], index: 4, kind: input, shape index: {}]   ;;  %s677_s5 = inlined_call_operand.vmem [shape: bf16[2,16,16], index: 5, kind: output, shape index: {}]  }
   0x1   :  { %10 = sst [smem:[#allocation2]] %s676_s4 }
   0x2 LB: > { %s489_s21 = sadd.s32 4294967295, %s582_s20   ;;  %p493_p0 = scmp.ge.s32.totalorder %s582_s20, 1  ;;  %s582_s20 = sphi %s619_s20, %s16_s20  }
   0x3   : > { %p188_p1 = scmp.lt.s32.totalorder %s582_s20, 3 }
   0x5   : > { %p189_p2 = pnand %p493_p0, %p188_p1 }
   0x6   : > { %p216_p3 = scmp.lt.s32.totalorder (!%p189_p2), %s489_s21, 1  ;;  %s662_s16 = sld [smem:[#allocation2]] (!%p189_p2) }
   0x7   : > { %192 = sbr.rel (%p189_p2) target bundleno = 458 (0x1ca), region = 40 }
   0xc   : > { %s679_s21 = smov (!%p216_p3, %s489_s21), 1  ;;  %v554_v1 = vld [vmem:[%s673_s1 + $0x4] sm:$0xf]  ;;  %v501_v2 = vld [vmem:[%s673_s1 + $0x8] sm:$0xf0]  ;;  %vm310_vm0 = vcmask 130048  }
   0xd   : > { %s556_s4 = smul.u32 72, %s679_s21  ;;  %v504_v5 = vor.u32 %v554_v1, %v501_v2  ;;  %v499_v12 = vld [vmem:[%s673_s1] sm:$0xf]  ;;  %v555_v13 = vld [vmem:[%s673_s1 + $0x4] sm:$0xf0]  ;;  %v584_v23 = vmov 16.0  }
   0xe   : > { %v500_v14 = vor.u32 %v555_v13, %v499_v12  ;;  %570 = vrcp.f32 %v584_v23  ;;  %v407_v26 = vld [vmem:[%s675_s3] sm:$0xff]  ;;  %v585_v27 = vmov 0   ;;  %v394_v43 = vld [vmem:[%s674_s2 + $0x8] sm:$0xff]  ;;  %s544_s17 = sshll.u32 %s679_s21, 3  ;;  %vm431_vm9 = vcmask 125952  }
   0xf   : > { %s220_s24 = scalar_lea.vmem %s672_s0, %s556_s4  ;;  %568 = vset.pattern.permute.xlu0 %v585_v27  ;;  %569 = vset.pattern.permute.xlu1 %v585_v27  ;;  %v393_v39 = vld [vmem:[%s674_s2] sm:$0xff]  ;;  %v408_v44 = vld [vmem:[%s675_s3 + $0x8] sm:$0xff]  ;;  %s225_s4 = scalar_lea.vmem %s677_s5, %s544_s17 }
  0x10   : > { %v552_v0 = vld [vmem:[%s220_s24 + $0x38] sm:$0xff]  ;;  %v551_v3 = vld [vmem:[%s220_s24 + $0x30] sm:$0xff]  ;;  %v553_v4 = vld [vmem:[%s220_s24 + $0x40] sm:$0xff]  ;;  %567 = vset.pattern.permute.xlu2 %v585_v27 }
  0x11   : > { %314 = vmatpush.bf16.msra.mxu0 %v552_v0  ;;  %335 = vmatpush.bf16.msra.mxu1 %v553_v4  ;;  %v550_v6 = vld [vmem:[%s220_s24 + $0x28] sm:$0xff]  ;;  %v549_v7 = vld [vmem:[%s220_s24 + $0x20] sm:$0xff]  ;;  %v548_v8 = vld [vmem:[%s220_s24 + $0x18] sm:$0xff] }
  0x12   : > { %v547_v9 = vld [vmem:[%s220_s24 + $0x10] sm:$0xff]  ;;  %v546_v10 = vld [vmem:[%s220_s24 + $0x8] sm:$0xff]  ;;  %v545_v11 = vld [vmem:[%s220_s24] sm:$0xff]  ;;  %397 = vperm.xlu2 %567, %v393_v39  }
  0x14   : > { %541 = vmatmul.msk.bf16.vlgmr.msra.gmra.mxu1 %vm310_vm0, %v504_v5  ;;  %v571_v24 = vpop.eup %570 }
  0x15   : > { %315 = vmatpush.bf16.msra.mxu0 %v551_v3  ;;  %v349_v25 = vmul.f32 16.0, %v571_v24  ;;  %vm353_vm1 = vweird.f32 %v571_v24  ;;  %v424_v3 = vstv %s662_s16 }
  0x17   : > { %v350_v28 = vsub.f32 1.0, %v349_v25 }
  0x19   : > { %316 = vmatpush.bf16.msra.mxu0 %v550_v6  ;;  %v351_v29 = vmul.f32 %v571_v24, %v350_v28 }
  0x1a   : > { %402 = vperm.xlu2 %567, %v394_v43  }
  0x1b   : > { %v352_v30 = vadd.f32 %v571_v24, %v351_v29 }
  0x1d   : > { %317 = vmatpush.bf16.msra.mxu0 %v549_v7  ;;  %v354_v31 = vsel %vm353_vm1, %v571_v24, %v352_v30 }
  0x21   : > { %318 = vmatpush.bf16.msra.mxu0 %v548_v8 }
  0x25   : > { %319 = vmatpush.bf16.msra.mxu0 %v547_v9 }
  0x29   : > { %320 = vmatpush.bf16.msra.mxu0 %v546_v10 }
  0x2d   : > { %321 = vmatpush.bf16.msra.mxu0 %v545_v11 }
  0x30   : > { %322 = vmatmul.bf16.vlgmr.msra.gmra.mxu0 %v500_v14 }
  0x6c   : > { %v398_v60 = vpop.permute.xlu2 %397 }
  0x74   : > { %v403_v10 = vpop.permute.xlu2 %402 }
  0x91   : > { %v337_v15 = vpop.f32.mrf.mxu1 }
  0x99   : > { %v339_v19 = vpop.f32.mrf.mxu1 }
  0xad   : > { %v323_v16 = vpop.f32.mrf.mxu0 }
  0xae   : > { %v338_v17 = vadd.f32 %v337_v15, %v323_v16 }
  0xb0   : > { %v342_v18 = vsel %vm310_vm0, %v338_v17, 0.0 }
  0xb1   : > { %343 = vadd.xlane.f32.xlu0 %v342_v18 }
  0xb5   : > { %v325_v20 = vpop.f32.mrf.mxu0 }
  0xb6   : > { %v340_v21 = vadd.f32 %v339_v19, %v325_v20 }
  0xb8   : > { %v345_v22 = vsel %vm310_vm0, %v340_v21, 0.0 }
  0xb9   : > { %346 = vadd.xlane.f32.xlu0 %v345_v22 }
  0xcd   : > { %411 = vperm.xlu0 %568, %v407_v26  }
 0x124   : > { %v344_v32 = vpop.xlane.xlu0 %343 }
 0x125   : > { %v355_v33 = vmul.f32 %v354_v31, %v344_v32 }
 0x127   : > { %v357_v34 = vsub.f32 %v338_v17, %v355_v33 }
 0x129   : > { %v359_v35 = vmul.f32 %v357_v34, %v357_v34 }
 0x12b   : > { %v361_v36 = vsel %vm310_vm0, %v359_v35, 0.0 }
 0x12c   : > { %362 = vadd.xlane.f32.xlu1 %v361_v36  ;;  %v347_v37 = vpop.xlane.xlu0 %346 }
 0x12d   : > { %v356_v38 = vmul.f32 %v354_v31, %v347_v37 }
 0x12f   : > { %v358_v40 = vsub.f32 %v340_v21, %v356_v38 }
 0x131   : > { %v360_v41 = vmul.f32 %v358_v40, %v358_v40 }
 0x133   : > { %v364_v42 = vsel %vm310_vm0, %v360_v41, 0.0 }
 0x134   : > { %365 = vadd.xlane.f32.xlu1 %v364_v42 }
 0x13f   : > { %v412_v0 = vpop.permute.xlu0 %411 }
 0x14d   : > { %416 = vperm.xlu1 %569, %v408_v44  }
 0x19f   : > { %v363_v45 = vpop.xlane.xlu1 %362 }
 0x1a0   : > { %v367_v46 = vmul.f32 %v363_v45, %v354_v31 }
 0x1a2   : > { %v369_v47 = vadd.f32 1e-05, %v367_v46 }
 0x1a4   : > { %572 = vrsqrt.f32 %v369_v47  ;;  %vm377_vm3 = vweird.f32 %v369_v47 }
 0x1a7   : > { %v366_v48 = vpop.xlane.xlu1 %365 }
 0x1a8   : > { %v368_v49 = vmul.f32 %v366_v48, %v354_v31 }
 0x1aa   : > { %v573_v50 = vpop.eup %572  ;;  %v370_v51 = vadd.f32 1e-05, %v368_v49 }
 0x1ab   : > { %v372_v52 = vmul.f32 %v573_v50, %v369_v47  ;;  %vm378_vm2 = vweird.f32 %v573_v50 }
 0x1ac   : > { %574 = vrsqrt.f32 %v370_v51  ;;  %vm379_vm4 = vmor %vm377_vm3, %vm378_vm2  ;;  %vm387_vm6 = vweird.f32 %v370_v51 }
 0x1ad   : > { %v373_v53 = vmul.f32 %v573_v50, %v372_v52 }
 0x1af   : > { %v374_v54 = vmul.f32 0.5, %v373_v53 }
 0x1b1   : > { %v375_v55 = vsub.f32 1.5, %v374_v54 }
 0x1b2   : > { %v575_v56 = vpop.eup %574 }
 0x1b3   : > { %v382_v57 = vmul.f32 %v575_v56, %v370_v51  ;;  %v376_v58 = vmul.f32 %v573_v50, %v375_v55  ;;  %vm388_vm5 = vweird.f32 %v575_v56 }
 0x1b4   : > { %vm389_vm7 = vmor %vm387_vm6, %vm388_vm5 }
 0x1b5   : > { %v383_v59 = vmul.f32 %v575_v56, %v382_v57  ;;  %v380_v61 = vsel %vm379_vm4, %v573_v50, %v376_v58 }
 0x1b6   : > { %v391_v62 = vmul.f32 %v380_v61, %v357_v34 }
 0x1b7   : > { %v384_v63 = vmul.f32 0.5, %v383_v59 }
 0x1b8   : > { %v405_v1 = vmul.f32 %v398_v60, %v391_v62 }
 0x1b9   : > { %v385_v2 = vsub.f32 1.5, %v384_v63 }
 0x1ba   : > { %v419_v4 = vadd.f32 %v412_v0, %v405_v1 }
 0x1bb   : > { %v386_v5 = vmul.f32 %v575_v56, %v385_v2 }
 0x1bc   : > { %vm422_vm8 = vcmp.ge.f32.partialorder %v419_v4, 0.0  ;;  %v425_v6 = vmul.f32 %v424_v3, %v419_v4 }
 0x1bd   : > { %v390_v7 = vsel %vm389_vm7, %v575_v56, %v386_v5 }
 0x1be   : > { %v392_v8 = vmul.f32 %v390_v7, %v358_v40  ;;  %v427_v9 = vsel %vm422_vm8, %v419_v4, %v425_v6 }
 0x1bf   : > { %v429_v11 = vpack.c.bf16 %v427_v9, %v427_v9  ;;  %v417_v12 = vpop.permute.xlu1 %416 }
 0x1c0   : > { %v406_v13 = vmul.f32 %v403_v10, %v392_v8 }
 0x1c1   : > { %432 = vst.msk [vmem:[%s225_s4] sm:$0xf] %vm431_vm9, %v429_v11 }
 0x1c2   : > { %v420_v14 = vadd.f32 %v417_v12, %v406_v13 }
 0x1c4   : > { %vm423_vm10 = vcmp.ge.f32.partialorder %v420_v14, 0.0  ;;  %v426_v15 = vmul.f32 %v424_v3, %v420_v14 }
 0x1c6   : > { %v428_v16 = vsel %vm423_vm10, %v420_v14, %v426_v15 }
 0x1c7   : > { %v430_v17 = vpack.c.bf16 %v428_v16, %v428_v16 }
 0x1c9   : > { %433 = vst.msk [vmem:[%s225_s4 + $0x4] sm:$0xf] %vm431_vm9, %v430_v17 }
 0x1ca PF: > { %s16_s20 = sadd.s32 1, %s582_s20  }
 0x1cb   : > { %p13_p4 = scmp.ge.s32.totalorder %s16_s20, 4  }
 0x1cd   :  { %15 = sbr.rel (!%p13_p4) target bundleno = 2 (0x2), region = 70 }

// kernel: unet_cms_forward.16
= control target key start
LH: loop header
LB: loop body
LE: loop exit
PB: predicated region body
PF: predicated region fallthrough
CT: control target
= control target key end

     0   :  { %s818_s23 = smov 0   ;;  %s820_s24 = smov 0   ;;  %s893_s0 = inlined_call_operand.vmem [shape: bf16[2,16,128], index: 0, kind: input, shape index: {}]   ;;  %s894_s1 = inlined_call_operand.vmem [shape: bf16[1,16,144], index: 1, kind: input, shape index: {}]   ;;  %s895_s2 = inlined_call_operand.vmem [shape: f32[1,16,1], index: 2, kind: input, shape index: {}]   ;;  %s896_s3 = inlined_call_operand.vmem [shape: f32[1,16,1], index: 3, kind: input, shape index: {}]   ;;  %s897_s4 = inlined_call_operand.<no memory space> [shape: f32[1,1], index: 4, kind: input, shape index: {}]   ;;  %s898_s5 = inlined_call_operand.vmem [shape: f32[1,128], index: 5, kind: input, shape index: {}]   ;;  %s899_s6 = inlined_call_operand.vmem [shape: bf16[2,16,128], index: 6, kind: output, shape index: {}]  }
   0x1   :  { %11 = sst [smem:[#allocation2]] %s897_s4  ;;  %s822_s25 = smov 0  }
   0x2 LB: > { %s29_s4 = sadd.s32 1, %s765_s24  ;;  %p637_p0 = scmp.ge.s32.totalorder %s769_s25, 1  ;;  %s769_s25 = sphi %s822_s25, %s17_s25   ;;  %s765_s24 = sphi %s820_s24, %s901_s24   ;;  %s761_s23 = sphi %s818_s23, %s900_s23  }
   0x3   : > { %p31_p1 = scmp.ge.s32.totalorder %s29_s4, 2  ;;  %p259_p2 = scmp.lt.s32.totalorder %s769_s25, 3 }
   0x5   : > { %s903_s4 = smov (%p31_p1, %s29_s4), 0  ;;  %p260_p3 = pnand %p637_p0, %p259_p2 }
   0x6   : > { %p306_p4 = scmp.lt.s32.totalorder (!%p260_p3), %s761_s23, 1  ;;  %s771_s30 = smov (!%p260_p3), 122  }
   0x7   : > { %263 = sbr.rel (%p260_p3) target bundleno = 588 (0x24c), region = 44  ;;  %s772_s7 = smov (!%p260_p3), 127  }
   0x8   : > { %s773_s8 = smov (!%p260_p3), 5   ;;  %s774_s9 = smov (!%p260_p3), 123  }
   0x9   : > { %s775_s10 = smov (!%p260_p3), 1   ;;  %s776_s11 = smov (!%p260_p3), 6  }
   0xa   : > { %s777_s12 = smov (!%p260_p3), 121   ;;  %s778_s13 = smov (!%p260_p3), 7  }
   0xc   : > { %s905_s23 = smov (!%p306_p4, %s761_s23), 1  ;;  %v655_v23 = vld [vmem:[%s894_s1 + $0x4] sm:$0xf]  ;;  %v646_v24 = vld [vmem:[%s894_s1 + $0x8] sm:$0xf0]  ;;  %vm393_vm0 = vcmask 130048  }
   0xd   : > { %s653_s26 = sshll.u32 %s905_s23, 3  ;;  %v649_v26 = vor.u32 %v655_v23, %v646_v24  ;;  %v644_v39 = vld [vmem:[%s894_s1] sm:$0xf]  ;;  %v656_v40 = vld [vmem:[%s894_s1 + $0x4] sm:$0xf0]  ;;  %v779_v42 = vmov 0  }
   0xe   : > { %s310_s29 = scalar_lea.vmem %s893_s0, %s653_s26  ;;  %v645_v41 = vor.u32 %v656_v40, %v644_v39  ;;  %739 = vset.pattern.permute.xlu2 %v779_v42  ;;  %741 = vset.pattern.permute.xlu1 %v779_v42  ;;  %v859_v44 = vld [vmem:[%s898_s5] ss:$0 sm:$0xff]  ;;  %v473_v60 = vld [vmem:[%s895_s2 + $0x8] sm:$0xff]  ;;  %s332_s15 = scalar_lea.vmem %s899_s6, %s653_s26 }
   0xf   : > { %v658_v0 = vld [vmem:[%s310_s29] sm:$0xff]   ;;  %740 = vset.pattern.permute.xlu0 %v779_v42 }
  0x10   : > { %v659_v1 = vunpack.c.l.bf16 %v658_v0  ;;  %v660_v2 = vunpack.c.h.bf16 %v658_v0  ;;  %v472_v52 = vld [vmem:[%s895_s2] sm:$0xff] }
  0x12   : > { %v699_v3 = vpack.i.bf16 %v660_v2, %v659_v1  ;;  %v487_v1 = vld [vmem:[%s896_s3 + $0x8] sm:$0xff] }
  0x14   : > { %700 = vrot.lane.b32.xlu0 %v699_v3, %s771_s30  ;;  %710 = vrot.lane.b32.xlu1 %v699_v3, %s772_s7 }
  0x15   : > { %720 = vrot.lane.b32.xlu2 %v699_v3, %s773_s8 }
  0x1c   : > { %705 = vrot.lane.b32.xlu0 %v699_v3, %s774_s9  ;;  %715 = vrot.lane.b32.xlu1 %v699_v3, %s775_s10 }
  0x1d   : > { %725 = vrot.lane.b32.xlu2 %v699_v3, %s776_s11 }
  0x24   : > { %735 = vrot.lane.b32.xlu1 %v699_v3, %s777_s12  ;;  %730 = vrot.lane.b32.xlu0 %v699_v3, %s778_s13  ;;  %s501_s12 = sld [smem:[#allocation2]] }
  0x6f   : > { %v721_v16 = vpop.permute.xlu2 %720 }
  0x70   : > { %v723_v29 = vunpack.i.h.bf16 %v721_v16  ;;  %v722_v30 = vunpack.i.l.bf16 %v721_v16 }
  0x72   : > { %v375_v34 = vpack.c.bf16 %v723_v29, %v722_v30 }
  0x77   : > { %v726_v28 = vpop.permute.xlu2 %725 }
  0x78   : > { %v728_v31 = vunpack.i.h.bf16 %v726_v28  ;;  %v727_v32 = vunpack.i.l.bf16 %v726_v28 }
  0x7a   : > { %v374_v37 = vpack.c.bf16 %v728_v31, %v727_v32 }
  0x86   : > { %v701_v4 = vpop.permute.xlu0 %700  ;;  %v711_v5 = vpop.permute.xlu1 %710 }
  0x87   : > { %v703_v6 = vunpack.i.h.bf16 %v701_v4  ;;  %v702_v7 = vunpack.i.l.bf16 %v701_v4  ;;  %v713_v11 = vunpack.i.h.bf16 %v711_v5  ;;  %v712_v12 = vunpack.i.l.bf16 %v711_v5 }
  0x89   : > { %v380_v8 = vpack.c.bf16 %v703_v6, %v702_v7  ;;  %v378_v17 = vpack.c.bf16 %v713_v11, %v712_v12 }
  0x8b   : > { %397 = vmatpush.bf16.msra.mxu0 %v380_v8 }
  0x8e   : > { %v706_v9 = vpop.permute.xlu0 %705  ;;  %v716_v10 = vpop.permute.xlu1 %715 }
  0x8f   : > { %v708_v13 = vunpack.i.h.bf16 %v706_v9  ;;  %v707_v14 = vunpack.i.l.bf16 %v706_v9  ;;  %v718_v19 = vunpack.i.h.bf16 %v716_v10  ;;  %v717_v20 = vunpack.i.l.bf16 %v716_v10 }
  0x91   : > { %v379_v15 = vpack.c.bf16 %v708_v13, %v707_v14  ;;  %v376_v27 = vpack.c.bf16 %v718_v19, %v717_v20 }
  0x93   : > { %398 = vmatpush.bf16.msra.mxu0 %v379_v15 }
  0x96   : > { %v736_v18 = vpop.permute.xlu1 %735  ;;  %v731_v33 = vpop.permute.xlu0 %730 }
  0x97   : > { %399 = vmatpush.bf16.msra.mxu0 %v378_v17  ;;  %v738_v21 = vunpack.i.h.bf16 %v736_v18  ;;  %v737_v22 = vunpack.i.l.bf16 %v736_v18  ;;  %v733_v35 = vunpack.i.h.bf16 %v731_v33  ;;  %v732_v36 = vunpack.i.l.bf16 %v731_v33 }
  0x99   : > { %v381_v25 = vpack.c.bf16 %v738_v21, %v737_v22  ;;  %v373_v38 = vpack.c.bf16 %v733_v35, %v732_v36 }
  0x9b   : > { %400 = vmatpush.bf16.msra.mxu0 %v658_v0  ;;  %418 = vmatpush.bf16.msra.mxu1 %v381_v25  ;;  %v486_v0 = vld [vmem:[%s896_s3] sm:$0xff] }
  0x9e   : > { %650 = vmatmul.msk.bf16.vlgmr.msra.gmra.mxu1 %vm393_vm0, %v649_v26  ;;  %v504_v26 = vstv %s501_s12 }
  0x9f   : > { %401 = vmatpush.bf16.msra.mxu0 %v376_v27 }
  0xa3   : > { %402 = vmatpush.bf16.msra.mxu0 %v375_v34 }
  0xa7   : > { %403 = vmatpush.bf16.msra.mxu0 %v374_v37 }
  0xab   : > { %404 = vmatpush.bf16.msra.mxu0 %v373_v38 }
  0xae   : > { %405 = vmatmul.bf16.vlgmr.msra.gmra.mxu0 %v645_v41 }
 0x11b   : > { %v420_v43 = vpop.f32.mrf.mxu1 }
 0x123   : > { %v422_v48 = vpop.f32.mrf.mxu1 }
 0x12b   : > { %v406_v45 = vpop.f32.mrf.mxu0 }
 0x12c   : > { %v421_v46 = vadd.f32 %v420_v43, %v406_v45 }
 0x12e   : > { %v428_v47 = vmul.f32 %v859_v44, %v421_v46 }
 0x130   : > { %430 = vadd.xlane.f32.xlu2 %v428_v47 }
 0x133   : > { %v408_v49 = vpop.f32.mrf.mxu0 }
 0x134   : > { %v423_v50 = vadd.f32 %v422_v48, %v408_v49 }
 0x136   : > { %v429_v51 = vmul.f32 %v859_v44, %v423_v50 }
 0x138   : > { %432 = vadd.xlane.f32.xlu0 %v429_v51 }
 0x148   : > { %476 = vperm.xlu2 %739, %v472_v52  }
 0x14c   : > { %481 = vperm.xlu0 %740, %v473_v60  }
 0x1a3   : > { %v431_v53 = vpop.xlane.xlu2 %430 }
 0x1a4   : > { %v434_v54 = vmul.f32 0.0625, %v431_v53 }
 0x1a6   : > { %v436_v55 = vsub.f32 %v421_v46, %v434_v54 }
 0x1a8   : > { %v438_v56 = vmul.f32 %v859_v44, %v436_v55 }
 0x1aa   : > { %v440_v57 = vmul.f32 %v438_v56, %v438_v56 }
 0x1ab   : > { %v433_v58 = vpop.xlane.xlu0 %432  ;;  %v477_v2 = vpop.permute.xlu2 %476 }
 0x1ac   : > { %v435_v59 = vmul.f32 0.0625, %v433_v58  ;;  %442 = vadd.xlane.f32.xlu1 %v440_v57 }
 0x1ae   : > { %v437_v61 = vsub.f32 %v423_v50, %v435_v59 }
 0x1b0   : > { %v439_v62 = vmul.f32 %v859_v44, %v437_v61 }
 0x1b2   : > { %v441_v63 = vmul.f32 %v439_v62, %v439_v62 }
 0x1b4   : > { %444 = vadd.xlane.f32.xlu2 %v441_v63 }
 0x1be   : > { %v482_v28 = vpop.permute.xlu0 %481 }
 0x1c5   : > { %490 = vperm.xlu1 %741, %v486_v0  }
 0x1cc   : > { %495 = vperm.xlu2 %739, %v487_v1  }
 0x21f   : > { %v443_v3 = vpop.xlane.xlu1 %442 }
 0x220   : > { %v446_v4 = vmul.f32 0.0625, %v443_v3 }
 0x222   : > { %v448_v5 = vadd.f32 1e-05, %v446_v4 }
 0x224   : > { %743 = vrsqrt.f32 %v448_v5  ;;  %vm456_vm2 = vweird.f32 %v448_v5 }
 0x227   : > { %v445_v6 = vpop.xlane.xlu2 %444 }
 0x228   : > { %v447_v7 = vmul.f32 0.0625, %v445_v6 }
 0x22a   : > { %v744_v8 = vpop.eup %743  ;;  %v449_v9 = vadd.f32 1e-05, %v447_v7 }
 0x22b   : > { %v451_v10 = vmul.f32 %v744_v8, %v448_v5  ;;  %vm457_vm1 = vweird.f32 %v744_v8 }
 0x22c   : > { %745 = vrsqrt.f32 %v449_v9  ;;  %vm458_vm3 = vmor %vm456_vm2, %vm457_vm1  ;;  %vm466_vm5 = vweird.f32 %v449_v9 }
 0x22d   : > { %v452_v11 = vmul.f32 %v744_v8, %v451_v10 }
 0x22f   : > { %v453_v12 = vmul.f32 0.5, %v452_v11  ;;  %v496_v32 = vpop.permute.xlu2 %495 }
 0x231   : > { %v454_v13 = vsub.f32 1.5, %v453_v12 }
 0x232   : > { %v746_v14 = vpop.eup %745 }
 0x233   : > { %v461_v15 = vmul.f32 %v746_v14, %v449_v9  ;;  %v455_v16 = vmul.f32 %v744_v8, %v454_v13  ;;  %vm467_vm4 = vweird.f32 %v746_v14 }
 0x234   : > { %vm468_vm6 = vmor %vm466_vm5, %vm467_vm4 }
 0x235   : > { %v462_v17 = vmul.f32 %v746_v14, %v461_v15  ;;  %v459_v18 = vsel %vm458_vm3, %v744_v8, %v455_v16 }
 0x236   : > { %v470_v19 = vmul.f32 %v459_v18, %v436_v55 }
 0x237   : > { %v463_v20 = vmul.f32 0.5, %v462_v17  ;;  %v491_v23 = vpop.permute.xlu1 %490 }
 0x238   : > { %v484_v21 = vmul.f32 %v477_v2, %v470_v19 }
 0x239   : > { %v464_v22 = vsub.f32 1.5, %v463_v20 }
 0x23a   : > { %v498_v25 = vadd.f32 %v491_v23, %v484_v21 }
 0x23b   : > { %v465_v24 = vmul.f32 %v746_v14, %v464_v22 }
 0x23c   : > { %v505_v30 = vmul.f32 %v504_v26, %v498_v25  ;;  %vm502_vm7 = vcmp.ge.f32.partialorder %v498_v25, 0.0 }
 0x23d   : > { %v469_v27 = vsel %vm468_vm6, %v746_v14, %v465_v24 }
 0x23e   : > { %v471_v29 = vmul.f32 %v469_v27, %v437_v61  ;;  %v507_v34 = vsel %vm502_vm7, %v498_v25, %v505_v30 }
 0x23f   : > { %v509_v37 = vmul.f32 %v859_v44, %v507_v34 }
 0x240   : > { %v485_v31 = vmul.f32 %v482_v28, %v471_v29 }
 0x242   : > { %v499_v33 = vadd.f32 %v496_v32, %v485_v31 }
 0x244   : > { %vm503_vm8 = vcmp.ge.f32.partialorder %v499_v33, 0.0  ;;  %v506_v35 = vmul.f32 %v504_v26, %v499_v33 }
 0x246   : > { %v508_v36 = vsel %vm503_vm8, %v499_v33, %v506_v35 }
 0x247   : > { %v510_v38 = vmul.f32 %v859_v44, %v508_v36 }
 0x249   : > { %v664_v39 = vpack.c.bf16 %v510_v38, %v509_v37 }
 0x24b   : > { %665 = vst [vmem:[%s332_s15] sm:$0xff] %v664_v39  }
 0x24c PF: > { %s17_s25 = sadd.s32 1, %s769_s25   ;;  %s900_s23 = smov %s765_s24 }
 0x24d   : > { %p14_p5 = scmp.ge.s32.totalorder %s17_s25, 4   ;;  %s901_s24 = smov %s903_s4 }
 0x24f   :  { %16 = sbr.rel (!%p14_p5) target bundleno = 2 (0x2), region = 83 }

// kernel: unet_cms_forward.17
= control target key start
LH: loop header
LB: loop body
LE: loop exit
PB: predicated region body
PF: predicated region fallthrough
CT: control target
= control target key end

     0   :  { %s1363_s12 = smov 0   ;;  %s1591_s0 = inlined_call_operand.vmem [shape: bf16[2,16,6,6], index: 0, kind: input, shape index: {}]   ;;  %s1592_s1 = inlined_call_operand.vmem [shape: f32[10,6], index: 1, kind: input, shape index: {}]   ;;  %s1593_s2 = inlined_call_operand.vmem [shape: f32[6,10], index: 2, kind: input, shape index: {}]   ;;  %s1594_s3 = inlined_call_operand.vmem [shape: bf16[2,16,10,10], index: 3, kind: output, shape index: {}]  }
   0x1 LB: > { %s1218_s13 = sadd.s32 4294967295, %s1341_s12   ;;  %p1222_p0 = scmp.ge.s32.totalorder %s1341_s12, 1  ;;  %s1341_s12 = sphi %s1363_s12, %s13_s12  }
   0x2   : > { %p137_p1 = scmp.lt.s32.totalorder %s1341_s12, 3 }
   0x4   : > { %p138_p2 = pnand %p1222_p0, %p137_p1 }
   0x5   : > { %p161_p3 = scmp.lt.s32.totalorder (!%p138_p2), %s1218_s13, 1 }
   0x6   : > { %141 = sbr.rel (%p138_p2) target bundleno = 342 (0x156), region = 32 }
   0xb   : > { %s1596_s13 = smov (!%p161_p3, %s1218_s13), 1  ;;  %vm213_vm0 = vcmask 1045504   ;;  %v1382_v0 = vld [vmem:[%s1592_s1] sm:$0xff]  ;;  %vm206_vm1 = vcmask 48128   ;;  %v204_v25 = vld [vmem:[%s1592_s1 + $0x8] sm:$0x3] }
   0xc   : > { %s1325_s14 = sshll.u32 %s1596_s13, 6  ;;  %v205_v34 = vld [vmem:[%s1593_s2] sm:$0x3f]  ;;  %s1326_s24 = sshll.u32 %s1596_s13, 7  ;;  %vm1129_vm2 = vcmask 76800   ;;  %vm1131_vm3 = vcmask 73728  }
   0xd   : > { %s1377_s17 = scalar_lea.vmem %s1591_s0, %s1325_s14  ;;  %s1522_s27 = scalar_lea.vmem %s1594_s3, %s1326_s24 }
   0xe   : > { %v173_v1 = vld [vmem:[%s1377_s17 + $0x8] sm:$0x7]  ;;  %v174_v2 = vld [vmem:[%s1377_s17 + $0xc] sm:$0x7]  ;;  %v177_v3 = vld [vmem:[%s1377_s17 + $0x18] sm:$0x7] }
   0xf   : > { %v189_v4 = vunpack.c.l.bf16 %v173_v1  ;;  %v190_v5 = vunpack.c.l.bf16 %v174_v2  ;;  %v193_v6 = vunpack.c.l.bf16 %v177_v3  ;;  %v178_v7 = vld [vmem:[%s1377_s17 + $0x1c] sm:$0x7]  ;;  %v171_v8 = vld [vmem:[%s1377_s17] sm:$0x7]  ;;  %v172_v9 = vld [vmem:[%s1377_s17 + $0x4] sm:$0x7] }
  0x10   : > { %v194_v10 = vunpack.c.l.bf16 %v178_v7  ;;  %v187_v11 = vunpack.c.l.bf16 %v171_v8  ;;  %v188_v12 = vunpack.c.l.bf16 %v172_v9  ;;  %v175_v13 = vld [vmem:[%s1377_s17 + $0x10] sm:$0x7]  ;;  %v176_v14 = vld [vmem:[%s1377_s17 + $0x14] sm:$0x7]  ;;  %v181_v15 = vld [vmem:[%s1377_s17 + $0x28] sm:$0x7] }
  0x11   : > { %1233 = vmatpush.msk.msra.mxu2 %vm213_vm0, %v189_v4  ;;  %1236 = vmatpush.msk.msra.mxu3 %vm213_vm0, %v190_v5  ;;  %v182_v16 = vld [vmem:[%s1377_s17 + $0x2c] sm:$0x7]  ;;  %v179_v17 = vld [vmem:[%s1377_s17 + $0x20] sm:$0x7]  ;;  %v180_v18 = vld [vmem:[%s1377_s17 + $0x24] sm:$0x7]  ;;  %v191_v19 = vunpack.c.l.bf16 %v175_v13  ;;  %v192_v20 = vunpack.c.l.bf16 %v176_v14  ;;  %v197_v21 = vunpack.c.l.bf16 %v181_v15 }
  0x12   : > { %1234 = vmatmul.msk.f32.vlgmr.msra.gmra.mxu2 %vm206_vm1, %v1382_v0  ;;  %1237 = vmatmul.msk.f32.vlgmr.msra.gmra.mxu3 %vm206_vm1, %v1382_v0  ;;  %v198_v22 = vunpack.c.l.bf16 %v182_v16  ;;  %v195_v23 = vunpack.c.l.bf16 %v179_v17  ;;  %v196_v24 = vunpack.c.l.bf16 %v180_v18  ;;  %v185_v26 = vld [vmem:[%s1377_s17 + $0x38] sm:$0x7]  ;;  %v186_v27 = vld [vmem:[%s1377_s17 + $0x3c] sm:$0x7]  ;;  %v183_v30 = vld [vmem:[%s1377_s17 + $0x30] sm:$0x7] }
  0x13   : > { %1245 = vmatpush.msk.msrb.mxu2 %vm213_vm0, %v193_v6  ;;  %1248 = vmatpush.msk.msrb.mxu3 %vm213_vm0, %v194_v10  ;;  %v201_v28 = vunpack.c.l.bf16 %v185_v26  ;;  %v202_v29 = vunpack.c.l.bf16 %v186_v27  ;;  %v184_v31 = vld [vmem:[%s1377_s17 + $0x34] sm:$0x7]  ;;  %v199_v32 = vunpack.c.l.bf16 %v183_v30 }
  0x14   : > { %1227 = vmatpush.msk.msra.mxu0 %vm213_vm0, %v187_v11  ;;  %1230 = vmatpush.msk.msra.mxu1 %vm213_vm0, %v188_v12  ;;  %v200_v33 = vunpack.c.l.bf16 %v184_v31 }
  0x15   : > { %1228 = vmatmul.msk.f32.vlgmr.msra.gmra.mxu0 %vm206_vm1, %v1382_v0  ;;  %1231 = vmatmul.msk.f32.vlgmr.msra.gmra.mxu1 %vm206_vm1, %v1382_v0 }
  0x16   : > { %1239 = vmatpush.msk.msrb.mxu0 %vm213_vm0, %v191_v19  ;;  %1242 = vmatpush.msk.msrb.mxu1 %vm213_vm0, %v192_v20 }
  0x17   : > { %1257 = vmatpush.msk.msra.mxu2 %vm213_vm0, %v197_v21  ;;  %1260 = vmatpush.msk.msra.mxu3 %vm213_vm0, %v198_v22 }
  0x18   : > { %1251 = vmatpush.msk.msra.mxu0 %vm213_vm0, %v195_v23  ;;  %1254 = vmatpush.msk.msra.mxu1 %vm213_vm0, %v196_v24 }
  0x1a   : > { %1235 = vmatmul.msk.f32.gmra.mxu2 %vm206_vm1, %v204_v25  ;;  %1238 = vmatmul.msk.f32.gmra.mxu3 %vm206_vm1, %v204_v25 }
  0x1d   : > { %1229 = vmatmul.msk.f32.gmra.mxu0 %vm206_vm1, %v204_v25  ;;  %1232 = vmatmul.msk.f32.gmra.mxu1 %vm206_vm1, %v204_v25 }
  0x22   : > { %1246 = vmatmul.msk.f32.vlgmr.msrb.gmra.mxu2 %vm206_vm1, %v1382_v0  ;;  %1249 = vmatmul.msk.f32.vlgmr.msrb.gmra.mxu3 %vm206_vm1, %v1382_v0 }
  0x23   : > { %1269 = vmatpush.msk.msrb.mxu2 %vm213_vm0, %v201_v28  ;;  %1272 = vmatpush.msk.msrb.mxu3 %vm213_vm0, %v202_v29 }
  0x25   : > { %1240 = vmatmul.msk.f32.vlgmr.msrb.gmra.mxu0 %vm206_vm1, %v1382_v0  ;;  %1243 = vmatmul.msk.f32.vlgmr.msrb.gmra.mxu1 %vm206_vm1, %v1382_v0 }
  0x26   : > { %1263 = vmatpush.msk.msrb.mxu0 %vm213_vm0, %v199_v32  ;;  %1266 = vmatpush.msk.msrb.mxu1 %vm213_vm0, %v200_v33 }
  0x2a   : > { %1247 = vmatmul.msk.f32.gmra.mxu2 %vm206_vm1, %v204_v25  ;;  %1250 = vmatmul.msk.f32.gmra.mxu3 %vm206_vm1, %v204_v25 }
  0x2d   : > { %1241 = vmatmul.msk.f32.gmra.mxu0 %vm206_vm1, %v204_v25  ;;  %1244 = vmatmul.msk.f32.gmra.mxu1 %vm206_vm1, %v204_v25 }
  0x32   : > { %1258 = vmatmul.msk.f32.vlgmr.msra.gmra.mxu2 %vm206_vm1, %v1382_v0  ;;  %1261 = vmatmul.msk.f32.vlgmr.msra.gmra.mxu3 %vm206_vm1, %v1382_v0 }
  0x33   : > { %1281 = vmatpush.msk.msra.mxu2 %vm213_vm0, %v205_v34  ;;  %1284 = vmatpush.msk.msra.mxu3 %vm213_vm0, %v205_v34 }
  0x35   : > { %1252 = vmatmul.msk.f32.vlgmr.msra.gmra.mxu0 %vm206_vm1, %v1382_v0  ;;  %1255 = vmatmul.msk.f32.vlgmr.msra.gmra.mxu1 %vm206_vm1, %v1382_v0 }
  0x36   : > { %1275 = vmatpush.msk.msra.mxu0 %vm213_vm0, %v205_v34  ;;  %1278 = vmatpush.msk.msra.mxu1 %vm213_vm0, %v205_v34 }
  0x3a   : > { %1259 = vmatmul.msk.f32.gmra.mxu2 %vm206_vm1, %v204_v25  ;;  %1262 = vmatmul.msk.f32.gmra.mxu3 %vm206_vm1, %v204_v25 }
  0x3d   : > { %1253 = vmatmul.msk.f32.gmra.mxu0 %vm206_vm1, %v204_v25  ;;  %1256 = vmatmul.msk.f32.gmra.mxu1 %vm206_vm1, %v204_v25 }
  0x42   : > { %1270 = vmatmul.msk.f32.vlgmr.msrb.gmra.mxu2 %vm206_vm1, %v1382_v0  ;;  %1273 = vmatmul.msk.f32.vlgmr.msrb.gmra.mxu3 %vm206_vm1, %v1382_v0 }
  0x43   : > { %1293 = vmatpush.msk.msrb.mxu2 %vm213_vm0, %v205_v34  ;;  %1296 = vmatpush.msk.msrb.mxu3 %vm213_vm0, %v205_v34 }
  0x45   : > { %1264 = vmatmul.msk.f32.vlgmr.msrb.gmra.mxu0 %vm206_vm1, %v1382_v0  ;;  %1267 = vmatmul.msk.f32.vlgmr.msrb.gmra.mxu1 %vm206_vm1, %v1382_v0 }
  0x46   : > { %1287 = vmatpush.msk.msrb.mxu0 %vm213_vm0, %v205_v34  ;;  %1290 = vmatpush.msk.msrb.mxu1 %vm213_vm0, %v205_v34 }
  0x4a   : > { %1271 = vmatmul.msk.f32.gmra.mxu2 %vm206_vm1, %v204_v25  ;;  %1274 = vmatmul.msk.f32.gmra.mxu3 %vm206_vm1, %v204_v25 }
  0x4d   : > { %1265 = vmatmul.msk.f32.gmra.mxu0 %vm206_vm1, %v204_v25  ;;  %1268 = vmatmul.msk.f32.gmra.mxu1 %vm206_vm1, %v204_v25 }
  0x92   : > { %v234_v35 = vpop.f32.mrf.mxu0  ;;  %v260_v36 = vpop.f32.mrf.mxu1 }
  0x93   : > { %1276 = vmatmul.msk.f32.vlgmr.msra.gmra.mxu0 %vm206_vm1, %v234_v35  ;;  %1279 = vmatmul.msk.f32.vlgmr.msra.gmra.mxu1 %vm206_vm1, %v260_v36 }
  0x94   : > { %1299 = vmatpush.msk.msra.mxu0 %vm213_vm0, %v205_v34  ;;  %1302 = vmatpush.msk.msra.mxu1 %vm213_vm0, %v205_v34 }
  0x95   : > { %v286_v37 = vpop.f32.mrf.mxu2  ;;  %v312_v38 = vpop.f32.mrf.mxu3 }
  0x96   : > { %1282 = vmatmul.msk.f32.vlgmr.msra.gmra.mxu2 %vm206_vm1, %v286_v37  ;;  %1285 = vmatmul.msk.f32.vlgmr.msra.gmra.mxu3 %vm206_vm1, %v312_v38 }
  0x97   : > { %1305 = vmatpush.msk.msra.mxu2 %vm213_vm0, %v205_v34  ;;  %1308 = vmatpush.msk.msra.mxu3 %vm213_vm0, %v205_v34 }
  0x9a   : > { %v237_v39 = vpop.f32.mrf.mxu0  ;;  %v263_v40 = vpop.f32.mrf.mxu1 }
  0x9b   : > { %1277 = vmatmul.msk.f32.gmra.mxu0 %vm206_vm1, %v237_v39  ;;  %1280 = vmatmul.msk.f32.gmra.mxu1 %vm206_vm1, %v263_v40 }
  0x9d   : > { %v289_v41 = vpop.f32.mrf.mxu2  ;;  %v315_v42 = vpop.f32.mrf.mxu3 }
  0x9e   : > { %1283 = vmatmul.msk.f32.gmra.mxu2 %vm206_vm1, %v289_v41  ;;  %1286 = vmatmul.msk.f32.gmra.mxu3 %vm206_vm1, %v315_v42 }
  0xa2   : > { %v338_v43 = vpop.f32.mrf.mxu0  ;;  %v364_v44 = vpop.f32.mrf.mxu1 }
  0xa3   : > { %1288 = vmatmul.msk.f32.vlgmr.msrb.gmra.mxu0 %vm206_vm1, %v338_v43  ;;  %1291 = vmatmul.msk.f32.vlgmr.msrb.gmra.mxu1 %vm206_vm1, %v364_v44 }
  0xa4   : > { %1311 = vmatpush.msk.msrb.mxu0 %vm213_vm0, %v205_v34  ;;  %1314 = vmatpush.msk.msrb.mxu1 %vm213_vm0, %v205_v34 }
  0xa5   : > { %v390_v45 = vpop.f32.mrf.mxu2  ;;  %v416_v46 = vpop.f32.mrf.mxu3 }
  0xa6   : > { %1294 = vmatmul.msk.f32.vlgmr.msrb.gmra.mxu2 %vm206_vm1, %v390_v45  ;;  %1297 = vmatmul.msk.f32.vlgmr.msrb.gmra.mxu3 %vm206_vm1, %v416_v46 }
  0xa7   : > { %1317 = vmatpush.msk.msrb.mxu2 %vm213_vm0, %v205_v34  ;;  %1320 = vmatpush.msk.msrb.mxu3 %vm213_vm0, %v205_v34 }
  0xaa   : > { %v341_v47 = vpop.f32.mrf.mxu0  ;;  %v367_v48 = vpop.f32.mrf.mxu1 }
  0xab   : > { %1289 = vmatmul.msk.f32.gmra.mxu0 %vm206_vm1, %v341_v47  ;;  %1292 = vmatmul.msk.f32.gmra.mxu1 %vm206_vm1, %v367_v48 }
  0xad   : > { %v393_v49 = vpop.f32.mrf.mxu2  ;;  %v419_v50 = vpop.f32.mrf.mxu3 }
  0xae   : > { %1295 = vmatmul.msk.f32.gmra.mxu2 %vm206_vm1, %v393_v49  ;;  %1298 = vmatmul.msk.f32.gmra.mxu3 %vm206_vm1, %v419_v50 }
  0xb2   : > { %v442_v51 = vpop.f32.mrf.mxu0  ;;  %v468_v52 = vpop.f32.mrf.mxu1 }
  0xb3   : > { %1300 = vmatmul.msk.f32.vlgmr.msra.gmra.mxu0 %vm206_vm1, %v442_v51  ;;  %1303 = vmatmul.msk.f32.vlgmr.msra.gmra.mxu1 %vm206_vm1, %v468_v52 }
  0xb5   : > { %v494_v53 = vpop.f32.mrf.mxu2  ;;  %v520_v54 = vpop.f32.mrf.mxu3 }
  0xb6   : > { %1306 = vmatmul.msk.f32.vlgmr.msra.gmra.mxu2 %vm206_vm1, %v494_v53  ;;  %1309 = vmatmul.msk.f32.vlgmr.msra.gmra.mxu3 %vm206_vm1, %v520_v54 }
  0xba   : > { %v445_v55 = vpop.f32.mrf.mxu0  ;;  %v471_v56 = vpop.f32.mrf.mxu1 }
  0xbb   : > { %1301 = vmatmul.msk.f32.gmra.mxu0 %vm206_vm1, %v445_v55  ;;  %1304 = vmatmul.msk.f32.gmra.mxu1 %vm206_vm1, %v471_v56 }
  0xbd   : > { %v497_v57 = vpop.f32.mrf.mxu2  ;;  %v523_v58 = vpop.f32.mrf.mxu3 }
  0xbe   : > { %1307 = vmatmul.msk.f32.gmra.mxu2 %vm206_vm1, %v497_v57  ;;  %1310 = vmatmul.msk.f32.gmra.mxu3 %vm206_vm1, %v523_v58 }
  0xc2   : > { %v546_v59 = vpop.f32.mrf.mxu0  ;;  %v572_v60 = vpop.f32.mrf.mxu1 }
  0xc3   : > { %1312 = vmatmul.msk.f32.vlgmr.msrb.gmra.mxu0 %vm206_vm1, %v546_v59  ;;  %1315 = vmatmul.msk.f32.vlgmr.msrb.gmra.mxu1 %vm206_vm1, %v572_v60 }
  0xc5   : > { %v598_v61 = vpop.f32.mrf.mxu2  ;;  %v624_v62 = vpop.f32.mrf.mxu3 }
  0xc6   : > { %1318 = vmatmul.msk.f32.vlgmr.msrb.gmra.mxu2 %vm206_vm1, %v598_v61  ;;  %1321 = vmatmul.msk.f32.vlgmr.msrb.gmra.mxu3 %vm206_vm1, %v624_v62 }
  0xca   : > { %v549_v63 = vpop.f32.mrf.mxu0  ;;  %v575_v0 = vpop.f32.mrf.mxu1 }
  0xcb   : > { %1313 = vmatmul.msk.f32.gmra.mxu0 %vm206_vm1, %v549_v63  ;;  %1316 = vmatmul.msk.f32.gmra.mxu1 %vm206_vm1, %v575_v0 }
  0xcd   : > { %v601_v1 = vpop.f32.mrf.mxu2  ;;  %v627_v2 = vpop.f32.mrf.mxu3 }
  0xce   : > { %1319 = vmatmul.msk.f32.gmra.mxu2 %vm206_vm1, %v601_v1  ;;  %1322 = vmatmul.msk.f32.gmra.mxu3 %vm206_vm1, %v627_v2 }
 0x110   : > { %v656_v3 = vpop.f32.mrf.mxu0  ;;  %v685_v4 = vpop.f32.mrf.mxu1 }
 0x111   : > { %v1097_v5 = vpack.c.bf16 %v656_v3, %v656_v3  ;;  %v1099_v6 = vpack.c.bf16 %v685_v4, %v685_v4 }
 0x113   : > { %1130 = vst.msk [vmem:[%s1522_s27] sm:$0xf] %vm1129_vm2, %v1097_v5 }
 0x114   : > { %1133 = vst.msk [vmem:[%s1522_s27 + $0x8] sm:$0xf] %vm1129_vm2, %v1099_v6 }
 0x118   : > { %v659_v7 = vpop.f32.mrf.mxu0  ;;  %v688_v8 = vpop.f32.mrf.mxu1 }
 0x119   : > { %v714_v9 = vpop.f32.mrf.mxu2  ;;  %v743_v10 = vpop.f32.mrf.mxu3  ;;  %v1098_v11 = vpack.c.bf16 %v659_v7, %v659_v7  ;;  %v1100_v14 = vpack.c.bf16 %v688_v8, %v688_v8 }
 0x11a   : > { %v1101_v12 = vpack.c.bf16 %v714_v9, %v714_v9  ;;  %v1103_v13 = vpack.c.bf16 %v743_v10, %v743_v10 }
 0x11b   : > { %1132 = vst.msk [vmem:[%s1522_s27 + $0x4] sm:$0x1] %vm1131_vm3, %v1098_v11 }
 0x11c   : > { %1135 = vst.msk [vmem:[%s1522_s27 + $0x10] sm:$0xf] %vm1129_vm2, %v1101_v12 }
 0x11d   : > { %1137 = vst.msk [vmem:[%s1522_s27 + $0x18] sm:$0xf] %vm1129_vm2, %v1103_v13 }
 0x11e   : > { %1134 = vst.msk [vmem:[%s1522_s27 + $0xc] sm:$0x1] %vm1131_vm3, %v1100_v14 }
 0x120   : > { %v772_v15 = vpop.f32.mrf.mxu0  ;;  %v801_v16 = vpop.f32.mrf.mxu1 }
 0x121   : > { %v717_v17 = vpop.f32.mrf.mxu2  ;;  %v746_v18 = vpop.f32.mrf.mxu3  ;;  %v1105_v19 = vpack.c.bf16 %v772_v15, %v772_v15  ;;  %v1107_v22 = vpack.c.bf16 %v801_v16, %v801_v16 }
 0x122   : > { %v1102_v20 = vpack.c.bf16 %v717_v17, %v717_v17  ;;  %v1104_v21 = vpack.c.bf16 %v746_v18, %v746_v18 }
 0x123   : > { %1139 = vst.msk [vmem:[%s1522_s27 + $0x20] sm:$0xf] %vm1129_vm2, %v1105_v19 }
 0x124   : > { %1136 = vst.msk [vmem:[%s1522_s27 + $0x14] sm:$0x1] %vm1131_vm3, %v1102_v20 }
 0x125   : > { %1138 = vst.msk [vmem:[%s1522_s27 + $0x1c] sm:$0x1] %vm1131_vm3, %v1104_v21 }
 0x126   : > { %1141 = vst.msk [vmem:[%s1522_s27 + $0x28] sm:$0xf] %vm1129_vm2, %v1107_v22 }
 0x128   : > { %v775_v23 = vpop.f32.mrf.mxu0  ;;  %v804_v24 = vpop.f32.mrf.mxu1 }
 0x129   : > { %v830_v25 = vpop.f32.mrf.mxu2  ;;  %v859_v26 = vpop.f32.mrf.mxu3  ;;  %v1106_v27 = vpack.c.bf16 %v775_v23, %v775_v23  ;;  %v1108_v30 = vpack.c.bf16 %v804_v24, %v804_v24 }
 0x12a   : > { %v1109_v28 = vpack.c.bf16 %v830_v25, %v830_v25  ;;  %v1111_v29 = vpack.c.bf16 %v859_v26, %v859_v26 }
 0x12b   : > { %1140 = vst.msk [vmem:[%s1522_s27 + $0x24] sm:$0x1] %vm1131_vm3, %v1106_v27 }
 0x12c   : > { %1143 = vst.msk [vmem:[%s1522_s27 + $0x30] sm:$0xf] %vm1129_vm2, %v1109_v28 }
 0x12d   : > { %1145 = vst.msk [vmem:[%s1522_s27 + $0x38] sm:$0xf] %vm1129_vm2, %v1111_v29 }
 0x12e   : > { %1142 = vst.msk [vmem:[%s1522_s27 + $0x2c] sm:$0x1] %vm1131_vm3, %v1108_v30 }
 0x130   : > { %v888_v31 = vpop.f32.mrf.mxu0  ;;  %v917_v32 = vpop.f32.mrf.mxu1 }
 0x131   : > { %v833_v33 = vpop.f32.mrf.mxu2  ;;  %v862_v34 = vpop.f32.mrf.mxu3  ;;  %v1113_v35 = vpack.c.bf16 %v888_v31, %v888_v31  ;;  %v1115_v38 = vpack.c.bf16 %v917_v32, %v917_v32 }
 0x132   : > { %v1110_v36 = vpack.c.bf16 %v833_v33, %v833_v33  ;;  %v1112_v37 = vpack.c.bf16 %v862_v34, %v862_v34 }
 0x133   : > { %1147 = vst.msk [vmem:[%s1522_s27 + $0x40] sm:$0xf] %vm1129_vm2, %v1113_v35 }
 0x134   : > { %1144 = vst.msk [vmem:[%s1522_s27 + $0x34] sm:$0x1] %vm1131_vm3, %v1110_v36 }
 0x135   : > { %1146 = vst.msk [vmem:[%s1522_s27 + $0x3c] sm:$0x1] %vm1131_vm3, %v1112_v37 }
 0x136   : > { %1149 = vst.msk [vmem:[%s1522_s27 + $0x48] sm:$0xf] %vm1129_vm2, %v1115_v38 }
 0x138   : > { %v891_v39 = vpop.f32.mrf.mxu0  ;;  %v920_v40 = vpop.f32.mrf.mxu1 }
 0x139   : > { %v946_v41 = vpop.f32.mrf.mxu2  ;;  %v975_v42 = vpop.f32.mrf.mxu3  ;;  %v1114_v43 = vpack.c.bf16 %v891_v39, %v891_v39  ;;  %v1116_v46 = vpack.c.bf16 %v920_v40, %v920_v40 }
 0x13a   : > { %v1117_v44 = vpack.c.bf16 %v946_v41, %v946_v41  ;;  %v1119_v45 = vpack.c.bf16 %v975_v42, %v975_v42 }
 0x13b   : > { %1148 = vst.msk [vmem:[%s1522_s27 + $0x44] sm:$0x1] %vm1131_vm3, %v1114_v43 }
 0x13c   : > { %1151 = vst.msk [vmem:[%s1522_s27 + $0x50] sm:$0xf] %vm1129_vm2, %v1117_v44 }
 0x13d   : > { %1153 = vst.msk [vmem:[%s1522_s27 + $0x58] sm:$0xf] %vm1129_vm2, %v1119_v45 }
 0x13e   : > { %1150 = vst.msk [vmem:[%s1522_s27 + $0x4c] sm:$0x1] %vm1131_vm3, %v1116_v46 }
 0x140   : > { %v1004_v47 = vpop.f32.mrf.mxu0  ;;  %v1033_v48 = vpop.f32.mrf.mxu1 }
 0x141   : > { %v949_v49 = vpop.f32.mrf.mxu2  ;;  %v978_v50 = vpop.f32.mrf.mxu3  ;;  %v1121_v51 = vpack.c.bf16 %v1004_v47, %v1004_v47  ;;  %v1123_v54 = vpack.c.bf16 %v1033_v48, %v1033_v48 }
 0x142   : > { %v1118_v52 = vpack.c.bf16 %v949_v49, %v949_v49  ;;  %v1120_v53 = vpack.c.bf16 %v978_v50, %v978_v50 }
 0x143   : > { %1155 = vst.msk [vmem:[%s1522_s27 + $0x60] sm:$0xf] %vm1129_vm2, %v1121_v51 }
 0x144   : > { %1152 = vst.msk [vmem:[%s1522_s27 + $0x54] sm:$0x1] %vm1131_vm3, %v1118_v52 }
 0x145   : > { %1154 = vst.msk [vmem:[%s1522_s27 + $0x5c] sm:$0x1] %vm1131_vm3, %v1120_v53 }
 0x146   : > { %1157 = vst.msk [vmem:[%s1522_s27 + $0x68] sm:$0xf] %vm1129_vm2, %v1123_v54 }
 0x148   : > { %v1007_v55 = vpop.f32.mrf.mxu0  ;;  %v1036_v56 = vpop.f32.mrf.mxu1 }
 0x149   : > { %v1062_v57 = vpop.f32.mrf.mxu2  ;;  %v1091_v58 = vpop.f32.mrf.mxu3  ;;  %v1122_v59 = vpack.c.bf16 %v1007_v55, %v1007_v55  ;;  %v1124_v62 = vpack.c.bf16 %v1036_v56, %v1036_v56 }
 0x14a   : > { %v1125_v60 = vpack.c.bf16 %v1062_v57, %v1062_v57  ;;  %v1127_v61 = vpack.c.bf16 %v1091_v58, %v1091_v58 }
 0x14b   : > { %1156 = vst.msk [vmem:[%s1522_s27 + $0x64] sm:$0x1] %vm1131_vm3, %v1122_v59 }
 0x14c   : > { %1159 = vst.msk [vmem:[%s1522_s27 + $0x70] sm:$0xf] %vm1129_vm2, %v1125_v60 }
 0x14d   : > { %1161 = vst.msk [vmem:[%s1522_s27 + $0x78] sm:$0xf] %vm1129_vm2, %v1127_v61 }
 0x14e   : > { %1158 = vst.msk [vmem:[%s1522_s27 + $0x6c] sm:$0x1] %vm1131_vm3, %v1124_v62 }
 0x151   : > { %v1065_v63 = vpop.f32.mrf.mxu2  ;;  %v1094_v0 = vpop.f32.mrf.mxu3 }
 0x152   : > { %v1126_v1 = vpack.c.bf16 %v1065_v63, %v1065_v63  ;;  %v1128_v2 = vpack.c.bf16 %v1094_v0, %v1094_v0 }
 0x154   : > { %1160 = vst.msk [vmem:[%s1522_s27 + $0x74] sm:$0x1] %vm1131_vm3, %v1126_v1 }
 0x155   : > { %1162 = vst.msk [vmem:[%s1522_s27 + $0x7c] sm:$0x1] %vm1131_vm3, %v1128_v2 }
 0x156 PF: > { %s13_s12 = sadd.s32 1, %s1341_s12  }
 0x157   : > { %p10_p4 = scmp.ge.s32.totalorder %s13_s12, 4  }
 0x159   :  { %12 = sbr.rel (!%p10_p4) target bundleno = 1 (0x1), region = 62 }

// kernel: unet_cms_forward.18
= control target key start
LH: loop header
LB: loop body
LE: loop exit
PB: predicated region body
PF: predicated region fallthrough
CT: control target
= control target key end

     0   :  { %15 = vsyncpa [#allocation3], 0  ;;  %s1483_s13 = smov 0   ;;  %s1485_s14 = smov 0   ;;  %s1633_s0 = inlined_call_operand.vmem [shape: bf16[2,16,128], index: 0, kind: input, shape index: {}]   ;;  %s1634_s1 = inlined_call_operand.vmem [shape: bf16[2,16,128], index: 1, kind: input, shape index: {}]   ;;  %s1635_s2 = inlined_call_operand.vmem [shape: bf16[1,16,288], index: 2, kind: input, shape index: {}]   ;;  %s1636_s3 = inlined_call_operand.vmem [shape: f32[1,16,1], index: 3, kind: input, shape index: {}]   ;;  %s1637_s4 = inlined_call_operand.vmem [shape: f32[1,16,1], index: 4, kind: input, shape index: {}]   ;;  %s1638_s5 = inlined_call_operand.vmem [shape: bf16[1,16,144], index: 5, kind: input, shape index: {}]   ;;  %s1639_s6 = inlined_call_operand.vmem [shape: f32[1,16,1], index: 6, kind: input, shape index: {}]   ;;  %s1640_s7 = inlined_call_operand.vmem [shape: f32[1,16,1], index: 7, kind: input, shape index: {}]   ;;  %s1641_s8 = inlined_call_operand.vmem [shape: f32[1,2], index: 8, kind: input, shape index: {}]   ;;  %s1642_s9 = inlined_call_operand.vmem [shape: f32[1,128], index: 9, kind: input, shape index: {}]   ;;  %s1643_s10 = inlined_call_operand.vmem [shape: bf16[2,16,128], index: 10, kind: output, shape index: {}]  }
   0x1   :  { %s1487_s15 = smov 0  }
   0x2 LB: > { %s1134_s16 = sadd.s32 4294967295, %s1416_s15   ;;  %s33_s17 = sadd.s32 1, %s1412_s14  ;;  %s1416_s15 = sphi %s1487_s15, %s21_s15   ;;  %s1412_s14 = sphi %s1485_s14, %s1645_s14   ;;  %s1408_s13 = sphi %s1483_s13, %s1644_s13  }
   0x3   : > { %p35_p0 = scmp.ge.s32.totalorder %s33_s17, 2  ;;  %p1136_p1 = scmp.ge.s32.totalorder %s1416_s15, 1 }
   0x4   : > { %p318_p2 = scmp.lt.s32.totalorder %s1416_s15, 3  ;;  %p1207_p4 = scmp.eq.s32.totalorder %s1134_s16, 0 }
   0x5   : > { %s1647_s17 = smov (%p35_p0, %s33_s17), 0  ;;  %s378_s20 = sshll.u32 %s1641_s8, 4  ;;  %s379_s20 = int_to_ptr.vmem [resolvable:$true] %s378_s20 }
   0x6   : > { %p319_p3 = pnand %p1136_p1, %p318_p2  ;;  %s1418_s21 = smov [#allocation2]  }
   0x8   : > { %p1203_p5 = pneg %p319_p3  ;;  %410 = sbr.rel (%p319_p3) target bundleno = 1169 (0x491), region = 60 }
   0xa   : > { %p1204_p6 = pnand %p1207_p4, %p1203_p5 }
   0xc   : > { %1206 = dma.vmem_to_smem (!%p1204_p6), %s379_s20, 16, %s1418_s21, [#allocation3]  }
   0xd   : > { %1403 = dma.done.wait (%p1207_p4), [#allocation3], 16  }
   0xe   : > { %1405 = vsyncadd (%p1207_p4), [#allocation3], 4294967280 }
   0xf   : > { %417 = sfence }
  0x10   : > { %p487_p7 = scmp.lt.s32.totalorder %s1408_s13, 1  ;;  %s1419_s29 = smov 1   ;;  %vm647_vm0 = vcmask 261120   ;;  %vm831_vm9 = vcmask 130048  }
  0x11   : > { %s1420_s30 = smov 5   ;;  %s1421_s11 = smov 122  }
  0x12   : > { %s1649_s13 = smov (!%p487_p7, %s1408_s13), 1  ;;  %s1422_s12 = smov 123  }
  0x13   : > { %s1505_s22 = sshll.u32 %s1649_s13, 3  ;;  %s1423_s13 = smov 6  }
  0x14   : > { %s496_s25 = scalar_lea.vmem %s1634_s1, %s1505_s22  ;;  %s491_s28 = scalar_lea.vmem %s1633_s0, %s1505_s22 }
  0x15   : > { %v1515_v0 = vld [vmem:[%s496_s25] sm:$0xff]   ;;  %s1424_s16 = smov 127   ;;  %s1425_s18 = smov 121  }
  0x16   : > { %v1517_v1 = vld [vmem:[%s491_s28] sm:$0xff]   ;;  %v1192_v2 = vunpack.c.l.bf16 %v1515_v0  ;;  %v1193_v3 = vunpack.c.h.bf16 %v1515_v0  ;;  %s1426_s19 = smov 7   ;;  %s769_s27 = sld [smem:[#allocation2]] }
  0x17   : > { %v1188_v4 = vunpack.c.l.bf16 %v1517_v1  ;;  %v1189_v5 = vunpack.c.h.bf16 %v1517_v1 }
  0x18   : > { %v1243_v6 = vpack.i.bf16 %v1193_v3, %v1192_v2 }
  0x19   : > { %v1253_v7 = vpack.i.bf16 %v1189_v5, %v1188_v4  ;;  %v1181_v5 = vld [vmem:[%s1635_s2 + $0x4] sm:$0xf] }
  0x1a   : > { %1244 = vrot.lane.b32.xlu0 %v1243_v6, %s1419_s29  ;;  %1264 = vrot.lane.b32.xlu2 %v1243_v6, %s1420_s30 }
  0x1b   : > { %1254 = vrot.lane.b32.xlu1 %v1253_v7, %s1419_s29 }
  0x22   : > { %1249 = vrot.lane.b32.xlu0 %v1243_v6, %s1421_s11  ;;  %1269 = vrot.lane.b32.xlu2 %v1243_v6, %s1422_s12 }
  0x23   : > { %1259 = vrot.lane.b32.xlu1 %v1253_v7, %s1421_s11 }
  0x2a   : > { %1274 = vrot.lane.b32.xlu0 %v1253_v7, %s1420_s30  ;;  %1284 = vrot.lane.b32.xlu2 %v1243_v6, %s1423_s13 }
  0x2b   : > { %1279 = vrot.lane.b32.xlu1 %v1253_v7, %s1422_s12 }
  0x32   : > { %1289 = vrot.lane.b32.xlu0 %v1243_v6, %s1424_s16  ;;  %1299 = vrot.lane.b32.xlu2 %v1253_v7, %s1424_s16 }
  0x33   : > { %1294 = vrot.lane.b32.xlu1 %v1253_v7, %s1423_s13 }
  0x3a   : > { %1304 = vrot.lane.b32.xlu0 %v1243_v6, %s1425_s18  ;;  %1314 = vrot.lane.b32.xlu2 %v1253_v7, %s1425_s18 }
  0x3b   : > { %1309 = vrot.lane.b32.xlu1 %v1243_v6, %s1426_s19 }
  0x42   : > { %1319 = vrot.lane.b32.xlu0 %v1253_v7, %s1426_s19  ;;  %v1157_v7 = vld [vmem:[%s1635_s2 + $0xc] sm:$0xf0] }
  0x74   : > { %v1265_v8 = vpop.permute.xlu2 %1264 }
  0x75   : > { %v1267_v18 = vunpack.i.h.bf16 %v1265_v8  ;;  %v1266_v19 = vunpack.i.l.bf16 %v1265_v8  ;;  %v1163_v8 = vld [vmem:[%s1635_s2 + $0x8] sm:$0xf] }
  0x77   : > { %v615_v27 = vpack.c.bf16 %v1267_v18, %v1266_v19 }
  0x7c   : > { %v1270_v9 = vpop.permute.xlu2 %1269 }
  0x7d   : > { %v1272_v30 = vunpack.i.h.bf16 %v1270_v9  ;;  %v1271_v31 = vunpack.i.l.bf16 %v1270_v9  ;;  %v1183_v9 = vld [vmem:[%s1635_s2 + $0x10] sm:$0xf0] }
  0x7f   : > { %v623_v41 = vpack.c.bf16 %v1272_v30, %v1271_v31  ;;  %v740_v30 = vld [vmem:[%s1636_s3] sm:$0xff]  ;;  %v1427_v31 = vmov 0  }
  0x80   : > { %1323 = vset.pattern.permute.xlu1 %v1427_v31  ;;  %1325 = vset.pattern.permute.xlu0 %v1427_v31 }
  0x81   : > { %1324 = vset.pattern.permute.xlu2 %v1427_v31 }
  0x84   : > { %v1285_v26 = vpop.permute.xlu2 %1284 }
  0x85   : > { %v1287_v33 = vunpack.i.h.bf16 %v1285_v26  ;;  %v1286_v34 = vunpack.i.l.bf16 %v1285_v26 }
  0x87   : > { %v613_v43 = vpack.c.bf16 %v1287_v33, %v1286_v34 }
  0x8c   : > { %v1245_v10 = vpop.permute.xlu0 %1244  ;;  %v1300_v42 = vpop.permute.xlu2 %1299 }
  0x8d   : > { %v1255_v11 = vpop.permute.xlu1 %1254  ;;  %v1247_v12 = vunpack.i.h.bf16 %v1245_v10  ;;  %v1246_v13 = vunpack.i.l.bf16 %v1245_v10  ;;  %v1302_v46 = vunpack.i.h.bf16 %v1300_v42  ;;  %v1301_v47 = vunpack.i.l.bf16 %v1300_v42 }
  0x8e   : > { %v1257_v14 = vunpack.i.h.bf16 %v1255_v11  ;;  %v1256_v15 = vunpack.i.l.bf16 %v1255_v11  ;;  %v1160_v11 = vor.u32 %v1181_v5, %v1157_v7  ;;  %v772_v7 = vstv %s769_s27 }
  0x8f   : > { %v617_v16 = vpack.c.bf16 %v1247_v12, %v1246_v13  ;;  %v620_v55 = vpack.c.bf16 %v1302_v46, %v1301_v47  ;;  %v1164_v12 = vor.u32 %v1183_v9, %v1163_v8 }
  0x90   : > { %v616_v17 = vpack.c.bf16 %v1257_v14, %v1256_v15  ;;  %v1155_v14 = vld [vmem:[%s1635_s2] sm:$0xf]  ;;  %v1182_v15 = vld [vmem:[%s1635_s2 + $0x8] sm:$0xf0] }
  0x91   : > { %651 = vmatpush.bf16.msra.mxu0 %v617_v16 }
  0x94   : > { %v1250_v20 = vpop.permute.xlu0 %1249  ;;  %v1315_v56 = vpop.permute.xlu2 %1314 }
  0x95   : > { %v1260_v21 = vpop.permute.xlu1 %1259  ;;  %v1252_v22 = vunpack.i.h.bf16 %v1250_v20  ;;  %v1251_v23 = vunpack.i.l.bf16 %v1250_v20  ;;  %652 = vmatpush.bf16.msra.mxu0 %v616_v17  ;;  %v1317_v58 = vunpack.i.h.bf16 %v1315_v56  ;;  %v1316_v59 = vunpack.i.l.bf16 %v1315_v56 }
  0x96   : > { %v1262_v24 = vunpack.i.h.bf16 %v1260_v21  ;;  %v1261_v25 = vunpack.i.l.bf16 %v1260_v21  ;;  %v1156_v17 = vor.u32 %v1182_v15, %v1155_v14 }
  0x97   : > { %v625_v28 = vpack.c.bf16 %v1252_v22, %v1251_v23  ;;  %v626_v6 = vpack.c.bf16 %v1317_v58, %v1316_v59 }
  0x98   : > { %v624_v29 = vpack.c.bf16 %v1262_v24, %v1261_v25 }
  0x99   : > { %653 = vmatpush.bf16.msra.mxu0 %v615_v27  ;;  %665 = vmatpush.bf16.msra.mxu1 %v625_v28 }
  0x9c   : > { %v1275_v32 = vpop.permute.xlu0 %1274 }
  0x9d   : > { %v1280_v35 = vpop.permute.xlu1 %1279  ;;  %v1277_v36 = vunpack.i.h.bf16 %v1275_v32  ;;  %v1276_v37 = vunpack.i.l.bf16 %v1275_v32  ;;  %666 = vmatpush.bf16.msra.mxu1 %v624_v29  ;;  %v755_v32 = vld [vmem:[%s1637_s4 + $0x8] sm:$0xff] }
  0x9e   : > { %v1282_v38 = vunpack.i.h.bf16 %v1280_v35  ;;  %v1281_v39 = vunpack.i.l.bf16 %v1280_v35 }
  0x9f   : > { %v614_v40 = vpack.c.bf16 %v1277_v36, %v1276_v37 }
  0xa0   : > { %v622_v44 = vpack.c.bf16 %v1282_v38, %v1281_v39 }
  0xa1   : > { %654 = vmatpush.bf16.msra.mxu0 %v614_v40  ;;  %667 = vmatpush.bf16.msra.mxu1 %v623_v41 }
  0xa4   : > { %v1290_v45 = vpop.permute.xlu0 %1289 }
  0xa5   : > { %v1295_v48 = vpop.permute.xlu1 %1294  ;;  %v1292_v49 = vunpack.i.h.bf16 %v1290_v45  ;;  %v1291_v50 = vunpack.i.l.bf16 %v1290_v45  ;;  %655 = vmatpush.bf16.msra.mxu0 %v613_v43  ;;  %668 = vmatpush.bf16.msra.mxu1 %v622_v44  ;;  %v754_v43 = vld [vmem:[%s1637_s4] sm:$0xff]  ;;  %v741_v44 = vld [vmem:[%s1636_s3 + $0x8] sm:$0xff] }
  0xa6   : > { %v1297_v51 = vunpack.i.h.bf16 %v1295_v48  ;;  %v1296_v52 = vunpack.i.l.bf16 %v1295_v48 }
  0xa7   : > { %v621_v53 = vpack.c.bf16 %v1292_v49, %v1291_v50 }
  0xa8   : > { %v612_v54 = vpack.c.bf16 %v1297_v51, %v1296_v52 }
  0xa9   : > { %669 = vmatpush.bf16.msra.mxu1 %v621_v53 }
  0xaa   : > { %656 = vmatpush.bf16.msra.mxu0 %v612_v54 }
  0xac   : > { %v1305_v57 = vpop.permute.xlu0 %1304 }
  0xad   : > { %v1310_v60 = vpop.permute.xlu1 %1309  ;;  %v1307_v61 = vunpack.i.h.bf16 %v1305_v57  ;;  %v1306_v62 = vunpack.i.l.bf16 %v1305_v57  ;;  %670 = vmatpush.bf16.msra.mxu1 %v620_v55 }
  0xae   : > { %v1312_v63 = vunpack.i.h.bf16 %v1310_v60  ;;  %v1311_v2 = vunpack.i.l.bf16 %v1310_v60 }
  0xaf   : > { %v627_v3 = vpack.c.bf16 %v1307_v61, %v1306_v62 }
  0xb0   : > { %v611_v4 = vpack.c.bf16 %v1312_v63, %v1311_v2 }
  0xb1   : > { %671 = vmatpush.bf16.msra.mxu1 %v1515_v0  ;;  %685 = vmatpush.bf16.msra.mxu2 %v627_v3 }
  0xb2   : > { %657 = vmatpush.bf16.msra.mxu0 %v611_v4 }
  0xb4   : > { %v1320_v10 = vpop.permute.xlu0 %1319 }
  0xb5   : > { %v1322_v13 = vunpack.i.h.bf16 %v1320_v10  ;;  %v1321_v0 = vunpack.i.l.bf16 %v1320_v10  ;;  %672 = vmatpush.bf16.msra.mxu1 %v1517_v1  ;;  %686 = vmatpush.bf16.msra.mxu2 %v626_v6  ;;  %v1562_v1 = vld [vmem:[%s1642_s9] ss:$0 sm:$0xff] }
  0xb7   : > { %v610_v16 = vpack.c.bf16 %v1322_v13, %v1321_v0 }
  0xb8   : > { %673 = vmatmul.bf16.vlgmr.msra.gmra.mxu1 %v1160_v11  ;;  %1165 = vmatmul.msk.bf16.vlgmr.msra.gmra.mxu2 %vm647_vm0, %v1164_v12 }
  0xb9   : > { %658 = vmatpush.bf16.msra.mxu0 %v610_v16 }
  0xbc   : > { %659 = vmatmul.bf16.vlgmr.msra.gmra.mxu0 %v1156_v17 }
 0x135   : > { %v674_v18 = vpop.f32.mrf.mxu1 }
 0x139   : > { %v660_v19 = vpop.f32.mrf.mxu0 }
 0x13a   : > { %v675_v20 = vadd.f32 %v674_v18, %v660_v19 }
 0x13b   : > { %v688_v21 = vpop.f32.mrf.mxu2 }
 0x13c   : > { %v689_v22 = vadd.f32 %v688_v21, %v675_v20 }
 0x13d   : > { %v676_v24 = vpop.f32.mrf.mxu1 }
 0x13e   : > { %v696_v23 = vmul.f32 %v1562_v1, %v689_v22 }
 0x140   : > { %698 = vadd.xlane.f32.xlu1 %v696_v23 }
 0x141   : > { %v662_v25 = vpop.f32.mrf.mxu0 }
 0x142   : > { %v677_v26 = vadd.f32 %v676_v24, %v662_v25 }
 0x143   : > { %v690_v27 = vpop.f32.mrf.mxu2 }
 0x144   : > { %v691_v28 = vadd.f32 %v690_v27, %v677_v26 }
 0x146   : > { %v697_v29 = vmul.f32 %v1562_v1, %v691_v28 }
 0x148   : > { %700 = vadd.xlane.f32.xlu2 %v697_v29 }
 0x159   : > { %744 = vperm.xlu1 %1323, %v740_v30  }
 0x161   : > { %763 = vperm.xlu1 %1323, %v755_v32  }
 0x1b3   : > { %v699_v33 = vpop.xlane.xlu1 %698 }
 0x1b4   : > { %v702_v34 = vmul.f32 0.0625, %v699_v33  ;;  %v1184_v33 = vld [vmem:[%s1638_s5 + $0x4] sm:$0xf] }
 0x1b6   : > { %v704_v35 = vsub.f32 %v689_v22, %v702_v34  ;;  %v1170_v34 = vld [vmem:[%s1638_s5 + $0x8] sm:$0xf0] }
 0x1b8   : > { %v706_v36 = vmul.f32 %v1562_v1, %v704_v35 }
 0x1ba   : > { %v708_v37 = vmul.f32 %v706_v36, %v706_v36 }
 0x1bb   : > { %v701_v38 = vpop.xlane.xlu2 %700 }
 0x1bc   : > { %v703_v39 = vmul.f32 0.0625, %v701_v38  ;;  %710 = vadd.xlane.f32.xlu0 %v708_v37 }
 0x1be   : > { %v705_v40 = vsub.f32 %v691_v28, %v703_v39  ;;  %v1173_v39 = vor.u32 %v1184_v33, %v1170_v34 }
 0x1c0   : > { %v707_v41 = vmul.f32 %v1562_v1, %v705_v40 }
 0x1c2   : > { %v709_v42 = vmul.f32 %v707_v41, %v707_v41 }
 0x1c4   : > { %712 = vadd.xlane.f32.xlu2 %v709_v42 }
 0x1cb   : > { %v745_v63 = vpop.permute.xlu1 %744 }
 0x1d0   : > { %758 = vperm.xlu0 %1325, %v754_v43  }
 0x1d3   : > { %v764_v13 = vpop.permute.xlu1 %763 }
 0x1dc   : > { %749 = vperm.xlu2 %1324, %v741_v44  }
 0x22f   : > { %v711_v45 = vpop.xlane.xlu0 %710 }
 0x230   : > { %v714_v46 = vmul.f32 0.0625, %v711_v45 }
 0x232   : > { %v716_v47 = vadd.f32 1e-05, %v714_v46 }
 0x234   : > { %1367 = vrsqrt.f32 %v716_v47  ;;  %vm724_vm2 = vweird.f32 %v716_v47 }
 0x237   : > { %v713_v48 = vpop.xlane.xlu2 %712 }
 0x238   : > { %v715_v49 = vmul.f32 0.0625, %v713_v48 }
 0x23a   : > { %v1368_v50 = vpop.eup %1367  ;;  %v717_v51 = vadd.f32 1e-05, %v715_v49 }
 0x23b   : > { %v719_v52 = vmul.f32 %v1368_v50, %v716_v47  ;;  %vm725_vm1 = vweird.f32 %v1368_v50 }
 0x23c   : > { %1369 = vrsqrt.f32 %v717_v51  ;;  %vm726_vm3 = vmor %vm724_vm2, %vm725_vm1  ;;  %vm734_vm5 = vweird.f32 %v717_v51 }
 0x23d   : > { %v720_v53 = vmul.f32 %v1368_v50, %v719_v52 }
 0x23f   : > { %v721_v54 = vmul.f32 0.5, %v720_v53  ;;  %v750_v9 = vpop.permute.xlu2 %749 }
 0x241   : > { %v722_v55 = vsub.f32 1.5, %v721_v54 }
 0x242   : > { %v1370_v56 = vpop.eup %1369  ;;  %v759_v4 = vpop.permute.xlu0 %758 }
 0x243   : > { %v729_v57 = vmul.f32 %v1370_v56, %v717_v51  ;;  %v723_v58 = vmul.f32 %v1368_v50, %v722_v55  ;;  %vm735_vm4 = vweird.f32 %v1370_v56  ;;  %v1168_v55 = vld [vmem:[%s1638_s5] sm:$0xf] }
 0x244   : > { %vm736_vm6 = vmor %vm734_vm5, %vm735_vm4 }
 0x245   : > { %v730_v59 = vmul.f32 %v1370_v56, %v729_v57  ;;  %v727_v60 = vsel %vm726_vm3, %v1368_v50, %v723_v58 }
 0x246   : > { %v738_v61 = vmul.f32 %v727_v60, %v704_v35 }
 0x247   : > { %v731_v62 = vmul.f32 0.5, %v730_v59 }
 0x248   : > { %v752_v2 = vmul.f32 %v745_v63, %v738_v61 }
 0x249   : > { %v732_v3 = vsub.f32 1.5, %v731_v62 }
 0x24a   : > { %v766_v6 = vadd.f32 %v759_v4, %v752_v2 }
 0x24b   : > { %v733_v5 = vmul.f32 %v1370_v56, %v732_v3 }
 0x24c   : > { %v773_v11 = vmul.f32 %v772_v7, %v766_v6  ;;  %vm770_vm7 = vcmp.ge.f32.partialorder %v766_v6, 0.0 }
 0x24d   : > { %v737_v8 = vsel %vm736_vm6, %v1370_v56, %v733_v5  ;;  %v1185_v56 = vld [vmem:[%s1638_s5 + $0x4] sm:$0xf0]  ;;  %v907_v5 = vld [vmem:[%s1639_s6] sm:$0xff] }
 0x24e   : > { %v739_v10 = vmul.f32 %v737_v8, %v705_v40  ;;  %v775_v14 = vsel %vm770_vm7, %v766_v6, %v773_v11  ;;  %v1169_v58 = vor.u32 %v1185_v56, %v1168_v55  ;;  %v922_v6 = vld [vmem:[%s1640_s7 + $0x8] sm:$0xff] }
 0x24f   : > { %v777_v17 = vmul.f32 %v1562_v1, %v775_v14 }
 0x250   : > { %v753_v12 = vmul.f32 %v750_v9, %v739_v10 }
 0x252   : > { %v767_v0 = vadd.f32 %v764_v13, %v753_v12 }
 0x254   : > { %vm771_vm8 = vcmp.ge.f32.partialorder %v767_v0, 0.0  ;;  %v774_v15 = vmul.f32 %v772_v7, %v767_v0 }
 0x256   : > { %v776_v16 = vsel %vm771_vm8, %v767_v0, %v774_v15 }
 0x257   : > { %v778_v18 = vmul.f32 %v1562_v1, %v776_v16  ;;  %v908_v16 = vld [vmem:[%s1639_s6 + $0x8] sm:$0xff] }
 0x259   : > { %v1351_v19 = vpack.i.bf16 %v778_v18, %v777_v17  ;;  %v815_v20 = vpack.c.bf16 %v778_v18, %v777_v17  ;;  %v921_v17 = vld [vmem:[%s1640_s7] sm:$0xff] }
 0x25b   : > { %1352 = vrot.lane.b32.xlu0 %v1351_v19, %s1423_s13  ;;  %1332 = vrot.lane.b32.xlu1 %v1351_v19, %s1422_s12  ;;  %s533_s12 = scalar_lea.vmem %s1643_s10, %s1505_s22 }
 0x25c   : > { %1327 = vrot.lane.b32.xlu2 %v1351_v19, %s1421_s11 }
 0x263   : > { %1342 = vrot.lane.b32.xlu1 %v1351_v19, %s1419_s29  ;;  %s1175_s29 = sld [smem:[#allocation2 + $0x1]] }
 0x264   : > { %1337 = vrot.lane.b32.xlu2 %v1351_v19, %s1424_s16 }
 0x26b   : > { %1357 = vrot.lane.b32.xlu1 %v1351_v19, %s1426_s19 }
 0x26c   : > { %1347 = vrot.lane.b32.xlu2 %v1351_v19, %s1420_s30 }
 0x274   : > { %1362 = vrot.lane.b32.xlu2 %v1351_v19, %s1425_s18 }
 0x2b6   : > { %v1328_v21 = vpop.permute.xlu2 %1327 }
 0x2b7   : > { %v1330_v22 = vunpack.i.h.bf16 %v1328_v21  ;;  %v1329_v23 = vunpack.i.l.bf16 %v1328_v21 }
 0x2b9   : > { %v818_v24 = vpack.c.bf16 %v1330_v22, %v1329_v23 }
 0x2bb   : > { %835 = vmatpush.bf16.msra.mxu3 %v818_v24 }
 0x2be   : > { %v1338_v25 = vpop.permute.xlu2 %1337 }
 0x2bf   : > { %v1340_v35 = vunpack.i.h.bf16 %v1338_v25  ;;  %v1339_v36 = vunpack.i.l.bf16 %v1338_v25 }
 0x2c1   : > { %v816_v40 = vpack.c.bf16 %v1340_v35, %v1339_v36 }
 0x2c6   : > { %v1348_v26 = vpop.permute.xlu2 %1347 }
 0x2c7   : > { %v1350_v44 = vunpack.i.h.bf16 %v1348_v26  ;;  %v1349_v45 = vunpack.i.l.bf16 %v1348_v26 }
 0x2c9   : > { %v813_v50 = vpack.c.bf16 %v1350_v44, %v1349_v45 }
 0x2cd   : > { %v1333_v27 = vpop.permute.xlu1 %1332  ;;  %v1353_v47 = vpop.permute.xlu0 %1352 }
 0x2ce   : > { %v1335_v28 = vunpack.i.h.bf16 %v1333_v27  ;;  %v1334_v29 = vunpack.i.l.bf16 %v1333_v27  ;;  %v1363_v30 = vpop.permute.xlu2 %1362  ;;  %v1355_v48 = vunpack.i.h.bf16 %v1353_v47  ;;  %v1354_v49 = vunpack.i.l.bf16 %v1353_v47 }
 0x2cf   : > { %v1365_v31 = vunpack.i.h.bf16 %v1363_v30  ;;  %v1364_v32 = vunpack.i.l.bf16 %v1363_v30 }
 0x2d0   : > { %v817_v37 = vpack.c.bf16 %v1335_v28, %v1334_v29  ;;  %v812_v54 = vpack.c.bf16 %v1355_v48, %v1354_v49 }
 0x2d1   : > { %v819_v38 = vpack.c.bf16 %v1365_v31, %v1364_v32 }
 0x2d2   : > { %836 = vmatpush.bf16.msra.mxu3 %v817_v37 }
 0x2d3   : > { %856 = vmatpush.bf16.msrb.mxu2 %v819_v38 }
 0x2d5   : > { %v1343_v41 = vpop.permute.xlu1 %1342 }
 0x2d6   : > { %837 = vmatpush.bf16.msra.mxu3 %v816_v40  ;;  %1174 = vmatmul.msk.bf16.vlgmr.msrb.gmra.mxu2 %vm831_vm9, %v1173_v39  ;;  %v1345_v42 = vunpack.i.h.bf16 %v1343_v41  ;;  %v1344_v43 = vunpack.i.l.bf16 %v1343_v41 }
 0x2d8   : > { %v814_v46 = vpack.c.bf16 %v1345_v42, %v1344_v43  ;;  %v939_v43 = vstv %s1175_s29 }
 0x2da   : > { %838 = vmatpush.bf16.msra.mxu3 %v815_v20 }
 0x2dd   : > { %v1358_v51 = vpop.permute.xlu1 %1357 }
 0x2de   : > { %839 = vmatpush.bf16.msra.mxu3 %v814_v46  ;;  %v1360_v52 = vunpack.i.h.bf16 %v1358_v51  ;;  %v1359_v53 = vunpack.i.l.bf16 %v1358_v51 }
 0x2e0   : > { %v811_v57 = vpack.c.bf16 %v1360_v52, %v1359_v53 }
 0x2e2   : > { %840 = vmatpush.bf16.msra.mxu3 %v813_v50 }
 0x2e6   : > { %841 = vmatpush.bf16.msra.mxu3 %v812_v54 }
 0x2ea   : > { %842 = vmatpush.bf16.msra.mxu3 %v811_v57 }
 0x2ed   : > { %843 = vmatmul.bf16.vlgmr.msra.gmra.mxu3 %v1169_v58 }
 0x359   : > { %v858_v59 = vpop.f32.mrf.mxu2 }
 0x361   : > { %v860_v63 = vpop.f32.mrf.mxu2 }
 0x370   : > { %v844_v60 = vpop.f32.mrf.mxu3 }
 0x371   : > { %v859_v61 = vadd.f32 %v858_v59, %v844_v60 }
 0x373   : > { %v863_v62 = vmul.f32 %v1562_v1, %v859_v61 }
 0x375   : > { %865 = vadd.xlane.f32.xlu0 %v863_v62 }
 0x378   : > { %v846_v2 = vpop.f32.mrf.mxu3 }
 0x379   : > { %v861_v3 = vadd.f32 %v860_v63, %v846_v2 }
 0x37b   : > { %v864_v4 = vmul.f32 %v1562_v1, %v861_v3 }
 0x37d   : > { %867 = vadd.xlane.f32.xlu1 %v864_v4 }
 0x396   : > { %911 = vperm.xlu1 %1323, %v907_v5  }
 0x39e   : > { %930 = vperm.xlu1 %1323, %v922_v6  }
 0x3e8   : > { %v866_v7 = vpop.xlane.xlu0 %865 }
 0x3e9   : > { %v869_v8 = vmul.f32 0.0625, %v866_v7 }
 0x3eb   : > { %v871_v9 = vsub.f32 %v859_v61, %v869_v8 }
 0x3ed   : > { %v873_v10 = vmul.f32 %v1562_v1, %v871_v9 }
 0x3ef   : > { %v875_v11 = vmul.f32 %v873_v10, %v873_v10 }
 0x3f0   : > { %v868_v12 = vpop.xlane.xlu1 %867 }
 0x3f1   : > { %v870_v13 = vmul.f32 0.0625, %v868_v12  ;;  %877 = vadd.xlane.f32.xlu2 %v875_v11 }
 0x3f3   : > { %v872_v0 = vsub.f32 %v861_v3, %v870_v13 }
 0x3f5   : > { %v874_v14 = vmul.f32 %v1562_v1, %v872_v0 }
 0x3f7   : > { %v876_v15 = vmul.f32 %v874_v14, %v874_v14 }
 0x3f9   : > { %879 = vadd.xlane.f32.xlu0 %v876_v15 }
 0x408   : > { %v912_v35 = vpop.permute.xlu1 %911 }
 0x409   : > { %916 = vperm.xlu2 %1324, %v908_v16  }
 0x40d   : > { %925 = vperm.xlu0 %1325, %v921_v17  }
 0x410   : > { %v931_v48 = vpop.permute.xlu1 %930 }
 0x464   : > { %v878_v18 = vpop.xlane.xlu2 %877 }
 0x465   : > { %v881_v19 = vmul.f32 0.0625, %v878_v18 }
 0x467   : > { %v883_v20 = vadd.f32 1e-05, %v881_v19 }
 0x469   : > { %1371 = vrsqrt.f32 %v883_v20  ;;  %vm891_vm11 = vweird.f32 %v883_v20 }
 0x46c   : > { %v880_v21 = vpop.xlane.xlu0 %879  ;;  %v917_v45 = vpop.permute.xlu2 %916 }
 0x46d   : > { %v882_v22 = vmul.f32 0.0625, %v880_v21 }
 0x46f   : > { %v1372_v23 = vpop.eup %1371  ;;  %v884_v24 = vadd.f32 1e-05, %v882_v22 }
 0x470   : > { %v886_v25 = vmul.f32 %v1372_v23, %v883_v20  ;;  %vm892_vm10 = vweird.f32 %v1372_v23 }
 0x471   : > { %1373 = vrsqrt.f32 %v884_v24  ;;  %vm893_vm12 = vmor %vm891_vm11, %vm892_vm10  ;;  %vm901_vm14 = vweird.f32 %v884_v24 }
 0x472   : > { %v887_v26 = vmul.f32 %v1372_v23, %v886_v25 }
 0x474   : > { %v888_v27 = vmul.f32 0.5, %v887_v26 }
 0x476   : > { %v889_v28 = vsub.f32 1.5, %v888_v27 }
 0x477   : > { %v1374_v29 = vpop.eup %1373 }
 0x478   : > { %v896_v30 = vmul.f32 %v1374_v29, %v884_v24  ;;  %v890_v31 = vmul.f32 %v1372_v23, %v889_v28  ;;  %vm902_vm13 = vweird.f32 %v1374_v29 }
 0x479   : > { %vm903_vm15 = vmor %vm901_vm14, %vm902_vm13 }
 0x47a   : > { %v897_v32 = vmul.f32 %v1374_v29, %v896_v30  ;;  %v894_v33 = vsel %vm893_vm12, %v1372_v23, %v890_v31 }
 0x47b   : > { %v905_v34 = vmul.f32 %v894_v33, %v871_v9 }
 0x47c   : > { %v898_v36 = vmul.f32 0.5, %v897_v32 }
 0x47d   : > { %v919_v37 = vmul.f32 %v912_v35, %v905_v34 }
 0x47e   : > { %v899_v38 = vsub.f32 1.5, %v898_v36 }
 0x47f   : > { %v926_v39 = vpop.permute.xlu0 %925 }
 0x480   : > { %v900_v40 = vmul.f32 %v1374_v29, %v899_v38  ;;  %v933_v41 = vadd.f32 %v926_v39, %v919_v37 }
 0x482   : > { %v904_v42 = vsel %vm903_vm15, %v1374_v29, %v900_v40  ;;  %v940_v47 = vmul.f32 %v939_v43, %v933_v41  ;;  %vm937_vm0 = vcmp.ge.f32.partialorder %v933_v41, 0.0 }
 0x483   : > { %v906_v44 = vmul.f32 %v904_v42, %v872_v0 }
 0x484   : > { %v942_v51 = vsel %vm937_vm0, %v933_v41, %v940_v47 }
 0x485   : > { %v920_v46 = vmul.f32 %v917_v45, %v906_v44  ;;  %v944_v53 = vmul.f32 %v1562_v1, %v942_v51 }
 0x487   : > { %v934_v49 = vadd.f32 %v931_v48, %v920_v46 }
 0x489   : > { %vm938_vm1 = vcmp.ge.f32.partialorder %v934_v49, 0.0  ;;  %v941_v50 = vmul.f32 %v939_v43, %v934_v49 }
 0x48b   : > { %v943_v52 = vsel %vm938_vm1, %v934_v49, %v941_v50 }
 0x48c   : > { %v945_v54 = vmul.f32 %v1562_v1, %v943_v52 }
 0x48e   : > { %v1197_v55 = vpack.c.bf16 %v945_v54, %v944_v53 }
 0x490   : > { %1198 = vst [vmem:[%s533_s12] sm:$0xff] %v1197_v55  }
 0x491 PF: > { %s21_s15 = sadd.s32 1, %s1416_s15   ;;  %s1644_s13 = smov %s1412_s14 }
 0x492   : > { %p18_p8 = scmp.ge.s32.totalorder %s21_s15, 4   ;;  %s1645_s14 = smov %s1647_s17 }
 0x494   :  { %20 = sbr.rel (!%p18_p8) target bundleno = 2 (0x2), region = 116 }
 0x499   :  { %977 = vsyncpa [#allocation3], 1 }
 0x49a   :  { %979 = vsyncpa [#allocation3 + $0x1], 1 }

// kernel: unet_cms_forward.20
= control target key start
LH: loop header
LB: loop body
LE: loop exit
PB: predicated region body
PF: predicated region fallthrough
CT: control target
= control target key end

     0   :  { %15 = vsyncpa [#allocation3], 0  ;;  %s1254_s13 = smov 0   ;;  %s1256_s14 = smov 0   ;;  %s1364_s0 = inlined_call_operand.vmem [shape: bf16[2,16,128], index: 0, kind: input, shape index: {}]   ;;  %s1365_s1 = inlined_call_operand.vmem [shape: bf16[2,16,128], index: 1, kind: input, shape index: {}]   ;;  %s1366_s2 = inlined_call_operand.vmem [shape: bf16[1,8,288], index: 2, kind: input, shape index: {}]   ;;  %s1367_s3 = inlined_call_operand.vmem [shape: f32[1,8,1], index: 3, kind: input, shape index: {}]   ;;  %s1368_s4 = inlined_call_operand.vmem [shape: f32[1,8,1], index: 4, kind: input, shape index: {}]   ;;  %s1369_s5 = inlined_call_operand.vmem [shape: bf16[1,8,72], index: 5, kind: input, shape index: {}]   ;;  %s1370_s6 = inlined_call_operand.vmem [shape: f32[1,8,1], index: 6, kind: input, shape index: {}]   ;;  %s1371_s7 = inlined_call_operand.vmem [shape: f32[1,8,1], index: 7, kind: input, shape index: {}]   ;;  %s1372_s8 = inlined_call_operand.vmem [shape: f32[1,2], index: 8, kind: input, shape index: {}]   ;;  %s1373_s9 = inlined_call_operand.vmem [shape: f32[1,128], index: 9, kind: input, shape index: {}]   ;;  %s1374_s10 = inlined_call_operand.vmem [shape: bf16[2,8,128], index: 10, kind: output, shape index: {}]  }
   0x1   :  { %s1258_s15 = smov 0  }
   0x2 LB: > { %s982_s16 = sadd.s32 4294967295, %s1187_s15   ;;  %s33_s17 = sadd.s32 1, %s1183_s14  ;;  %s1187_s15 = sphi %s1258_s15, %s21_s15   ;;  %s1183_s14 = sphi %s1256_s14, %s1376_s14   ;;  %s1179_s13 = sphi %s1254_s13, %s1375_s13  }
   0x3   : > { %p35_p0 = scmp.ge.s32.totalorder %s33_s17, 2  ;;  %p984_p1 = scmp.ge.s32.totalorder %s1187_s15, 1 }
   0x4   : > { %p318_p2 = scmp.lt.s32.totalorder %s1187_s15, 3  ;;  %p1023_p4 = scmp.eq.s32.totalorder %s982_s16, 0 }
   0x5   : > { %s1378_s17 = smov (%p35_p0, %s33_s17), 0  ;;  %s373_s20 = sshll.u32 %s1372_s8, 4  ;;  %s374_s20 = int_to_ptr.vmem [resolvable:$true] %s373_s20 }
   0x6   : > { %p319_p3 = pnand %p984_p1, %p318_p2  ;;  %s1189_s21 = smov [#allocation2]  }
   0x8   : > { %p1019_p5 = pneg %p319_p3  ;;  %405 = sbr.rel (%p319_p3) target bundleno = 1156 (0x484), region = 60 }
   0xa   : > { %p1020_p6 = pnand %p1023_p4, %p1019_p5 }
   0xc   : > { %1022 = dma.vmem_to_smem (!%p1020_p6), %s374_s20, 16, %s1189_s21, [#allocation3]  }
   0xd   : > { %1174 = dma.done.wait (%p1023_p4), [#allocation3], 16  }
   0xe   : > { %1176 = vsyncadd (%p1023_p4), [#allocation3], 4294967280 }
   0xf   : > { %412 = sfence }
  0x10   : > { %p476_p7 = scmp.lt.s32.totalorder %s1179_s13, 1  ;;  %s1190_s29 = smov 1   ;;  %vm623_vm0 = vcmask 261120   ;;  %vm738_vm5 = vcmask 1043456   ;;  %vm734_vm6 = vcmask 588800  }
  0x11   : > { %s1191_s30 = smov 9   ;;  %s1192_s11 = smov 118  }
  0x12   : > { %s1380_s13 = smov (!%p476_p7, %s1179_s13), 1  ;;  %s1193_s12 = smov 119  }
  0x13   : > { %s1005_s22 = sshll.u32 %s1380_s13, 3  ;;  %s1194_s16 = smov 10  }
  0x14   : > { %s485_s25 = scalar_lea.vmem %s1365_s1, %s1005_s22  ;;  %s480_s28 = scalar_lea.vmem %s1364_s0, %s1005_s22 }
  0x15   : > { %v1285_v0 = vld [vmem:[%s485_s25] sm:$0xff]   ;;  %s1195_s18 = smov 127   ;;  %s1196_s19 = smov 117  }
  0x16   : > { %v1287_v1 = vld [vmem:[%s480_s28] sm:$0xff]   ;;  %v1013_v2 = vunpack.c.l.bf16 %v1285_v0  ;;  %v1014_v3 = vunpack.c.h.bf16 %v1285_v0  ;;  %s1197_s20 = smov 11   ;;  %s706_s23 = sld [smem:[#allocation2]] }
  0x17   : > { %v1009_v4 = vunpack.c.l.bf16 %v1287_v1  ;;  %v1010_v5 = vunpack.c.h.bf16 %v1287_v1 }
  0x18   : > { %v1059_v6 = vpack.i.bf16 %v1014_v3, %v1013_v2  ;;  %v611_v3 = vld [vmem:[%s1366_s2] sm:$0xff] }
  0x19   : > { %v1069_v7 = vpack.i.bf16 %v1010_v5, %v1009_v4  ;;  %v612_v4 = vld [vmem:[%s1366_s2 + $0x8] sm:$0xf] }
  0x1a   : > { %1060 = vrot.lane.b32.xlu0 %v1059_v6, %s1190_s29  ;;  %1080 = vrot.lane.b32.xlu2 %v1059_v6, %s1191_s30 }
  0x1b   : > { %1070 = vrot.lane.b32.xlu1 %v1069_v7, %s1190_s29 }
  0x22   : > { %1065 = vrot.lane.b32.xlu0 %v1059_v6, %s1192_s11  ;;  %1085 = vrot.lane.b32.xlu2 %v1059_v6, %s1193_s12 }
  0x23   : > { %1075 = vrot.lane.b32.xlu1 %v1069_v7, %s1192_s11 }
  0x2a   : > { %1090 = vrot.lane.b32.xlu0 %v1069_v7, %s1191_s30  ;;  %1100 = vrot.lane.b32.xlu2 %v1059_v6, %s1194_s16 }
  0x2b   : > { %1095 = vrot.lane.b32.xlu1 %v1069_v7, %s1193_s12 }
  0x32   : > { %1105 = vrot.lane.b32.xlu0 %v1059_v6, %s1195_s18  ;;  %1115 = vrot.lane.b32.xlu2 %v1069_v7, %s1195_s18 }
  0x33   : > { %1110 = vrot.lane.b32.xlu1 %v1069_v7, %s1194_s16 }
  0x3a   : > { %1120 = vrot.lane.b32.xlu0 %v1059_v6, %s1196_s19  ;;  %1130 = vrot.lane.b32.xlu2 %v1069_v7, %s1196_s19 }
  0x3b   : > { %1125 = vrot.lane.b32.xlu1 %v1059_v6, %s1197_s20 }
  0x42   : > { %1135 = vrot.lane.b32.xlu0 %v1069_v7, %s1197_s20  ;;  %v616_v7 = vunpack.c.h.b16 %v611_v3 }
  0x74   : > { %v1081_v8 = vpop.permute.xlu2 %1080 }
  0x75   : > { %v1083_v18 = vunpack.i.h.bf16 %v1081_v8  ;;  %v1082_v19 = vunpack.i.l.bf16 %v1081_v8  ;;  %v617_v8 = vunpack.c.l.b16 %v612_v4 }
  0x77   : > { %v598_v27 = vpack.c.bf16 %v1083_v18, %v1082_v19 }
  0x7c   : > { %v1086_v9 = vpop.permute.xlu2 %1085 }
  0x7d   : > { %v1088_v30 = vunpack.i.h.bf16 %v1086_v9  ;;  %v1087_v31 = vunpack.i.l.bf16 %v1086_v9 }
  0x7f   : > { %v606_v41 = vpack.c.bf16 %v1088_v30, %v1087_v31 }
  0x84   : > { %v1101_v26 = vpop.permute.xlu2 %1100 }
  0x85   : > { %v1103_v33 = vunpack.i.h.bf16 %v1101_v26  ;;  %v1102_v34 = vunpack.i.l.bf16 %v1101_v26  ;;  %v691_v26 = vld [vmem:[%s1367_s3] sm:$0xff] }
  0x87   : > { %v596_v43 = vpack.c.bf16 %v1103_v33, %v1102_v34 }
  0x8c   : > { %v1061_v10 = vpop.permute.xlu0 %1060  ;;  %v1116_v42 = vpop.permute.xlu2 %1115 }
  0x8d   : > { %v1071_v11 = vpop.permute.xlu1 %1070  ;;  %v1063_v12 = vunpack.i.h.bf16 %v1061_v10  ;;  %v1062_v13 = vunpack.i.l.bf16 %v1061_v10  ;;  %v1118_v46 = vunpack.i.h.bf16 %v1116_v42  ;;  %v1117_v47 = vunpack.i.l.bf16 %v1116_v42 }
  0x8e   : > { %v1073_v14 = vunpack.i.h.bf16 %v1071_v11  ;;  %v1072_v15 = vunpack.i.l.bf16 %v1071_v11  ;;  %v619_v11 = vpack.c.b16 %v616_v7, %v616_v7 }
  0x8f   : > { %v600_v16 = vpack.c.bf16 %v1063_v12, %v1062_v13  ;;  %v603_v55 = vpack.c.bf16 %v1118_v46, %v1117_v47  ;;  %v620_v12 = vpack.c.b16 %v617_v8, %v617_v8  ;;  %v615_v13 = vunpack.c.l.b16 %v611_v3 }
  0x90   : > { %v599_v17 = vpack.c.bf16 %v1073_v14, %v1072_v15  ;;  %v708_v47 = vstv %s706_s23 }
  0x91   : > { %627 = vmatpush.bf16.msra.mxu0 %v600_v16 }
  0x94   : > { %v1066_v20 = vpop.permute.xlu0 %1065  ;;  %v1131_v56 = vpop.permute.xlu2 %1130 }
  0x95   : > { %v1076_v21 = vpop.permute.xlu1 %1075  ;;  %v1068_v22 = vunpack.i.h.bf16 %v1066_v20  ;;  %v1067_v23 = vunpack.i.l.bf16 %v1066_v20  ;;  %628 = vmatpush.bf16.msra.mxu0 %v599_v17  ;;  %v1133_v58 = vunpack.i.h.bf16 %v1131_v56  ;;  %v1132_v59 = vunpack.i.l.bf16 %v1131_v56  ;;  %v1320_v20 = vld [vmem:[%s1373_s9] ss:$0 sm:$0xff] }
  0x96   : > { %v1078_v24 = vunpack.i.h.bf16 %v1076_v21  ;;  %v1077_v25 = vunpack.i.l.bf16 %v1076_v21  ;;  %v618_v17 = vpack.c.b16 %v615_v13, %v615_v13 }
  0x97   : > { %v608_v28 = vpack.c.bf16 %v1068_v22, %v1067_v23  ;;  %v609_v9 = vpack.c.bf16 %v1133_v58, %v1132_v59 }
  0x98   : > { %v607_v29 = vpack.c.bf16 %v1078_v24, %v1077_v25 }
  0x99   : > { %629 = vmatpush.bf16.msra.mxu0 %v598_v27  ;;  %640 = vmatpush.bf16.msra.mxu1 %v608_v28  ;;  %v1198_v27 = vmov 0   ;;  %v698_v28 = vld [vmem:[%s1368_s4] sm:$0xff] }
  0x9a   : > { %1139 = vset.pattern.permute.xlu0 %v1198_v27  ;;  %1140 = vset.pattern.permute.xlu2 %v1198_v27 }
  0x9b   : > { %694 = vperm.xlu0 %1139, %v691_v26  }
  0x9c   : > { %v1091_v32 = vpop.permute.xlu0 %1090 }
  0x9d   : > { %v1096_v35 = vpop.permute.xlu1 %1095  ;;  %v1093_v36 = vunpack.i.h.bf16 %v1091_v32  ;;  %v1092_v37 = vunpack.i.l.bf16 %v1091_v32  ;;  %641 = vmatpush.bf16.msra.mxu1 %v607_v29 }
  0x9e   : > { %v1098_v38 = vunpack.i.h.bf16 %v1096_v35  ;;  %v1097_v39 = vunpack.i.l.bf16 %v1096_v35 }
  0x9f   : > { %v597_v40 = vpack.c.bf16 %v1093_v36, %v1092_v37 }
  0xa0   : > { %v605_v44 = vpack.c.bf16 %v1098_v38, %v1097_v39 }
  0xa1   : > { %630 = vmatpush.bf16.msra.mxu0 %v597_v40  ;;  %642 = vmatpush.bf16.msra.mxu1 %v606_v41 }
  0xa3   : > { %701 = vperm.xlu0 %1139, %v698_v28  }
  0xa4   : > { %v1106_v45 = vpop.permute.xlu0 %1105 }
  0xa5   : > { %v1111_v48 = vpop.permute.xlu1 %1110  ;;  %v1108_v49 = vunpack.i.h.bf16 %v1106_v45  ;;  %v1107_v50 = vunpack.i.l.bf16 %v1106_v45  ;;  %631 = vmatpush.bf16.msra.mxu0 %v596_v43  ;;  %643 = vmatpush.bf16.msra.mxu1 %v605_v44 }
  0xa6   : > { %v1113_v51 = vunpack.i.h.bf16 %v1111_v48  ;;  %v1112_v52 = vunpack.i.l.bf16 %v1111_v48 }
  0xa7   : > { %v604_v53 = vpack.c.bf16 %v1108_v49, %v1107_v50 }
  0xa8   : > { %v595_v54 = vpack.c.bf16 %v1113_v51, %v1112_v52 }
  0xa9   : > { %644 = vmatpush.bf16.msra.mxu1 %v604_v53 }
  0xaa   : > { %632 = vmatpush.bf16.msra.mxu0 %v595_v54 }
  0xac   : > { %v1121_v57 = vpop.permute.xlu0 %1120 }
  0xad   : > { %v1126_v60 = vpop.permute.xlu1 %1125  ;;  %v1123_v61 = vunpack.i.h.bf16 %v1121_v57  ;;  %v1122_v62 = vunpack.i.l.bf16 %v1121_v57  ;;  %645 = vmatpush.bf16.msra.mxu1 %v603_v55 }
  0xae   : > { %v1128_v63 = vunpack.i.h.bf16 %v1126_v60  ;;  %v1127_v2 = vunpack.i.l.bf16 %v1126_v60 }
  0xaf   : > { %v610_v5 = vpack.c.bf16 %v1123_v61, %v1122_v62 }
  0xb0   : > { %v594_v6 = vpack.c.bf16 %v1128_v63, %v1127_v2 }
  0xb1   : > { %646 = vmatpush.bf16.msra.mxu1 %v1285_v0  ;;  %659 = vmatpush.bf16.msra.mxu2 %v610_v5  ;;  %v733_v5 = vld [vmem:[%s1369_s5] sm:$0xf] }
  0xb2   : > { %633 = vmatpush.bf16.msra.mxu0 %v594_v6 }
  0xb4   : > { %v1136_v10 = vpop.permute.xlu0 %1135 }
  0xb5   : > { %v1138_v14 = vunpack.i.h.bf16 %v1136_v10  ;;  %v1137_v15 = vunpack.i.l.bf16 %v1136_v10  ;;  %647 = vmatpush.bf16.msra.mxu1 %v1287_v1  ;;  %660 = vmatpush.bf16.msra.mxu2 %v609_v9  ;;  %v777_v9 = vld [vmem:[%s1370_s6] sm:$0xff] }
  0xb6   : > { %v784_v10 = vld [vmem:[%s1371_s7] sm:$0xff] }
  0xb7   : > { %v593_v16 = vpack.c.bf16 %v1138_v14, %v1137_v15 }
  0xb8   : > { %648 = vmatmul.bf16.vlgmr.msra.gmra.mxu1 %v619_v11  ;;  %1000 = vmatmul.msk.bf16.vlgmr.msra.gmra.mxu2 %vm623_vm0, %v620_v12 }
  0xb9   : > { %634 = vmatpush.bf16.msra.mxu0 %v593_v16 }
  0xbc   : > { %635 = vmatmul.bf16.vlgmr.msra.gmra.mxu0 %v618_v17 }
 0x10d   : > { %v695_v41 = vpop.permute.xlu0 %694 }
 0x115   : > { %v702_v48 = vpop.permute.xlu0 %701 }
 0x135   : > { %v649_v0 = vpop.f32.mrf.mxu1 }
 0x139   : > { %v636_v18 = vpop.f32.mrf.mxu0 }
 0x13a   : > { %v650_v19 = vadd.f32 %v649_v0, %v636_v18 }
 0x13b   : > { %v662_v21 = vpop.f32.mrf.mxu2 }
 0x13c   : > { %v663_v22 = vadd.f32 %v662_v21, %v650_v19 }
 0x13d   : > { %v651_v23 = vpop.f32.mrf.mxu1 }
 0x13e   : > { %v669_v1 = vmul.f32 %v1320_v20, %v663_v22 }
 0x140   : > { %670 = vadd.xlane.f32.xlu1 %v669_v1 }
 0x141   : > { %v638_v24 = vpop.f32.mrf.mxu0 }
 0x143   : > { %v664_v25 = vpop.f32.mrf.mxu2 }
 0x1b3   : > { %v671_v29 = vpop.xlane.xlu1 %670 }
 0x1b4   : > { %v672_v30 = vmul.f32 0.015625, %v671_v29 }
 0x1b6   : > { %v673_v31 = vsub.f32 %v663_v22, %v672_v30 }
 0x1b8   : > { %v674_v32 = vmul.f32 %v1320_v20, %v673_v31 }
 0x1ba   : > { %v675_v33 = vmul.f32 %v674_v32, %v674_v32 }
 0x1bc   : > { %676 = vadd.xlane.f32.xlu2 %v675_v33 }
 0x22f   : > { %v677_v34 = vpop.xlane.xlu2 %676 }
 0x230   : > { %v678_v35 = vmul.f32 0.015625, %v677_v34 }
 0x232   : > { %v679_v36 = vadd.f32 1e-05, %v678_v35 }
 0x234   : > { %1142 = vrsqrt.f32 %v679_v36  ;;  %vm686_vm2 = vweird.f32 %v679_v36 }
 0x23a   : > { %v1143_v37 = vpop.eup %1142 }
 0x23b   : > { %v681_v38 = vmul.f32 %v1143_v37, %v679_v36  ;;  %vm687_vm1 = vweird.f32 %v1143_v37 }
 0x23c   : > { %vm688_vm3 = vmor %vm686_vm2, %vm687_vm1 }
 0x23d   : > { %v682_v39 = vmul.f32 %v1143_v37, %v681_v38 }
 0x23f   : > { %v683_v40 = vmul.f32 0.5, %v682_v39 }
 0x241   : > { %v684_v42 = vsub.f32 1.5, %v683_v40 }
 0x243   : > { %v685_v43 = vmul.f32 %v1143_v37, %v684_v42 }
 0x245   : > { %v689_v44 = vsel %vm688_vm3, %v1143_v37, %v685_v43 }
 0x246   : > { %v690_v45 = vmul.f32 %v689_v44, %v673_v31 }
 0x248   : > { %v697_v46 = vmul.f32 %v695_v41, %v690_v45 }
 0x24a   : > { %v704_v49 = vadd.f32 %v702_v48, %v697_v46 }
 0x24c   : > { %vm707_vm4 = vcmp.ge.f32.partialorder %v704_v49, 0.0  ;;  %v709_v50 = vmul.f32 %v708_v47, %v704_v49 }
 0x24e   : > { %v710_v51 = vsel %vm707_vm4, %v704_v49, %v709_v50 }
 0x24f   : > { %v711_v52 = vmul.f32 %v1320_v20, %v710_v51 }
 0x251   : > { %720 = vrot.lane.b32.xlu1 %v711_v52, %s1195_s18  ;;  %724 = vrot.lane.b32.xlu2 %v711_v52, %s1192_s11 }
 0x252   : > { %726 = vrot.lane.b32.xlu0 %v711_v52, %s1196_s19  ;;  %s1002_s19 = sld [smem:[#allocation2 + $0x1]] }
 0x258   : > { %v794_v28 = vstv %s1002_s19 }
 0x259   : > { %714 = vrot.lane.b32.xlu2 %v711_v52, %s1194_s16 }
 0x25a   : > { %722 = vrot.lane.b32.xlu0 %v711_v52, %s1193_s12 }
 0x261   : > { %780 = vperm.xlu2 %1140, %v777_v9  }
 0x262   : > { %716 = vrot.lane.b32.xlu0 %v711_v52, %s1191_s30 }
 0x269   : > { %787 = vperm.xlu2 %1140, %v784_v10  }
 0x26a   : > { %718 = vrot.lane.b32.xlu0 %v711_v52, %s1190_s29 }
 0x272   : > { %712 = vrot.lane.b32.xlu0 %v711_v52, %s1197_s20  ;;  %s999_s20 = sshll.u32 %s1380_s13, 2 }
 0x273   : > { %s516_s26 = scalar_lea.vmem %s1374_s10, %s999_s20 }
 0x2ab   : > { %v725_v56 = vpop.permute.xlu2 %724 }
 0x2b3   : > { %v715_v2 = vpop.permute.xlu2 %714 }
 0x2bb   : > { %v781_v23 = vpop.permute.xlu2 %780 }
 0x2c3   : > { %v721_v59 = vpop.permute.xlu1 %720  ;;  %v788_v29 = vpop.permute.xlu2 %787 }
 0x2c4   : > { %v727_v53 = vpop.permute.xlu0 %726  ;;  %v730_v60 = vpack.c.bf16 %v721_v59, %v711_v52 }
 0x2c5   : > { %v732_v54 = vpack.c.bf16 %v727_v53, %v727_v53 }
 0x2c7   : > { %v740_v55 = vsel %vm738_vm5, %v732_v54, 0 }
 0x2c8   : > { %745 = vmatpush.bf16.msra.mxu3 %v740_v55 }
 0x2cc   : > { %v723_v57 = vpop.permute.xlu0 %722 }
 0x2cd   : > { %v731_v58 = vpack.c.bf16 %v725_v56, %v723_v57 }
 0x2cf   : > { %746 = vmatpush.bf16.msra.mxu3 %v731_v58 }
 0x2d3   : > { %747 = vmatpush.bf16.msra.mxu3 %v730_v60 }
 0x2d4   : > { %v717_v61 = vpop.permute.xlu0 %716 }
 0x2dc   : > { %v719_v62 = vpop.permute.xlu0 %718 }
 0x2dd   : > { %v729_v63 = vpack.c.bf16 %v719_v62, %v717_v61 }
 0x2df   : > { %748 = vmatpush.bf16.msra.mxu3 %v729_v63 }
 0x2e4   : > { %v713_v3 = vpop.permute.xlu0 %712 }
 0x2e5   : > { %v728_v4 = vpack.c.bf16 %v715_v2, %v713_v3 }
 0x2e7   : > { %749 = vmatpush.bf16.msra.mxu3 %v728_v4 }
 0x2ea   : > { %1001 = vmatmul.msk.bf16.vlgmr.msra.gmra.mxu3 %vm734_vm6, %v733_v5 }
 0x36d   : > { %v751_v6 = vpop.f32.mrf.mxu3 }
 0x36e   : > { %v755_v7 = vmul.f32 %v1320_v20, %v751_v6 }
 0x370   : > { %756 = vadd.xlane.f32.xlu1 %v755_v7 }
 0x375   : > { %v753_v8 = vpop.f32.mrf.mxu3 }
 0x3e3   : > { %v757_v11 = vpop.xlane.xlu1 %756 }
 0x3e4   : > { %v758_v12 = vmul.f32 0.015625, %v757_v11 }
 0x3e6   : > { %v759_v13 = vsub.f32 %v751_v6, %v758_v12 }
 0x3e8   : > { %v760_v14 = vmul.f32 %v1320_v20, %v759_v13 }
 0x3ea   : > { %v761_v15 = vmul.f32 %v760_v14, %v760_v14 }
 0x3ec   : > { %762 = vadd.xlane.f32.xlu0 %v761_v15 }
 0x45f   : > { %v763_v16 = vpop.xlane.xlu0 %762 }
 0x460   : > { %v764_v17 = vmul.f32 0.015625, %v763_v16 }
 0x462   : > { %v765_v0 = vadd.f32 1e-05, %v764_v17 }
 0x464   : > { %1144 = vrsqrt.f32 %v765_v0  ;;  %vm772_vm8 = vweird.f32 %v765_v0 }
 0x46a   : > { %v1145_v18 = vpop.eup %1144 }
 0x46b   : > { %v767_v19 = vmul.f32 %v1145_v18, %v765_v0  ;;  %vm773_vm7 = vweird.f32 %v1145_v18 }
 0x46c   : > { %vm774_vm9 = vmor %vm772_vm8, %vm773_vm7 }
 0x46d   : > { %v768_v21 = vmul.f32 %v1145_v18, %v767_v19 }
 0x46f   : > { %v769_v22 = vmul.f32 0.5, %v768_v21 }
 0x471   : > { %v770_v1 = vsub.f32 1.5, %v769_v22 }
 0x473   : > { %v771_v24 = vmul.f32 %v1145_v18, %v770_v1 }
 0x475   : > { %v775_v25 = vsel %vm774_vm9, %v1145_v18, %v771_v24 }
 0x476   : > { %v776_v26 = vmul.f32 %v775_v25, %v759_v13 }
 0x478   : > { %v783_v27 = vmul.f32 %v781_v23, %v776_v26 }
 0x47a   : > { %v790_v30 = vadd.f32 %v788_v29, %v783_v27 }
 0x47c   : > { %vm793_vm10 = vcmp.ge.f32.partialorder %v790_v30, 0.0  ;;  %v795_v31 = vmul.f32 %v794_v28, %v790_v30 }
 0x47e   : > { %v796_v32 = vsel %vm793_vm10, %v790_v30, %v795_v31 }
 0x47f   : > { %v797_v33 = vmul.f32 %v1320_v20, %v796_v32 }
 0x481   : > { %v798_v34 = vpack.c.bf16 %v797_v33, %v797_v33 }
 0x483   : > { %799 = vst [vmem:[%s516_s26] sm:$0xf] %v798_v34 }
 0x484 PF: > { %s21_s15 = sadd.s32 1, %s1187_s15   ;;  %s1375_s13 = smov %s1183_s14 }
 0x485   : > { %p18_p8 = scmp.ge.s32.totalorder %s21_s15, 4   ;;  %s1376_s14 = smov %s1378_s17 }
 0x487   :  { %20 = sbr.rel (!%p18_p8) target bundleno = 2 (0x2), region = 116 }
 0x48c   :  { %825 = vsyncpa [#allocation3], 1 }
 0x48d   :  { %827 = vsyncpa [#allocation3 + $0x1], 1 }

// kernel: unet_cms_forward.21
= control target key start
LH: loop header
LB: loop body
LE: loop exit
PB: predicated region body
PF: predicated region fallthrough
CT: control target
= control target key end

     0   :  { %s951_s12 = smov 0   ;;  %s1129_s0 = inlined_call_operand.vmem [shape: bf16[2,8,10,10], index: 0, kind: input, shape index: {}]   ;;  %s1130_s1 = inlined_call_operand.vmem [shape: f32[18,10], index: 1, kind: input, shape index: {}]   ;;  %s1131_s2 = inlined_call_operand.vmem [shape: f32[10,18], index: 2, kind: input, shape index: {}]   ;;  %s1132_s3 = inlined_call_operand.vmem [shape: bf16[2,8,18,18], index: 3, kind: output, shape index: {}]  }
   0x1 LB: > { %s839_s13 = sadd.s32 4294967295, %s929_s12   ;;  %p843_p0 = scmp.ge.s32.totalorder %s929_s12, 1  ;;  %s929_s12 = sphi %s951_s12, %s13_s12  }
   0x2   : > { %p137_p1 = scmp.lt.s32.totalorder %s929_s12, 3 }
   0x4   : > { %p138_p2 = pnand %p843_p0, %p137_p1 }
   0x5   : > { %p161_p3 = scmp.lt.s32.totalorder (!%p138_p2), %s839_s13, 1 }
   0x6   : > { %141 = sbr.rel (%p138_p2) target bundleno = 328 (0x148), region = 32 }
   0xb   : > { %s1134_s13 = smov (!%p161_p3, %s839_s13), 1  ;;  %vm218_vm0 = vcmask 1041408   ;;  %v980_v12 = vld [vmem:[%s1130_s1] sm:$0xff]  ;;  %vm208_vm1 = vcmask 80896   ;;  %v204_v31 = vld [vmem:[%s1130_s1 + $0x8] sm:$0xff]  ;;  %vm758_vm2 = vcmask 142336  }
   0xc   : > { %s913_s14 = sshll.u32 %s1134_s13, 6  ;;  %v205_v34 = vld [vmem:[%s1130_s1 + $0x10] sm:$0x3]  ;;  %v207_v35 = vld [vmem:[%s1131_s2 + $0x8] sm:$0x3]  ;;  %v206_v36 = vld [vmem:[%s1131_s2] sm:$0xff] }
   0xd   : > { %s965_s17 = scalar_lea.vmem %s1129_s0, %s913_s14  ;;  %s914_s28 = smul.u32 96, %s1134_s13  ;;  %vm761_vm3 = vcmask 139264  }
   0xe   : > { %v176_v0 = vld [vmem:[%s965_s17 + $0x14] sm:$0x1]  ;;  %v178_v1 = vld [vmem:[%s965_s17 + $0x1c] sm:$0x1]  ;;  %v175_v2 = vld [vmem:[%s965_s17 + $0x10] sm:$0xf] }
   0xf   : > { %v192_v3 = vunpack.c.l.bf16 %v176_v0  ;;  %v194_v4 = vunpack.c.l.bf16 %v178_v1  ;;  %v191_v5 = vunpack.c.l.bf16 %v175_v2  ;;  %v177_v6 = vld [vmem:[%s965_s17 + $0x18] sm:$0xf]  ;;  %v184_v7 = vld [vmem:[%s965_s17 + $0x34] sm:$0x1]  ;;  %v186_v8 = vld [vmem:[%s965_s17 + $0x3c] sm:$0x1]  ;;  %s1076_s4 = scalar_lea.vmem %s1132_s3, %s914_s28 }
  0x10   : > { %v193_v9 = vunpack.c.l.bf16 %v177_v6  ;;  %v172_v10 = vld [vmem:[%s965_s17 + $0x4] sm:$0x1]  ;;  %v174_v11 = vld [vmem:[%s965_s17 + $0xc] sm:$0x1]  ;;  %v200_v13 = vunpack.c.l.bf16 %v184_v7  ;;  %v202_v14 = vunpack.c.l.bf16 %v186_v8  ;;  %v171_v15 = vld [vmem:[%s965_s17] sm:$0xf] }
  0x11   : > { %855 = vmatpush.msk.msra.mxu2 %vm218_vm0, %v192_v3  ;;  %859 = vmatpush.msk.msra.mxu3 %vm218_vm0, %v194_v4  ;;  %v173_v16 = vld [vmem:[%s965_s17 + $0x8] sm:$0xf]  ;;  %v188_v17 = vunpack.c.l.bf16 %v172_v10  ;;  %v190_v18 = vunpack.c.l.bf16 %v174_v11  ;;  %v183_v19 = vld [vmem:[%s965_s17 + $0x30] sm:$0xf]  ;;  %v185_v20 = vld [vmem:[%s965_s17 + $0x38] sm:$0xf]  ;;  %v187_v25 = vunpack.c.l.bf16 %v171_v15 }
  0x12   : > { %v180_v21 = vld [vmem:[%s965_s17 + $0x24] sm:$0x1]  ;;  %v182_v22 = vld [vmem:[%s965_s17 + $0x2c] sm:$0x1]  ;;  %v199_v23 = vunpack.c.l.bf16 %v183_v19  ;;  %v201_v24 = vunpack.c.l.bf16 %v185_v20  ;;  %v189_v26 = vunpack.c.l.bf16 %v173_v16  ;;  %v179_v29 = vld [vmem:[%s965_s17 + $0x20] sm:$0xf] }
  0x13   : > { %295 = vmatpush.msra.mxu2 %v191_v5  ;;  %324 = vmatpush.msra.mxu3 %v193_v9  ;;  %v196_v27 = vunpack.c.l.bf16 %v180_v21  ;;  %v198_v28 = vunpack.c.l.bf16 %v182_v22  ;;  %v181_v30 = vld [vmem:[%s965_s17 + $0x28] sm:$0xf]  ;;  %v195_v32 = vunpack.c.l.bf16 %v179_v29 }
  0x14   : > { %856 = vmatmul.msk.f32.vlgmr.msra.gmra.mxu2 %vm208_vm1, %v980_v12  ;;  %860 = vmatmul.msk.f32.vlgmr.msra.gmra.mxu3 %vm208_vm1, %v980_v12  ;;  %v197_v33 = vunpack.c.l.bf16 %v181_v30 }
  0x15   : > { %871 = vmatpush.msk.msrb.mxu2 %vm218_vm0, %v200_v13  ;;  %875 = vmatpush.msk.msrb.mxu3 %vm218_vm0, %v202_v14 }
  0x16   : > { %847 = vmatpush.msk.msra.mxu0 %vm218_vm0, %v188_v17  ;;  %851 = vmatpush.msk.msra.mxu1 %vm218_vm0, %v190_v18 }
  0x17   : > { %411 = vmatpush.msrb.mxu2 %v199_v23  ;;  %440 = vmatpush.msrb.mxu3 %v201_v24 }
  0x18   : > { %237 = vmatpush.msra.mxu0 %v187_v25  ;;  %266 = vmatpush.msra.mxu1 %v189_v26 }
  0x19   : > { %848 = vmatmul.msk.f32.vlgmr.msra.gmra.mxu0 %vm208_vm1, %v980_v12  ;;  %852 = vmatmul.msk.f32.vlgmr.msra.gmra.mxu1 %vm208_vm1, %v980_v12 }
  0x1a   : > { %863 = vmatpush.msk.msrb.mxu0 %vm218_vm0, %v196_v27  ;;  %867 = vmatpush.msk.msrb.mxu1 %vm218_vm0, %v198_v28 }
  0x1b   : > { %887 = vmatpush.msk.msra.mxu2 %vm218_vm0, %v207_v35  ;;  %891 = vmatpush.msk.msra.mxu3 %vm218_vm0, %v207_v35 }
  0x1c   : > { %857 = vmatmul.msk.f32.gmra.mxu2 %vm208_vm1, %v204_v31  ;;  %861 = vmatmul.msk.f32.gmra.mxu3 %vm208_vm1, %v204_v31 }
  0x1d   : > { %353 = vmatpush.msrb.mxu0 %v195_v32  ;;  %382 = vmatpush.msrb.mxu1 %v197_v33 }
  0x1e   : > { %548 = vmatpush.msra.mxu2 %v206_v36  ;;  %583 = vmatpush.msra.mxu3 %v206_v36 }
  0x1f   : > { %879 = vmatpush.msk.msra.mxu0 %vm218_vm0, %v207_v35  ;;  %883 = vmatpush.msk.msra.mxu1 %vm218_vm0, %v207_v35 }
  0x21   : > { %849 = vmatmul.msk.f32.gmra.mxu0 %vm208_vm1, %v204_v31  ;;  %853 = vmatmul.msk.f32.gmra.mxu1 %vm208_vm1, %v204_v31 }
  0x22   : > { %478 = vmatpush.msra.mxu0 %v206_v36  ;;  %513 = vmatpush.msra.mxu1 %v206_v36 }
  0x24   : > { %858 = vmatmul.msk.f32.gmra.mxu2 %vm208_vm1, %v205_v34  ;;  %862 = vmatmul.msk.f32.gmra.mxu3 %vm208_vm1, %v205_v34 }
  0x29   : > { %850 = vmatmul.msk.f32.gmra.mxu0 %vm208_vm1, %v205_v34  ;;  %854 = vmatmul.msk.f32.gmra.mxu1 %vm208_vm1, %v205_v34 }
  0x2c   : > { %872 = vmatmul.msk.f32.vlgmr.msrb.gmra.mxu2 %vm208_vm1, %v980_v12  ;;  %876 = vmatmul.msk.f32.vlgmr.msrb.gmra.mxu3 %vm208_vm1, %v980_v12 }
  0x2d   : > { %903 = vmatpush.msk.msrb.mxu2 %vm218_vm0, %v207_v35  ;;  %907 = vmatpush.msk.msrb.mxu3 %vm218_vm0, %v207_v35 }
  0x2f   : > { %688 = vmatpush.msrb.mxu2 %v206_v36  ;;  %723 = vmatpush.msrb.mxu3 %v206_v36 }
  0x31   : > { %864 = vmatmul.msk.f32.vlgmr.msrb.gmra.mxu0 %vm208_vm1, %v980_v12  ;;  %868 = vmatmul.msk.f32.vlgmr.msrb.gmra.mxu1 %vm208_vm1, %v980_v12 }
  0x32   : > { %895 = vmatpush.msk.msrb.mxu0 %vm218_vm0, %v207_v35  ;;  %899 = vmatpush.msk.msrb.mxu1 %vm218_vm0, %v207_v35 }
  0x34   : > { %873 = vmatmul.msk.f32.gmra.mxu2 %vm208_vm1, %v204_v31  ;;  %877 = vmatmul.msk.f32.gmra.mxu3 %vm208_vm1, %v204_v31 }
  0x35   : > { %618 = vmatpush.msrb.mxu0 %v206_v36  ;;  %653 = vmatpush.msrb.mxu1 %v206_v36 }
  0x39   : > { %865 = vmatmul.msk.f32.gmra.mxu0 %vm208_vm1, %v204_v31  ;;  %869 = vmatmul.msk.f32.gmra.mxu1 %vm208_vm1, %v204_v31 }
  0x3c   : > { %874 = vmatmul.msk.f32.gmra.mxu2 %vm208_vm1, %v205_v34  ;;  %878 = vmatmul.msk.f32.gmra.mxu3 %vm208_vm1, %v205_v34 }
  0x41   : > { %866 = vmatmul.msk.f32.gmra.mxu0 %vm208_vm1, %v205_v34  ;;  %870 = vmatmul.msk.f32.gmra.mxu1 %vm208_vm1, %v205_v34 }
  0x96   : > { %v239_v37 = vpop.f32.mrf.mxu0  ;;  %v268_v38 = vpop.f32.mrf.mxu1 }
  0x97   : > { %v297_v39 = vpop.f32.mrf.mxu2  ;;  %v326_v40 = vpop.f32.mrf.mxu3  ;;  %880 = vmatmul.msk.f32.vlgmr.msra.gmra.mxu0 %vm208_vm1, %v239_v37  ;;  %884 = vmatmul.msk.f32.vlgmr.msra.gmra.mxu1 %vm208_vm1, %v268_v38 }
  0x98   : > { %888 = vmatmul.msk.f32.vlgmr.msra.gmra.mxu2 %vm208_vm1, %v297_v39  ;;  %892 = vmatmul.msk.f32.vlgmr.msra.gmra.mxu3 %vm208_vm1, %v326_v40 }
  0x9e   : > { %v242_v41 = vpop.f32.mrf.mxu0  ;;  %v271_v42 = vpop.f32.mrf.mxu1 }
  0x9f   : > { %v300_v43 = vpop.f32.mrf.mxu2  ;;  %v329_v44 = vpop.f32.mrf.mxu3  ;;  %881 = vmatmul.msk.f32.gmra.mxu0 %vm208_vm1, %v242_v41  ;;  %885 = vmatmul.msk.f32.gmra.mxu1 %vm208_vm1, %v271_v42 }
  0xa0   : > { %889 = vmatmul.msk.f32.gmra.mxu2 %vm208_vm1, %v300_v43  ;;  %893 = vmatmul.msk.f32.gmra.mxu3 %vm208_vm1, %v329_v44 }
  0xa6   : > { %v245_v45 = vpop.f32.mrf.mxu0  ;;  %v274_v46 = vpop.f32.mrf.mxu1 }
  0xa7   : > { %v303_v47 = vpop.f32.mrf.mxu2  ;;  %v332_v48 = vpop.f32.mrf.mxu3  ;;  %882 = vmatmul.msk.f32.gmra.mxu0 %vm208_vm1, %v245_v45  ;;  %886 = vmatmul.msk.f32.gmra.mxu1 %vm208_vm1, %v274_v46 }
  0xa8   : > { %890 = vmatmul.msk.f32.gmra.mxu2 %vm208_vm1, %v303_v47  ;;  %894 = vmatmul.msk.f32.gmra.mxu3 %vm208_vm1, %v332_v48 }
  0xae   : > { %v355_v49 = vpop.f32.mrf.mxu0  ;;  %v384_v50 = vpop.f32.mrf.mxu1 }
  0xaf   : > { %v413_v51 = vpop.f32.mrf.mxu2  ;;  %v442_v52 = vpop.f32.mrf.mxu3  ;;  %896 = vmatmul.msk.f32.vlgmr.msrb.gmra.mxu0 %vm208_vm1, %v355_v49  ;;  %900 = vmatmul.msk.f32.vlgmr.msrb.gmra.mxu1 %vm208_vm1, %v384_v50 }
  0xb0   : > { %904 = vmatmul.msk.f32.vlgmr.msrb.gmra.mxu2 %vm208_vm1, %v413_v51  ;;  %908 = vmatmul.msk.f32.vlgmr.msrb.gmra.mxu3 %vm208_vm1, %v442_v52 }
  0xb6   : > { %v358_v53 = vpop.f32.mrf.mxu0  ;;  %v387_v54 = vpop.f32.mrf.mxu1 }
  0xb7   : > { %v416_v55 = vpop.f32.mrf.mxu2  ;;  %v445_v56 = vpop.f32.mrf.mxu3  ;;  %897 = vmatmul.msk.f32.gmra.mxu0 %vm208_vm1, %v358_v53  ;;  %901 = vmatmul.msk.f32.gmra.mxu1 %vm208_vm1, %v387_v54 }
  0xb8   : > { %905 = vmatmul.msk.f32.gmra.mxu2 %vm208_vm1, %v416_v55  ;;  %909 = vmatmul.msk.f32.gmra.mxu3 %vm208_vm1, %v445_v56 }
  0xbe   : > { %v361_v57 = vpop.f32.mrf.mxu0  ;;  %v390_v58 = vpop.f32.mrf.mxu1 }
  0xbf   : > { %v419_v59 = vpop.f32.mrf.mxu2  ;;  %v448_v60 = vpop.f32.mrf.mxu3  ;;  %898 = vmatmul.msk.f32.gmra.mxu0 %vm208_vm1, %v361_v57  ;;  %902 = vmatmul.msk.f32.gmra.mxu1 %vm208_vm1, %v390_v58 }
  0xc0   : > { %906 = vmatmul.msk.f32.gmra.mxu2 %vm208_vm1, %v419_v59  ;;  %910 = vmatmul.msk.f32.gmra.mxu3 %vm208_vm1, %v448_v60 }
 0x114   : > { %v480_v61 = vpop.f32.mrf.mxu0  ;;  %v515_v62 = vpop.f32.mrf.mxu1 }
 0x115   : > { %v734_v63 = vpack.c.bf16 %v480_v61, %v480_v61  ;;  %v737_v0 = vpack.c.bf16 %v515_v62, %v515_v62 }
 0x117   : > { %759 = vst.msk [vmem:[%s1076_s4] sm:$0xf] %vm758_vm2, %v734_v63 }
 0x118   : > { %763 = vst.msk [vmem:[%s1076_s4 + $0xc] sm:$0xf] %vm758_vm2, %v737_v0 }
 0x11b   : > { %v550_v1 = vpop.f32.mrf.mxu2  ;;  %v585_v2 = vpop.f32.mrf.mxu3 }
 0x11c   : > { %v740_v3 = vpack.c.bf16 %v550_v1, %v550_v1  ;;  %v743_v4 = vpack.c.bf16 %v585_v2, %v585_v2  ;;  %v483_v5 = vpop.f32.mrf.mxu0  ;;  %v518_v6 = vpop.f32.mrf.mxu1 }
 0x11d   : > { %v735_v7 = vpack.c.bf16 %v483_v5, %v483_v5  ;;  %v738_v8 = vpack.c.bf16 %v518_v6, %v518_v6 }
 0x11e   : > { %766 = vst.msk [vmem:[%s1076_s4 + $0x18] sm:$0xf] %vm758_vm2, %v740_v3 }
 0x11f   : > { %769 = vst.msk [vmem:[%s1076_s4 + $0x24] sm:$0xf] %vm758_vm2, %v743_v4 }
 0x120   : > { %760 = vst.msk [vmem:[%s1076_s4 + $0x4] sm:$0xf] %vm758_vm2, %v735_v7 }
 0x121   : > { %764 = vst.msk [vmem:[%s1076_s4 + $0x10] sm:$0xf] %vm758_vm2, %v738_v8 }
 0x123   : > { %v553_v9 = vpop.f32.mrf.mxu2  ;;  %v588_v10 = vpop.f32.mrf.mxu3 }
 0x124   : > { %v741_v11 = vpack.c.bf16 %v553_v9, %v553_v9  ;;  %v744_v12 = vpack.c.bf16 %v588_v10, %v588_v10  ;;  %v486_v13 = vpop.f32.mrf.mxu0  ;;  %v521_v14 = vpop.f32.mrf.mxu1 }
 0x125   : > { %v736_v15 = vpack.c.bf16 %v486_v13, %v486_v13  ;;  %v739_v16 = vpack.c.bf16 %v521_v14, %v521_v14 }
 0x126   : > { %767 = vst.msk [vmem:[%s1076_s4 + $0x1c] sm:$0xf] %vm758_vm2, %v741_v11 }
 0x127   : > { %770 = vst.msk [vmem:[%s1076_s4 + $0x28] sm:$0xf] %vm758_vm2, %v744_v12 }
 0x128   : > { %762 = vst.msk [vmem:[%s1076_s4 + $0x8] sm:$0x1] %vm761_vm3, %v736_v15 }
 0x129   : > { %765 = vst.msk [vmem:[%s1076_s4 + $0x14] sm:$0x1] %vm761_vm3, %v739_v16 }
 0x12b   : > { %v556_v17 = vpop.f32.mrf.mxu2  ;;  %v591_v18 = vpop.f32.mrf.mxu3 }
 0x12c   : > { %v742_v19 = vpack.c.bf16 %v556_v17, %v556_v17  ;;  %v745_v20 = vpack.c.bf16 %v591_v18, %v591_v18  ;;  %v620_v21 = vpop.f32.mrf.mxu0  ;;  %v655_v22 = vpop.f32.mrf.mxu1 }
 0x12d   : > { %v746_v23 = vpack.c.bf16 %v620_v21, %v620_v21  ;;  %v749_v24 = vpack.c.bf16 %v655_v22, %v655_v22 }
 0x12e   : > { %768 = vst.msk [vmem:[%s1076_s4 + $0x20] sm:$0x1] %vm761_vm3, %v742_v19 }
 0x12f   : > { %771 = vst.msk [vmem:[%s1076_s4 + $0x2c] sm:$0x1] %vm761_vm3, %v745_v20 }
 0x130   : > { %772 = vst.msk [vmem:[%s1076_s4 + $0x30] sm:$0xf] %vm758_vm2, %v746_v23 }
 0x131   : > { %775 = vst.msk [vmem:[%s1076_s4 + $0x3c] sm:$0xf] %vm758_vm2, %v749_v24 }
 0x133   : > { %v690_v25 = vpop.f32.mrf.mxu2  ;;  %v725_v26 = vpop.f32.mrf.mxu3 }
 0x134   : > { %v752_v27 = vpack.c.bf16 %v690_v25, %v690_v25  ;;  %v755_v28 = vpack.c.bf16 %v725_v26, %v725_v26  ;;  %v623_v29 = vpop.f32.mrf.mxu0  ;;  %v658_v30 = vpop.f32.mrf.mxu1 }
 0x135   : > { %v747_v31 = vpack.c.bf16 %v623_v29, %v623_v29  ;;  %v750_v32 = vpack.c.bf16 %v658_v30, %v658_v30 }
 0x136   : > { %778 = vst.msk [vmem:[%s1076_s4 + $0x48] sm:$0xf] %vm758_vm2, %v752_v27 }
 0x137   : > { %781 = vst.msk [vmem:[%s1076_s4 + $0x54] sm:$0xf] %vm758_vm2, %v755_v28 }
 0x138   : > { %773 = vst.msk [vmem:[%s1076_s4 + $0x34] sm:$0xf] %vm758_vm2, %v747_v31 }
 0x139   : > { %776 = vst.msk [vmem:[%s1076_s4 + $0x40] sm:$0xf] %vm758_vm2, %v750_v32 }
 0x13b   : > { %v693_v33 = vpop.f32.mrf.mxu2  ;;  %v728_v34 = vpop.f32.mrf.mxu3 }
 0x13c   : > { %v753_v35 = vpack.c.bf16 %v693_v33, %v693_v33  ;;  %v756_v36 = vpack.c.bf16 %v728_v34, %v728_v34  ;;  %v626_v37 = vpop.f32.mrf.mxu0  ;;  %v661_v38 = vpop.f32.mrf.mxu1 }
 0x13d   : > { %v748_v39 = vpack.c.bf16 %v626_v37, %v626_v37  ;;  %v751_v40 = vpack.c.bf16 %v661_v38, %v661_v38 }
 0x13e   : > { %779 = vst.msk [vmem:[%s1076_s4 + $0x4c] sm:$0xf] %vm758_vm2, %v753_v35 }
 0x13f   : > { %782 = vst.msk [vmem:[%s1076_s4 + $0x58] sm:$0xf] %vm758_vm2, %v756_v36 }
 0x140   : > { %774 = vst.msk [vmem:[%s1076_s4 + $0x38] sm:$0x1] %vm761_vm3, %v748_v39 }
 0x141   : > { %777 = vst.msk [vmem:[%s1076_s4 + $0x44] sm:$0x1] %vm761_vm3, %v751_v40 }
 0x143   : > { %v696_v41 = vpop.f32.mrf.mxu2  ;;  %v731_v42 = vpop.f32.mrf.mxu3 }
 0x144   : > { %v754_v43 = vpack.c.bf16 %v696_v41, %v696_v41  ;;  %v757_v44 = vpack.c.bf16 %v731_v42, %v731_v42 }
 0x146   : > { %780 = vst.msk [vmem:[%s1076_s4 + $0x50] sm:$0x1] %vm761_vm3, %v754_v43 }
 0x147   : > { %783 = vst.msk [vmem:[%s1076_s4 + $0x5c] sm:$0x1] %vm761_vm3, %v757_v44 }
 0x148 PF: > { %s13_s12 = sadd.s32 1, %s929_s12  }
 0x149   : > { %p10_p4 = scmp.ge.s32.totalorder %s13_s12, 4  }
 0x14b   :  { %12 = sbr.rel (!%p10_p4) target bundleno = 1 (0x1), region = 62 }

// kernel: unet_cms_forward.22
= control target key start
LH: loop header
LB: loop body
LE: loop exit
PB: predicated region body
PF: predicated region fallthrough
CT: control target
= control target key end

     0   :  { %19 = vsyncpa [#allocation3], 0  ;;  %s1921_s25 = smov 0   ;;  %s1923_s26 = smov 0   ;;  %s2420_s0 = inlined_call_operand.vmem [shape: bf16[2,8,384], index: 0, kind: input, shape index: {}]   ;;  %s2421_s1 = inlined_call_operand.vmem [shape: bf16[2,8,384], index: 1, kind: input, shape index: {}]   ;;  %s2422_s2 = inlined_call_operand.vmem [shape: bf16[1,8,144], index: 2, kind: input, shape index: {}]   ;;  %s2423_s3 = inlined_call_operand.vmem [shape: f32[1,8,1], index: 3, kind: input, shape index: {}]   ;;  %s2424_s4 = inlined_call_operand.vmem [shape: f32[1,8,1], index: 4, kind: input, shape index: {}]   ;;  %s2425_s5 = inlined_call_operand.vmem [shape: bf16[1,8,72], index: 5, kind: input, shape index: {}]   ;;  %s2426_s6 = inlined_call_operand.vmem [shape: f32[1,8,1], index: 6, kind: input, shape index: {}]   ;;  %s2427_s7 = inlined_call_operand.vmem [shape: f32[1,8,1], index: 7, kind: input, shape index: {}]   ;;  %s2428_s8 = inlined_call_operand.vmem [shape: f32[1,2], index: 8, kind: input, shape index: {}]   ;;  %s2429_s9 = inlined_call_operand.vmem [shape: bf16[1,2,8], index: 9, kind: input, shape index: {}]   ;;  %s2430_s10 = inlined_call_operand.vmem [shape: f32[1,2,1], index: 10, kind: input, shape index: {}]   ;;  %s2431_s11 = inlined_call_operand.vmem [shape: f32[1,384], index: 11, kind: input, shape index: {}]   ;;  %s2432_s12 = inlined_call_operand.vmem [shape: bf16[2,8,384], index: 12, kind: output, shape index: {0}]   ;;  %s2433_s13 = inlined_call_operand.vmem [shape: f32[2,2,384], index: 13, kind: output, shape index: {1}]  }
   0x1   :  { %s1925_s27 = smov 0  }
   0x2 LB: > { %s1555_s28 = sadd.s32 4294967295, %s1839_s27   ;;  %s37_s29 = sadd.s32 1, %s1835_s26  ;;  %s1839_s27 = sphi %s1925_s27, %s25_s27   ;;  %s1835_s26 = sphi %s1923_s26, %s2435_s26   ;;  %s1831_s25 = sphi %s1921_s25, %s2434_s25  }
   0x3   : > { %p39_p0 = scmp.ge.s32.totalorder %s37_s29, 2  ;;  %p1557_p1 = scmp.ge.s32.totalorder %s1839_s27, 1 }
   0x4   : > { %p404_p2 = scmp.lt.s32.totalorder %s1839_s27, 3  ;;  %p1596_p4 = scmp.eq.s32.totalorder %s1555_s28, 0 }
   0x5   : > { %s2437_s29 = smov (%p39_p0, %s37_s29), 0  ;;  %s459_s15 = sshll.u32 %s2428_s8, 4  ;;  %s460_s15 = int_to_ptr.vmem [resolvable:$true] %s459_s15 }
   0x6   : > { %p405_p3 = pnand %p1557_p1, %p404_p2  ;;  %s1841_s16 = smov [#allocation2]  }
   0x8   : > { %p1592_p5 = pneg %p405_p3  ;;  %504 = sbr.rel (%p405_p3) target bundleno = 1358 (0x54e), region = 68 }
   0xa   : > { %p1593_p6 = pnand %p1596_p4, %p1592_p5 }
   0xc   : > { %1595 = dma.vmem_to_smem (!%p1593_p6), %s460_s15, 16, %s1841_s16, [#allocation3]  }
   0xd   : > { %1826 = dma.done.wait (%p1596_p4), [#allocation3], 16  }
   0xe   : > { %1828 = vsyncadd (%p1596_p4), [#allocation3], 4294967280 }
   0xf   : > { %511 = sfence }
  0x10   : > { %p596_p7 = scmp.lt.s32.totalorder %s1831_s25, 1  ;;  %s1842_s24 = smov 111   ;;  %v674_v20 = vlaneseq  ;;  %vm856_vm5 = vcmask 130048   ;;  %vm1106_vm15 = vcmask 1043456  }
  0x11   : > { %s1843_s28 = smov 110   ;;  %s1844_s30 = smov 127  }
  0x12   : > { %s2439_s25 = smov (!%p596_p7, %s1831_s25), 1  ;;  %s1845_s14 = smov 109   ;;  %v2014_v22 = vand.u32 127, %v674_v20 }
  0x13   : > { %s1946_s17 = smul.u32 12, %s2439_s25  ;;  %s1846_s15 = smov 1  }
  0x14   : > { %s1847_s16 = smov 17   ;;  %s1848_s18 = smov 18   ;;  %vm790_vm0 = vcmp.lt.s32.totalorder %v2014_v22, 110  ;;  %vm771_vm1 = vcmp.lt.s32.totalorder %v2014_v22, 111  ;;  %vm752_vm2 = vcmp.lt.s32.totalorder %v2014_v22, 127  ;;  %vm809_vm3 = vcmp.lt.s32.totalorder %v2014_v22, 109 }
  0x15   : > { %s600_s20 = scalar_lea.vmem %s2420_s0, %s1946_s17  ;;  %s605_s23 = scalar_lea.vmem %s2421_s1, %s1946_s17  ;;  %vm733_vm4 = vcmp.lt.s32.totalorder %v2014_v22, 1  ;;  %vm714_vm6 = vcmp.lt.s32.totalorder %v2014_v22, 17  ;;  %vm695_vm7 = vcmp.lt.s32.totalorder %v2014_v22, 18  ;;  %vm676_vm8 = vcmp.lt.s32.totalorder %v2014_v22, 19 }
  0x16   : > { %v658_v0 = vld [vmem:[%s600_s20] sm:$0xff]  ;;  %v659_v1 = vld [vmem:[%s600_s20 + $0x8] sm:$0xf]  ;;  %s1849_s19 = smov 19   ;;  %s1000_s20 = sld [smem:[#allocation2]] }
  0x17   : > { %v1956_v2 = vunpack.c.h.bf16 %v658_v0  ;;  %v1958_v3 = vunpack.c.l.bf16 %v659_v1  ;;  %v663_v4 = vld [vmem:[%s605_s23] sm:$0xff]  ;;  %v664_v5 = vld [vmem:[%s605_s23 + $0x8] sm:$0xf]  ;;  %v1962_v7 = vunpack.c.l.bf16 %v658_v0 }
  0x18   : > { %v1964_v8 = vunpack.c.l.bf16 %v663_v4  ;;  %v1968_v9 = vunpack.c.h.bf16 %v663_v4  ;;  %v1970_v10 = vunpack.c.l.bf16 %v664_v5  ;;  %v2100_v0 = vld [vmem:[%s2422_s2] sm:$0xff] }
  0x19   : > { %v1642_v6 = vpack.i.bf16 %v1958_v3, %v1956_v2  ;;  %v1687_v13 = vpack.i.bf16 %v1956_v2, %v1962_v7 }
  0x1a   : > { %v1652_v11 = vpack.i.bf16 %v1964_v8, %v1962_v7  ;;  %v1647_v12 = vpack.i.bf16 %v1970_v10, %v1968_v9  ;;  %v1692_v14 = vpack.i.bf16 %v1968_v9, %v1964_v8  ;;  %v1712_v15 = vpack.i.bf16 %v1970_v10, %v1958_v3 }
  0x1b   : > { %1643 = vrot.lane.b32.xlu1 %v1642_v6, %s1842_s24  ;;  %1633 = vrot.lane.b32.xlu0 %v1642_v6, %s1843_s28  ;;  %v835_v1 = vpack.c.bf16 %v1968_v9, %v1956_v2  ;;  %v834_v20 = vpack.c.bf16 %v1964_v8, %v1962_v7 }
  0x1c   : > { %1653 = vrot.lane.b32.xlu2 %v1652_v11, %s1843_s28 }
  0x23   : > { %1648 = vrot.lane.b32.xlu1 %v1647_v12, %s1842_s24  ;;  %1638 = vrot.lane.b32.xlu0 %v1647_v12, %s1843_s28 }
  0x24   : > { %1658 = vrot.lane.b32.xlu2 %v1642_v6, %s1844_s30 }
  0x2b   : > { %1663 = vrot.lane.b32.xlu0 %v1647_v12, %s1844_s30  ;;  %1668 = vrot.lane.b32.xlu1 %v1652_v11, %s1842_s24 }
  0x2c   : > { %1673 = vrot.lane.b32.xlu2 %v1652_v11, %s1844_s30 }
  0x33   : > { %1678 = vrot.lane.b32.xlu0 %v1642_v6, %s1845_s14  ;;  %1683 = vrot.lane.b32.xlu1 %v1647_v12, %s1845_s14 }
  0x34   : > { %1688 = vrot.lane.b32.xlu2 %v1687_v13, %s1846_s15 }
  0x3b   : > { %1693 = vrot.lane.b32.xlu0 %v1692_v14, %s1846_s15  ;;  %1698 = vrot.lane.b32.xlu1 %v1687_v13, %s1847_s16 }
  0x3c   : > { %1703 = vrot.lane.b32.xlu2 %v1692_v14, %s1847_s16 }
  0x43   : > { %1708 = vrot.lane.b32.xlu0 %v1652_v11, %s1845_s14  ;;  %1713 = vrot.lane.b32.xlu1 %v1712_v15, %s1846_s15  ;;  %v852_v11 = vunpack.c.h.b16 %v2100_v0 }
  0x44   : > { %1718 = vrot.lane.b32.xlu2 %v1687_v13, %s1848_s18 }
  0x4b   : > { %1723 = vrot.lane.b32.xlu0 %v1692_v14, %s1848_s18  ;;  %1728 = vrot.lane.b32.xlu1 %v1712_v15, %s1847_s16 }
  0x4c   : > { %1733 = vrot.lane.b32.xlu2 %v1687_v13, %s1849_s19 }
  0x53   : > { %1738 = vrot.lane.b32.xlu0 %v1692_v14, %s1849_s19  ;;  %1743 = vrot.lane.b32.xlu1 %v1712_v15, %s1848_s18 }
  0x54   : > { %1748 = vrot.lane.b32.xlu2 %v1712_v15, %s1849_s19 }
  0x76   : > { %v2004_v16 = vpop.permute.xlu2 %1653 }
  0x77   : > { %v1656_v25 = vunpack.i.h.bf16 %v2004_v16  ;;  %v1655_v26 = vunpack.i.l.bf16 %v2004_v16 }
  0x7e   : > { %v2006_v17 = vpop.permute.xlu2 %1658 }
  0x7f   : > { %v1661_v40 = vunpack.i.h.bf16 %v2006_v17  ;;  %v1660_v41 = vunpack.i.l.bf16 %v2006_v17 }
  0x81   : > { %v753_v51 = vsel %vm752_vm2, %v1660_v41, %v1661_v40 }
  0x86   : > { %v2012_v21 = vpop.permute.xlu2 %1673 }
  0x87   : > { %v1676_v48 = vunpack.i.h.bf16 %v2012_v21  ;;  %v1675_v49 = vunpack.i.l.bf16 %v2012_v21 }
  0x89   : > { %v754_v61 = vsel %vm752_vm2, %v1675_v49, %v1660_v41 }
  0x8d   : > { %v2008_v18 = vpop.permute.xlu1 %1643  ;;  %v2010_v19 = vpop.permute.xlu0 %1633 }
  0x8e   : > { %v1636_v23 = vunpack.i.h.bf16 %v2010_v19  ;;  %v1635_v24 = vunpack.i.l.bf16 %v2010_v19  ;;  %v1646_v27 = vunpack.i.h.bf16 %v2008_v18  ;;  %v1645_v28 = vunpack.i.l.bf16 %v2008_v18  ;;  %v2048_v39 = vpop.permute.xlu2 %1688 }
  0x8f   : > { %v1691_v9 = vunpack.i.h.bf16 %v2048_v39 }
  0x90   : > { %v792_v35 = vsel %vm790_vm0, %v1655_v26, %v1635_v24  ;;  %v791_v37 = vsel %vm790_vm0, %v1635_v24, %v1636_v23  ;;  %v772_v44 = vsel %vm771_vm1, %v1645_v28, %v1646_v27 }
  0x95   : > { %v2022_v29 = vpop.permute.xlu1 %1648  ;;  %v2024_v30 = vpop.permute.xlu0 %1638 }
  0x96   : > { %v1651_v31 = vunpack.i.h.bf16 %v2022_v29  ;;  %v1650_v32 = vunpack.i.l.bf16 %v2022_v29  ;;  %v1641_v33 = vunpack.i.h.bf16 %v2024_v30  ;;  %v1640_v34 = vunpack.i.l.bf16 %v2024_v30  ;;  %v2095_v63 = vpop.permute.xlu2 %1703 }
  0x97   : > { %v1706_v7 = vunpack.i.h.bf16 %v2095_v63  ;;  %v1705_v8 = vunpack.i.l.bf16 %v2095_v63 }
  0x98   : > { %v801_v36 = vsel %vm790_vm0, %v1656_v25, %v1640_v34  ;;  %v800_v38 = vsel %vm790_vm0, %v1640_v34, %v1641_v33  ;;  %v781_v45 = vsel %vm771_vm1, %v1650_v32, %v1651_v31  ;;  %v2115_v34 = vpack.c.b16 %v852_v11, %v852_v11 }
  0x99   : > { %v843_v42 = vpack.c.bf16 %v801_v36, %v792_v35  ;;  %v844_v43 = vpack.c.bf16 %v800_v38, %v791_v37  ;;  %v841_v50 = vpack.c.bf16 %v781_v45, %v772_v44 }
  0x9b   : > { %860 = vmatpush.bf16.msra.mxu0 %v843_v42  ;;  %886 = vmatpush.bf16.msra.mxu2 %v844_v43 }
  0x9d   : > { %v2061_v46 = vpop.permute.xlu0 %1663  ;;  %v2063_v47 = vpop.permute.xlu1 %1668 }
  0x9e   : > { %v1666_v52 = vunpack.i.h.bf16 %v2061_v46  ;;  %v1665_v53 = vunpack.i.l.bf16 %v2061_v46  ;;  %v1671_v54 = vunpack.i.h.bf16 %v2063_v47  ;;  %v1670_v55 = vunpack.i.l.bf16 %v2063_v47  ;;  %v2119_v35 = vpop.permute.xlu2 %1718 }
  0x9f   : > { %887 = vmatpush.bf16.msra.mxu2 %v841_v50 }
  0xa0   : > { %v773_v56 = vsel %vm771_vm1, %v1670_v55, %v1645_v28  ;;  %v782_v57 = vsel %vm771_vm1, %v1671_v54, %v1650_v32  ;;  %v762_v58 = vsel %vm752_vm2, %v1665_v53, %v1666_v52  ;;  %v763_v62 = vsel %vm752_vm2, %v1676_v48, %v1665_v53 }
  0xa1   : > { %v840_v59 = vpack.c.bf16 %v782_v57, %v773_v56  ;;  %v838_v60 = vpack.c.bf16 %v762_v58, %v753_v51  ;;  %v837_v6 = vpack.c.bf16 %v763_v62, %v754_v61  ;;  %v1690_v28 = vunpack.i.l.bf16 %v2048_v39 }
  0xa2   : > { %v725_v51 = vsel %vm714_vm6, %v1705_v8, %v1706_v7  ;;  %v802_v57 = vsel %vm790_vm0, %v1641_v33, %v1656_v25  ;;  %v1721_v25 = vunpack.i.h.bf16 %v2119_v35  ;;  %v1720_v33 = vunpack.i.l.bf16 %v2119_v35 }
  0xa3   : > { %861 = vmatpush.bf16.msra.mxu0 %v840_v59  ;;  %888 = vmatpush.bf16.msra.mxu2 %v838_v60  ;;  %v735_v38 = vsel %vm733_vm4, %v1690_v28, %v1691_v9  ;;  %v793_v60 = vsel %vm790_vm0, %v1636_v23, %v1655_v26 }
  0xa4   : > { %v697_v18 = vsel %vm695_vm7, %v1720_v33, %v1721_v25 }
  0xa5   : > { %v1679_v4 = vpop.permute.xlu0 %1678  ;;  %v1684_v5 = vpop.permute.xlu1 %1683 }
  0xa6   : > { %v1681_v12 = vunpack.i.h.bf16 %v1679_v4  ;;  %v1680_v13 = vunpack.i.l.bf16 %v1679_v4  ;;  %v1686_v14 = vunpack.i.h.bf16 %v1684_v5  ;;  %v1685_v15 = vunpack.i.l.bf16 %v1684_v5  ;;  %v2164_v30 = vpop.permute.xlu2 %1733 }
  0xa7   : > { %862 = vmatpush.bf16.msra.mxu0 %v837_v6  ;;  %889 = vmatpush.bf16.msra.mxu2 %v835_v1  ;;  %v845_v5 = vpack.c.bf16 %v802_v57, %v793_v60  ;;  %v1736_v21 = vunpack.i.h.bf16 %v2164_v30  ;;  %v1735_v46 = vunpack.i.l.bf16 %v2164_v30 }
  0xa8   : > { %v810_v24 = vsel %vm809_vm3, %v1680_v13, %v1681_v12  ;;  %v819_v2 = vsel %vm809_vm3, %v1685_v15, %v1686_v14 }
  0xa9   : > { %v847_v32 = vpack.c.bf16 %v819_v2, %v810_v24 }
  0xab   : > { %906 = vmatpush.bf16.msra.mxu3 %v847_v32  ;;  %863 = vmatpush.bf16.msra.mxu0 %v834_v20 }
  0xad   : > { %v2121_v36 = vpop.permute.xlu0 %1693  ;;  %v2123_v37 = vpop.permute.xlu1 %1698 }
  0xae   : > { %v1696_v41 = vunpack.i.h.bf16 %v2121_v36  ;;  %v1695_v42 = vunpack.i.l.bf16 %v2121_v36  ;;  %v1701_v43 = vunpack.i.h.bf16 %v2123_v37  ;;  %v1700_v44 = vunpack.i.l.bf16 %v2123_v37  ;;  %1575 = vmatmul.msk.bf16.vlgmr.msra.gmra.mxu3 %vm856_vm5, %v2115_v34 }
  0xb0   : > { %v744_v45 = vsel %vm733_vm4, %v1695_v42, %v1696_v41  ;;  %v716_v50 = vsel %vm714_vm6, %v1700_v44, %v1701_v43 }
  0xb1   : > { %v832_v53 = vpack.c.bf16 %v744_v45, %v735_v38  ;;  %v829_v56 = vpack.c.bf16 %v725_v51, %v716_v50  ;;  %v678_v50 = vsel %vm676_vm8, %v1735_v46, %v1736_v21  ;;  %v851_v51 = vunpack.c.l.b16 %v2100_v0 }
  0xb3   : > { %890 = vmatpush.bf16.msra.mxu2 %v832_v53 }
  0xb5   : > { %v1709_v58 = vpop.permute.xlu0 %1708  ;;  %v2154_v59 = vpop.permute.xlu1 %1713 }
  0xb6   : > { %v1711_v61 = vunpack.i.h.bf16 %v1709_v58  ;;  %v1710_v62 = vunpack.i.l.bf16 %v1709_v58  ;;  %v1716_v1 = vunpack.i.h.bf16 %v2154_v59  ;;  %v1715_v4 = vunpack.i.l.bf16 %v2154_v59 }
  0xb7   : > { %891 = vmatpush.bf16.msra.mxu2 %v829_v56 }
  0xb8   : > { %v736_v16 = vsel %vm733_vm4, %v1715_v4, %v1690_v28  ;;  %v745_v19 = vsel %vm733_vm4, %v1716_v1, %v1695_v42  ;;  %v811_v23 = vsel %vm809_vm3, %v1710_v62, %v1680_v13  ;;  %v820_v26 = vsel %vm809_vm3, %v1711_v61, %v1685_v15 }
  0xb9   : > { %v831_v6 = vpack.c.bf16 %v745_v19, %v736_v16  ;;  %v846_v11 = vpack.c.bf16 %v820_v26, %v811_v23  ;;  %v812_v20 = vsel %vm809_vm3, %v1681_v12, %v1710_v62  ;;  %v821_v24 = vsel %vm809_vm3, %v1686_v14, %v1711_v61 }
  0xba   : > { %v848_v2 = vpack.c.bf16 %v821_v24, %v812_v20  ;;  %v774_v28 = vsel %vm771_vm1, %v1646_v27, %v1670_v55  ;;  %v783_v13 = vsel %vm771_vm1, %v1651_v31, %v1671_v54  ;;  %v755_v31 = vsel %vm752_vm2, %v1661_v40, %v1675_v49  ;;  %v1749_v49 = vpop.permute.xlu2 %1748  ;;  %v657_v24 = vld [vmem:[%s2431_s11] sm:$0x7] }
  0xbb   : > { %864 = vmatpush.bf16.msra.mxu0 %v831_v6  ;;  %880 = vmatpush.bf16.msra.mxu1 %v846_v11  ;;  %v842_v15 = vpack.c.bf16 %v783_v13, %v774_v28  ;;  %v764_v54 = vsel %vm752_vm2, %v1666_v52, %v1676_v48  ;;  %v1751_v42 = vunpack.i.h.bf16 %v1749_v49  ;;  %v734_v59 = vsel %vm733_vm4, %v1691_v9, %v1715_v4 }
  0xbc   : > { %932 = vmatpush.bf16.msrb.mxu3 %v848_v2  ;;  %v839_v52 = vpack.c.bf16 %v764_v54, %v755_v31  ;;  %v2266_v28 = vperm.slane %v657_v24, 1 }
  0xbd   : > { %v1724_v12 = vpop.permute.xlu0 %1723  ;;  %v1729_v14 = vpop.permute.xlu1 %1728 }
  0xbe   : > { %v1726_v27 = vunpack.i.h.bf16 %v1724_v12  ;;  %v1725_v47 = vunpack.i.l.bf16 %v1724_v12  ;;  %v1731_v29 = vunpack.i.h.bf16 %v1729_v14  ;;  %v1730_v55 = vunpack.i.l.bf16 %v1729_v14  ;;  %1574 = vmatmul.msk.bf16.vlgmr.msra.gmra.mxu1 %vm856_vm5, %v2115_v34 }
  0xbf   : > { %912 = vmatpush.bf16.msrb.mxu1 %v845_v5  ;;  %1576 = vmatmul.msk.bf16.vlgmr.msrb.gmra.mxu3 %vm856_vm5, %v2115_v34  ;;  %v1750_v34 = vunpack.i.l.bf16 %v1749_v49  ;;  %v2268_v12 = vperm.slane %v657_v24, 0  ;;  %v1850_v49 = vmov 0  }
  0xc0   : > { %v717_v32 = vsel %vm714_vm6, %v1730_v55, %v1700_v44  ;;  %v726_v17 = vsel %vm714_vm6, %v1731_v29, %v1705_v8  ;;  %v706_v40 = vsel %vm695_vm7, %v1725_v47, %v1726_v27  ;;  %v836_v8 = vpack.c.bf16 %v1970_v10, %v1958_v3  ;;  %1752 = vset.pattern.permute.xlu2 %v1850_v49 }
  0xc1   : > { %v828_v38 = vpack.c.bf16 %v726_v17, %v717_v32  ;;  %v826_v48 = vpack.c.bf16 %v706_v40, %v697_v18  ;;  %v743_v3 = vsel %vm733_vm4, %v1696_v41, %v1716_v1  ;;  %v679_v10 = vsel %vm676_vm8, %v1750_v34, %v1735_v46  ;;  %v981_v40 = vld [vmem:[%s2423_s3] sm:$0xff]  ;;  %1793 = vset.pattern.permute.xlu0 %v1850_v49 }
  0xc2   : > { %v833_v62 = vpack.c.bf16 %v743_v3, %v734_v59  ;;  %v853_v41 = vpack.c.b16 %v851_v51, %v851_v51  ;;  %v715_v4 = vsel %vm714_vm6, %v1701_v43, %v1730_v55  ;;  %v724_v30 = vsel %vm714_vm6, %v1706_v7, %v1731_v29  ;;  %984 = vperm.xlu2 %1752, %v981_v40  }
  0xc3   : > { %913 = vmatpush.bf16.msrb.mxu1 %v842_v15  ;;  %865 = vmatpush.bf16.msra.mxu0 %v828_v38  ;;  %v677_v63 = vsel %vm676_vm8, %v1736_v21, %v1750_v34  ;;  %v2271_v18 = vperm.slane %v657_v24, 2  ;;  %v990_v21 = vld [vmem:[%s2424_s4] sm:$0xff] }
  0xc4   : > { %892 = vmatpush.bf16.msra.mxu2 %v826_v48 }
  0xc5   : > { %v1739_v44 = vpop.permute.xlu0 %1738  ;;  %v1744_v45 = vpop.permute.xlu1 %1743 }
  0xc6   : > { %v1741_v53 = vunpack.i.h.bf16 %v1739_v44  ;;  %v1740_v56 = vunpack.i.l.bf16 %v1739_v44  ;;  %v1746_v57 = vunpack.i.h.bf16 %v1744_v45  ;;  %v1745_v58 = vunpack.i.l.bf16 %v1744_v45 }
  0xc7   : > { %914 = vmatpush.bf16.msrb.mxu1 %v839_v52 }
  0xc8   : > { %v698_v0 = vsel %vm695_vm7, %v1745_v58, %v1720_v33  ;;  %v707_v60 = vsel %vm695_vm7, %v1746_v57, %v1725_v47  ;;  %v687_v39 = vsel %vm676_vm8, %v1740_v56, %v1741_v53  ;;  %v688_v9 = vsel %vm676_vm8, %v1751_v42, %v1740_v56 }
  0xc9   : > { %v825_v36 = vpack.c.bf16 %v707_v60, %v698_v0  ;;  %v823_v61 = vpack.c.bf16 %v687_v39, %v678_v50  ;;  %v822_v1 = vpack.c.bf16 %v688_v9, %v679_v10  ;;  %v830_v33 = vpack.c.bf16 %v724_v30, %v715_v4 }
  0xca   : > { %v696_v5 = vsel %vm695_vm7, %v1721_v25, %v1745_v58  ;;  %v705_v37 = vsel %vm695_vm7, %v1726_v27, %v1746_v57  ;;  %v686_v7 = vsel %vm676_vm8, %v1741_v53, %v1751_v42  ;;  %993 = vperm.xlu2 %1752, %v990_v21  }
  0xcb   : > { %915 = vmatpush.bf16.msrb.mxu1 %v836_v8  ;;  %866 = vmatpush.bf16.msra.mxu0 %v825_v36  ;;  %v827_v43 = vpack.c.bf16 %v705_v37, %v696_v5  ;;  %v824_v16 = vpack.c.bf16 %v686_v7, %v677_v63  ;;  %v1004_v5 = vstv %s1000_s20  ;;  %s644_s20 = scalar_lea.vmem %s2432_s12, %s1946_s17 }
  0xcc   : > { %893 = vmatpush.bf16.msra.mxu2 %v823_v61 }
  0xcf   : > { %916 = vmatpush.bf16.msrb.mxu1 %v833_v62  ;;  %894 = vmatmul.bf16.vlgmr.msra.gmra.mxu2 %v853_v41 }
  0xd0   : > { %867 = vmatpush.bf16.msra.mxu0 %v822_v1 }
  0xd3   : > { %917 = vmatpush.bf16.msrb.mxu1 %v830_v33  ;;  %868 = vmatmul.bf16.vlgmr.msra.gmra.mxu0 %v853_v41 }
  0xd7   : > { %918 = vmatpush.bf16.msrb.mxu1 %v827_v43 }
  0xdb   : > { %919 = vmatpush.bf16.msrb.mxu1 %v824_v16 }
  0xde   : > { %920 = vmatmul.bf16.vlgmr.msrb.gmra.mxu1 %v853_v41 }
 0x11c   : > { %v985_v39 = vpop.permute.xlu2 %984 }
 0x124   : > { %v994_v37 = vpop.permute.xlu2 %993 }
 0x131   : > { %v908_v35 = vpop.f32.mrf.mxu3 }
 0x139   : > { %v910_v19 = vpop.f32.mrf.mxu3 }
 0x13b   : > { %v882_v23 = vpop.f32.mrf.mxu1 }
 0x142   : > { %v934_v25 = vpop.f32.mrf.mxu3 }
 0x143   : > { %v884_v26 = vpop.f32.mrf.mxu1 }
 0x14a   : > { %v936_v6 = vpop.f32.mrf.mxu3 }
 0x150   : > { %v869_v11 = vpop.f32.mrf.mxu0 }
 0x151   : > { %v883_v13 = vadd.f32 %v882_v23, %v869_v11 }
 0x152   : > { %v895_v20 = vpop.f32.mrf.mxu2 }
 0x153   : > { %v909_v2 = vadd.f32 %v908_v35, %v895_v20  ;;  %v945_v47 = vmul.f32 %v2268_v12, %v883_v13 }
 0x155   : > { %v946_v14 = vmul.f32 %v2266_v28, %v909_v2 }
 0x157   : > { %v948_v54 = vadd.f32 %v946_v14, %v945_v47  ;;  %v1200_v14 = vld [vmem:[%s2427_s7] sm:$0xff] }
 0x158   : > { %v871_v15 = vpop.f32.mrf.mxu0 }
 0x159   : > { %v1229_v15 = vld [vmem:[%s2430_s10] sm:$0x3] }
 0x15a   : > { %v897_v55 = vpop.f32.mrf.mxu2 }
 0x15b   : > { %v921_v27 = vpop.f32.mrf.mxu1 }
 0x15c   : > { %v935_v29 = vadd.f32 %v934_v25, %v921_v27 }
 0x15e   : > { %v947_v31 = vmul.f32 %v2271_v18, %v935_v29 }
 0x160   : > { %v949_v32 = vadd.f32 %v948_v54, %v947_v31 }
 0x162   : > { %950 = vadd.xlane.f32.xlu0 %v949_v32 }
 0x163   : > { %v923_v17 = vpop.f32.mrf.mxu1 }
 0x1d5   : > { %v951_v46 = vpop.xlane.xlu0 %950 }
 0x1d6   : > { %v952_v38 = vmul.f32 0.00390625, %v951_v46 }
 0x1d8   : > { %v953_v48 = vsub.f32 %v883_v13, %v952_v38  ;;  %v954_v52 = vsub.f32 %v909_v2, %v952_v38  ;;  %v955_v34 = vsub.f32 %v935_v29, %v952_v38  ;;  %v1191_v13 = vld [vmem:[%s2426_s6] sm:$0xff] }
 0x1da   : > { %v956_v42 = vmul.f32 %v953_v48, %v2268_v12  ;;  %v957_v8 = vmul.f32 %v954_v52, %v2266_v28  ;;  %v958_v44 = vmul.f32 %v955_v34, %v2271_v18 }
 0x1dc   : > { %v959_v45 = vmul.f32 %v956_v42, %v956_v42  ;;  %v960_v50 = vmul.f32 %v957_v8, %v957_v8  ;;  %v961_v51 = vmul.f32 %v958_v44, %v958_v44 }
 0x1de   : > { %v962_v53 = vadd.f32 %v960_v50, %v959_v45 }
 0x1e0   : > { %v963_v56 = vadd.f32 %v962_v53, %v961_v51 }
 0x1e2   : > { %964 = vadd.xlane.f32.xlu1 %v963_v56 }
 0x255   : > { %v965_v57 = vpop.xlane.xlu1 %964 }
 0x256   : > { %v966_v58 = vmul.f32 0.00390625, %v965_v57 }
 0x258   : > { %v967_v59 = vadd.f32 1e-05, %v966_v58 }
 0x25a   : > { %1794 = vrsqrt.f32 %v967_v59  ;;  %vm974_vm10 = vweird.f32 %v967_v59 }
 0x260   : > { %v1795_v3 = vpop.eup %1794 }
 0x261   : > { %v969_v10 = vmul.f32 %v1795_v3, %v967_v59  ;;  %vm975_vm9 = vweird.f32 %v1795_v3 }
 0x262   : > { %vm976_vm11 = vmor %vm974_vm10, %vm975_vm9 }
 0x263   : > { %v970_v0 = vmul.f32 %v1795_v3, %v969_v10 }
 0x265   : > { %v971_v60 = vmul.f32 0.5, %v970_v0 }
 0x267   : > { %v972_v9 = vsub.f32 1.5, %v971_v60 }
 0x269   : > { %v973_v36 = vmul.f32 %v1795_v3, %v972_v9 }
 0x26b   : > { %v977_v61 = vsel %vm976_vm11, %v1795_v3, %v973_v36 }
 0x26c   : > { %v978_v62 = vmul.f32 %v977_v61, %v953_v48  ;;  %v979_v41 = vmul.f32 %v977_v61, %v954_v52  ;;  %v980_v1 = vmul.f32 %v977_v61, %v955_v34 }
 0x26e   : > { %v987_v4 = vmul.f32 %v985_v39, %v978_v62  ;;  %v988_v30 = vmul.f32 %v985_v39, %v979_v41  ;;  %v989_v33 = vmul.f32 %v985_v39, %v980_v1 }
 0x270   : > { %v996_v43 = vadd.f32 %v994_v37, %v987_v4  ;;  %v997_v63 = vadd.f32 %v994_v37, %v988_v30  ;;  %v998_v7 = vadd.f32 %v994_v37, %v989_v33 }
 0x272   : > { %vm1001_vm12 = vcmp.ge.f32.partialorder %v996_v43, 0.0  ;;  %vm1002_vm13 = vcmp.ge.f32.partialorder %v997_v63, 0.0  ;;  %vm1003_vm14 = vcmp.ge.f32.partialorder %v998_v7, 0.0  ;;  %v1005_v16 = vmul.f32 %v1004_v5, %v996_v43 }
 0x273   : > { %v1006_v35 = vmul.f32 %v1004_v5, %v997_v63  ;;  %v1007_v19 = vmul.f32 %v1004_v5, %v998_v7 }
 0x274   : > { %v1008_v23 = vsel %vm1001_vm12, %v996_v43, %v1005_v16 }
 0x275   : > { %v1009_v25 = vsel %vm1002_vm13, %v997_v63, %v1006_v35  ;;  %v1010_v26 = vsel %vm1003_vm14, %v998_v7, %v1007_v19  ;;  %v2285_v6 = vmul.f32 %v1008_v23, %v2268_v12 }
 0x276   : > { %v2288_v11 = vmul.f32 %v1009_v25, %v2266_v28  ;;  %v2291_v20 = vmul.f32 %v1010_v26, %v2271_v18 }
 0x278   : > { %1072 = vrot.lane.b32.xlu1 %v2291_v20, %s1843_s28  ;;  %1063 = vrot.lane.b32.xlu0 %v2291_v20, %s1842_s24  ;;  %v1753_v24 = vpack.i.bf16 %v2288_v11, %v2285_v6  ;;  %v1773_v2 = vpack.i.bf16 %v2291_v20, %v2285_v6 }
 0x27a   : > { %1754 = vrot.lane.b32.xlu2 %v1753_v24, %s1845_s14 }
 0x280   : > { %1034 = vrot.lane.b32.xlu1 %v2288_v11, %s1847_s16  ;;  %1774 = vrot.lane.b32.xlu0 %v1773_v2, %s1847_s16  ;;  %s1587_s16 = smul.u32 6, %s2439_s25 }
 0x282   : > { %1081 = vrot.lane.b32.xlu2 %v2291_v20, %s1845_s14 }
 0x288   : > { %1789 = vrot.lane.b32.xlu1 %v1773_v2, %s1848_s18  ;;  %1043 = vrot.lane.b32.xlu0 %v2288_v11, %s1846_s15 }
 0x28a   : > { %1759 = vrot.lane.b32.xlu2 %v1753_v24, %s1842_s24 }
 0x290   : > { %1016 = vrot.lane.b32.xlu0 %v2288_v11, %s1849_s19 }
 0x292   : > { %1764 = vrot.lane.b32.xlu2 %v1753_v24, %s1843_s28  ;;  %s653_s28 = scalar_lea.vmem %s2433_s13, %s1587_s16 }
 0x29a   : > { %1769 = vrot.lane.b32.xlu2 %v1753_v24, %s1844_s30 }
 0x2a2   : > { %1054 = vrot.lane.b32.xlu2 %v2291_v20, %s1844_s30 }
 0x2aa   : > { %1779 = vrot.lane.b32.xlu2 %v1773_v2, %s1846_s15 }
 0x2b2   : > { %1784 = vrot.lane.b32.xlu2 %v1773_v2, %s1849_s19 }
 0x2ba   : > { %1025 = vrot.lane.b32.xlu2 %v2288_v11, %s1848_s18  ;;  %s1580_s18 = sld [smem:[#allocation2 + $0x1]] }
 0x2c2   : > { %1194 = vperm.xlu2 %1752, %v1191_v13  }
 0x2ca   : > { %1203 = vperm.xlu2 %1752, %v1200_v14  }
 0x2d2   : > { %1232 = vperm.xlu2 %1752, %v1229_v15  }
 0x2d4   : > { %v1755_v27 = vpop.permute.xlu2 %1754 }
 0x2d5   : > { %v1757_v47 = vunpack.i.h.bf16 %v1755_v27  ;;  %v1756_v29 = vunpack.i.l.bf16 %v1755_v27 }
 0x2d7   : > { %v1084_v55 = vsel %vm809_vm3, %v1756_v29, %v1757_v47 }
 0x2d8   : > { %v1098_v31 = vpack.c.bf16 %v1084_v55, %v1084_v55 }
 0x2da   : > { %v1108_v54 = vsel %vm1106_vm15, %v1098_v31, 0 }
 0x2db   : > { %1119 = vmatpush.bf16.msra.mxu3 %v1108_v54 }
 0x2dc   : > { %v1082_v32 = vpop.permute.xlu2 %1081 }
 0x2dd   : > { %v1083_v17 = vsel %vm809_vm3, %v1757_v47, %v1082_v32  ;;  %v1085_v40 = vsel %vm809_vm3, %v1082_v32, %v1756_v29  ;;  %v1101_v32 = vld [vmem:[%s2425_s5] sm:$0xf] }
 0x2de   : > { %v1099_v49 = vpack.c.bf16 %v1083_v17, %v1083_v17  ;;  %v1100_v21 = vpack.c.bf16 %v1085_v40, %v1085_v40 }
 0x2e0   : > { %v1111_v46 = vsel %vm1106_vm15, %v1099_v49, 0  ;;  %v1114_v38 = vsel %vm1106_vm15, %v1100_v21, 0 }
 0x2e1   : > { %1132 = vmatpush.bf16.msrb.mxu0 %v1111_v46  ;;  %1145 = vmatpush.bf16.msrb.mxu2 %v1114_v38 }
 0x2e4   : > { %v1760_v48 = vpop.permute.xlu2 %1759 }
 0x2e5   : > { %v1762_v52 = vunpack.i.h.bf16 %v1760_v48  ;;  %v1761_v34 = vunpack.i.l.bf16 %v1760_v48 }
 0x2e7   : > { %v1066_v53 = vsel %vm771_vm1, %v1761_v34, %v1762_v52 }
 0x2ea   : > { %v1064_v42 = vpop.permute.xlu0 %1063  ;;  %v1073_v50 = vpop.permute.xlu1 %1072 }
 0x2eb   : > { %v1065_v51 = vsel %vm771_vm1, %v1762_v52, %v1064_v42  ;;  %v1067_v56 = vsel %vm771_vm1, %v1064_v42, %v1761_v34 }
 0x2ec   : > { %v1765_v8 = vpop.permute.xlu2 %1764 }
 0x2ed   : > { %v1767_v44 = vunpack.i.h.bf16 %v1765_v8  ;;  %v1766_v45 = vunpack.i.l.bf16 %v1765_v8 }
 0x2ef   : > { %v1075_v57 = vsel %vm790_vm0, %v1766_v45, %v1767_v44  ;;  %v1074_v58 = vsel %vm790_vm0, %v1767_v44, %v1073_v50  ;;  %v1076_v59 = vsel %vm790_vm0, %v1073_v50, %v1766_v45  ;;  %vm1102_vm0 = vcmask 588800  }
 0x2f0   : > { %v1095_v3 = vpack.c.bf16 %v1075_v57, %v1066_v53  ;;  %v1096_v10 = vpack.c.bf16 %v1074_v58, %v1065_v51  ;;  %v1097_v0 = vpack.c.bf16 %v1076_v59, %v1067_v56 }
 0x2f2   : > { %1120 = vmatpush.bf16.msra.mxu3 %v1095_v3  ;;  %1133 = vmatpush.bf16.msrb.mxu0 %v1096_v10  ;;  %v1775_v62 = vpop.permute.xlu0 %1774  ;;  %v1035_v30 = vpop.permute.xlu1 %1034 }
 0x2f3   : > { %1146 = vmatpush.bf16.msrb.mxu2 %v1097_v0  ;;  %v1777_v37 = vunpack.i.h.bf16 %v1775_v62  ;;  %v1776_v43 = vunpack.i.l.bf16 %v1775_v62 }
 0x2f4   : > { %v1770_v60 = vpop.permute.xlu2 %1769 }
 0x2f5   : > { %v1772_v39 = vunpack.i.h.bf16 %v1770_v60  ;;  %v1771_v9 = vunpack.i.l.bf16 %v1770_v60  ;;  %v1040_v19 = vsel %vm714_vm6, %v1777_v37, %v1776_v43  ;;  %v1039_v23 = vsel %vm714_vm6, %v1776_v43, %v1035_v30 }
 0x2f7   : > { %v1057_v36 = vsel %vm752_vm2, %v1771_v9, %v1772_v39 }
 0x2f8   : > { %v1092_v61 = vpack.c.bf16 %v1057_v36, %v2285_v6  ;;  %v1038_v6 = vsel %vm714_vm6, %v1035_v30, %v1777_v37 }
 0x2fa   : > { %1121 = vmatpush.bf16.msra.mxu3 %v1092_v61  ;;  %v1044_v35 = vpop.permute.xlu0 %1043 }
 0x2fc   : > { %v1055_v41 = vpop.permute.xlu2 %1054 }
 0x2fd   : > { %v1056_v1 = vsel %vm752_vm2, %v1772_v39, %v1055_v41  ;;  %v1058_v4 = vsel %vm752_vm2, %v1055_v41, %v1771_v9 }
 0x2fe   : > { %v1093_v33 = vpack.c.bf16 %v1056_v1, %v2288_v11  ;;  %v1094_v5 = vpack.c.bf16 %v1058_v4, %v2291_v20  ;;  %v1790_v20 = vpop.permute.xlu1 %1789 }
 0x2ff   : > { %v1792_v14 = vunpack.i.h.bf16 %v1790_v20  ;;  %v1791_v15 = vunpack.i.l.bf16 %v1790_v20 }
 0x300   : > { %1134 = vmatpush.bf16.msrb.mxu0 %v1093_v33  ;;  %1147 = vmatpush.bf16.msrb.mxu2 %v1094_v5 }
 0x301   : > { %v1031_v31 = vsel %vm695_vm7, %v1792_v14, %v1791_v15 }
 0x302   : > { %v1017_v17 = vpop.permute.xlu0 %1016 }
 0x304   : > { %v1780_v63 = vpop.permute.xlu2 %1779 }
 0x305   : > { %v1782_v7 = vunpack.i.h.bf16 %v1780_v63  ;;  %v1781_v16 = vunpack.i.l.bf16 %v1780_v63 }
 0x307   : > { %v1049_v25 = vsel %vm733_vm4, %v1782_v7, %v1781_v16  ;;  %v1048_v26 = vsel %vm733_vm4, %v1781_v16, %v1044_v35  ;;  %v1047_v11 = vsel %vm733_vm4, %v1044_v35, %v1782_v7 }
 0x308   : > { %v1089_v24 = vpack.c.bf16 %v1049_v25, %v1040_v19  ;;  %v1090_v2 = vpack.c.bf16 %v1048_v26, %v1039_v23  ;;  %v1091_v13 = vpack.c.bf16 %v1047_v11, %v1038_v6 }
 0x30a   : > { %1122 = vmatpush.bf16.msra.mxu3 %v1089_v24  ;;  %1135 = vmatpush.bf16.msrb.mxu0 %v1090_v2  ;;  %v1214_v2 = vstv %s1580_s18 }
 0x30b   : > { %1148 = vmatpush.bf16.msrb.mxu2 %v1091_v13 }
 0x30c   : > { %v1785_v27 = vpop.permute.xlu2 %1784 }
 0x30d   : > { %v1787_v47 = vunpack.i.h.bf16 %v1785_v27  ;;  %v1786_v29 = vunpack.i.l.bf16 %v1785_v27 }
 0x30f   : > { %v1022_v55 = vsel %vm676_vm8, %v1787_v47, %v1786_v29  ;;  %v1021_v46 = vsel %vm676_vm8, %v1786_v29, %v1017_v17  ;;  %v1020_v38 = vsel %vm676_vm8, %v1017_v17, %v1787_v47  ;;  %vm1300_vm8 = vcmask 1041408  }
 0x310   : > { %v1086_v54 = vpack.c.bf16 %v1031_v31, %v1022_v55 }
 0x312   : > { %1123 = vmatpush.bf16.msra.mxu3 %v1086_v54 }
 0x314   : > { %v1026_v40 = vpop.permute.xlu2 %1025 }
 0x315   : > { %v1029_v49 = vsel %vm695_vm7, %v1026_v40, %v1792_v14  ;;  %v1030_v21 = vsel %vm695_vm7, %v1791_v15, %v1026_v40  ;;  %1577 = vmatmul.msk.bf16.vlgmr.msra.gmra.mxu3 %vm1102_vm0, %v1101_v32  ;;  %vm1243_vm7 = vcmask 64512  }
 0x316   : > { %v1087_v48 = vpack.c.bf16 %v1030_v21, %v1021_v46  ;;  %v1088_v52 = vpack.c.bf16 %v1029_v49, %v1020_v38 }
 0x318   : > { %1136 = vmatpush.bf16.msrb.mxu0 %v1087_v48  ;;  %1149 = vmatpush.bf16.msrb.mxu2 %v1088_v52 }
 0x31b   : > { %1578 = vmatmul.msk.bf16.vlgmr.msrb.gmra.mxu0 %vm1102_vm0, %v1101_v32  ;;  %1579 = vmatmul.msk.bf16.vlgmr.msrb.gmra.mxu2 %vm1102_vm0, %v1101_v32 }
 0x31c   : > { %v1195_v63 = vpop.permute.xlu2 %1194 }
 0x324   : > { %v1204_v24 = vpop.permute.xlu2 %1203 }
 0x398   : > { %v1125_v34 = vpop.f32.mrf.mxu3  ;;  %v1138_v42 = vpop.f32.mrf.mxu0 }
 0x399   : > { %v1155_v8 = vmul.f32 %v1125_v34, %v2268_v12  ;;  %v1156_v44 = vmul.f32 %v1138_v42, %v2266_v28 }
 0x39b   : > { %v1158_v45 = vadd.f32 %v1156_v44, %v1155_v8 }
 0x39e   : > { %v1151_v50 = vpop.f32.mrf.mxu2 }
 0x39f   : > { %v1157_v51 = vmul.f32 %v1151_v50, %v2271_v18 }
 0x3a0   : > { %v1127_v53 = vpop.f32.mrf.mxu3  ;;  %v1140_v56 = vpop.f32.mrf.mxu0 }
 0x3a1   : > { %v1159_v22 = vadd.f32 %v1158_v45, %v1157_v51 }
 0x3a3   : > { %1160 = vadd.xlane.f32.xlu1 %v1159_v22 }
 0x3a6   : > { %v1153_v57 = vpop.f32.mrf.mxu2 }
 0x416   : > { %v1161_v58 = vpop.xlane.xlu1 %1160 }
 0x417   : > { %v1162_v59 = vmul.f32 0.00390625, %v1161_v58 }
 0x419   : > { %v1163_v3 = vsub.f32 %v1125_v34, %v1162_v59  ;;  %v1164_v10 = vsub.f32 %v1138_v42, %v1162_v59  ;;  %v1165_v0 = vsub.f32 %v1151_v50, %v1162_v59  ;;  %v1233_v50 = vpop.permute.xlu2 %1232 }
 0x41b   : > { %v1166_v60 = vmul.f32 %v1163_v3, %v2268_v12  ;;  %v1167_v39 = vmul.f32 %v1164_v10, %v2266_v28  ;;  %v1168_v9 = vmul.f32 %v1165_v0, %v2271_v18 }
 0x41d   : > { %v1169_v36 = vmul.f32 %v1166_v60, %v1166_v60  ;;  %v1170_v61 = vmul.f32 %v1167_v39, %v1167_v39  ;;  %v1171_v62 = vmul.f32 %v1168_v9, %v1168_v9 }
 0x41f   : > { %v1172_v41 = vadd.f32 %v1170_v61, %v1169_v36 }
 0x421   : > { %v1173_v1 = vadd.f32 %v1172_v41, %v1171_v62 }
 0x423   : > { %1174 = vadd.xlane.f32.xlu0 %v1173_v1 }
 0x496   : > { %v1175_v4 = vpop.xlane.xlu0 %1174 }
 0x497   : > { %v1176_v30 = vmul.f32 0.00390625, %v1175_v4 }
 0x499   : > { %v1177_v33 = vadd.f32 1e-05, %v1176_v30 }
 0x49b   : > { %1796 = vrsqrt.f32 %v1177_v33  ;;  %vm1184_vm2 = vweird.f32 %v1177_v33 }
 0x4a1   : > { %v1797_v5 = vpop.eup %1796 }
 0x4a2   : > { %v1179_v37 = vmul.f32 %v1797_v5, %v1177_v33  ;;  %vm1185_vm1 = vweird.f32 %v1797_v5 }
 0x4a3   : > { %vm1186_vm3 = vmor %vm1184_vm2, %vm1185_vm1 }
 0x4a4   : > { %v1180_v43 = vmul.f32 %v1797_v5, %v1179_v37 }
 0x4a6   : > { %v1181_v7 = vmul.f32 0.5, %v1180_v43 }
 0x4a8   : > { %v1182_v16 = vsub.f32 1.5, %v1181_v7 }
 0x4aa   : > { %v1183_v35 = vmul.f32 %v1797_v5, %v1182_v16 }
 0x4ac   : > { %v1187_v19 = vsel %vm1186_vm3, %v1797_v5, %v1183_v35 }
 0x4ad   : > { %v1188_v23 = vmul.f32 %v1187_v19, %v1163_v3  ;;  %v1189_v25 = vmul.f32 %v1187_v19, %v1164_v10  ;;  %v1190_v26 = vmul.f32 %v1187_v19, %v1165_v0 }
 0x4af   : > { %v1197_v6 = vmul.f32 %v1195_v63, %v1188_v23  ;;  %v1198_v11 = vmul.f32 %v1195_v63, %v1189_v25  ;;  %v1199_v20 = vmul.f32 %v1195_v63, %v1190_v26 }
 0x4b1   : > { %v1206_v13 = vadd.f32 %v1204_v24, %v1197_v6  ;;  %v1207_v14 = vadd.f32 %v1204_v24, %v1198_v11  ;;  %v1208_v15 = vadd.f32 %v1204_v24, %v1199_v20 }
 0x4b3   : > { %vm1211_vm4 = vcmp.ge.f32.partialorder %v1206_v13, 0.0  ;;  %vm1212_vm5 = vcmp.ge.f32.partialorder %v1207_v14, 0.0  ;;  %v1215_v27 = vmul.f32 %v1214_v2, %v1206_v13  ;;  %v1216_v47 = vmul.f32 %v1214_v2, %v1207_v14 }
 0x4b4   : > { %vm1213_vm6 = vcmp.ge.f32.partialorder %v1208_v15, 0.0  ;;  %v1217_v29 = vmul.f32 %v1214_v2, %v1208_v15 }
 0x4b5   : > { %v1218_v55 = vsel %vm1211_vm4, %v1206_v13, %v1215_v27  ;;  %v1219_v31 = vsel %vm1212_vm5, %v1207_v14, %v1216_v47 }
 0x4b6   : > { %v1221_v54 = vmul.f32 %v1218_v55, %v2268_v12  ;;  %v1222_v32 = vmul.f32 %v1219_v31, %v2266_v28  ;;  %v1220_v17 = vsel %vm1213_vm6, %v1208_v15, %v1217_v29 }
 0x4b7   : > { %v1223_v40 = vmul.f32 %v1220_v17, %v2271_v18  ;;  %v1228_v18 = vld [vmem:[%s2429_s9] sm:$0x1] }
 0x4b8   : > { %v1224_v49 = vpack.c.bf16 %v1222_v32, %v1221_v54 }
 0x4b9   : > { %v1225_v21 = vpack.c.bf16 %v1223_v40, %v1223_v40 }
 0x4ba   : > { %v1237_v46 = vunpack.c.l.b16 %v1224_v49  ;;  %v1238_v38 = vunpack.c.h.b16 %v1224_v49  ;;  %1226 = vst [vmem:[%s644_s20] sm:$0xff] %v1224_v49 }
 0x4bb   : > { %1227 = vst [vmem:[%s644_s20 + $0x8] sm:$0xf] %v1225_v21  ;;  %v1239_v48 = vunpack.c.l.b16 %v1225_v21 }
 0x4bc   : > { %v1240_v52 = vpack.c.b16 %v1237_v46, %v1237_v46  ;;  %v1241_v34 = vpack.c.b16 %v1238_v38, %v1238_v38 }
 0x4bd   : > { %v1242_v42 = vpack.c.b16 %v1239_v48, %v1239_v48 }
 0x4be   : > { %v1248_v28 = vsel %vm1106_vm15, %v1240_v52, 0  ;;  %v1251_v12 = vsel %vm1106_vm15, %v1241_v34, 0 }
 0x4bf   : > { %1263 = vmatpush.bf16.msra.mxu1 %v1248_v28  ;;  %1276 = vmatpush.bf16.msrb.mxu3 %v1251_v12  ;;  %v1254_v8 = vsel %vm1106_vm15, %v1242_v42, 0 }
 0x4c0   : > { %1289 = vmatpush.bf16.msra.mxu0 %v1254_v8 }
 0x4c2   : > { %1581 = vmatmul.msk.bf16.vlgmr.msra.gmra.mxu1 %vm1243_vm7, %v1228_v18  ;;  %1582 = vmatmul.msk.bf16.vlgmr.msrb.gmra.mxu3 %vm1243_vm7, %v1228_v18 }
 0x4c3   : > { %1583 = vmatmul.msk.bf16.vlgmr.msra.gmra.mxu0 %vm1243_vm7, %v1228_v18 }
 0x53f   : > { %v1265_v44 = vpop.f32.mrf.mxu1 }
 0x540   : > { %v1291_v45 = vpop.f32.mrf.mxu0  ;;  %v1266_v57 = vadd.f32 %v1265_v44, %v1233_v50 }
 0x541   : > { %v1292_v51 = vadd.f32 %v1291_v45, %v1233_v50 }
 0x543   : > { %v1299_v3 = vrot.slane %v1292_v51, 4 }
 0x545   : > { %v1278_v53 = vpop.f32.mrf.mxu3 }
 0x546   : > { %v1279_v56 = vadd.f32 %v1278_v53, %v1233_v50 }
 0x547   : > { %v1267_v22 = vpop.f32.mrf.mxu1 }
 0x548   : > { %v1298_v58 = vrot.slane %v1279_v56, 6  ;;  %v1293_v59 = vpop.f32.mrf.mxu0 }
 0x54a   : > { %v1301_v10 = vsel %vm1300_vm8, %v1266_v57, %v1298_v58 }
 0x54b   : > { %v1302_v0 = vsel %vm1106_vm15, %v1301_v10, %v1299_v3 }
 0x54c   : > { %1304 = vst [vmem:[%s653_s28] sm:$0x3f] %v1302_v0 }
 0x54d   : > { %v1280_v60 = vpop.f32.mrf.mxu3 }
 0x54e PF: > { %s25_s27 = sadd.s32 1, %s1839_s27   ;;  %s2434_s25 = smov %s1835_s26 }
 0x54f   : > { %p22_p8 = scmp.ge.s32.totalorder %s25_s27, 4   ;;  %s2435_s26 = smov %s2437_s29 }
 0x551   :  { %24 = sbr.rel (!%p22_p8) target bundleno = 2 (0x2), region = 142 }
 0x556   :  { %1354 = vsyncpa [#allocation3], 1 }
 0x557   :  { %1356 = vsyncpa [#allocation3 + $0x1], 1 }

// kernel: unet_cms_forward.23
= control target key start
LH: loop header
LB: loop body
LE: loop exit
PB: predicated region body
PF: predicated region fallthrough
CT: control target
= control target key end

     0   :  { %s3060_s0 = inlined_call_operand.vmem [shape: bf16[2,8,384], index: 0, kind: input, shape index: {}]   ;;  %s3061_s1 = inlined_call_operand.vmem [shape: bf16[3,8,72], index: 1, kind: input, shape index: {}]   ;;  %s3062_s2 = inlined_call_operand.vmem [shape: f32[3,8,1], index: 2, kind: input, shape index: {}]   ;;  %s3063_s3 = inlined_call_operand.vmem [shape: f32[3,8,1], index: 3, kind: input, shape index: {}]   ;;  %s3064_s4 = inlined_call_operand.vmem [shape: bf16[3,8,72], index: 4, kind: input, shape index: {}]   ;;  %s3065_s5 = inlined_call_operand.vmem [shape: f32[3,8,1], index: 5, kind: input, shape index: {}]   ;;  %s3066_s6 = inlined_call_operand.vmem [shape: f32[3,8,1], index: 6, kind: input, shape index: {}]   ;;  %s3067_s7 = inlined_call_operand.vmem [shape: bf16[3,8,72], index: 7, kind: input, shape index: {}]   ;;  %s3068_s8 = inlined_call_operand.vmem [shape: f32[3,8,1], index: 8, kind: input, shape index: {}]   ;;  %s3069_s9 = inlined_call_operand.vmem [shape: f32[3,8,1], index: 9, kind: input, shape index: {}]   ;;  %s3070_s10 = inlined_call_operand.vmem [shape: bf16[3,8,72], index: 10, kind: input, shape index: {}]   ;;  %s3071_s11 = inlined_call_operand.vmem [shape: f32[3,8,1], index: 11, kind: input, shape index: {}]   ;;  %s3072_s12 = inlined_call_operand.vmem [shape: f32[3,8,1], index: 12, kind: input, shape index: {}]   ;;  %s3073_s13 = inlined_call_operand.vmem [shape: f32[3,4], index: 13, kind: input, shape index: {}]   ;;  %s3074_s14 = inlined_call_operand.vmem [shape: bf16[3,4,8], index: 14, kind: input, shape index: {}]   ;;  %s3075_s15 = inlined_call_operand.vmem [shape: f32[3,4,1], index: 15, kind: input, shape index: {}]   ;;  %s3076_s16 = inlined_call_operand.vmem [shape: f32[1,384], index: 16, kind: input, shape index: {}]   ;;  %s3077_s17 = inlined_call_operand.vmem [shape: f32[6,4,384], index: 17, kind: output, shape index: {}]  }
   0x1   :  { %3097 = sst [smem:[#allocation10_spill]] %s3060_s0 }
   0x2   :  { %3098 = sst [smem:[#allocation11_spill]] %s3061_s1 }
   0x3   :  { %3099 = sst [smem:[#allocation12_spill]] %s3062_s2 }
   0x4   :  { %3100 = sst [smem:[#allocation13_spill]] %s3063_s3 }
   0x5   :  { %3101 = sst [smem:[#allocation14_spill]] %s3073_s13 }
   0x6   :  { %3102 = sst [smem:[#allocation15_spill]] %s3076_s16 }
   0x7   :  { %3103 = sst [smem:[#allocation16_spill]] %s3077_s17 }
   0x8   :  { %22 = vsyncpa [#allocation3], 0  ;;  %s2493_s24 = smov 0   ;;  %s2495_s25 = smov 0  }
   0x9   :  { %s2497_s26 = smov 0   ;;  %s2499_s27 = smov 0  }
   0xa   :  { %s2501_s28 = smov 0  }
   0xb LB: > { %3104 = sst [smem:[#allocation5_spill]] %s2383_s26  ;;  %s2045_s29 = sadd.s32 4294967295, %s2391_s28   ;;  %s2391_s28 = sphi %s2501_s28, %s28_s28   ;;  %s2387_s27 = sphi %s2499_s27, %s3128_s27   ;;  %s2383_s26 = sphi %s2497_s26, %s3127_s26   ;;  %s2379_s25 = sphi %s2495_s25, %s3126_s25   ;;  %s2375_s24 = sphi %s2493_s24, %s3125_s24  }
   0xc   : > { %3105 = sst [smem:[#allocation6_spill]] %s2387_s27  ;;  %s37_s0 = sadd.s32 1, %s2383_s26 }
   0xd   : > { %3106 = sst [smem:[#allocation7_spill]] %s2391_s28  ;;  %p38_p0 = scmp.ge.s32.totalorder %s37_s0, 3 }
   0xe   : > { %s40_s30 = sadd.s32 1, %s2387_s27  ;;  %p2049_p1 = scmp.ge.s32.totalorder %s2391_s28, 1 }
   0xf   : > { %p507_p2 = scmp.lt.s32.totalorder %s2391_s28, 7  ;;  %s3130_s0 = smov (%p38_p0, %s37_s0), 0 }
  0x10   : > { %3107 = sst [smem:[#allocation8_spill]] %s3130_s0  ;;  %s3132_s30 = smov (!%p38_p0, %s40_s30), %s2387_s27 }
  0x11   : > { %p508_p3 = pnand %p2049_p1, %p507_p2  ;;  %p42_p4 = scmp.ge.s32.totalorder %s3132_s30, 2 }
  0x12   : > { %p2099_p5 = scmp.eq.s32.totalorder %s2045_s29, 0  ;;  %s3108_s13 = sld [smem:[#allocation14_spill]] }
  0x13   : > { %p2095_p6 = pneg %p508_p3  ;;  %s3134_s30 = smov (%p42_p4, %s3132_s30), 0 }
  0x14   : > { %3109 = sst [smem:[#allocation9_spill]] %s3134_s30  ;;  %s2393_s20 = smov [#allocation2]  }
  0x15   : > { %p2096_p7 = pnand %p2099_p5, %p2095_p6  ;;  %641 = sbr.rel (%p508_p3) target bundleno = 2554 (0x9fa), region = 88 }
  0x18   : > { %s519_s1 = sshll.u32 %s3108_s13, 4  ;;  %s520_s1 = int_to_ptr.vmem [resolvable:$true] %s519_s1 }
  0x19   : > { %2098 = dma.vmem_to_smem (!%p2096_p7), %s520_s1, 64, %s2393_s20, [#allocation3]  }
  0x1a   : > { %2370 = dma.done.wait (%p2099_p5), [#allocation3], 64  }
  0x1b   : > { %2372 = vsyncadd (%p2099_p5), [#allocation3], 4294967232 }
  0x1c   : > { %648 = sfence }
  0x1d   : > { %p753_p8 = scmp.lt.s32.totalorder %s2379_s25, 1  ;;  %s3110_s0 = sld [smem:[#allocation10_spill]]  ;;  %v836_v8 = vlaneseq  ;;  %vm932_vm1 = vcmask 1043456   ;;  %vm928_vm9 = vcmask 588800  }
  0x1e   : > { %s3084_s19 = smov 111   ;;  %s3092_s1 = smov 109  }
  0x1f   : > { %s754_s21 = scalar_select %p753_p8, %s2379_s25, 1  ;;  %v2572_v9 = vand.u32 127, %v836_v8 }
  0x20   : > { %s3078_s20 = smov 127   ;;  %s3080_s23 = smov 19  }
  0x21   : > { %s2089_s22 = smul.u32 12, %s754_s21  ;;  %s3086_s21 = smov 17   ;;  %vm908_vm0 = vcmp.lt.s32.totalorder %v2572_v9, 109  ;;  %vm888_vm2 = vcmp.lt.s32.totalorder %v2572_v9, 111  ;;  %vm898_vm3 = vcmp.lt.s32.totalorder %v2572_v9, 110  ;;  %vm878_vm4 = vcmp.lt.s32.totalorder %v2572_v9, 127 }
  0x22   : > { %s3082_s29 = smov 18   ;;  %vm868_vm5 = vcmp.lt.s32.totalorder %v2572_v9, 1  ;;  %vm858_vm6 = vcmp.lt.s32.totalorder %v2572_v9, 17  ;;  %p758_p9 = scmp.lt.s32.totalorder %s2375_s24, 2  ;;  %vm848_vm7 = vcmp.lt.s32.totalorder %v2572_v9, 18  ;;  %vm838_vm8 = vcmp.lt.s32.totalorder %v2572_v9, 19 }
  0x23   : > { %s757_s18 = scalar_lea.vmem %s3110_s0, %s2089_s22  ;;  %s3090_s0 = smov 110  }
  0x24   : > { %v825_v0 = vld [vmem:[%s757_s18] sm:$0xff]  ;;  %v826_v1 = vld [vmem:[%s757_s18 + $0x8] sm:$0xf]  ;;  %s3088_s22 = smov 1   ;;  %s3112_s16 = sld [smem:[#allocation15_spill]] }
  0x25   : > { %v2536_v2 = vunpack.c.l.bf16 %v825_v0  ;;  %v2538_v3 = vunpack.c.l.bf16 %v826_v1  ;;  %v2545_v5 = vunpack.c.h.bf16 %v825_v0  ;;  %s2618_s18 = scalar_select %p758_p9, %s2375_s24, 2 }
  0x26   : > { %s3113_s2 = sld [smem:[#allocation12_spill]]  ;;  %s3122_s13 = smov 127  }
  0x27   : > { %v2156_v4 = vpack.i.bf16 %v2538_v3, %v2536_v2  ;;  %v2171_v6 = vpack.i.bf16 %v2538_v3, %v2545_v5  ;;  %s3114_s3 = sld [smem:[#allocation13_spill]] }
  0x29   : > { %2157 = vrot.lane.b32.xlu1 %v2156_v4, %s3084_s19  ;;  %2152 = vrot.lane.b32.xlu0 %v2156_v4, %s3092_s1 }
  0x2a   : > { %2167 = vrot.lane.b32.xlu2 %v2156_v4, %s3078_s20 }
  0x31   : > { %2162 = vrot.lane.b32.xlu1 %v2156_v4, %s3090_s0  ;;  %904 = vrot.lane.b32.xlu0 %v2545_v5, %s3092_s1 }
  0x32   : > { %884 = vrot.lane.b32.xlu2 %v2545_v5, %s3084_s19  ;;  %s3111_s19 = sld [smem:[#allocation11_spill]] }
  0x39   : > { %2172 = vrot.lane.b32.xlu1 %v2171_v6, %s3086_s21  ;;  %894 = vrot.lane.b32.xlu0 %v2545_v5, %s3090_s0 }
  0x3a   : > { %2177 = vrot.lane.b32.xlu2 %v2171_v6, %s3088_s22 }
  0x41   : > { %2182 = vrot.lane.b32.xlu1 %v2171_v6, %s3080_s23  ;;  %874 = vrot.lane.b32.xlu0 %v2545_v5, %s3078_s20  ;;  %s2625_s20 = sshll.u32 %s2618_s18, 2 }
  0x42   : > { %2187 = vrot.lane.b32.xlu2 %v2171_v6, %s3082_s29  ;;  %s773_s26 = scalar_lea.vmem %s3064_s4, %s2625_s20 }
  0x49   : > { %862 = vrot.lane.b32.xlu1 %v2536_v2, %s3088_s22  ;;  %852 = vrot.lane.b32.xlu0 %v2536_v2, %s3086_s21  ;;  %s761_s21 = scalar_lea.vmem %s3111_s19, %s2625_s20  ;;  %s3115_s22 = smov 109  }
  0x4a   : > { %830 = vrot.lane.b32.xlu2 %v2536_v2, %s3080_s23  ;;  %v927_v4 = vld [vmem:[%s761_s21] sm:$0xf]  ;;  %s2671_s23 = sshll.u32 %s2618_s18, 3  ;;  %s3117_s19 = smov 1  }
  0x4b   : > { %s765_s21 = scalar_lea.vmem %s3113_s2, %s2671_s23  ;;  %s769_s1 = scalar_lea.vmem %s3114_s3, %s2671_s23 }
  0x4c   : > { %s3120_s2 = smov 18   ;;  %s3121_s3 = smov 19  }
  0x4d   : > { %s777_s27 = scalar_lea.vmem %s3065_s5, %s2671_s23  ;;  %s781_s17 = scalar_lea.vmem %s3066_s6, %s2671_s23 }
  0x51   : > { %842 = vrot.lane.b32.xlu0 %v2536_v2, %s3082_s29  ;;  %s3116_s29 = smov 110  }
  0x84   : > { %v2570_v7 = vpop.permute.xlu2 %2167 }
  0x85   : > { %v2170_v18 = vunpack.i.h.bf16 %v2570_v7  ;;  %v2169_v19 = vunpack.i.l.bf16 %v2570_v7 }
  0x87   : > { %v881_v34 = vsel %vm878_vm4, %v2170_v18, %v2169_v19 }
  0x88   : > { %v920_v39 = vpack.c.bf16 %v881_v34, %v2538_v3 }
  0x8c   : > { %v885_v10 = vpop.permute.xlu2 %884 }
  0x94   : > { %v2587_v28 = vpop.permute.xlu2 %2177 }
  0x95   : > { %v2180_v31 = vunpack.i.h.bf16 %v2587_v28  ;;  %v2179_v37 = vunpack.i.l.bf16 %v2587_v28 }
  0x97   : > { %v869_v44 = vsel %vm868_vm5, %v2179_v37, %v2180_v31 }
  0x9b   : > { %v2158_v11 = vpop.permute.xlu1 %2157  ;;  %v2153_v12 = vpop.permute.xlu0 %2152 }
  0x9c   : > { %v2155_v13 = vunpack.i.h.bf16 %v2153_v12  ;;  %v2154_v14 = vunpack.i.l.bf16 %v2153_v12  ;;  %v2160_v20 = vunpack.i.h.bf16 %v2158_v11  ;;  %v2159_v21 = vunpack.i.l.bf16 %v2158_v11  ;;  %v2188_v51 = vpop.permute.xlu2 %2187 }
  0x9d   : > { %v2190_v53 = vunpack.i.h.bf16 %v2188_v51  ;;  %v2189_v54 = vunpack.i.l.bf16 %v2188_v51 }
  0x9e   : > { %v911_v15 = vsel %vm908_vm0, %v2155_v13, %v2154_v14  ;;  %v891_v32 = vsel %vm888_vm2, %v2160_v20, %v2159_v21  ;;  %v889_v40 = vsel %vm888_vm2, %v885_v10, %v2160_v20  ;;  %v890_v41 = vsel %vm888_vm2, %v2159_v21, %v885_v10 }
  0x9f   : > { %v926_v16 = vpack.c.bf16 %v911_v15, %v911_v15  ;;  %v849_v58 = vsel %vm848_vm7, %v2189_v54, %v2190_v53 }
  0xa1   : > { %v940_v17 = vsel %vm932_vm1, %v926_v16, 0 }
  0xa2   : > { %971 = vmatpush.bf16.msra.mxu2 %v940_v17 }
  0xa3   : > { %v2163_v22 = vpop.permute.xlu1 %2162  ;;  %v905_v23 = vpop.permute.xlu0 %904 }
  0xa4   : > { %v2165_v24 = vunpack.i.h.bf16 %v2163_v22  ;;  %v2164_v25 = vunpack.i.l.bf16 %v2163_v22  ;;  %v909_v26 = vsel %vm908_vm0, %v905_v23, %v2155_v13  ;;  %v910_v27 = vsel %vm908_vm0, %v2154_v14, %v905_v23  ;;  %v831_v13 = vpop.permute.xlu2 %830  ;;  %v824_v22 = vld [vmem:[%s3112_s16] sm:$0x7] }
  0xa5   : > { %v924_v29 = vpack.c.bf16 %v910_v27, %v910_v27  ;;  %v925_v30 = vpack.c.bf16 %v909_v26, %v909_v26  ;;  %v2661_v23 = vperm.slane %v824_v22, 2 }
  0xa6   : > { %v901_v33 = vsel %vm898_vm3, %v2165_v24, %v2164_v25 }
  0xa7   : > { %v934_v35 = vsel %vm932_vm1, %v924_v29, 0  ;;  %v937_v36 = vsel %vm932_vm1, %v925_v30, 0  ;;  %v923_v38 = vpack.c.bf16 %v901_v33, %v891_v32 }
  0xa8   : > { %945 = vmatpush.bf16.msra.mxu0 %v934_v35  ;;  %958 = vmatpush.bf16.msra.mxu1 %v937_v36  ;;  %v1024_v36 = vld [vmem:[%s765_s21] sm:$0xff]  ;;  %s3118_s21 = smov 17  }
  0xa9   : > { %972 = vmatpush.bf16.msra.mxu2 %v923_v38  ;;  %v1033_v38 = vld [vmem:[%s769_s1] sm:$0xff]  ;;  %s2685_s1 = sshll.u32 %s2375_s24, 7 }
  0xaa   : > { %s1043_s0 = sld [smem:[#allocation2 + %s2685_s1]] }
  0xab   : > { %v2173_v42 = vpop.permute.xlu1 %2172  ;;  %v895_v43 = vpop.permute.xlu0 %894 }
  0xac   : > { %v2175_v45 = vunpack.i.h.bf16 %v2173_v42  ;;  %v2174_v46 = vunpack.i.l.bf16 %v2173_v42  ;;  %v899_v47 = vsel %vm898_vm3, %v895_v43, %v2165_v24  ;;  %v900_v48 = vsel %vm898_vm3, %v2164_v25, %v895_v43 }
  0xad   : > { %973 = vmatpush.bf16.msra.mxu2 %v920_v39  ;;  %v921_v49 = vpack.c.bf16 %v900_v48, %v890_v41  ;;  %v922_v50 = vpack.c.bf16 %v899_v47, %v889_v40  ;;  %v2663_v24 = vperm.slane %v824_v22, 0  ;;  %v2665_v25 = vperm.slane %v824_v22, 1  ;;  %v1232_v22 = vld [vmem:[%s777_s27] sm:$0xff]  ;;  %s1250_s27 = sadd.s32 1, %s2685_s1 }
  0xae   : > { %v859_v52 = vsel %vm858_vm6, %v2174_v46, %v2175_v45  ;;  %s1251_s28 = sld [smem:[#allocation2 + %s1250_s27]] }
  0xaf   : > { %946 = vmatpush.bf16.msra.mxu0 %v921_v49  ;;  %959 = vmatpush.bf16.msra.mxu1 %v922_v50  ;;  %v917_v55 = vpack.c.bf16 %v869_v44, %v859_v52 }
  0xb1   : > { %974 = vmatpush.bf16.msra.mxu2 %v917_v55 }
  0xb3   : > { %v2183_v56 = vpop.permute.xlu1 %2182  ;;  %v875_v57 = vpop.permute.xlu0 %874 }
  0xb4   : > { %v2185_v59 = vunpack.i.h.bf16 %v2183_v56  ;;  %v2184_v60 = vunpack.i.l.bf16 %v2183_v56  ;;  %v879_v61 = vsel %vm878_vm4, %v875_v57, %v2170_v18  ;;  %v880_v62 = vsel %vm878_vm4, %v2169_v19, %v875_v57 }
  0xb5   : > { %v918_v63 = vpack.c.bf16 %v880_v62, %v2536_v2  ;;  %v919_v0 = vpack.c.bf16 %v879_v61, %v2545_v5 }
  0xb6   : > { %v839_v1 = vsel %vm838_vm8, %v2184_v60, %v2185_v59  ;;  %v840_v15 = vsel %vm838_vm8, %v831_v13, %v2184_v60  ;;  %v841_v16 = vsel %vm838_vm8, %v2185_v59, %v831_v13 }
  0xb7   : > { %947 = vmatpush.bf16.msra.mxu0 %v918_v63  ;;  %960 = vmatpush.bf16.msra.mxu1 %v919_v0  ;;  %v914_v3 = vpack.c.bf16 %v849_v58, %v839_v1 }
  0xb9   : > { %975 = vmatpush.bf16.msra.mxu2 %v914_v3 }
  0xbb   : > { %v863_v6 = vpop.permute.xlu1 %862  ;;  %v853_v7 = vpop.permute.xlu0 %852 }
  0xbc   : > { %v870_v2 = vsel %vm868_vm5, %v863_v6, %v2179_v37  ;;  %v871_v5 = vsel %vm868_vm5, %v2180_v31, %v863_v6  ;;  %v860_v8 = vsel %vm858_vm6, %v853_v7, %v2174_v46  ;;  %v861_v10 = vsel %vm858_vm6, %v2175_v45, %v853_v7  ;;  %2073 = vmatmul.msk.bf16.vlgmr.msra.gmra.mxu2 %vm928_vm9, %v927_v4 }
  0xbd   : > { %v915_v11 = vpack.c.bf16 %v871_v5, %v861_v10  ;;  %v916_v12 = vpack.c.bf16 %v870_v2, %v860_v8  ;;  %v2402_v37 = vmov 0   ;;  %v1047_v7 = vstv %s1043_s0  ;;  %s3119_s0 = smov 111  }
  0xbe   : > { %2191 = vset.pattern.permute.xlu0 %v2402_v37  ;;  %2272 = vset.pattern.permute.xlu1 %v2402_v37 }
  0xbf   : > { %948 = vmatpush.bf16.msra.mxu0 %v915_v11  ;;  %961 = vmatpush.bf16.msra.mxu1 %v916_v12 }
  0xc0   : > { %1027 = vperm.xlu0 %2191, %v1024_v36   ;;  %2313 = vset.pattern.permute.xlu2 %v2402_v37 }
  0xc3   : > { %v843_v14 = vpop.permute.xlu0 %842 }
  0xc4   : > { %v850_v17 = vsel %vm848_vm7, %v843_v14, %v2189_v54  ;;  %v851_v18 = vsel %vm848_vm7, %v2190_v53, %v843_v14 }
  0xc5   : > { %v912_v19 = vpack.c.bf16 %v851_v18, %v841_v16  ;;  %v913_v20 = vpack.c.bf16 %v850_v17, %v840_v15 }
  0xc7   : > { %949 = vmatpush.bf16.msra.mxu0 %v912_v19  ;;  %962 = vmatpush.bf16.msra.mxu1 %v913_v20 }
  0xc8   : > { %1036 = vperm.xlu0 %2191, %v1033_v38  }
  0xca   : > { %2071 = vmatmul.msk.bf16.vlgmr.msra.gmra.mxu0 %vm928_vm9, %v927_v4  ;;  %2072 = vmatmul.msk.bf16.vlgmr.msra.gmra.mxu1 %vm928_vm9, %v927_v4 }
 0x132   : > { %v1028_v59 = vpop.permute.xlu0 %1027 }
 0x13a   : > { %v1037_v2 = vpop.permute.xlu0 %1036 }
 0x13f   : > { %v977_v21 = vpop.f32.mrf.mxu2 }
 0x140   : > { %v990_v28 = vmul.f32 %v2661_v23, %v977_v21 }
 0x147   : > { %v951_v26 = vpop.f32.mrf.mxu0  ;;  %v964_v27 = vpop.f32.mrf.mxu1 }
 0x148   : > { %v988_v29 = vmul.f32 %v2663_v24, %v951_v26  ;;  %v989_v30 = vmul.f32 %v2665_v25, %v964_v27  ;;  %v979_v31 = vpop.f32.mrf.mxu2 }
 0x14a   : > { %v991_v32 = vadd.f32 %v989_v30, %v988_v29 }
 0x14c   : > { %v992_v33 = vadd.f32 %v991_v32, %v990_v28 }
 0x14e   : > { %993 = vadd.xlane.f32.xlu1 %v992_v33 }
 0x14f   : > { %v953_v34 = vpop.f32.mrf.mxu0  ;;  %v966_v35 = vpop.f32.mrf.mxu1 }
 0x1c1   : > { %v994_v39 = vpop.xlane.xlu1 %993 }
 0x1c2   : > { %v995_v40 = vmul.f32 0.00390625, %v994_v39 }
 0x1c4   : > { %v996_v41 = vsub.f32 %v951_v26, %v995_v40  ;;  %v997_v42 = vsub.f32 %v964_v27, %v995_v40  ;;  %v998_v43 = vsub.f32 %v977_v21, %v995_v40  ;;  %v1241_v26 = vld [vmem:[%s781_s17] sm:$0xff]  ;;  %s785_s17 = scalar_lea.vmem %s3067_s7, %s2625_s20 }
 0x1c6   : > { %v999_v44 = vmul.f32 %v996_v41, %v2663_v24  ;;  %v1000_v45 = vmul.f32 %v997_v42, %v2665_v25  ;;  %v1001_v46 = vmul.f32 %v998_v43, %v2661_v23 }
 0x1c8   : > { %v1002_v47 = vmul.f32 %v999_v44, %v999_v44  ;;  %v1003_v48 = vmul.f32 %v1000_v45, %v1000_v45  ;;  %v1004_v49 = vmul.f32 %v1001_v46, %v1001_v46 }
 0x1ca   : > { %v1005_v50 = vadd.f32 %v1003_v48, %v1002_v47 }
 0x1cc   : > { %v1006_v51 = vadd.f32 %v1005_v50, %v1004_v49 }
 0x1ce   : > { %1007 = vadd.xlane.f32.xlu2 %v1006_v51 }
 0x241   : > { %v1008_v52 = vpop.xlane.xlu2 %1007 }
 0x242   : > { %v1009_v53 = vmul.f32 0.00390625, %v1008_v52 }
 0x244   : > { %v1010_v54 = vadd.f32 1e-05, %v1009_v53 }
 0x246   : > { %2314 = vrsqrt.f32 %v1010_v54  ;;  %vm1017_vm11 = vweird.f32 %v1010_v54 }
 0x24c   : > { %v2315_v55 = vpop.eup %2314 }
 0x24d   : > { %v1012_v56 = vmul.f32 %v2315_v55, %v1010_v54  ;;  %vm1018_vm10 = vweird.f32 %v2315_v55 }
 0x24e   : > { %vm1019_vm12 = vmor %vm1017_vm11, %vm1018_vm10 }
 0x24f   : > { %v1013_v57 = vmul.f32 %v2315_v55, %v1012_v56 }
 0x251   : > { %v1014_v58 = vmul.f32 0.5, %v1013_v57 }
 0x253   : > { %v1015_v60 = vsub.f32 1.5, %v1014_v58 }
 0x255   : > { %v1016_v61 = vmul.f32 %v2315_v55, %v1015_v60 }
 0x257   : > { %v1020_v62 = vsel %vm1019_vm12, %v2315_v55, %v1016_v61 }
 0x258   : > { %v1021_v63 = vmul.f32 %v1020_v62, %v996_v41  ;;  %v1022_v0 = vmul.f32 %v1020_v62, %v997_v42  ;;  %v1023_v1 = vmul.f32 %v1020_v62, %v998_v43 }
 0x25a   : > { %v1030_v3 = vmul.f32 %v1028_v59, %v1021_v63  ;;  %v1031_v4 = vmul.f32 %v1028_v59, %v1022_v0  ;;  %v1032_v6 = vmul.f32 %v1028_v59, %v1023_v1 }
 0x25c   : > { %v1039_v5 = vadd.f32 %v1037_v2, %v1030_v3  ;;  %v1040_v8 = vadd.f32 %v1037_v2, %v1031_v4  ;;  %v1041_v10 = vadd.f32 %v1037_v2, %v1032_v6 }
 0x25e   : > { %vm1044_vm13 = vcmp.ge.f32.partialorder %v1039_v5, 0.0  ;;  %vm1045_vm14 = vcmp.ge.f32.partialorder %v1040_v8, 0.0  ;;  %vm1046_vm15 = vcmp.ge.f32.partialorder %v1041_v10, 0.0  ;;  %v1048_v11 = vmul.f32 %v1047_v7, %v1039_v5 }
 0x25f   : > { %v1049_v12 = vmul.f32 %v1047_v7, %v1040_v8  ;;  %v1050_v13 = vmul.f32 %v1047_v7, %v1041_v10 }
 0x260   : > { %v1051_v14 = vsel %vm1044_vm13, %v1039_v5, %v1048_v11 }
 0x261   : > { %v1052_v15 = vsel %vm1045_vm14, %v1040_v8, %v1049_v12  ;;  %v1053_v16 = vsel %vm1046_vm15, %v1041_v10, %v1050_v13  ;;  %v2689_v17 = vmul.f32 %v1051_v14, %v2663_v24  ;;  %v1144_v10 = vld [vmem:[%s773_s26] sm:$0xf]  ;;  %s1458_s26 = sadd.s32 2, %s2685_s1 }
 0x262   : > { %v2692_v18 = vmul.f32 %v1052_v15, %v2665_v25  ;;  %v2695_v19 = vmul.f32 %v1053_v16, %v2661_v23  ;;  %s1459_s27 = sld [smem:[#allocation2 + %s1458_s26]] }
 0x264   : > { %1124 = vrot.lane.b32.xlu1 %v2695_v19, %s3115_s22  ;;  %v2202_v20 = vpack.i.bf16 %v2692_v18, %v2689_v17  ;;  %v2217_v21 = vpack.i.bf16 %v2695_v19, %v2689_v17 }
 0x266   : > { %2203 = vrot.lane.b32.xlu2 %v2202_v20, %s3116_s29  ;;  %2193 = vrot.lane.b32.xlu0 %v2202_v20, %s3115_s22 }
 0x26c   : > { %2218 = vrot.lane.b32.xlu1 %v2217_v21, %s3117_s19 }
 0x26e   : > { %2213 = vrot.lane.b32.xlu2 %v2217_v21, %s3118_s21  ;;  %2198 = vrot.lane.b32.xlu0 %v2202_v20, %s3119_s0 }
 0x274   : > { %2228 = vrot.lane.b32.xlu1 %v2217_v21, %s3120_s2 }
 0x276   : > { %2223 = vrot.lane.b32.xlu2 %v2217_v21, %s3121_s3  ;;  %2208 = vrot.lane.b32.xlu0 %v2202_v20, %s3122_s13 }
 0x27c   : > { %1059 = vrot.lane.b32.xlu1 %v2692_v18, %s3121_s3 }
 0x27e   : > { %1086 = vrot.lane.b32.xlu2 %v2692_v18, %s3117_s19  ;;  %1106 = vrot.lane.b32.xlu0 %v2695_v19, %s3119_s0 }
 0x286   : > { %1115 = vrot.lane.b32.xlu0 %v2695_v19, %s3116_s29 }
 0x28e   : > { %1097 = vrot.lane.b32.xlu0 %v2695_v19, %s3122_s13 }
 0x296   : > { %1077 = vrot.lane.b32.xlu0 %v2692_v18, %s3118_s21 }
 0x29e   : > { %1068 = vrot.lane.b32.xlu0 %v2692_v18, %s3120_s2 }
 0x2a6   : > { %1235 = vperm.xlu0 %2191, %v1232_v22  }
 0x2ae   : > { %1244 = vperm.xlu0 %2191, %v1241_v26  }
 0x2c0   : > { %v2204_v28 = vpop.permute.xlu2 %2203 }
 0x2c1   : > { %v2206_v41 = vunpack.i.h.bf16 %v2204_v28  ;;  %v2205_v42 = vunpack.i.l.bf16 %v2204_v28 }
 0x2c3   : > { %v1118_v49 = vsel %vm898_vm3, %v2205_v42, %v2206_v41 }
 0x2c8   : > { %v2214_v47 = vpop.permute.xlu2 %2213 }
 0x2c9   : > { %v2216_v57 = vunpack.i.h.bf16 %v2214_v47  ;;  %v2215_v58 = vunpack.i.l.bf16 %v2214_v47 }
 0x2cb   : > { %v1083_v4 = vsel %vm858_vm6, %v2216_v57, %v2215_v58 }
 0x2d0   : > { %v2224_v60 = vpop.permute.xlu2 %2223 }
 0x2d1   : > { %v2226_v1 = vunpack.i.h.bf16 %v2224_v60  ;;  %v2225_v3 = vunpack.i.l.bf16 %v2224_v60 }
 0x2d3   : > { %v1065_v5 = vsel %vm838_vm8, %v2226_v1, %v2225_v3 }
 0x2d6   : > { %v1125_v27 = vpop.permute.xlu1 %1124 }
 0x2d8   : > { %v2194_v29 = vpop.permute.xlu0 %2193  ;;  %v1087_v28 = vpop.permute.xlu2 %1086 }
 0x2d9   : > { %v2196_v30 = vunpack.i.h.bf16 %v2194_v29  ;;  %v2195_v31 = vunpack.i.l.bf16 %v2194_v29 }
 0x2db   : > { %v1127_v32 = vsel %vm908_vm0, %v2195_v31, %v2196_v30  ;;  %v1126_v33 = vsel %vm908_vm0, %v2196_v30, %v1125_v27  ;;  %v1128_v34 = vsel %vm908_vm0, %v1125_v27, %v2195_v31 }
 0x2dc   : > { %v1141_v35 = vpack.c.bf16 %v1127_v32, %v1127_v32  ;;  %v1142_v36 = vpack.c.bf16 %v1126_v33, %v1126_v33  ;;  %v1143_v37 = vpack.c.bf16 %v1128_v34, %v1128_v34 }
 0x2de   : > { %v1149_v38 = vsel %vm932_vm1, %v1141_v35, 0  ;;  %v1152_v39 = vsel %vm932_vm1, %v1142_v36, 0  ;;  %v1155_v40 = vsel %vm932_vm1, %v1143_v37, 0  ;;  %v2219_v43 = vpop.permute.xlu1 %2218 }
 0x2df   : > { %1160 = vmatpush.bf16.msra.mxu3 %v1149_v38  ;;  %1173 = vmatpush.bf16.msrb.mxu0 %v1152_v39  ;;  %v2221_v52 = vunpack.i.h.bf16 %v2219_v43  ;;  %v2220_v53 = vunpack.i.l.bf16 %v2219_v43 }
 0x2e0   : > { %1186 = vmatpush.bf16.msrb.mxu1 %v1155_v40  ;;  %v2199_v44 = vpop.permute.xlu0 %2198 }
 0x2e1   : > { %v2201_v45 = vunpack.i.h.bf16 %v2199_v44  ;;  %v2200_v46 = vunpack.i.l.bf16 %v2199_v44  ;;  %v1092_v0 = vsel %vm868_vm5, %v2221_v52, %v2220_v53  ;;  %v1091_v32 = vsel %vm868_vm5, %v2220_v53, %v1087_v28 }
 0x2e2   : > { %v1132_v7 = vpack.c.bf16 %v1092_v0, %v1083_v4  ;;  %v1090_v33 = vsel %vm868_vm5, %v1087_v28, %v2221_v52 }
 0x2e3   : > { %v1109_v48 = vsel %vm888_vm2, %v2200_v46, %v2201_v45 }
 0x2e4   : > { %v1138_v50 = vpack.c.bf16 %v1118_v49, %v1109_v48 }
 0x2e6   : > { %1161 = vmatpush.bf16.msra.mxu3 %v1138_v50  ;;  %v2229_v56 = vpop.permute.xlu1 %2228 }
 0x2e7   : > { %v2231_v62 = vunpack.i.h.bf16 %v2229_v56  ;;  %v2230_v63 = vunpack.i.l.bf16 %v2229_v56 }
 0x2e8   : > { %v2209_v51 = vpop.permute.xlu0 %2208 }
 0x2e9   : > { %v2211_v54 = vunpack.i.h.bf16 %v2209_v51  ;;  %v2210_v55 = vunpack.i.l.bf16 %v2209_v51  ;;  %v1074_v2 = vsel %vm848_vm7, %v2231_v62, %v2230_v63 }
 0x2ea   : > { %v1129_v8 = vpack.c.bf16 %v1074_v2, %v1065_v5 }
 0x2eb   : > { %v1100_v59 = vsel %vm878_vm4, %v2210_v55, %v2211_v54 }
 0x2ec   : > { %v1135_v61 = vpack.c.bf16 %v1100_v59, %v2689_v17 }
 0x2ee   : > { %1162 = vmatpush.bf16.msra.mxu3 %v1135_v61 }
 0x2f0   : > { %v1107_v6 = vpop.permute.xlu0 %1106 }
 0x2f1   : > { %v1108_v12 = vsel %vm888_vm2, %v2201_v45, %v1107_v6  ;;  %v1110_v13 = vsel %vm888_vm2, %v1107_v6, %v2200_v46 }
 0x2f2   : > { %1163 = vmatpush.bf16.msra.mxu3 %v1132_v7 }
 0x2f6   : > { %1164 = vmatpush.bf16.msra.mxu3 %v1129_v8 }
 0x2f8   : > { %v1116_v11 = vpop.permute.xlu0 %1115 }
 0x2f9   : > { %v1117_v14 = vsel %vm898_vm3, %v2206_v41, %v1116_v11  ;;  %v1119_v15 = vsel %vm898_vm3, %v1116_v11, %v2205_v42  ;;  %2075 = vmatmul.msk.bf16.vlgmr.msra.gmra.mxu3 %vm928_vm9, %v1144_v10 }
 0x2fa   : > { %v1139_v16 = vpack.c.bf16 %v1117_v14, %v1108_v12  ;;  %v1140_v17 = vpack.c.bf16 %v1119_v15, %v1110_v13 }
 0x2fc   : > { %1174 = vmatpush.bf16.msrb.mxu0 %v1139_v16  ;;  %1187 = vmatpush.bf16.msrb.mxu1 %v1140_v17 }
 0x300   : > { %v1098_v20 = vpop.permute.xlu0 %1097 }
 0x301   : > { %v1099_v21 = vsel %vm878_vm4, %v2211_v54, %v1098_v20  ;;  %v1101_v22 = vsel %vm878_vm4, %v1098_v20, %v2210_v55 }
 0x302   : > { %v1136_v26 = vpack.c.bf16 %v1099_v21, %v2692_v18  ;;  %v1137_v27 = vpack.c.bf16 %v1101_v22, %v2695_v19  ;;  %v1060_v19 = vpop.permute.xlu1 %1059  ;;  %v1255_v22 = vstv %s1251_s28  ;;  %s789_s28 = scalar_lea.vmem %s3068_s8, %s2671_s23 }
 0x303   : > { %v1063_v36 = vsel %vm838_vm8, %v1060_v19, %v2226_v1  ;;  %v1064_v37 = vsel %vm838_vm8, %v2225_v3, %v1060_v19 }
 0x304   : > { %1175 = vmatpush.bf16.msrb.mxu0 %v1136_v26  ;;  %1188 = vmatpush.bf16.msrb.mxu1 %v1137_v27 }
 0x308   : > { %v1078_v29 = vpop.permute.xlu0 %1077 }
 0x309   : > { %v1081_v30 = vsel %vm858_vm6, %v1078_v29, %v2216_v57  ;;  %v1082_v31 = vsel %vm858_vm6, %v2215_v58, %v1078_v29 }
 0x30a   : > { %v1133_v34 = vpack.c.bf16 %v1091_v32, %v1082_v31  ;;  %v1134_v18 = vpack.c.bf16 %v1090_v33, %v1081_v30 }
 0x30c   : > { %1176 = vmatpush.bf16.msrb.mxu0 %v1133_v34  ;;  %1189 = vmatpush.bf16.msrb.mxu1 %v1134_v18 }
 0x310   : > { %v1069_v35 = vpop.permute.xlu0 %1068 }
 0x311   : > { %v1072_v38 = vsel %vm848_vm7, %v1069_v35, %v2231_v62  ;;  %v1073_v39 = vsel %vm848_vm7, %v2230_v63, %v1069_v35 }
 0x312   : > { %v1130_v40 = vpack.c.bf16 %v1073_v39, %v1064_v37  ;;  %v1131_v41 = vpack.c.bf16 %v1072_v38, %v1063_v36 }
 0x314   : > { %1177 = vmatpush.bf16.msrb.mxu0 %v1130_v40  ;;  %1190 = vmatpush.bf16.msrb.mxu1 %v1131_v41 }
 0x317   : > { %2076 = vmatmul.msk.bf16.vlgmr.msrb.gmra.mxu0 %vm928_vm9, %v1144_v10  ;;  %2077 = vmatmul.msk.bf16.vlgmr.msrb.gmra.mxu1 %vm928_vm9, %v1144_v10 }
 0x318   : > { %v1236_v8 = vpop.permute.xlu0 %1235 }
 0x320   : > { %v1245_v26 = vpop.permute.xlu0 %1244 }
 0x37c   : > { %v1166_v42 = vpop.f32.mrf.mxu3 }
 0x37d   : > { %v1196_v44 = vmul.f32 %v1166_v42, %v2663_v24 }
 0x384   : > { %v1168_v43 = vpop.f32.mrf.mxu3 }
 0x394   : > { %v1179_v45 = vpop.f32.mrf.mxu0  ;;  %v1192_v46 = vpop.f32.mrf.mxu1 }
 0x395   : > { %v1197_v47 = vmul.f32 %v1179_v45, %v2665_v25  ;;  %v1198_v48 = vmul.f32 %v1192_v46, %v2661_v23 }
 0x397   : > { %v1199_v49 = vadd.f32 %v1197_v47, %v1196_v44 }
 0x399   : > { %v1200_v50 = vadd.f32 %v1199_v49, %v1198_v48 }
 0x39b   : > { %1201 = vadd.xlane.f32.xlu2 %v1200_v50 }
 0x39c   : > { %v1181_v51 = vpop.f32.mrf.mxu0  ;;  %v1194_v52 = vpop.f32.mrf.mxu1 }
 0x40e   : > { %v1202_v53 = vpop.xlane.xlu2 %1201 }
 0x40f   : > { %v1203_v54 = vmul.f32 0.00390625, %v1202_v53 }
 0x411   : > { %v1204_v55 = vsub.f32 %v1166_v42, %v1203_v54  ;;  %v1205_v56 = vsub.f32 %v1179_v45, %v1203_v54  ;;  %v1206_v57 = vsub.f32 %v1192_v46, %v1203_v54 }
 0x413   : > { %v1207_v58 = vmul.f32 %v1204_v55, %v2663_v24  ;;  %v1208_v59 = vmul.f32 %v1205_v56, %v2665_v25  ;;  %v1209_v60 = vmul.f32 %v1206_v57, %v2661_v23 }
 0x415   : > { %v1210_v61 = vmul.f32 %v1207_v58, %v1207_v58  ;;  %v1211_v62 = vmul.f32 %v1208_v59, %v1208_v59  ;;  %v1212_v63 = vmul.f32 %v1209_v60, %v1209_v60 }
 0x417   : > { %v1213_v0 = vadd.f32 %v1211_v62, %v1210_v61 }
 0x419   : > { %v1214_v1 = vadd.f32 %v1213_v0, %v1212_v63 }
 0x41b   : > { %1215 = vadd.xlane.f32.xlu1 %v1214_v1 }
 0x48e   : > { %v1216_v3 = vpop.xlane.xlu1 %1215 }
 0x48f   : > { %v1217_v4 = vmul.f32 0.00390625, %v1216_v3 }
 0x491   : > { %v1218_v6 = vadd.f32 1e-05, %v1217_v4 }
 0x493   : > { %2316 = vrsqrt.f32 %v1218_v6  ;;  %vm1225_vm11 = vweird.f32 %v1218_v6 }
 0x499   : > { %v2317_v7 = vpop.eup %2316 }
 0x49a   : > { %v1220_v2 = vmul.f32 %v2317_v7, %v1218_v6  ;;  %vm1226_vm10 = vweird.f32 %v2317_v7 }
 0x49b   : > { %vm1227_vm12 = vmor %vm1225_vm11, %vm1226_vm10 }
 0x49c   : > { %v1221_v5 = vmul.f32 %v2317_v7, %v1220_v2 }
 0x49e   : > { %v1222_v10 = vmul.f32 0.5, %v1221_v5 }
 0x4a0   : > { %v1223_v11 = vsub.f32 1.5, %v1222_v10 }
 0x4a2   : > { %v1224_v12 = vmul.f32 %v2317_v7, %v1223_v11 }
 0x4a4   : > { %v1228_v13 = vsel %vm1227_vm12, %v2317_v7, %v1224_v12 }
 0x4a5   : > { %v1229_v14 = vmul.f32 %v1228_v13, %v1204_v55  ;;  %v1230_v15 = vmul.f32 %v1228_v13, %v1205_v56  ;;  %v1231_v16 = vmul.f32 %v1228_v13, %v1206_v57 }
 0x4a7   : > { %v1238_v17 = vmul.f32 %v1236_v8, %v1229_v14  ;;  %v1239_v20 = vmul.f32 %v1236_v8, %v1230_v15  ;;  %v1240_v21 = vmul.f32 %v1236_v8, %v1231_v16 }
 0x4a9   : > { %v1247_v27 = vadd.f32 %v1245_v26, %v1238_v17  ;;  %v1248_v28 = vadd.f32 %v1245_v26, %v1239_v20  ;;  %v1249_v29 = vadd.f32 %v1245_v26, %v1240_v21 }
 0x4ab   : > { %vm1252_vm13 = vcmp.ge.f32.partialorder %v1247_v27, 0.0  ;;  %vm1253_vm14 = vcmp.ge.f32.partialorder %v1248_v28, 0.0  ;;  %vm1254_vm15 = vcmp.ge.f32.partialorder %v1249_v29, 0.0  ;;  %v1256_v30 = vmul.f32 %v1255_v22, %v1247_v27 }
 0x4ac   : > { %v1257_v31 = vmul.f32 %v1255_v22, %v1248_v28  ;;  %v1258_v32 = vmul.f32 %v1255_v22, %v1249_v29 }
 0x4ad   : > { %v1259_v33 = vsel %vm1252_vm13, %v1247_v27, %v1256_v30 }
 0x4ae   : > { %v1260_v34 = vsel %vm1253_vm14, %v1248_v28, %v1257_v31  ;;  %v1261_v18 = vsel %vm1254_vm15, %v1249_v29, %v1258_v32  ;;  %v2802_v19 = vmul.f32 %v1259_v33, %v2663_v24 }
 0x4af   : > { %v2805_v35 = vmul.f32 %v1260_v34, %v2665_v25  ;;  %v2808_v36 = vmul.f32 %v1261_v18, %v2661_v23 }
 0x4b1   : > { %1314 = vrot.lane.b32.xlu2 %v2808_v36, %s3119_s0  ;;  %v2242_v37 = vpack.i.bf16 %v2805_v35, %v2802_v19 }
 0x4b3   : > { %2243 = vrot.lane.b32.xlu1 %v2242_v37, %s3116_s29  ;;  %2233 = vrot.lane.b32.xlu0 %v2242_v37, %s3115_s22 }
 0x4b9   : > { %2253 = vrot.lane.b32.xlu2 %v2242_v37, %s3118_s21 }
 0x4bb   : > { %1287 = vrot.lane.b32.xlu1 %v2808_v36, %s3118_s21  ;;  %1332 = vrot.lane.b32.xlu0 %v2808_v36, %s3115_s22 }
 0x4c1   : > { %1296 = vrot.lane.b32.xlu2 %v2808_v36, %s3117_s19 }
 0x4c3   : > { %2263 = vrot.lane.b32.xlu1 %v2242_v37, %s3121_s3  ;;  %2238 = vrot.lane.b32.xlu0 %v2242_v37, %s3119_s0 }
 0x4c9   : > { %2268 = vrot.lane.b32.xlu2 %v2242_v37, %s3120_s2 }
 0x4cb   : > { %1278 = vrot.lane.b32.xlu1 %v2808_v36, %s3120_s2  ;;  %1323 = vrot.lane.b32.xlu0 %v2808_v36, %s3116_s29 }
 0x4d3   : > { %2248 = vrot.lane.b32.xlu0 %v2242_v37, %s3122_s13 }
 0x4db   : > { %1305 = vrot.lane.b32.xlu0 %v2808_v36, %s3122_s13 }
 0x4e3   : > { %2258 = vrot.lane.b32.xlu0 %v2242_v37, %s3117_s19 }
 0x4eb   : > { %1269 = vrot.lane.b32.xlu0 %v2808_v36, %s3121_s3 }
 0x50b   : > { %v1315_v55 = vpop.permute.xlu2 %1314 }
 0x513   : > { %v2254_v6 = vpop.permute.xlu2 %2253 }
 0x514   : > { %v2256_v21 = vunpack.i.h.bf16 %v2254_v6  ;;  %v2255_v22 = vunpack.i.l.bf16 %v2254_v6 }
 0x516   : > { %v1290_v18 = vsel %vm858_vm6, %v2255_v22, %v2256_v21 }
 0x51b   : > { %v1297_v12 = vpop.permute.xlu2 %1296 }
 0x523   : > { %v2269_v26 = vpop.permute.xlu2 %2268 }
 0x524   : > { %v2271_v32 = vunpack.i.h.bf16 %v2269_v26  ;;  %v2270_v33 = vunpack.i.l.bf16 %v2269_v26 }
 0x525   : > { %v2234_v38 = vpop.permute.xlu0 %2233  ;;  %v2244_v49 = vpop.permute.xlu1 %2243 }
 0x526   : > { %v2236_v39 = vunpack.i.h.bf16 %v2234_v38  ;;  %v2235_v40 = vunpack.i.l.bf16 %v2234_v38  ;;  %v2246_v52 = vunpack.i.h.bf16 %v2244_v49  ;;  %v2245_v53 = vunpack.i.l.bf16 %v2244_v49 }
 0x528   : > { %v1335_v41 = vsel %vm908_vm0, %v2235_v40, %v2236_v39  ;;  %v1326_v59 = vsel %vm898_vm3, %v2245_v53, %v2246_v52 }
 0x529   : > { %v1349_v42 = vpack.c.bf16 %v1335_v41, %v1335_v41 }
 0x52b   : > { %v1357_v43 = vsel %vm932_vm1, %v1349_v42, 0 }
 0x52c   : > { %1368 = vmatpush.bf16.msrb.mxu2 %v1357_v43  ;;  %v1281_v43 = vsel %vm848_vm7, %v2270_v33, %v2271_v32 }
 0x52d   : > { %v1333_v44 = vpop.permute.xlu0 %1332  ;;  %v1288_v8 = vpop.permute.xlu1 %1287 }
 0x52e   : > { %v1334_v45 = vsel %vm908_vm0, %v2236_v39, %v1333_v44  ;;  %v1336_v46 = vsel %vm908_vm0, %v1333_v44, %v2235_v40  ;;  %v1289_v34 = vsel %vm858_vm6, %v2256_v21, %v1288_v8 }
 0x52f   : > { %v1350_v47 = vpack.c.bf16 %v1334_v45, %v1334_v45  ;;  %v1351_v48 = vpack.c.bf16 %v1336_v46, %v1336_v46 }
 0x531   : > { %v1360_v50 = vsel %vm932_vm1, %v1350_v47, 0  ;;  %v1363_v51 = vsel %vm932_vm1, %v1351_v48, 0 }
 0x532   : > { %1381 = vmatpush.bf16.msrb.mxu3 %v1360_v50  ;;  %1394 = vmatpush.bf16.msra.mxu0 %v1363_v51 }
 0x535   : > { %v2239_v54 = vpop.permute.xlu0 %2238  ;;  %v2264_v20 = vpop.permute.xlu1 %2263 }
 0x536   : > { %v2241_v56 = vunpack.i.h.bf16 %v2239_v54  ;;  %v2240_v57 = vunpack.i.l.bf16 %v2239_v54  ;;  %v2266_v28 = vunpack.i.h.bf16 %v2264_v20  ;;  %v2265_v29 = vunpack.i.l.bf16 %v2264_v20 }
 0x538   : > { %v1317_v58 = vsel %vm888_vm2, %v2240_v57, %v2241_v56  ;;  %v1318_v62 = vsel %vm888_vm2, %v1315_v55, %v2240_v57  ;;  %v1316_v1 = vsel %vm888_vm2, %v2241_v56, %v1315_v55  ;;  %v1272_v41 = vsel %vm838_vm8, %v2265_v29, %v2266_v28 }
 0x539   : > { %v1346_v60 = vpack.c.bf16 %v1326_v59, %v1317_v58  ;;  %v1338_v45 = vpack.c.bf16 %v1281_v43, %v1272_v41 }
 0x53b   : > { %1369 = vmatpush.bf16.msrb.mxu2 %v1346_v60 }
 0x53d   : > { %v1324_v61 = vpop.permute.xlu0 %1323  ;;  %v1279_v42 = vpop.permute.xlu1 %1278 }
 0x53e   : > { %v1325_v63 = vsel %vm898_vm3, %v2246_v52, %v1324_v61  ;;  %v1327_v0 = vsel %vm898_vm3, %v1324_v61, %v2245_v53  ;;  %v1280_v46 = vsel %vm848_vm7, %v2271_v32, %v1279_v42  ;;  %v1282_v47 = vsel %vm848_vm7, %v1279_v42, %v2270_v33  ;;  %v1352_v52 = vld [vmem:[%s785_s17] sm:$0xf]  ;;  %s793_s17 = scalar_lea.vmem %s3069_s9, %s2671_s23 }
 0x53f   : > { %v1348_v3 = vpack.c.bf16 %v1327_v0, %v1318_v62  ;;  %v1347_v4 = vpack.c.bf16 %v1325_v63, %v1316_v1  ;;  %v1440_v0 = vld [vmem:[%s789_s28] sm:$0xff]  ;;  %s805_s28 = scalar_lea.vmem %s3072_s12, %s2671_s23 }
 0x540   : > { %1443 = vperm.xlu1 %2272, %v1440_v0   ;;  %v1449_v1 = vld [vmem:[%s793_s17] sm:$0xff]  ;;  %s813_s17 = scalar_lea.vmem %s3075_s15, %s2625_s20 }
 0x541   : > { %1382 = vmatpush.bf16.msrb.mxu3 %v1347_v4  ;;  %1395 = vmatpush.bf16.msra.mxu0 %v1348_v3 }
 0x545   : > { %v2249_v7 = vpop.permute.xlu0 %2248 }
 0x546   : > { %v2251_v2 = vunpack.i.h.bf16 %v2249_v7  ;;  %v2250_v5 = vunpack.i.l.bf16 %v2249_v7 }
 0x548   : > { %v1308_v10 = vsel %vm878_vm4, %v2250_v5, %v2251_v2  ;;  %1452 = vperm.xlu1 %2272, %v1449_v1  }
 0x549   : > { %v1343_v11 = vpack.c.bf16 %v1308_v10, %v2802_v19  ;;  %v1291_v19 = vsel %vm858_vm6, %v1288_v8, %v2255_v22 }
 0x54b   : > { %1370 = vmatpush.bf16.msrb.mxu2 %v1343_v11 }
 0x54d   : > { %v1306_v13 = vpop.permute.xlu0 %1305 }
 0x54e   : > { %v1307_v14 = vsel %vm878_vm4, %v2251_v2, %v1306_v13  ;;  %v1309_v15 = vsel %vm878_vm4, %v1306_v13, %v2250_v5 }
 0x54f   : > { %v1345_v16 = vpack.c.bf16 %v1309_v15, %v2808_v36  ;;  %v1344_v17 = vpack.c.bf16 %v1307_v14, %v2805_v35 }
 0x551   : > { %1383 = vmatpush.bf16.msrb.mxu3 %v1344_v17  ;;  %1396 = vmatpush.bf16.msra.mxu0 %v1345_v16 }
 0x555   : > { %v2259_v27 = vpop.permute.xlu0 %2258 }
 0x556   : > { %v2261_v30 = vunpack.i.h.bf16 %v2259_v27  ;;  %v2260_v31 = vunpack.i.l.bf16 %v2259_v27 }
 0x558   : > { %v1300_v35 = vsel %vm868_vm5, %v1297_v12, %v2260_v31  ;;  %v1299_v36 = vsel %vm868_vm5, %v2260_v31, %v2261_v30  ;;  %v1298_v37 = vsel %vm868_vm5, %v2261_v30, %v1297_v12 }
 0x559   : > { %v1340_v38 = vpack.c.bf16 %v1300_v35, %v1291_v19  ;;  %v1341_v39 = vpack.c.bf16 %v1299_v36, %v1290_v18  ;;  %v1342_v40 = vpack.c.bf16 %v1298_v37, %v1289_v34  ;;  %v1463_v36 = vstv %s1459_s27 }
 0x55b   : > { %1371 = vmatpush.bf16.msrb.mxu2 %v1340_v38  ;;  %1384 = vmatpush.bf16.msrb.mxu3 %v1341_v39 }
 0x55c   : > { %1397 = vmatpush.bf16.msra.mxu0 %v1342_v40 }
 0x55d   : > { %v1270_v44 = vpop.permute.xlu0 %1269 }
 0x55e   : > { %v1271_v48 = vsel %vm838_vm8, %v2266_v28, %v1270_v44  ;;  %v1273_v49 = vsel %vm838_vm8, %v1270_v44, %v2265_v29 }
 0x55f   : > { %v1339_v50 = vpack.c.bf16 %v1280_v46, %v1271_v48  ;;  %1385 = vmatpush.bf16.msrb.mxu3 %v1338_v45  ;;  %v1337_v51 = vpack.c.bf16 %v1282_v47, %v1273_v49 }
 0x561   : > { %1372 = vmatpush.bf16.msrb.mxu2 %v1337_v51  ;;  %1398 = vmatpush.bf16.msra.mxu0 %v1339_v50 }
 0x562   : > { %2079 = vmatmul.msk.bf16.vlgmr.msrb.gmra.mxu3 %vm928_vm9, %v1352_v52 }
 0x564   : > { %2078 = vmatmul.msk.bf16.vlgmr.msrb.gmra.mxu2 %vm928_vm9, %v1352_v52  ;;  %2080 = vmatmul.msk.bf16.vlgmr.msra.gmra.mxu0 %vm928_vm9, %v1352_v52 }
 0x5b2   : > { %v1444_v28 = vpop.permute.xlu1 %1443 }
 0x5ba   : > { %v1453_v37 = vpop.permute.xlu1 %1452 }
 0x5e1   : > { %v1400_v53 = vpop.f32.mrf.mxu0 }
 0x5e2   : > { %v1406_v57 = vmul.f32 %v1400_v53, %v2661_v23 }
 0x5e5   : > { %v1387_v54 = vpop.f32.mrf.mxu3 }
 0x5e6   : > { %v1405_v55 = vmul.f32 %v1387_v54, %v2665_v25 }
 0x5e7   : > { %v1374_v56 = vpop.f32.mrf.mxu2 }
 0x5e8   : > { %v1404_v58 = vmul.f32 %v1374_v56, %v2663_v24 }
 0x5e9   : > { %v1402_v59 = vpop.f32.mrf.mxu0 }
 0x5ea   : > { %v1407_v60 = vadd.f32 %v1405_v55, %v1404_v58 }
 0x5ec   : > { %v1408_v61 = vadd.f32 %v1407_v60, %v1406_v57 }
 0x5ed   : > { %v1389_v62 = vpop.f32.mrf.mxu3 }
 0x5ee   : > { %1409 = vadd.xlane.f32.xlu0 %v1408_v61 }
 0x5ef   : > { %v1376_v63 = vpop.f32.mrf.mxu2 }
 0x661   : > { %v1410_v3 = vpop.xlane.xlu0 %1409 }
 0x662   : > { %v1411_v4 = vmul.f32 0.00390625, %v1410_v3 }
 0x664   : > { %v1412_v6 = vsub.f32 %v1374_v56, %v1411_v4  ;;  %v1413_v7 = vsub.f32 %v1387_v54, %v1411_v4  ;;  %v1414_v2 = vsub.f32 %v1400_v53, %v1411_v4 }
 0x666   : > { %v1415_v5 = vmul.f32 %v1412_v6, %v2663_v24  ;;  %v1416_v8 = vmul.f32 %v1413_v7, %v2665_v25  ;;  %v1417_v10 = vmul.f32 %v1414_v2, %v2661_v23 }
 0x668   : > { %v1418_v11 = vmul.f32 %v1415_v5, %v1415_v5  ;;  %v1419_v12 = vmul.f32 %v1416_v8, %v1416_v8  ;;  %v1420_v13 = vmul.f32 %v1417_v10, %v1417_v10 }
 0x66a   : > { %v1421_v14 = vadd.f32 %v1419_v12, %v1418_v11 }
 0x66c   : > { %v1422_v15 = vadd.f32 %v1421_v14, %v1420_v13 }
 0x66e   : > { %1423 = vadd.xlane.f32.xlu2 %v1422_v15 }
 0x6e1   : > { %v1424_v16 = vpop.xlane.xlu2 %1423 }
 0x6e2   : > { %v1425_v17 = vmul.f32 0.00390625, %v1424_v16 }
 0x6e4   : > { %v1426_v20 = vadd.f32 1e-05, %v1425_v17 }
 0x6e6   : > { %2318 = vrsqrt.f32 %v1426_v20  ;;  %vm1433_vm11 = vweird.f32 %v1426_v20 }
 0x6ec   : > { %v2319_v21 = vpop.eup %2318 }
 0x6ed   : > { %v1428_v22 = vmul.f32 %v2319_v21, %v1426_v20  ;;  %vm1434_vm10 = vweird.f32 %v2319_v21 }
 0x6ee   : > { %vm1435_vm12 = vmor %vm1433_vm11, %vm1434_vm10 }
 0x6ef   : > { %v1429_v26 = vmul.f32 %v2319_v21, %v1428_v22 }
 0x6f1   : > { %v1430_v27 = vmul.f32 0.5, %v1429_v26 }
 0x6f3   : > { %v1431_v29 = vsub.f32 1.5, %v1430_v27 }
 0x6f5   : > { %v1432_v30 = vmul.f32 %v2319_v21, %v1431_v29 }
 0x6f7   : > { %v1436_v31 = vsel %vm1435_vm12, %v2319_v21, %v1432_v30 }
 0x6f8   : > { %v1437_v32 = vmul.f32 %v1436_v31, %v1412_v6  ;;  %v1438_v33 = vmul.f32 %v1436_v31, %v1413_v7  ;;  %v1439_v34 = vmul.f32 %v1436_v31, %v1414_v2 }
 0x6fa   : > { %v1446_v18 = vmul.f32 %v1444_v28, %v1437_v32  ;;  %v1447_v19 = vmul.f32 %v1444_v28, %v1438_v33  ;;  %v1448_v35 = vmul.f32 %v1444_v28, %v1439_v34 }
 0x6fc   : > { %v1455_v38 = vadd.f32 %v1453_v37, %v1446_v18  ;;  %v1456_v39 = vadd.f32 %v1453_v37, %v1447_v19  ;;  %v1457_v40 = vadd.f32 %v1453_v37, %v1448_v35 }
 0x6fe   : > { %vm1460_vm13 = vcmp.ge.f32.partialorder %v1455_v38, 0.0  ;;  %vm1461_vm14 = vcmp.ge.f32.partialorder %v1456_v39, 0.0  ;;  %vm1462_vm15 = vcmp.ge.f32.partialorder %v1457_v40, 0.0  ;;  %v1464_v41 = vmul.f32 %v1463_v36, %v1455_v38 }
 0x6ff   : > { %v1465_v42 = vmul.f32 %v1463_v36, %v1456_v39  ;;  %v1466_v43 = vmul.f32 %v1463_v36, %v1457_v40 }
 0x700   : > { %v1467_v44 = vsel %vm1460_vm13, %v1455_v38, %v1464_v41 }
 0x701   : > { %v1468_v45 = vsel %vm1461_vm14, %v1456_v39, %v1465_v42  ;;  %v1469_v46 = vsel %vm1462_vm15, %v1457_v40, %v1466_v43  ;;  %v2913_v47 = vmul.f32 %v1467_v44, %v2663_v24 }
 0x702   : > { %v2916_v48 = vmul.f32 %v1468_v45, %v2665_v25  ;;  %v2919_v49 = vmul.f32 %v1469_v46, %v2661_v23 }
 0x703   : > { %1518 = vrot.lane.b32.xlu2 %v2913_v47, %s3119_s0 }
 0x704   : > { %v2283_v50 = vpack.i.bf16 %v2919_v49, %v2916_v48  ;;  %v2298_v51 = vpack.i.bf16 %v2916_v48, %v2913_v47 }
 0x706   : > { %2284 = vrot.lane.b32.xlu0 %v2283_v50, %s3116_s29  ;;  %2274 = vrot.lane.b32.xlu1 %v2283_v50, %s3115_s22 }
 0x70b   : > { %2299 = vrot.lane.b32.xlu2 %v2298_v51, %s3117_s19 }
 0x70e   : > { %1509 = vrot.lane.b32.xlu0 %v2913_v47, %s3122_s13  ;;  %1536 = vrot.lane.b32.xlu1 %v2913_v47, %s3115_s22  ;;  %s3123_s22 = sld [smem:[#allocation16_spill]] }
 0x713   : > { %2304 = vrot.lane.b32.xlu2 %v2298_v51, %s3121_s3 }
 0x716   : > { %1495 = vrot.lane.b32.xlu0 %v2919_v49, %s3118_s21  ;;  %2279 = vrot.lane.b32.xlu1 %v2283_v50, %s3119_s0 }
 0x71b   : > { %1486 = vrot.lane.b32.xlu2 %v2919_v49, %s3120_s2 }
 0x71e   : > { %2309 = vrot.lane.b32.xlu0 %v2298_v51, %s3120_s2  ;;  %1527 = vrot.lane.b32.xlu1 %v2913_v47, %s3116_s29 }
 0x726   : > { %2289 = vrot.lane.b32.xlu1 %v2283_v50, %s3122_s13  ;;  %s797_s13 = scalar_lea.vmem %s3070_s10, %s2625_s20  ;;  %s1666_s20 = sadd.s32 3, %s2685_s1 }
 0x727   : > { %s2067_s1 = sshll.u32 %s2618_s18, 1  ;;  %s2069_s18 = sshll.u32 %s2375_s24, 1 }
 0x728   : > { %s809_s2 = scalar_lea.vmem %s3074_s14, %s2067_s1 }
 0x72e   : > { %2294 = vrot.lane.b32.xlu1 %v2298_v51, %s3118_s21 }
 0x736   : > { %1504 = vrot.lane.b32.xlu1 %v2919_v49, %s3117_s19  ;;  %s801_s19 = scalar_lea.vmem %s3071_s11, %s2671_s23  ;;  %s1667_s23 = sld [smem:[#allocation2 + %s1666_s20]] }
 0x73e   : > { %1477 = vrot.lane.b32.xlu1 %v2919_v49, %s3121_s3  ;;  %s815_s3 = sadd.s32 %s2379_s25, %s2069_s18 }
 0x73f   : > { %p816_p10 = scmp.lt.s32.totalorder %s815_s3, 5 }
 0x741   : > { %s3136_s3 = smov (!%p816_p10, %s815_s3), 5 }
 0x742   : > { %s2090_s24 = smul.u32 12, %s3136_s3 }
 0x744   : > { %s820_s29 = scalar_lea.vmem %s3123_s22, %s2090_s24 }
 0x75d   : > { %v1519_v11 = vpop.permute.xlu2 %1518 }
 0x765   : > { %v2300_v26 = vpop.permute.xlu2 %2299 }
 0x766   : > { %v2302_v35 = vunpack.i.h.bf16 %v2300_v26  ;;  %v2301_v36 = vunpack.i.l.bf16 %v2300_v26 }
 0x768   : > { %v1507_v46 = vsel %vm868_vm5, %v2301_v36, %v2302_v35 }
 0x76d   : > { %v2305_v37 = vpop.permute.xlu2 %2304 }
 0x76e   : > { %v2307_v43 = vunpack.i.h.bf16 %v2305_v37  ;;  %v2306_v44 = vunpack.i.l.bf16 %v2305_v37 }
 0x778   : > { %v2275_v52 = vpop.permute.xlu1 %2274  ;;  %v2285_v58 = vpop.permute.xlu0 %2284 }
 0x779   : > { %v2277_v53 = vunpack.i.h.bf16 %v2275_v52  ;;  %v2276_v54 = vunpack.i.l.bf16 %v2275_v52  ;;  %v2287_v3 = vunpack.i.h.bf16 %v2285_v58  ;;  %v2286_v4 = vunpack.i.l.bf16 %v2285_v58  ;;  %v1560_v58 = vld [vmem:[%s797_s13] sm:$0xf] }
 0x77b   : > { %v1542_v55 = vsel %vm908_vm0, %v2276_v54, %v2277_v53  ;;  %v1533_v10 = vsel %vm898_vm3, %v2286_v4, %v2287_v3 }
 0x77c   : > { %v1558_v56 = vpack.c.bf16 %v1542_v55, %v1542_v55 }
 0x77e   : > { %v1568_v57 = vsel %vm932_vm1, %v1558_v56, 0 }
 0x77f   : > { %1589 = vmatpush.bf16.msra.mxu2 %v1568_v57 }
 0x780   : > { %v1537_v59 = vpop.permute.xlu1 %1536  ;;  %v1510_v5 = vpop.permute.xlu0 %1509 }
 0x781   : > { %v1543_v60 = vsel %vm908_vm0, %v1537_v59, %v2276_v54  ;;  %v1544_v61 = vsel %vm908_vm0, %v2277_v53, %v1537_v59  ;;  %v1487_v59 = vpop.permute.xlu2 %1486 }
 0x782   : > { %v1557_v62 = vpack.c.bf16 %v1543_v60, %v1543_v60  ;;  %v1559_v63 = vpack.c.bf16 %v1544_v61, %v1544_v61 }
 0x784   : > { %v1565_v0 = vsel %vm932_vm1, %v1557_v62, 0  ;;  %v1571_v1 = vsel %vm932_vm1, %v1559_v63, 0 }
 0x785   : > { %1576 = vmatpush.bf16.msra.mxu1 %v1565_v0  ;;  %1602 = vmatpush.bf16.msra.mxu3 %v1571_v1 }
 0x788   : > { %v2280_v6 = vpop.permute.xlu1 %2279  ;;  %v1496_v22 = vpop.permute.xlu0 %1495 }
 0x789   : > { %v2282_v7 = vunpack.i.h.bf16 %v2280_v6  ;;  %v2281_v2 = vunpack.i.l.bf16 %v2280_v6 }
 0x78b   : > { %v1524_v8 = vsel %vm888_vm2, %v2281_v2, %v2282_v7  ;;  %v1525_v14 = vsel %vm888_vm2, %v1519_v11, %v2281_v2  ;;  %v1526_v15 = vsel %vm888_vm2, %v2282_v7, %v1519_v11 }
 0x78c   : > { %v1555_v12 = vpack.c.bf16 %v1533_v10, %v1524_v8 }
 0x78e   : > { %1590 = vmatpush.bf16.msra.mxu2 %v1555_v12 }
 0x790   : > { %v1528_v13 = vpop.permute.xlu1 %1527  ;;  %v2310_v19 = vpop.permute.xlu0 %2309 }
 0x791   : > { %v1534_v16 = vsel %vm898_vm3, %v1528_v13, %v2286_v4  ;;  %v1535_v17 = vsel %vm898_vm3, %v2287_v3, %v1528_v13  ;;  %v2312_v39 = vunpack.i.h.bf16 %v2310_v19  ;;  %v2311_v40 = vunpack.i.l.bf16 %v2310_v19 }
 0x792   : > { %v1554_v20 = vpack.c.bf16 %v1534_v16, %v1525_v14  ;;  %v1556_v21 = vpack.c.bf16 %v1535_v17, %v1526_v15  ;;  %v1648_v14 = vld [vmem:[%s801_s19] sm:$0xff] }
 0x793   : > { %v1488_v61 = vsel %vm848_vm7, %v2312_v39, %v1487_v59  ;;  %v1490_v62 = vsel %vm848_vm7, %v1487_v59, %v2311_v40  ;;  %1651 = vperm.xlu2 %2313, %v1648_v14   ;;  %v1657_v15 = vld [vmem:[%s805_s28] sm:$0xff] }
 0x794   : > { %1577 = vmatpush.bf16.msra.mxu1 %v1554_v20  ;;  %1603 = vmatpush.bf16.msra.mxu3 %v1556_v21  ;;  %v1685_v16 = vld [vmem:[%s813_s17] sm:$0xf] }
 0x798   : > { %v2290_v27 = vpop.permute.xlu1 %2289 }
 0x799   : > { %v2292_v28 = vunpack.i.h.bf16 %v2290_v27  ;;  %v2291_v29 = vunpack.i.l.bf16 %v2290_v27 }
 0x79b   : > { %v1516_v30 = vsel %vm878_vm4, %v1510_v5, %v2291_v29  ;;  %v1515_v31 = vsel %vm878_vm4, %v2291_v29, %v2292_v28  ;;  %v1517_v32 = vsel %vm878_vm4, %v2292_v28, %v1510_v5  ;;  %1660 = vperm.xlu2 %2313, %v1657_v15  }
 0x79c   : > { %v1551_v33 = vpack.c.bf16 %v1516_v30, %v2913_v47  ;;  %v1552_v34 = vpack.c.bf16 %v1515_v31, %v2916_v48  ;;  %v1553_v18 = vpack.c.bf16 %v1517_v32, %v2919_v49  ;;  %v1489_v48 = vsel %vm848_vm7, %v2311_v40, %v2312_v39 }
 0x79d   : > { %v1480_v49 = vsel %vm838_vm8, %v2306_v44, %v2307_v43  ;;  %vm1691_vm7 = vcmask 64512  }
 0x79e   : > { %1578 = vmatpush.bf16.msra.mxu1 %v1551_v33  ;;  %1591 = vmatpush.bf16.msra.mxu2 %v1552_v34  ;;  %v1546_v51 = vpack.c.bf16 %v1489_v48, %v1480_v49 }
 0x79f   : > { %1604 = vmatpush.bf16.msra.mxu3 %v1553_v18 }
 0x7a0   : > { %v2295_v38 = vpop.permute.xlu1 %2294 }
 0x7a1   : > { %v2297_v41 = vunpack.i.h.bf16 %v2295_v38  ;;  %v2296_v42 = vunpack.i.l.bf16 %v2295_v38 }
 0x7a3   : > { %v1498_v45 = vsel %vm858_vm6, %v2296_v42, %v2297_v41  ;;  %v1497_v52 = vsel %vm858_vm6, %v2297_v41, %v1496_v22  ;;  %v1499_v53 = vsel %vm858_vm6, %v1496_v22, %v2296_v42  ;;  %1688 = vperm.xlu2 %2313, %v1685_v16  }
 0x7a4   : > { %v1549_v47 = vpack.c.bf16 %v1507_v46, %v1498_v45 }
 0x7a6   : > { %1592 = vmatpush.bf16.msra.mxu2 %v1549_v47 }
 0x7a8   : > { %v1505_v50 = vpop.permute.xlu1 %1504 }
 0x7a9   : > { %v1506_v54 = vsel %vm868_vm5, %v2302_v35, %v1505_v50  ;;  %v1508_v55 = vsel %vm868_vm5, %v1505_v50, %v2301_v36  ;;  %v1671_v50 = vstv %s1667_s23 }
 0x7aa   : > { %v1548_v56 = vpack.c.bf16 %v1508_v55, %v1499_v53  ;;  %v1550_v57 = vpack.c.bf16 %v1506_v54, %v1497_v52  ;;  %1593 = vmatpush.bf16.msra.mxu2 %v1546_v51 }
 0x7ac   : > { %1579 = vmatpush.bf16.msra.mxu1 %v1548_v56  ;;  %1605 = vmatpush.bf16.msra.mxu3 %v1550_v57 }
 0x7ad   : > { %2082 = vmatmul.msk.bf16.vlgmr.msra.gmra.mxu2 %vm928_vm9, %v1560_v58 }
 0x7b0   : > { %v1478_v60 = vpop.permute.xlu1 %1477 }
 0x7b1   : > { %v1479_v63 = vsel %vm838_vm8, %v2307_v43, %v1478_v60  ;;  %v1481_v0 = vsel %vm838_vm8, %v1478_v60, %v2306_v44 }
 0x7b2   : > { %v1545_v1 = vpack.c.bf16 %v1490_v62, %v1481_v0  ;;  %v1547_v3 = vpack.c.bf16 %v1488_v61, %v1479_v63 }
 0x7b4   : > { %1580 = vmatpush.bf16.msra.mxu1 %v1545_v1  ;;  %1606 = vmatpush.bf16.msra.mxu3 %v1547_v3 }
 0x7b7   : > { %2081 = vmatmul.msk.bf16.vlgmr.msra.gmra.mxu1 %vm928_vm9, %v1560_v58  ;;  %2083 = vmatmul.msk.bf16.vlgmr.msra.gmra.mxu3 %vm928_vm9, %v1560_v58 }
 0x7ed   : > { %v1652_v40 = vpop.permute.xlu2 %1651 }
 0x7f5   : > { %v1661_v51 = vpop.permute.xlu2 %1660 }
 0x830   : > { %v1595_v4 = vpop.f32.mrf.mxu2 }
 0x831   : > { %v1613_v7 = vmul.f32 %v1595_v4, %v2665_v25 }
 0x834   : > { %v1582_v6 = vpop.f32.mrf.mxu1 }
 0x835   : > { %v1612_v2 = vmul.f32 %v1582_v6, %v2663_v24 }
 0x837   : > { %v1615_v9 = vadd.f32 %v1613_v7, %v1612_v2  ;;  %v1681_v7 = vld [vmem:[%s809_s2] sm:$0x3] }
 0x838   : > { %v1597_v5 = vpop.f32.mrf.mxu2 }
 0x83a   : > { %v1608_v8 = vpop.f32.mrf.mxu3 }
 0x83b   : > { %v1614_v10 = vmul.f32 %v1608_v8, %v2661_v23 }
 0x83c   : > { %v1584_v11 = vpop.f32.mrf.mxu1 }
 0x83d   : > { %v1616_v12 = vadd.f32 %v1615_v9, %v1614_v10 }
 0x83f   : > { %1617 = vadd.xlane.f32.xlu0 %v1616_v12 }
 0x842   : > { %v1610_v13 = vpop.f32.mrf.mxu3 }
 0x8b2   : > { %v1618_v17 = vpop.xlane.xlu0 %1617 }
 0x8b3   : > { %v1619_v20 = vmul.f32 0.00390625, %v1618_v17 }
 0x8b5   : > { %v1620_v21 = vsub.f32 %v1582_v6, %v1619_v20  ;;  %v1621_v22 = vsub.f32 %v1595_v4, %v1619_v20  ;;  %v1622_v26 = vsub.f32 %v1608_v8, %v1619_v20 }
 0x8b7   : > { %v1623_v27 = vmul.f32 %v1620_v21, %v2663_v24  ;;  %v1624_v28 = vmul.f32 %v1621_v22, %v2665_v25  ;;  %v1625_v29 = vmul.f32 %v1622_v26, %v2661_v23 }
 0x8b9   : > { %v1626_v30 = vmul.f32 %v1623_v27, %v1623_v27  ;;  %v1627_v31 = vmul.f32 %v1624_v28, %v1624_v28  ;;  %v1628_v32 = vmul.f32 %v1625_v29, %v1625_v29 }
 0x8bb   : > { %v1629_v33 = vadd.f32 %v1627_v31, %v1626_v30 }
 0x8bd   : > { %v1630_v34 = vadd.f32 %v1629_v33, %v1628_v32 }
 0x8bf   : > { %1631 = vadd.xlane.f32.xlu1 %v1630_v34 }
 0x932   : > { %v1632_v18 = vpop.xlane.xlu1 %1631 }
 0x933   : > { %v1633_v19 = vmul.f32 0.00390625, %v1632_v18 }
 0x935   : > { %v1634_v35 = vadd.f32 1e-05, %v1633_v19 }
 0x937   : > { %2320 = vrsqrt.f32 %v1634_v35  ;;  %vm1641_vm2 = vweird.f32 %v1634_v35 }
 0x93d   : > { %v2321_v36 = vpop.eup %2320 }
 0x93e   : > { %v1636_v37 = vmul.f32 %v2321_v36, %v1634_v35  ;;  %vm1642_vm0 = vweird.f32 %v2321_v36 }
 0x93f   : > { %vm1643_vm3 = vmor %vm1641_vm2, %vm1642_vm0 }
 0x940   : > { %v1637_v38 = vmul.f32 %v2321_v36, %v1636_v37 }
 0x942   : > { %v1638_v39 = vmul.f32 0.5, %v1637_v38 }
 0x944   : > { %v1639_v41 = vsub.f32 1.5, %v1638_v39 }
 0x946   : > { %v1640_v42 = vmul.f32 %v2321_v36, %v1639_v41 }
 0x948   : > { %v1644_v43 = vsel %vm1643_vm3, %v2321_v36, %v1640_v42 }
 0x949   : > { %v1645_v44 = vmul.f32 %v1644_v43, %v1620_v21  ;;  %v1646_v45 = vmul.f32 %v1644_v43, %v1621_v22  ;;  %v1647_v46 = vmul.f32 %v1644_v43, %v1622_v26 }
 0x94b   : > { %v1654_v47 = vmul.f32 %v1652_v40, %v1645_v44  ;;  %v1655_v48 = vmul.f32 %v1652_v40, %v1646_v45  ;;  %v1656_v49 = vmul.f32 %v1652_v40, %v1647_v46 }
 0x94d   : > { %v1663_v52 = vadd.f32 %v1661_v51, %v1654_v47  ;;  %v1664_v53 = vadd.f32 %v1661_v51, %v1655_v48  ;;  %v1665_v54 = vadd.f32 %v1661_v51, %v1656_v49 }
 0x94f   : > { %vm1668_vm4 = vcmp.ge.f32.partialorder %v1663_v52, 0.0  ;;  %vm1669_vm5 = vcmp.ge.f32.partialorder %v1664_v53, 0.0  ;;  %vm1670_vm6 = vcmp.ge.f32.partialorder %v1665_v54, 0.0  ;;  %v1672_v55 = vmul.f32 %v1671_v50, %v1663_v52 }
 0x950   : > { %v1673_v56 = vmul.f32 %v1671_v50, %v1664_v53  ;;  %v1674_v57 = vmul.f32 %v1671_v50, %v1665_v54 }
 0x951   : > { %v1675_v58 = vsel %vm1668_vm4, %v1663_v52, %v1672_v55 }
 0x952   : > { %v1678_v59 = vmul.f32 %v1675_v58, %v2663_v24  ;;  %v1676_v60 = vsel %vm1669_vm5, %v1664_v53, %v1673_v56  ;;  %v1677_v61 = vsel %vm1670_vm6, %v1665_v54, %v1674_v57 }
 0x953   : > { %v1679_v62 = vmul.f32 %v1676_v60, %v2665_v25  ;;  %v1680_v63 = vmul.f32 %v1677_v61, %v2661_v23  ;;  %v1689_v23 = vpop.permute.xlu2 %1688 }
 0x954   : > { %v1682_v0 = vpack.c.bf16 %v1678_v59, %v1678_v59 }
 0x955   : > { %v1683_v1 = vpack.c.bf16 %v1679_v62, %v1679_v62  ;;  %v1684_v3 = vpack.c.bf16 %v1680_v63, %v1680_v63 }
 0x956   : > { %v1696_v4 = vsel %vm932_vm1, %v1682_v0, 0 }
 0x957   : > { %1711 = vmatpush.bf16.msrb.mxu0 %v1696_v4  ;;  %v1699_v6 = vsel %vm932_vm1, %v1683_v1, 0  ;;  %v1702_v24 = vsel %vm932_vm1, %v1684_v3, 0 }
 0x958   : > { %1724 = vmatpush.bf16.msrb.mxu1 %v1699_v6  ;;  %1737 = vmatpush.bf16.msrb.mxu2 %v1702_v24 }
 0x95a   : > { %2084 = vmatmul.msk.bf16.vlgmr.msrb.gmra.mxu0 %vm1691_vm7, %v1681_v7 }
 0x95b   : > { %2085 = vmatmul.msk.bf16.vlgmr.msrb.gmra.mxu1 %vm1691_vm7, %v1681_v7  ;;  %2086 = vmatmul.msk.bf16.vlgmr.msrb.gmra.mxu2 %vm1691_vm7, %v1681_v7 }
 0x9d7   : > { %v1713_v25 = vpop.f32.mrf.mxu0 }
 0x9d8   : > { %v1714_v2 = vadd.f32 %v1713_v25, %v1689_v23  ;;  %v1726_v5 = vpop.f32.mrf.mxu1 }
 0x9d9   : > { %v1727_v9 = vadd.f32 %v1726_v5, %v1689_v23 }
 0x9da   : > { %v1746_v8 = vmin.f32 %v1714_v2, 20.0  ;;  %vm1743_vm11 = vcmp.gt.f32.partialorder %v1714_v2, 20.0 }
 0x9db   : > { %v1747_v10 = vmin.f32 %v1727_v9, 20.0  ;;  %vm1744_vm10 = vcmp.gt.f32.partialorder %v1727_v9, 20.0 }
 0x9dc   : > { %v1749_v11 = vmul.f32 1.442695, %v1746_v8 }
 0x9dd   : > { %v1751_v12 = vmul.f32 1.442695, %v1747_v10 }
 0x9de   : > { %2322 = vpow2.f32 %v1749_v11  ;;  %v1739_v13 = vpop.f32.mrf.mxu2 }
 0x9df   : > { %2324 = vpow2.f32 %v1751_v12  ;;  %v1740_v14 = vadd.f32 %v1739_v13, %v1689_v23  ;;  %v1715_v15 = vpop.f32.mrf.mxu0 }
 0x9e0   : > { %v1728_v16 = vpop.f32.mrf.mxu1 }
 0x9e1   : > { %v1748_v17 = vmin.f32 %v1740_v14, 20.0  ;;  %vm1745_vm13 = vcmp.gt.f32.partialorder %v1740_v14, 20.0 }
 0x9e3   : > { %v1753_v20 = vmul.f32 1.442695, %v1748_v17 }
 0x9e4   : > { %v2323_v21 = vpop.eup %2322 }
 0x9e5   : > { %v2325_v22 = vpop.eup %2324  ;;  %v1755_v26 = vadd.f32 1.0, %v2323_v21  ;;  %2326 = vpow2.f32 %v1753_v20  ;;  %v1758_v29 = vmul.f32 -0.5, %v2323_v21  ;;  %v1761_v34 = vand.u32 2147483647, %v2323_v21 }
 0x9e6   : > { %v1764_v27 = vadd.f32 1.0, %v2325_v22  ;;  %v1741_v28 = vpop.f32.mrf.mxu2  ;;  %v1767_v30 = vmul.f32 -0.5, %v2325_v22  ;;  %v1770_v18 = vand.u32 2147483647, %v2325_v22 }
 0x9e7   : > { %2328 = vlog2.f32 %v1755_v26  ;;  %v1759_v32 = vadd.f32 1.0, %v1758_v29  ;;  %vm1762_vm8 = vcmp.lt.f32.partialorder %v1761_v34, 0.0004427343 }
 0x9e8   : > { %2330 = vlog2.f32 %v1764_v27  ;;  %v1768_v33 = vadd.f32 1.0, %v1767_v30  ;;  %vm1771_vm9 = vcmp.lt.f32.partialorder %v1770_v18, 0.0004427343 }
 0x9e9   : > { %v1760_v39 = vmul.f32 %v2323_v21, %v1759_v32 }
 0x9ea   : > { %v1769_v41 = vmul.f32 %v2325_v22, %v1768_v33 }
 0x9eb   : > { %v2327_v31 = vpop.eup %2326 }
 0x9ec   : > { %v1773_v19 = vadd.f32 1.0, %v2327_v31  ;;  %v1776_v36 = vmul.f32 -0.5, %v2327_v31  ;;  %v1779_v46 = vand.u32 2147483647, %v2327_v31 }
 0x9ed   : > { %v2329_v35 = vpop.eup %2328 }
 0x9ee   : > { %v2331_v37 = vpop.eup %2330  ;;  %v1757_v38 = vmul.f32 0.6931472, %v2329_v35  ;;  %2332 = vlog2.f32 %v1773_v19  ;;  %v1777_v44 = vadd.f32 1.0, %v1776_v36  ;;  %vm1780_vm12 = vcmp.lt.f32.partialorder %v1779_v46, 0.0004427343 }
 0x9ef   : > { %v1766_v40 = vmul.f32 0.6931472, %v2331_v37 }
 0x9f0   : > { %v1763_v42 = vsel %vm1762_vm8, %v1760_v39, %v1757_v38  ;;  %v1778_v51 = vmul.f32 %v2327_v31, %v1777_v44 }
 0x9f1   : > { %v1772_v43 = vsel %vm1771_vm9, %v1769_v41, %v1766_v40  ;;  %v1782_v49 = vsel %vm1743_vm11, %v1714_v2, %v1763_v42 }
 0x9f2   : > { %v1783_v45 = vsel %vm1744_vm10, %v1727_v9, %v1772_v43 }
 0x9f3   : > { %v1787_v47 = vrot.slane %v1783_v45, 4 }
 0x9f4   : > { %v2333_v48 = vpop.eup %2332 }
 0x9f5   : > { %v1775_v50 = vmul.f32 0.6931472, %v2333_v48  ;;  %v1788_v52 = vsel %vm932_vm1, %v1782_v49, %v1787_v47 }
 0x9f6   : > { %1790 = vst [vmem:[%s820_s29] sm:$0xff] %v1788_v52 }
 0x9f7   : > { %v1781_v53 = vsel %vm1780_vm12, %v1778_v51, %v1775_v50 }
 0x9f8   : > { %v1784_v54 = vsel %vm1745_vm13, %v1740_v14, %v1781_v53 }
 0x9f9   : > { %1791 = vst [vmem:[%s820_s29 + $0x8] sm:$0xf] %v1784_v54 }
 0x9fa PF: > { %s3124_s19 = sld [smem:[#allocation7_spill]] }
 0x9fb   : > { %s3125_s24 = sld [smem:[#allocation5_spill]] }
 0x9fc   : > { %s3126_s25 = sld [smem:[#allocation6_spill]] }
 0x9fd   : > { %s3127_s26 = sld [smem:[#allocation8_spill]] }
 0x9fe   : > { %s3128_s27 = sld [smem:[#allocation9_spill]] }
 0xa00   : > { %s28_s28 = sadd.s32 1, %s3124_s19  }
 0xa01   : > { %p25_p11 = scmp.ge.s32.totalorder %s28_s28, 8  }
 0xa03   :  { %27 = sbr.rel (!%p25_p11) target bundleno = 11 (0xb), region = 165 }
 0xa08   :  { %1819 = vsyncpa [#allocation3], 1 }
 0xa09   :  { %1821 = vsyncpa [#allocation3 + $0x1], 1 }

</bundles_post_ra>
